<compile_context>
chip_gen: v6e
topology: v6e:2x2x1
jax: 0.10.0
libtpu: 0.0.40
codegen_flags: <defaults>
</compile_context>

<pallas_src>
import functools
import math

import numpy as np
import jax
import jax.numpy as jnp
from jax import lax
from jax.experimental import pallas as pl
from jax.experimental.pallas import tpu as pltpu


def _swish(x):
    # swish(x) = x*sigmoid(x) = 0.5*x*(1+tanh(x/2)); guarantees a single EUP op (tanh) per element
    # instead of a possible exp+add+reciprocal sigmoid lowering.
    return 0.5 * x * (1.0 + jnp.tanh(0.5 * x))


# ----------------------------------------------------------------------------
# Kernel: one grid step per (batch, query-tile). Hot work inside: location MLP (VPU/EUP),
# per-head masked softmax over keys (lane axis), attention*V and output projection (MXU).
# ----------------------------------------------------------------------------
def _eqv_mha_kernel(pg_ref, q_ref, kt_ref, vt_ref, mask_ref,
                    wout_ref, bout_ref,
                    w1_ref, b1_ref, w2_ref, b2_ref, w3_ref, b3_ref,
                    out_ref, *, approx_recip=True):
    f32 = jnp.float32
    G = pg_ref.shape[1]
    H = q_ref.shape[1]
    HID = w2_ref.shape[0]
    TQ = q_ref.shape[2]
    C_OUT = wout_ref.shape[2]

    # ---- location kernel (MultiheadWeightNet): channel-major swish MLP on (TQ, N) tiles ----
    # Keys on lanes -> dense vregs; tiny G/HID/H contractions run as SMEM-scalar x tile VPU FMAs
    # plus EUP tanh. Streamed through accumulators so at most ~(HID + max(G,H) + 2) tiles are live
    # at once (never two full layers).
    pg = [pg_ref[0, g].astype(f32) for g in range(G)]            # G x (TQ, N), f32 compute
    pre2 = [None] * HID
    for c in range(HID):
        t = pg[0] * w1_ref[0, c]
        for g in range(1, G):
            t = t + pg[g] * w1_ref[g, c]
        h1_c = _swish(t + b1_ref[c])
        for d in range(HID):
            w = w2_ref[c, d]
            pre2[d] = h1_c * w if pre2[d] is None else pre2[d] + h1_c * w
    locp = [None] * H
    for d in range(HID):
        h2_d = _swish(pre2[d] + b2_ref[d])
        pre2[d] = None                                           # release layer-2 preactivation
        for h in range(H):
            w = w3_ref[d, h]
            locp[h] = h2_d * w if locp[h] is None else locp[h] + h2_d * w
    loc = [_swish(locp[h] + b3_ref[h]) for h in range(H)]        # H x (TQ, N), f32

    # ---- per-head: dot-product kernel + masked softmax (keys on lanes) + value aggregation ----
    neg_big = jnp.float32(-1e38)
    valid = mask_ref[0] > 0.5                                    # (1, N); broadcasts over queries
    acc = jnp.zeros((TQ, C_OUT), f32)
    for h in range(H):
        qh = q_ref[0, h]                                         # (TQ, dk), already 1/sqrt(dk)-scaled
        sc = jnp.dot(qh, kt_ref[0, h], preferred_element_type=f32)          # (TQ, N)
        # Fully-masked rows give a uniform softmax over -1e38 logits, matching the torch module.
        logits = jnp.where(valid, sc + loc[h], neg_big)
        mx = jnp.max(logits, axis=-1, keepdims=True)
        e = jnp.exp(logits - mx)
        s = jnp.sum(e, axis=-1, keepdims=True)
        if approx_recip:
            attn = e * pl.reciprocal(s, approx=True)             # rows sum to 1 up to ~1e-3
        else:
            attn = e / s
        vt = vt_ref[0, h]                                        # (dv, N), keys on lanes
        oh = lax.dot_general(attn.astype(vt.dtype), vt, (((1,), (1,)), ((), ())),
                             preferred_element_type=f32)         # (TQ, dv)
        # Per-head accumulation (instead of concat + one (C_OUT,C_OUT) matmul): keeps only one
        # lane-padded (TQ, dv) value live at a time; the MXU has slack so the narrow K is fine.
        acc = acc + jnp.dot(oh, wout_ref[h], preferred_element_type=f32)    # (TQ, C_OUT)

    # TODO(synk): optionally present a lane-dense (>=128-wide) output slab if profiling shows
    # masked-vst overhead on the (TQ, C_OUT=32) store.
    out_ref[0] = (acc + bout_ref[...]).astype(out_ref.dtype)


def _pick_query_tile(n, g, hid, n_heads, dk, dv, pg_isz, mxu_isz, budget_bytes, align, cap=None):
    """Largest query tile whose in-kernel working set fits an explicit VMEM byte model."""
    lane = 128
    pad = lambda x, m: ((x + m - 1) // m) * m
    n_lane = pad(n, lane)
    # bytes whose VMEM footprint scales with the query-tile size (per query row, padded layout)
    per_row = (
        2 * g * n_lane * pg_isz                 # pairwise_g block (double-buffered)
        + (g + hid + 2) * n_lane * 4            # streamed location-MLP live tiles (f32)
        + (n_heads + 4) * n_lane * 4            # per-head loc tiles + softmax transients (f32)
        + 2 * n_heads * lane * mxu_isz          # per-head query block (dk lane-padded, dbl-buffered)
        + 4 * lane * 4                          # output block + accumulator (C_OUT lane-padded)
    )
    fixed = (
        2 * n_heads * (pad(dk, 8) + pad(dv, 8)) * n_lane * mxu_isz   # K^T / V^T blocks (dbl-buffered)
        + 2 * 8 * n_lane * 4                                          # key mask block
        + (3 << 20)                                                   # weights + compiler scratch headroom
    )
    tq = max(budget_bytes - fixed, per_row) // per_row
    if cap is not None:
        tq = min(tq, cap)
    tq = int(min(n, max(1, tq)))
    if tq < n:
        tq = max((tq // align) * align, align)   # second-to-last block dim: multiple of 8 (16 for bf16)
        while tq > align and n % tq:
            tq -= align
        if n % tq or tq % align:
            tq = n                               # fall back to a single query tile per batch row
    return tq


def eqv_multihead_attention(pairwise_g, coset_functions, mask, params, n_heads,
                            max_tq=None, bf16_inputs=False, approx_recip=True):
    """Pallas forward. Returns (pairwise_g, new_coset_functions, mask) like the torch module."""
    B, N, _, G = pairwise_g.shape
    C_IN = coset_functions.shape[-1]
    C_OUT = params["w_out"].shape[0]
    HID = params["w1"].shape[1]
    H = n_heads
    dk = C_IN // H
    dv = C_OUT // H
    f32 = jnp.float32
    in_dt = jnp.bfloat16 if bf16_inputs else f32
    in_isz = 2 if bf16_inputs else 4

    # ---- hoisted full-width Q/K/V projections (one XLA matmul each) ----
    # Query-tile invariant, so doing them once here removes the per-tile K/V recompute and the
    # narrow per-head projection matmuls from the kernel. 1/sqrt(dk) folded into W_q / b_q.
    inv = 1.0 / math.sqrt(dk)
    q = coset_functions @ (params["w_q"] * inv) + params["b_q"][0] * inv
    k = coset_functions @ params["w_k"] + params["b_k"][0]
    v = coset_functions @ params["w_in"] + params["b_in"][0]
    q_h = jnp.transpose(q.reshape(B, N, H, dk), (0, 2, 1, 3)).astype(in_dt)   # (B, H, N, dk)
    k_t = jnp.transpose(k.reshape(B, N, H, dk), (0, 2, 3, 1)).astype(in_dt)   # (B, H, dk, N) keys on lanes
    v_t = jnp.transpose(v.reshape(B, N, H, dv), (0, 2, 3, 1)).astype(in_dt)   # (B, H, dv, N) keys on lanes

    # keys-on-lanes layout for the pairwise group elements and the key mask (layout plumbing only)
    pg_t = jnp.transpose(pairwise_g, (0, 3, 1, 2)).astype(in_dt)              # (B, G, N_q, N_k)
    mask_f = mask.astype(f32)[:, None, :]                                      # (B, 1, N)

    # output projection as per-head slabs; tiny location-MLP weights go to SMEM (scalar reads)
    wout = params["w_out"].reshape(H, dv, C_OUT).astype(f32)
    bout = params["b_out"].reshape(1, C_OUT).astype(f32)
    w1 = params["w1"].astype(f32); b1 = params["b1"].reshape(HID).astype(f32)
    w2 = params["w2"].astype(f32); b2 = params["b2"].reshape(HID).astype(f32)
    w3 = params["w3"].astype(f32); b3 = params["b3"].reshape(H).astype(f32)

    # ---- VMEM budget (per-generation) and query tile size ----
    try:
        vmem_cap = int(pltpu.get_tpu_info().vmem_capacity_bytes)
    except Exception:
        vmem_cap = 128 * 1024 * 1024
    vmem_limit = (vmem_cap * 4) // 5          # ~80% of physical (~100 MiB v5e/v6e, ~51 MiB v7x)
    budget = (vmem_limit * 9) // 10           # leave compiler-scratch headroom inside the limit
    align = 16 if bf16_inputs else 8
    cap = max_tq if max_tq is not None else 256
    TQ = _pick_query_tile(N, G, HID, H, dk, dv, in_isz, in_isz, budget, align, cap=cap)

    vmem_weights = [wout, bout]
    smem_weights = [w1, b1, w2, b2, w3, b3]

    def _full_vmem_spec(a):
        nd = a.ndim
        return pl.BlockSpec(a.shape, lambda b, qi, _nd=nd: (0,) * _nd)

    in_specs = [
        pl.BlockSpec((1, G, TQ, N), lambda b, qi: (b, 0, qi, 0)),    # pairwise_g, keys on lanes
        pl.BlockSpec((1, H, TQ, dk), lambda b, qi: (b, 0, qi, 0)),   # per-head queries (this tile)
        pl.BlockSpec((1, H, dk, N), lambda b, qi: (b, 0, 0, 0)),     # per-head keys^T (whole batch row)
        pl.BlockSpec((1, H, dv, N), lambda b, qi: (b, 0, 0, 0)),     # per-head values^T
        pl.BlockSpec((1, 1, N), lambda b, qi: (b, 0, 0)),            # key mask
    ]
    in_specs += [_full_vmem_spec(a) for a in vmem_weights]
    in_specs += [pl.BlockSpec(memory_space=pltpu.MemorySpace.SMEM) for _ in smem_weights]

    out = pl.pallas_call(
        functools.partial(_eqv_mha_kernel, approx_recip=approx_recip),
        out_shape=jax.ShapeDtypeStruct((B, N, C_OUT), jnp.float32),
        grid_spec=pltpu.PrefetchScalarGridSpec(
            num_scalar_prefetch=0,
            grid=(B, N // TQ),
            in_specs=in_specs,
            out_specs=pl.BlockSpec((1, TQ, C_OUT), lambda b, qi: (b, qi, 0)),
        ),
        compiler_params=pltpu.CompilerParams(
            dimension_semantics=("parallel", "parallel"),   # both axes shardable across TCs (v7x)
            vmem_limit_bytes=int(vmem_limit),
        ),
    )(pg_t, q_h, k_t, v_t, mask_f, *vmem_weights, *smem_weights)

    return pairwise_g, out, mask


# ----------------------------------------------------------------------------
# Pure-JAX reference (same math, batched) for correctness checking.
# ----------------------------------------------------------------------------
def reference_forward(pairwise_g, cf, mask, params, n_heads):
    B, N, _, G = pairwise_g.shape
    C_IN = cf.shape[-1]
    C_OUT = params["w_out"].shape[0]
    dk = C_IN // n_heads
    dv = C_OUT // n_heads

    def swish(x):
        return x * jax.nn.sigmoid(x)

    h = swish(jnp.einsum("bijg,gk->bijk", pairwise_g, params["w1"]) + params["b1"][0])
    h = swish(jnp.einsum("bijk,kl->bijl", h, params["w2"]) + params["b2"][0])
    loc = swish(jnp.einsum("bijk,kh->bijh", h, params["w3"]) + params["b3"][0])       # (B,N,N,H)

    q = cf @ params["w_q"] + params["b_q"][0]
    k = cf @ params["w_k"] + params["b_k"][0]
    qh = q.reshape(B, N, n_heads, dk)
    kh = k.reshape(B, N, n_heads, dk)
    dot = jnp.einsum("bihd,bjhd->bijh", qh, kh) / math.sqrt(dk)

    logits = loc + dot
    logits = jnp.where(mask[:, None, :, None], logits, -1e38)
    attn = jax.nn.softmax(logits, axis=2)                                             # (B,N,N,H)

    v = cf @ params["w_in"] + params["b_in"][0]
    vh = v.reshape(B, N, n_heads, dv)
    out = jnp.einsum("bijh,bjhd->bihd", attn, vh).reshape(B, N, C_OUT)
    out = out @ params["w_out"] + params["b_out"][0]
    return out


def make_params(key, g_dim, hid, c_in, c_out, n_heads):
    ks = jax.random.split(key, 16)

    def lin(k, fan_in, shape):
        return jax.random.normal(k, shape, jnp.float32) / math.sqrt(fan_in)

    return {
        # MultiheadWeightNet (location kernel): g_dim -> hid -> hid -> n_heads
        "w1": lin(ks[0], g_dim, (g_dim, hid)),   "b1": lin(ks[1], hid, (1, hid)),
        "w2": lin(ks[2], hid, (hid, hid)),       "b2": lin(ks[3], hid, (1, hid)),
        "w3": lin(ks[4], hid, (hid, n_heads)),   "b3": lin(ks[5], hid, (1, n_heads)),
        # DotProductKernel: q/k linear projections c_in -> c_in
        "w_q": lin(ks[6], c_in, (c_in, c_in)),   "b_q": lin(ks[7], c_in, (1, c_in)),
        "w_k": lin(ks[8], c_in, (c_in, c_in)),   "b_k": lin(ks[9], c_in, (1, c_in)),
        # input_linear: c_in -> c_out, output_linear: c_out -> c_out
        "w_in": lin(ks[10], c_in, (c_in, c_out)),    "b_in": lin(ks[11], c_in, (1, c_out)),
        "w_out": lin(ks[12], c_out, (c_out, c_out)), "b_out": lin(ks[13], c_out, (1, c_out)),
    }


if __name__ == "__main__":
    def run_case(B, N, G, C_IN, C_OUT, H, HID, n_pad, max_tq=None, bf16_inputs=False, tol=2e-2):
        key = jax.random.PRNGKey(0)
        k_pg, k_cf, k_par = jax.random.split(key, 3)
        pairwise_g = jax.random.normal(k_pg, (B, N, N, G), jnp.float32) * 0.5
        coset_functions = jax.random.normal(k_cf, (B, N, C_IN), jnp.float32)
        n_valid = jnp.array([N] + [N - n_pad] * (B - 1))
        mask = jnp.arange(N)[None, :] < n_valid[:, None]            # batch 0 full, others padded
        params = make_params(k_par, G, HID, C_IN, C_OUT, H)

        _, out_k, _ = eqv_multihead_attention(pairwise_g, coset_functions, mask, params, H,
                                              max_tq=max_tq, bf16_inputs=bf16_inputs)
        out_k = jax.block_until_ready(out_k)
        out_r = jax.block_until_ready(reference_forward(pairwise_g, coset_functions, mask, params, H))
        np.testing.assert_allclose(np.asarray(out_k), np.asarray(out_r), rtol=tol, atol=tol)

    # small config matching the module defaults (group with lie_dim=3, q_dim=0 -> G=3)
    run_case(B=2, N=16, G=3, C_IN=16, C_OUT=32, H=4, HID=16, n_pad=5)
    # larger config exercising query tiling (grid = (B, N // 64)) on the f32 path
    run_case(B=2, N=128, G=6, C_IN=32, C_OUT=32, H=4, HID=16, n_pad=37, max_tq=64)
    # bf16 fast path (pairwise_g + MXU operands stored in bf16, f32 accumulate); looser tolerance
    run_case(B=2, N=128, G=3, C_IN=32, C_OUT=32, H=4, HID=16, n_pad=21, bf16_inputs=True, tol=1e-1)

    print("KERNEL_OK")
</pallas_src>

<mosaic_0001>
module attributes {stable_mosaic.version = 11 : i64} {
  func.func @_eqv_mha_kernel(%arg0: i32, %arg1: i32, %arg2: memref<1x3x16x16xf32, #tpu.memory_space<vmem>>, %arg3: memref<1x4x16x4xf32, #tpu.memory_space<vmem>>, %arg4: memref<1x4x4x16xf32, #tpu.memory_space<vmem>>, %arg5: memref<1x4x8x16xf32, #tpu.memory_space<vmem>>, %arg6: memref<1x1x16xf32, #tpu.memory_space<vmem>>, %arg7: memref<4x8x32xf32, #tpu.memory_space<vmem>>, %arg8: memref<1x32xf32, #tpu.memory_space<vmem>>, %arg9: memref<3x16xf32, #tpu.memory_space<smem>>, %arg10: memref<16xf32, #tpu.memory_space<smem>>, %arg11: memref<16x16xf32, #tpu.memory_space<smem>>, %arg12: memref<16xf32, #tpu.memory_space<smem>>, %arg13: memref<16x4xf32, #tpu.memory_space<smem>>, %arg14: memref<4xf32, #tpu.memory_space<smem>>, %arg15: memref<1x16x32xf32, #tpu.memory_space<vmem>>) attributes {dimension_semantics = [#tpu.dimension_semantics<parallel>, #tpu.dimension_semantics<parallel>], iteration_bounds = array<i64: 2, 1>, scalar_prefetch = 0 : i64, scratch_operands = 0 : i64, tpu.core_type = #tpu.core_type<tc>, window_params = [{transform_indices = @transform_0, window_bounds = array<i64: 1, 3, 16, 16>}, {transform_indices = @transform_1, window_bounds = array<i64: 1, 4, 16, 4>}, {transform_indices = @transform_2, window_bounds = array<i64: 1, 4, 4, 16>}, {transform_indices = @transform_3, window_bounds = array<i64: 1, 4, 8, 16>}, {transform_indices = @transform_4, window_bounds = array<i64: 1, 1, 16>}, {pipeline_mode = #tpu.pipeline_mode<synchronous>, transform_indices = @transform_5, window_bounds = array<i64: 4, 8, 32>}, {pipeline_mode = #tpu.pipeline_mode<synchronous>, transform_indices = @transform_6, window_bounds = array<i64: 1, 32>}, {transform_indices = @transform_7, window_bounds = array<i64: 3, 16>}, {transform_indices = @transform_8, window_bounds = array<i64: 16>}, {transform_indices = @transform_9, window_bounds = array<i64: 16, 16>}, {transform_indices = @transform_10, window_bounds = array<i64: 16>}, {transform_indices = @transform_11, window_bounds = array<i64: 16, 4>}, {transform_indices = @transform_12, window_bounds = array<i64: 4>}, {transform_indices = @transform_13, window_bounds = array<i64: 1, 16, 32>}]} {
    %c0 = arith.constant 0 : index
    %c0_0 = arith.constant 0 : index
    %c0_1 = arith.constant 0 : index
    %c0_2 = arith.constant 0 : index
    %0 = vector.load %arg2[%c0, %c0_0, %c0_1, %c0_2] : memref<1x3x16x16xf32, #tpu.memory_space<vmem>>, vector<1x1x16x16xf32>
    %1 = vector.shape_cast %0 : vector<1x1x16x16xf32> to vector<16x16xf32>
    %c0_3 = arith.constant 0 : index
    %c1 = arith.constant 1 : index
    %c0_4 = arith.constant 0 : index
    %c0_5 = arith.constant 0 : index
    %2 = vector.load %arg2[%c0_3, %c1, %c0_4, %c0_5] : memref<1x3x16x16xf32, #tpu.memory_space<vmem>>, vector<1x1x16x16xf32>
    %3 = vector.shape_cast %2 : vector<1x1x16x16xf32> to vector<16x16xf32>
    %c0_6 = arith.constant 0 : index
    %c2 = arith.constant 2 : index
    %c0_7 = arith.constant 0 : index
    %c0_8 = arith.constant 0 : index
    %4 = vector.load %arg2[%c0_6, %c2, %c0_7, %c0_8] : memref<1x3x16x16xf32, #tpu.memory_space<vmem>>, vector<1x1x16x16xf32>
    %5 = vector.shape_cast %4 : vector<1x1x16x16xf32> to vector<16x16xf32>
    %c0_9 = arith.constant 0 : index
    %c0_10 = arith.constant 0 : index
    %6 = memref.load %arg9[%c0_9, %c0_10] : memref<3x16xf32, #tpu.memory_space<smem>>
    %7 = vector.broadcast %6 : f32 to vector<16x16xf32>
    %8 = arith.mulf %1, %7 : vector<16x16xf32>
    %c1_11 = arith.constant 1 : index
    %c0_12 = arith.constant 0 : index
    %9 = memref.load %arg9[%c1_11, %c0_12] : memref<3x16xf32, #tpu.memory_space<smem>>
    %10 = vector.broadcast %9 : f32 to vector<16x16xf32>
    %11 = arith.mulf %3, %10 : vector<16x16xf32>
    %12 = arith.addf %8, %11 : vector<16x16xf32>
    %c2_13 = arith.constant 2 : index
    %c0_14 = arith.constant 0 : index
    %13 = memref.load %arg9[%c2_13, %c0_14] : memref<3x16xf32, #tpu.memory_space<smem>>
    %14 = vector.broadcast %13 : f32 to vector<16x16xf32>
    %15 = arith.mulf %5, %14 : vector<16x16xf32>
    %16 = arith.addf %12, %15 : vector<16x16xf32>
    %c0_15 = arith.constant 0 : index
    %17 = memref.load %arg10[%c0_15] : memref<16xf32, #tpu.memory_space<smem>>
    %18 = vector.broadcast %17 : f32 to vector<16x16xf32>
    %19 = arith.addf %16, %18 : vector<16x16xf32>
    %cst = arith.constant 5.000000e-01 : f32
    %20 = vector.broadcast %cst : f32 to vector<16x16xf32>
    %21 = arith.mulf %20, %19 : vector<16x16xf32>
    %cst_16 = arith.constant 5.000000e-01 : f32
    %22 = vector.broadcast %cst_16 : f32 to vector<16x16xf32>
    %23 = arith.mulf %22, %19 : vector<16x16xf32>
    %24 = math.tanh %23 : vector<16x16xf32>
    %cst_17 = arith.constant 1.000000e+00 : f32
    %25 = vector.broadcast %cst_17 : f32 to vector<16x16xf32>
    %26 = arith.addf %25, %24 : vector<16x16xf32>
    %27 = arith.mulf %21, %26 : vector<16x16xf32>
    %c0_18 = arith.constant 0 : index
    %c0_19 = arith.constant 0 : index
    %28 = memref.load %arg11[%c0_18, %c0_19] : memref<16x16xf32, #tpu.memory_space<smem>>
    %29 = vector.broadcast %28 : f32 to vector<16x16xf32>
    %30 = arith.mulf %27, %29 : vector<16x16xf32>
    %c0_20 = arith.constant 0 : index
    %c1_21 = arith.constant 1 : index
    %31 = memref.load %arg11[%c0_20, %c1_21] : memref<16x16xf32, #tpu.memory_space<smem>>
    %32 = vector.broadcast %31 : f32 to vector<16x16xf32>
    %33 = arith.mulf %27, %32 : vector<16x16xf32>
    %c0_22 = arith.constant 0 : index
    %c2_23 = arith.constant 2 : index
    %34 = memref.load %arg11[%c0_22, %c2_23] : memref<16x16xf32, #tpu.memory_space<smem>>
    %35 = vector.broadcast %34 : f32 to vector<16x16xf32>
    %36 = arith.mulf %27, %35 : vector<16x16xf32>
    %c0_24 = arith.constant 0 : index
    %c3 = arith.constant 3 : index
    %37 = memref.load %arg11[%c0_24, %c3] : memref<16x16xf32, #tpu.memory_space<smem>>
    %38 = vector.broadcast %37 : f32 to vector<16x16xf32>
    %39 = arith.mulf %27, %38 : vector<16x16xf32>
    %c0_25 = arith.constant 0 : index
    %c4 = arith.constant 4 : index
    %40 = memref.load %arg11[%c0_25, %c4] : memref<16x16xf32, #tpu.memory_space<smem>>
    %41 = vector.broadcast %40 : f32 to vector<16x16xf32>
    %42 = arith.mulf %27, %41 : vector<16x16xf32>
    %c0_26 = arith.constant 0 : index
    %c5 = arith.constant 5 : index
    %43 = memref.load %arg11[%c0_26, %c5] : memref<16x16xf32, #tpu.memory_space<smem>>
    %44 = vector.broadcast %43 : f32 to vector<16x16xf32>
    %45 = arith.mulf %27, %44 : vector<16x16xf32>
    %c0_27 = arith.constant 0 : index
    %c6 = arith.constant 6 : index
    %46 = memref.load %arg11[%c0_27, %c6] : memref<16x16xf32, #tpu.memory_space<smem>>
    %47 = vector.broadcast %46 : f32 to vector<16x16xf32>
    %48 = arith.mulf %27, %47 : vector<16x16xf32>
    %c0_28 = arith.constant 0 : index
    %c7 = arith.constant 7 : index
    %49 = memref.load %arg11[%c0_28, %c7] : memref<16x16xf32, #tpu.memory_space<smem>>
    %50 = vector.broadcast %49 : f32 to vector<16x16xf32>
    %51 = arith.mulf %27, %50 : vector<16x16xf32>
    %c0_29 = arith.constant 0 : index
    %c8 = arith.constant 8 : index
    %52 = memref.load %arg11[%c0_29, %c8] : memref<16x16xf32, #tpu.memory_space<smem>>
    %53 = vector.broadcast %52 : f32 to vector<16x16xf32>
    %54 = arith.mulf %27, %53 : vector<16x16xf32>
    %c0_30 = arith.constant 0 : index
    %c9 = arith.constant 9 : index
    %55 = memref.load %arg11[%c0_30, %c9] : memref<16x16xf32, #tpu.memory_space<smem>>
    %56 = vector.broadcast %55 : f32 to vector<16x16xf32>
    %57 = arith.mulf %27, %56 : vector<16x16xf32>
    %c0_31 = arith.constant 0 : index
    %c10 = arith.constant 10 : index
    %58 = memref.load %arg11[%c0_31, %c10] : memref<16x16xf32, #tpu.memory_space<smem>>
    %59 = vector.broadcast %58 : f32 to vector<16x16xf32>
    %60 = arith.mulf %27, %59 : vector<16x16xf32>
    %c0_32 = arith.constant 0 : index
    %c11 = arith.constant 11 : index
    %61 = memref.load %arg11[%c0_32, %c11] : memref<16x16xf32, #tpu.memory_space<smem>>
    %62 = vector.broadcast %61 : f32 to vector<16x16xf32>
    %63 = arith.mulf %27, %62 : vector<16x16xf32>
    %c0_33 = arith.constant 0 : index
    %c12 = arith.constant 12 : index
    %64 = memref.load %arg11[%c0_33, %c12] : memref<16x16xf32, #tpu.memory_space<smem>>
    %65 = vector.broadcast %64 : f32 to vector<16x16xf32>
    %66 = arith.mulf %27, %65 : vector<16x16xf32>
    %c0_34 = arith.constant 0 : index
    %c13 = arith.constant 13 : index
    %67 = memref.load %arg11[%c0_34, %c13] : memref<16x16xf32, #tpu.memory_space<smem>>
    %68 = vector.broadcast %67 : f32 to vector<16x16xf32>
    %69 = arith.mulf %27, %68 : vector<16x16xf32>
    %c0_35 = arith.constant 0 : index
    %c14 = arith.constant 14 : index
    %70 = memref.load %arg11[%c0_35, %c14] : memref<16x16xf32, #tpu.memory_space<smem>>
    %71 = vector.broadcast %70 : f32 to vector<16x16xf32>
    %72 = arith.mulf %27, %71 : vector<16x16xf32>
    %c0_36 = arith.constant 0 : index
    %c15 = arith.constant 15 : index
    %73 = memref.load %arg11[%c0_36, %c15] : memref<16x16xf32, #tpu.memory_space<smem>>
    %74 = vector.broadcast %73 : f32 to vector<16x16xf32>
    %75 = arith.mulf %27, %74 : vector<16x16xf32>
    %c0_37 = arith.constant 0 : index
    %c1_38 = arith.constant 1 : index
    %76 = memref.load %arg9[%c0_37, %c1_38] : memref<3x16xf32, #tpu.memory_space<smem>>
    %77 = vector.broadcast %76 : f32 to vector<16x16xf32>
    %78 = arith.mulf %1, %77 : vector<16x16xf32>
    %c1_39 = arith.constant 1 : index
    %c1_40 = arith.constant 1 : index
    %79 = memref.load %arg9[%c1_39, %c1_40] : memref<3x16xf32, #tpu.memory_space<smem>>
    %80 = vector.broadcast %79 : f32 to vector<16x16xf32>
    %81 = arith.mulf %3, %80 : vector<16x16xf32>
    %82 = arith.addf %78, %81 : vector<16x16xf32>
    %c2_41 = arith.constant 2 : index
    %c1_42 = arith.constant 1 : index
    %83 = memref.load %arg9[%c2_41, %c1_42] : memref<3x16xf32, #tpu.memory_space<smem>>
    %84 = vector.broadcast %83 : f32 to vector<16x16xf32>
    %85 = arith.mulf %5, %84 : vector<16x16xf32>
    %86 = arith.addf %82, %85 : vector<16x16xf32>
    %c1_43 = arith.constant 1 : index
    %87 = memref.load %arg10[%c1_43] : memref<16xf32, #tpu.memory_space<smem>>
    %88 = vector.broadcast %87 : f32 to vector<16x16xf32>
    %89 = arith.addf %86, %88 : vector<16x16xf32>
    %cst_44 = arith.constant 5.000000e-01 : f32
    %90 = vector.broadcast %cst_44 : f32 to vector<16x16xf32>
    %91 = arith.mulf %90, %89 : vector<16x16xf32>
    %cst_45 = arith.constant 5.000000e-01 : f32
    %92 = vector.broadcast %cst_45 : f32 to vector<16x16xf32>
    %93 = arith.mulf %92, %89 : vector<16x16xf32>
    %94 = math.tanh %93 : vector<16x16xf32>
    %cst_46 = arith.constant 1.000000e+00 : f32
    %95 = vector.broadcast %cst_46 : f32 to vector<16x16xf32>
    %96 = arith.addf %95, %94 : vector<16x16xf32>
    %97 = arith.mulf %91, %96 : vector<16x16xf32>
    %c1_47 = arith.constant 1 : index
    %c0_48 = arith.constant 0 : index
    %98 = memref.load %arg11[%c1_47, %c0_48] : memref<16x16xf32, #tpu.memory_space<smem>>
    %99 = vector.broadcast %98 : f32 to vector<16x16xf32>
    %100 = arith.mulf %97, %99 : vector<16x16xf32>
    %101 = arith.addf %30, %100 : vector<16x16xf32>
    %c1_49 = arith.constant 1 : index
    %c1_50 = arith.constant 1 : index
    %102 = memref.load %arg11[%c1_49, %c1_50] : memref<16x16xf32, #tpu.memory_space<smem>>
    %103 = vector.broadcast %102 : f32 to vector<16x16xf32>
    %104 = arith.mulf %97, %103 : vector<16x16xf32>
    %105 = arith.addf %33, %104 : vector<16x16xf32>
    %c1_51 = arith.constant 1 : index
    %c2_52 = arith.constant 2 : index
    %106 = memref.load %arg11[%c1_51, %c2_52] : memref<16x16xf32, #tpu.memory_space<smem>>
    %107 = vector.broadcast %106 : f32 to vector<16x16xf32>
    %108 = arith.mulf %97, %107 : vector<16x16xf32>
    %109 = arith.addf %36, %108 : vector<16x16xf32>
    %c1_53 = arith.constant 1 : index
    %c3_54 = arith.constant 3 : index
    %110 = memref.load %arg11[%c1_53, %c3_54] : memref<16x16xf32, #tpu.memory_space<smem>>
    %111 = vector.broadcast %110 : f32 to vector<16x16xf32>
    %112 = arith.mulf %97, %111 : vector<16x16xf32>
    %113 = arith.addf %39, %112 : vector<16x16xf32>
    %c1_55 = arith.constant 1 : index
    %c4_56 = arith.constant 4 : index
    %114 = memref.load %arg11[%c1_55, %c4_56] : memref<16x16xf32, #tpu.memory_space<smem>>
    %115 = vector.broadcast %114 : f32 to vector<16x16xf32>
    %116 = arith.mulf %97, %115 : vector<16x16xf32>
    %117 = arith.addf %42, %116 : vector<16x16xf32>
    %c1_57 = arith.constant 1 : index
    %c5_58 = arith.constant 5 : index
    %118 = memref.load %arg11[%c1_57, %c5_58] : memref<16x16xf32, #tpu.memory_space<smem>>
    %119 = vector.broadcast %118 : f32 to vector<16x16xf32>
    %120 = arith.mulf %97, %119 : vector<16x16xf32>
    %121 = arith.addf %45, %120 : vector<16x16xf32>
    %c1_59 = arith.constant 1 : index
    %c6_60 = arith.constant 6 : index
    %122 = memref.load %arg11[%c1_59, %c6_60] : memref<16x16xf32, #tpu.memory_space<smem>>
    %123 = vector.broadcast %122 : f32 to vector<16x16xf32>
    %124 = arith.mulf %97, %123 : vector<16x16xf32>
    %125 = arith.addf %48, %124 : vector<16x16xf32>
    %c1_61 = arith.constant 1 : index
    %c7_62 = arith.constant 7 : index
    %126 = memref.load %arg11[%c1_61, %c7_62] : memref<16x16xf32, #tpu.memory_space<smem>>
    %127 = vector.broadcast %126 : f32 to vector<16x16xf32>
    %128 = arith.mulf %97, %127 : vector<16x16xf32>
    %129 = arith.addf %51, %128 : vector<16x16xf32>
    %c1_63 = arith.constant 1 : index
    %c8_64 = arith.constant 8 : index
    %130 = memref.load %arg11[%c1_63, %c8_64] : memref<16x16xf32, #tpu.memory_space<smem>>
    %131 = vector.broadcast %130 : f32 to vector<16x16xf32>
    %132 = arith.mulf %97, %131 : vector<16x16xf32>
    %133 = arith.addf %54, %132 : vector<16x16xf32>
    %c1_65 = arith.constant 1 : index
    %c9_66 = arith.constant 9 : index
    %134 = memref.load %arg11[%c1_65, %c9_66] : memref<16x16xf32, #tpu.memory_space<smem>>
    %135 = vector.broadcast %134 : f32 to vector<16x16xf32>
    %136 = arith.mulf %97, %135 : vector<16x16xf32>
    %137 = arith.addf %57, %136 : vector<16x16xf32>
    %c1_67 = arith.constant 1 : index
    %c10_68 = arith.constant 10 : index
    %138 = memref.load %arg11[%c1_67, %c10_68] : memref<16x16xf32, #tpu.memory_space<smem>>
    %139 = vector.broadcast %138 : f32 to vector<16x16xf32>
    %140 = arith.mulf %97, %139 : vector<16x16xf32>
    %141 = arith.addf %60, %140 : vector<16x16xf32>
    %c1_69 = arith.constant 1 : index
    %c11_70 = arith.constant 11 : index
    %142 = memref.load %arg11[%c1_69, %c11_70] : memref<16x16xf32, #tpu.memory_space<smem>>
    %143 = vector.broadcast %142 : f32 to vector<16x16xf32>
    %144 = arith.mulf %97, %143 : vector<16x16xf32>
    %145 = arith.addf %63, %144 : vector<16x16xf32>
    %c1_71 = arith.constant 1 : index
    %c12_72 = arith.constant 12 : index
    %146 = memref.load %arg11[%c1_71, %c12_72] : memref<16x16xf32, #tpu.memory_space<smem>>
    %147 = vector.broadcast %146 : f32 to vector<16x16xf32>
    %148 = arith.mulf %97, %147 : vector<16x16xf32>
    %149 = arith.addf %66, %148 : vector<16x16xf32>
    %c1_73 = arith.constant 1 : index
    %c13_74 = arith.constant 13 : index
    %150 = memref.load %arg11[%c1_73, %c13_74] : memref<16x16xf32, #tpu.memory_space<smem>>
    %151 = vector.broadcast %150 : f32 to vector<16x16xf32>
    %152 = arith.mulf %97, %151 : vector<16x16xf32>
    %153 = arith.addf %69, %152 : vector<16x16xf32>
    %c1_75 = arith.constant 1 : index
    %c14_76 = arith.constant 14 : index
    %154 = memref.load %arg11[%c1_75, %c14_76] : memref<16x16xf32, #tpu.memory_space<smem>>
    %155 = vector.broadcast %154 : f32 to vector<16x16xf32>
    %156 = arith.mulf %97, %155 : vector<16x16xf32>
    %157 = arith.addf %72, %156 : vector<16x16xf32>
    %c1_77 = arith.constant 1 : index
    %c15_78 = arith.constant 15 : index
    %158 = memref.load %arg11[%c1_77, %c15_78] : memref<16x16xf32, #tpu.memory_space<smem>>
    %159 = vector.broadcast %158 : f32 to vector<16x16xf32>
    %160 = arith.mulf %97, %159 : vector<16x16xf32>
    %161 = arith.addf %75, %160 : vector<16x16xf32>
    %c0_79 = arith.constant 0 : index
    %c2_80 = arith.constant 2 : index
    %162 = memref.load %arg9[%c0_79, %c2_80] : memref<3x16xf32, #tpu.memory_space<smem>>
    %163 = vector.broadcast %162 : f32 to vector<16x16xf32>
    %164 = arith.mulf %1, %163 : vector<16x16xf32>
    %c1_81 = arith.constant 1 : index
    %c2_82 = arith.constant 2 : index
    %165 = memref.load %arg9[%c1_81, %c2_82] : memref<3x16xf32, #tpu.memory_space<smem>>
    %166 = vector.broadcast %165 : f32 to vector<16x16xf32>
    %167 = arith.mulf %3, %166 : vector<16x16xf32>
    %168 = arith.addf %164, %167 : vector<16x16xf32>
    %c2_83 = arith.constant 2 : index
    %c2_84 = arith.constant 2 : index
    %169 = memref.load %arg9[%c2_83, %c2_84] : memref<3x16xf32, #tpu.memory_space<smem>>
    %170 = vector.broadcast %169 : f32 to vector<16x16xf32>
    %171 = arith.mulf %5, %170 : vector<16x16xf32>
    %172 = arith.addf %168, %171 : vector<16x16xf32>
    %c2_85 = arith.constant 2 : index
    %173 = memref.load %arg10[%c2_85] : memref<16xf32, #tpu.memory_space<smem>>
    %174 = vector.broadcast %173 : f32 to vector<16x16xf32>
    %175 = arith.addf %172, %174 : vector<16x16xf32>
    %cst_86 = arith.constant 5.000000e-01 : f32
    %176 = vector.broadcast %cst_86 : f32 to vector<16x16xf32>
    %177 = arith.mulf %176, %175 : vector<16x16xf32>
    %cst_87 = arith.constant 5.000000e-01 : f32
    %178 = vector.broadcast %cst_87 : f32 to vector<16x16xf32>
    %179 = arith.mulf %178, %175 : vector<16x16xf32>
    %180 = math.tanh %179 : vector<16x16xf32>
    %cst_88 = arith.constant 1.000000e+00 : f32
    %181 = vector.broadcast %cst_88 : f32 to vector<16x16xf32>
    %182 = arith.addf %181, %180 : vector<16x16xf32>
    %183 = arith.mulf %177, %182 : vector<16x16xf32>
    %c2_89 = arith.constant 2 : index
    %c0_90 = arith.constant 0 : index
    %184 = memref.load %arg11[%c2_89, %c0_90] : memref<16x16xf32, #tpu.memory_space<smem>>
    %185 = vector.broadcast %184 : f32 to vector<16x16xf32>
    %186 = arith.mulf %183, %185 : vector<16x16xf32>
    %187 = arith.addf %101, %186 : vector<16x16xf32>
    %c2_91 = arith.constant 2 : index
    %c1_92 = arith.constant 1 : index
    %188 = memref.load %arg11[%c2_91, %c1_92] : memref<16x16xf32, #tpu.memory_space<smem>>
    %189 = vector.broadcast %188 : f32 to vector<16x16xf32>
    %190 = arith.mulf %183, %189 : vector<16x16xf32>
    %191 = arith.addf %105, %190 : vector<16x16xf32>
    %c2_93 = arith.constant 2 : index
    %c2_94 = arith.constant 2 : index
    %192 = memref.load %arg11[%c2_93, %c2_94] : memref<16x16xf32, #tpu.memory_space<smem>>
    %193 = vector.broadcast %192 : f32 to vector<16x16xf32>
    %194 = arith.mulf %183, %193 : vector<16x16xf32>
    %195 = arith.addf %109, %194 : vector<16x16xf32>
    %c2_95 = arith.constant 2 : index
    %c3_96 = arith.constant 3 : index
    %196 = memref.load %arg11[%c2_95, %c3_96] : memref<16x16xf32, #tpu.memory_space<smem>>
    %197 = vector.broadcast %196 : f32 to vector<16x16xf32>
    %198 = arith.mulf %183, %197 : vector<16x16xf32>
    %199 = arith.addf %113, %198 : vector<16x16xf32>
    %c2_97 = arith.constant 2 : index
    %c4_98 = arith.constant 4 : index
    %200 = memref.load %arg11[%c2_97, %c4_98] : memref<16x16xf32, #tpu.memory_space<smem>>
    %201 = vector.broadcast %200 : f32 to vector<16x16xf32>
    %202 = arith.mulf %183, %201 : vector<16x16xf32>
    %203 = arith.addf %117, %202 : vector<16x16xf32>
    %c2_99 = arith.constant 2 : index
    %c5_100 = arith.constant 5 : index
    %204 = memref.load %arg11[%c2_99, %c5_100] : memref<16x16xf32, #tpu.memory_space<smem>>
    %205 = vector.broadcast %204 : f32 to vector<16x16xf32>
    %206 = arith.mulf %183, %205 : vector<16x16xf32>
    %207 = arith.addf %121, %206 : vector<16x16xf32>
    %c2_101 = arith.constant 2 : index
    %c6_102 = arith.constant 6 : index
    %208 = memref.load %arg11[%c2_101, %c6_102] : memref<16x16xf32, #tpu.memory_space<smem>>
    %209 = vector.broadcast %208 : f32 to vector<16x16xf32>
    %210 = arith.mulf %183, %209 : vector<16x16xf32>
    %211 = arith.addf %125, %210 : vector<16x16xf32>
    %c2_103 = arith.constant 2 : index
    %c7_104 = arith.constant 7 : index
    %212 = memref.load %arg11[%c2_103, %c7_104] : memref<16x16xf32, #tpu.memory_space<smem>>
    %213 = vector.broadcast %212 : f32 to vector<16x16xf32>
    %214 = arith.mulf %183, %213 : vector<16x16xf32>
    %215 = arith.addf %129, %214 : vector<16x16xf32>
    %c2_105 = arith.constant 2 : index
    %c8_106 = arith.constant 8 : index
    %216 = memref.load %arg11[%c2_105, %c8_106] : memref<16x16xf32, #tpu.memory_space<smem>>
    %217 = vector.broadcast %216 : f32 to vector<16x16xf32>
    %218 = arith.mulf %183, %217 : vector<16x16xf32>
    %219 = arith.addf %133, %218 : vector<16x16xf32>
    %c2_107 = arith.constant 2 : index
    %c9_108 = arith.constant 9 : index
    %220 = memref.load %arg11[%c2_107, %c9_108] : memref<16x16xf32, #tpu.memory_space<smem>>
    %221 = vector.broadcast %220 : f32 to vector<16x16xf32>
    %222 = arith.mulf %183, %221 : vector<16x16xf32>
    %223 = arith.addf %137, %222 : vector<16x16xf32>
    %c2_109 = arith.constant 2 : index
    %c10_110 = arith.constant 10 : index
    %224 = memref.load %arg11[%c2_109, %c10_110] : memref<16x16xf32, #tpu.memory_space<smem>>
    %225 = vector.broadcast %224 : f32 to vector<16x16xf32>
    %226 = arith.mulf %183, %225 : vector<16x16xf32>
    %227 = arith.addf %141, %226 : vector<16x16xf32>
    %c2_111 = arith.constant 2 : index
    %c11_112 = arith.constant 11 : index
    %228 = memref.load %arg11[%c2_111, %c11_112] : memref<16x16xf32, #tpu.memory_space<smem>>
    %229 = vector.broadcast %228 : f32 to vector<16x16xf32>
    %230 = arith.mulf %183, %229 : vector<16x16xf32>
    %231 = arith.addf %145, %230 : vector<16x16xf32>
    %c2_113 = arith.constant 2 : index
    %c12_114 = arith.constant 12 : index
    %232 = memref.load %arg11[%c2_113, %c12_114] : memref<16x16xf32, #tpu.memory_space<smem>>
    %233 = vector.broadcast %232 : f32 to vector<16x16xf32>
    %234 = arith.mulf %183, %233 : vector<16x16xf32>
    %235 = arith.addf %149, %234 : vector<16x16xf32>
    %c2_115 = arith.constant 2 : index
    %c13_116 = arith.constant 13 : index
    %236 = memref.load %arg11[%c2_115, %c13_116] : memref<16x16xf32, #tpu.memory_space<smem>>
    %237 = vector.broadcast %236 : f32 to vector<16x16xf32>
    %238 = arith.mulf %183, %237 : vector<16x16xf32>
    %239 = arith.addf %153, %238 : vector<16x16xf32>
    %c2_117 = arith.constant 2 : index
    %c14_118 = arith.constant 14 : index
    %240 = memref.load %arg11[%c2_117, %c14_118] : memref<16x16xf32, #tpu.memory_space<smem>>
    %241 = vector.broadcast %240 : f32 to vector<16x16xf32>
    %242 = arith.mulf %183, %241 : vector<16x16xf32>
    %243 = arith.addf %157, %242 : vector<16x16xf32>
    %c2_119 = arith.constant 2 : index
    %c15_120 = arith.constant 15 : index
    %244 = memref.load %arg11[%c2_119, %c15_120] : memref<16x16xf32, #tpu.memory_space<smem>>
    %245 = vector.broadcast %244 : f32 to vector<16x16xf32>
    %246 = arith.mulf %183, %245 : vector<16x16xf32>
    %247 = arith.addf %161, %246 : vector<16x16xf32>
    %c0_121 = arith.constant 0 : index
    %c3_122 = arith.constant 3 : index
    %248 = memref.load %arg9[%c0_121, %c3_122] : memref<3x16xf32, #tpu.memory_space<smem>>
    %249 = vector.broadcast %248 : f32 to vector<16x16xf32>
    %250 = arith.mulf %1, %249 : vector<16x16xf32>
    %c1_123 = arith.constant 1 : index
    %c3_124 = arith.constant 3 : index
    %251 = memref.load %arg9[%c1_123, %c3_124] : memref<3x16xf32, #tpu.memory_space<smem>>
    %252 = vector.broadcast %251 : f32 to vector<16x16xf32>
    %253 = arith.mulf %3, %252 : vector<16x16xf32>
    %254 = arith.addf %250, %253 : vector<16x16xf32>
    %c2_125 = arith.constant 2 : index
    %c3_126 = arith.constant 3 : index
    %255 = memref.load %arg9[%c2_125, %c3_126] : memref<3x16xf32, #tpu.memory_space<smem>>
    %256 = vector.broadcast %255 : f32 to vector<16x16xf32>
    %257 = arith.mulf %5, %256 : vector<16x16xf32>
    %258 = arith.addf %254, %257 : vector<16x16xf32>
    %c3_127 = arith.constant 3 : index
    %259 = memref.load %arg10[%c3_127] : memref<16xf32, #tpu.memory_space<smem>>
    %260 = vector.broadcast %259 : f32 to vector<16x16xf32>
    %261 = arith.addf %258, %260 : vector<16x16xf32>
    %cst_128 = arith.constant 5.000000e-01 : f32
    %262 = vector.broadcast %cst_128 : f32 to vector<16x16xf32>
    %263 = arith.mulf %262, %261 : vector<16x16xf32>
    %cst_129 = arith.constant 5.000000e-01 : f32
    %264 = vector.broadcast %cst_129 : f32 to vector<16x16xf32>
    %265 = arith.mulf %264, %261 : vector<16x16xf32>
    %266 = math.tanh %265 : vector<16x16xf32>
    %cst_130 = arith.constant 1.000000e+00 : f32
    %267 = vector.broadcast %cst_130 : f32 to vector<16x16xf32>
    %268 = arith.addf %267, %266 : vector<16x16xf32>
    %269 = arith.mulf %263, %268 : vector<16x16xf32>
    %c3_131 = arith.constant 3 : index
    %c0_132 = arith.constant 0 : index
    %270 = memref.load %arg11[%c3_131, %c0_132] : memref<16x16xf32, #tpu.memory_space<smem>>
    %271 = vector.broadcast %270 : f32 to vector<16x16xf32>
    %272 = arith.mulf %269, %271 : vector<16x16xf32>
    %273 = arith.addf %187, %272 : vector<16x16xf32>
    %c3_133 = arith.constant 3 : index
    %c1_134 = arith.constant 1 : index
    %274 = memref.load %arg11[%c3_133, %c1_134] : memref<16x16xf32, #tpu.memory_space<smem>>
    %275 = vector.broadcast %274 : f32 to vector<16x16xf32>
    %276 = arith.mulf %269, %275 : vector<16x16xf32>
    %277 = arith.addf %191, %276 : vector<16x16xf32>
    %c3_135 = arith.constant 3 : index
    %c2_136 = arith.constant 2 : index
    %278 = memref.load %arg11[%c3_135, %c2_136] : memref<16x16xf32, #tpu.memory_space<smem>>
    %279 = vector.broadcast %278 : f32 to vector<16x16xf32>
    %280 = arith.mulf %269, %279 : vector<16x16xf32>
    %281 = arith.addf %195, %280 : vector<16x16xf32>
    %c3_137 = arith.constant 3 : index
    %c3_138 = arith.constant 3 : index
    %282 = memref.load %arg11[%c3_137, %c3_138] : memref<16x16xf32, #tpu.memory_space<smem>>
    %283 = vector.broadcast %282 : f32 to vector<16x16xf32>
    %284 = arith.mulf %269, %283 : vector<16x16xf32>
    %285 = arith.addf %199, %284 : vector<16x16xf32>
    %c3_139 = arith.constant 3 : index
    %c4_140 = arith.constant 4 : index
    %286 = memref.load %arg11[%c3_139, %c4_140] : memref<16x16xf32, #tpu.memory_space<smem>>
    %287 = vector.broadcast %286 : f32 to vector<16x16xf32>
    %288 = arith.mulf %269, %287 : vector<16x16xf32>
    %289 = arith.addf %203, %288 : vector<16x16xf32>
    %c3_141 = arith.constant 3 : index
    %c5_142 = arith.constant 5 : index
    %290 = memref.load %arg11[%c3_141, %c5_142] : memref<16x16xf32, #tpu.memory_space<smem>>
    %291 = vector.broadcast %290 : f32 to vector<16x16xf32>
    %292 = arith.mulf %269, %291 : vector<16x16xf32>
    %293 = arith.addf %207, %292 : vector<16x16xf32>
    %c3_143 = arith.constant 3 : index
    %c6_144 = arith.constant 6 : index
    %294 = memref.load %arg11[%c3_143, %c6_144] : memref<16x16xf32, #tpu.memory_space<smem>>
    %295 = vector.broadcast %294 : f32 to vector<16x16xf32>
    %296 = arith.mulf %269, %295 : vector<16x16xf32>
    %297 = arith.addf %211, %296 : vector<16x16xf32>
    %c3_145 = arith.constant 3 : index
    %c7_146 = arith.constant 7 : index
    %298 = memref.load %arg11[%c3_145, %c7_146] : memref<16x16xf32, #tpu.memory_space<smem>>
    %299 = vector.broadcast %298 : f32 to vector<16x16xf32>
    %300 = arith.mulf %269, %299 : vector<16x16xf32>
    %301 = arith.addf %215, %300 : vector<16x16xf32>
    %c3_147 = arith.constant 3 : index
    %c8_148 = arith.constant 8 : index
    %302 = memref.load %arg11[%c3_147, %c8_148] : memref<16x16xf32, #tpu.memory_space<smem>>
    %303 = vector.broadcast %302 : f32 to vector<16x16xf32>
    %304 = arith.mulf %269, %303 : vector<16x16xf32>
    %305 = arith.addf %219, %304 : vector<16x16xf32>
    %c3_149 = arith.constant 3 : index
    %c9_150 = arith.constant 9 : index
    %306 = memref.load %arg11[%c3_149, %c9_150] : memref<16x16xf32, #tpu.memory_space<smem>>
    %307 = vector.broadcast %306 : f32 to vector<16x16xf32>
    %308 = arith.mulf %269, %307 : vector<16x16xf32>
    %309 = arith.addf %223, %308 : vector<16x16xf32>
    %c3_151 = arith.constant 3 : index
    %c10_152 = arith.constant 10 : index
    %310 = memref.load %arg11[%c3_151, %c10_152] : memref<16x16xf32, #tpu.memory_space<smem>>
    %311 = vector.broadcast %310 : f32 to vector<16x16xf32>
    %312 = arith.mulf %269, %311 : vector<16x16xf32>
    %313 = arith.addf %227, %312 : vector<16x16xf32>
    %c3_153 = arith.constant 3 : index
    %c11_154 = arith.constant 11 : index
    %314 = memref.load %arg11[%c3_153, %c11_154] : memref<16x16xf32, #tpu.memory_space<smem>>
    %315 = vector.broadcast %314 : f32 to vector<16x16xf32>
    %316 = arith.mulf %269, %315 : vector<16x16xf32>
    %317 = arith.addf %231, %316 : vector<16x16xf32>
    %c3_155 = arith.constant 3 : index
    %c12_156 = arith.constant 12 : index
    %318 = memref.load %arg11[%c3_155, %c12_156] : memref<16x16xf32, #tpu.memory_space<smem>>
    %319 = vector.broadcast %318 : f32 to vector<16x16xf32>
    %320 = arith.mulf %269, %319 : vector<16x16xf32>
    %321 = arith.addf %235, %320 : vector<16x16xf32>
    %c3_157 = arith.constant 3 : index
    %c13_158 = arith.constant 13 : index
    %322 = memref.load %arg11[%c3_157, %c13_158] : memref<16x16xf32, #tpu.memory_space<smem>>
    %323 = vector.broadcast %322 : f32 to vector<16x16xf32>
    %324 = arith.mulf %269, %323 : vector<16x16xf32>
    %325 = arith.addf %239, %324 : vector<16x16xf32>
    %c3_159 = arith.constant 3 : index
    %c14_160 = arith.constant 14 : index
    %326 = memref.load %arg11[%c3_159, %c14_160] : memref<16x16xf32, #tpu.memory_space<smem>>
    %327 = vector.broadcast %326 : f32 to vector<16x16xf32>
    %328 = arith.mulf %269, %327 : vector<16x16xf32>
    %329 = arith.addf %243, %328 : vector<16x16xf32>
    %c3_161 = arith.constant 3 : index
    %c15_162 = arith.constant 15 : index
    %330 = memref.load %arg11[%c3_161, %c15_162] : memref<16x16xf32, #tpu.memory_space<smem>>
    %331 = vector.broadcast %330 : f32 to vector<16x16xf32>
    %332 = arith.mulf %269, %331 : vector<16x16xf32>
    %333 = arith.addf %247, %332 : vector<16x16xf32>
    %c0_163 = arith.constant 0 : index
    %c4_164 = arith.constant 4 : index
    %334 = memref.load %arg9[%c0_163, %c4_164] : memref<3x16xf32, #tpu.memory_space<smem>>
    %335 = vector.broadcast %334 : f32 to vector<16x16xf32>
    %336 = arith.mulf %1, %335 : vector<16x16xf32>
    %c1_165 = arith.constant 1 : index
    %c4_166 = arith.constant 4 : index
    %337 = memref.load %arg9[%c1_165, %c4_166] : memref<3x16xf32, #tpu.memory_space<smem>>
    %338 = vector.broadcast %337 : f32 to vector<16x16xf32>
    %339 = arith.mulf %3, %338 : vector<16x16xf32>
    %340 = arith.addf %336, %339 : vector<16x16xf32>
    %c2_167 = arith.constant 2 : index
    %c4_168 = arith.constant 4 : index
    %341 = memref.load %arg9[%c2_167, %c4_168] : memref<3x16xf32, #tpu.memory_space<smem>>
    %342 = vector.broadcast %341 : f32 to vector<16x16xf32>
    %343 = arith.mulf %5, %342 : vector<16x16xf32>
    %344 = arith.addf %340, %343 : vector<16x16xf32>
    %c4_169 = arith.constant 4 : index
    %345 = memref.load %arg10[%c4_169] : memref<16xf32, #tpu.memory_space<smem>>
    %346 = vector.broadcast %345 : f32 to vector<16x16xf32>
    %347 = arith.addf %344, %346 : vector<16x16xf32>
    %cst_170 = arith.constant 5.000000e-01 : f32
    %348 = vector.broadcast %cst_170 : f32 to vector<16x16xf32>
    %349 = arith.mulf %348, %347 : vector<16x16xf32>
    %cst_171 = arith.constant 5.000000e-01 : f32
    %350 = vector.broadcast %cst_171 : f32 to vector<16x16xf32>
    %351 = arith.mulf %350, %347 : vector<16x16xf32>
    %352 = math.tanh %351 : vector<16x16xf32>
    %cst_172 = arith.constant 1.000000e+00 : f32
    %353 = vector.broadcast %cst_172 : f32 to vector<16x16xf32>
    %354 = arith.addf %353, %352 : vector<16x16xf32>
    %355 = arith.mulf %349, %354 : vector<16x16xf32>
    %c4_173 = arith.constant 4 : index
    %c0_174 = arith.constant 0 : index
    %356 = memref.load %arg11[%c4_173, %c0_174] : memref<16x16xf32, #tpu.memory_space<smem>>
    %357 = vector.broadcast %356 : f32 to vector<16x16xf32>
    %358 = arith.mulf %355, %357 : vector<16x16xf32>
    %359 = arith.addf %273, %358 : vector<16x16xf32>
    %c4_175 = arith.constant 4 : index
    %c1_176 = arith.constant 1 : index
    %360 = memref.load %arg11[%c4_175, %c1_176] : memref<16x16xf32, #tpu.memory_space<smem>>
    %361 = vector.broadcast %360 : f32 to vector<16x16xf32>
    %362 = arith.mulf %355, %361 : vector<16x16xf32>
    %363 = arith.addf %277, %362 : vector<16x16xf32>
    %c4_177 = arith.constant 4 : index
    %c2_178 = arith.constant 2 : index
    %364 = memref.load %arg11[%c4_177, %c2_178] : memref<16x16xf32, #tpu.memory_space<smem>>
    %365 = vector.broadcast %364 : f32 to vector<16x16xf32>
    %366 = arith.mulf %355, %365 : vector<16x16xf32>
    %367 = arith.addf %281, %366 : vector<16x16xf32>
    %c4_179 = arith.constant 4 : index
    %c3_180 = arith.constant 3 : index
    %368 = memref.load %arg11[%c4_179, %c3_180] : memref<16x16xf32, #tpu.memory_space<smem>>
    %369 = vector.broadcast %368 : f32 to vector<16x16xf32>
    %370 = arith.mulf %355, %369 : vector<16x16xf32>
    %371 = arith.addf %285, %370 : vector<16x16xf32>
    %c4_181 = arith.constant 4 : index
    %c4_182 = arith.constant 4 : index
    %372 = memref.load %arg11[%c4_181, %c4_182] : memref<16x16xf32, #tpu.memory_space<smem>>
    %373 = vector.broadcast %372 : f32 to vector<16x16xf32>
    %374 = arith.mulf %355, %373 : vector<16x16xf32>
    %375 = arith.addf %289, %374 : vector<16x16xf32>
    %c4_183 = arith.constant 4 : index
    %c5_184 = arith.constant 5 : index
    %376 = memref.load %arg11[%c4_183, %c5_184] : memref<16x16xf32, #tpu.memory_space<smem>>
    %377 = vector.broadcast %376 : f32 to vector<16x16xf32>
    %378 = arith.mulf %355, %377 : vector<16x16xf32>
    %379 = arith.addf %293, %378 : vector<16x16xf32>
    %c4_185 = arith.constant 4 : index
    %c6_186 = arith.constant 6 : index
    %380 = memref.load %arg11[%c4_185, %c6_186] : memref<16x16xf32, #tpu.memory_space<smem>>
    %381 = vector.broadcast %380 : f32 to vector<16x16xf32>
    %382 = arith.mulf %355, %381 : vector<16x16xf32>
    %383 = arith.addf %297, %382 : vector<16x16xf32>
    %c4_187 = arith.constant 4 : index
    %c7_188 = arith.constant 7 : index
    %384 = memref.load %arg11[%c4_187, %c7_188] : memref<16x16xf32, #tpu.memory_space<smem>>
    %385 = vector.broadcast %384 : f32 to vector<16x16xf32>
    %386 = arith.mulf %355, %385 : vector<16x16xf32>
    %387 = arith.addf %301, %386 : vector<16x16xf32>
    %c4_189 = arith.constant 4 : index
    %c8_190 = arith.constant 8 : index
    %388 = memref.load %arg11[%c4_189, %c8_190] : memref<16x16xf32, #tpu.memory_space<smem>>
    %389 = vector.broadcast %388 : f32 to vector<16x16xf32>
    %390 = arith.mulf %355, %389 : vector<16x16xf32>
    %391 = arith.addf %305, %390 : vector<16x16xf32>
    %c4_191 = arith.constant 4 : index
    %c9_192 = arith.constant 9 : index
    %392 = memref.load %arg11[%c4_191, %c9_192] : memref<16x16xf32, #tpu.memory_space<smem>>
    %393 = vector.broadcast %392 : f32 to vector<16x16xf32>
    %394 = arith.mulf %355, %393 : vector<16x16xf32>
    %395 = arith.addf %309, %394 : vector<16x16xf32>
    %c4_193 = arith.constant 4 : index
    %c10_194 = arith.constant 10 : index
    %396 = memref.load %arg11[%c4_193, %c10_194] : memref<16x16xf32, #tpu.memory_space<smem>>
    %397 = vector.broadcast %396 : f32 to vector<16x16xf32>
    %398 = arith.mulf %355, %397 : vector<16x16xf32>
    %399 = arith.addf %313, %398 : vector<16x16xf32>
    %c4_195 = arith.constant 4 : index
    %c11_196 = arith.constant 11 : index
    %400 = memref.load %arg11[%c4_195, %c11_196] : memref<16x16xf32, #tpu.memory_space<smem>>
    %401 = vector.broadcast %400 : f32 to vector<16x16xf32>
    %402 = arith.mulf %355, %401 : vector<16x16xf32>
    %403 = arith.addf %317, %402 : vector<16x16xf32>
    %c4_197 = arith.constant 4 : index
    %c12_198 = arith.constant 12 : index
    %404 = memref.load %arg11[%c4_197, %c12_198] : memref<16x16xf32, #tpu.memory_space<smem>>
    %405 = vector.broadcast %404 : f32 to vector<16x16xf32>
    %406 = arith.mulf %355, %405 : vector<16x16xf32>
    %407 = arith.addf %321, %406 : vector<16x16xf32>
    %c4_199 = arith.constant 4 : index
    %c13_200 = arith.constant 13 : index
    %408 = memref.load %arg11[%c4_199, %c13_200] : memref<16x16xf32, #tpu.memory_space<smem>>
    %409 = vector.broadcast %408 : f32 to vector<16x16xf32>
    %410 = arith.mulf %355, %409 : vector<16x16xf32>
    %411 = arith.addf %325, %410 : vector<16x16xf32>
    %c4_201 = arith.constant 4 : index
    %c14_202 = arith.constant 14 : index
    %412 = memref.load %arg11[%c4_201, %c14_202] : memref<16x16xf32, #tpu.memory_space<smem>>
    %413 = vector.broadcast %412 : f32 to vector<16x16xf32>
    %414 = arith.mulf %355, %413 : vector<16x16xf32>
    %415 = arith.addf %329, %414 : vector<16x16xf32>
    %c4_203 = arith.constant 4 : index
    %c15_204 = arith.constant 15 : index
    %416 = memref.load %arg11[%c4_203, %c15_204] : memref<16x16xf32, #tpu.memory_space<smem>>
    %417 = vector.broadcast %416 : f32 to vector<16x16xf32>
    %418 = arith.mulf %355, %417 : vector<16x16xf32>
    %419 = arith.addf %333, %418 : vector<16x16xf32>
    %c0_205 = arith.constant 0 : index
    %c5_206 = arith.constant 5 : index
    %420 = memref.load %arg9[%c0_205, %c5_206] : memref<3x16xf32, #tpu.memory_space<smem>>
    %421 = vector.broadcast %420 : f32 to vector<16x16xf32>
    %422 = arith.mulf %1, %421 : vector<16x16xf32>
    %c1_207 = arith.constant 1 : index
    %c5_208 = arith.constant 5 : index
    %423 = memref.load %arg9[%c1_207, %c5_208] : memref<3x16xf32, #tpu.memory_space<smem>>
    %424 = vector.broadcast %423 : f32 to vector<16x16xf32>
    %425 = arith.mulf %3, %424 : vector<16x16xf32>
    %426 = arith.addf %422, %425 : vector<16x16xf32>
    %c2_209 = arith.constant 2 : index
    %c5_210 = arith.constant 5 : index
    %427 = memref.load %arg9[%c2_209, %c5_210] : memref<3x16xf32, #tpu.memory_space<smem>>
    %428 = vector.broadcast %427 : f32 to vector<16x16xf32>
    %429 = arith.mulf %5, %428 : vector<16x16xf32>
    %430 = arith.addf %426, %429 : vector<16x16xf32>
    %c5_211 = arith.constant 5 : index
    %431 = memref.load %arg10[%c5_211] : memref<16xf32, #tpu.memory_space<smem>>
    %432 = vector.broadcast %431 : f32 to vector<16x16xf32>
    %433 = arith.addf %430, %432 : vector<16x16xf32>
    %cst_212 = arith.constant 5.000000e-01 : f32
    %434 = vector.broadcast %cst_212 : f32 to vector<16x16xf32>
    %435 = arith.mulf %434, %433 : vector<16x16xf32>
    %cst_213 = arith.constant 5.000000e-01 : f32
    %436 = vector.broadcast %cst_213 : f32 to vector<16x16xf32>
    %437 = arith.mulf %436, %433 : vector<16x16xf32>
    %438 = math.tanh %437 : vector<16x16xf32>
    %cst_214 = arith.constant 1.000000e+00 : f32
    %439 = vector.broadcast %cst_214 : f32 to vector<16x16xf32>
    %440 = arith.addf %439, %438 : vector<16x16xf32>
    %441 = arith.mulf %435, %440 : vector<16x16xf32>
    %c5_215 = arith.constant 5 : index
    %c0_216 = arith.constant 0 : index
    %442 = memref.load %arg11[%c5_215, %c0_216] : memref<16x16xf32, #tpu.memory_space<smem>>
    %443 = vector.broadcast %442 : f32 to vector<16x16xf32>
    %444 = arith.mulf %441, %443 : vector<16x16xf32>
    %445 = arith.addf %359, %444 : vector<16x16xf32>
    %c5_217 = arith.constant 5 : index
    %c1_218 = arith.constant 1 : index
    %446 = memref.load %arg11[%c5_217, %c1_218] : memref<16x16xf32, #tpu.memory_space<smem>>
    %447 = vector.broadcast %446 : f32 to vector<16x16xf32>
    %448 = arith.mulf %441, %447 : vector<16x16xf32>
    %449 = arith.addf %363, %448 : vector<16x16xf32>
    %c5_219 = arith.constant 5 : index
    %c2_220 = arith.constant 2 : index
    %450 = memref.load %arg11[%c5_219, %c2_220] : memref<16x16xf32, #tpu.memory_space<smem>>
    %451 = vector.broadcast %450 : f32 to vector<16x16xf32>
    %452 = arith.mulf %441, %451 : vector<16x16xf32>
    %453 = arith.addf %367, %452 : vector<16x16xf32>
    %c5_221 = arith.constant 5 : index
    %c3_222 = arith.constant 3 : index
    %454 = memref.load %arg11[%c5_221, %c3_222] : memref<16x16xf32, #tpu.memory_space<smem>>
    %455 = vector.broadcast %454 : f32 to vector<16x16xf32>
    %456 = arith.mulf %441, %455 : vector<16x16xf32>
    %457 = arith.addf %371, %456 : vector<16x16xf32>
    %c5_223 = arith.constant 5 : index
    %c4_224 = arith.constant 4 : index
    %458 = memref.load %arg11[%c5_223, %c4_224] : memref<16x16xf32, #tpu.memory_space<smem>>
    %459 = vector.broadcast %458 : f32 to vector<16x16xf32>
    %460 = arith.mulf %441, %459 : vector<16x16xf32>
    %461 = arith.addf %375, %460 : vector<16x16xf32>
    %c5_225 = arith.constant 5 : index
    %c5_226 = arith.constant 5 : index
    %462 = memref.load %arg11[%c5_225, %c5_226] : memref<16x16xf32, #tpu.memory_space<smem>>
    %463 = vector.broadcast %462 : f32 to vector<16x16xf32>
    %464 = arith.mulf %441, %463 : vector<16x16xf32>
    %465 = arith.addf %379, %464 : vector<16x16xf32>
    %c5_227 = arith.constant 5 : index
    %c6_228 = arith.constant 6 : index
    %466 = memref.load %arg11[%c5_227, %c6_228] : memref<16x16xf32, #tpu.memory_space<smem>>
    %467 = vector.broadcast %466 : f32 to vector<16x16xf32>
    %468 = arith.mulf %441, %467 : vector<16x16xf32>
    %469 = arith.addf %383, %468 : vector<16x16xf32>
    %c5_229 = arith.constant 5 : index
    %c7_230 = arith.constant 7 : index
    %470 = memref.load %arg11[%c5_229, %c7_230] : memref<16x16xf32, #tpu.memory_space<smem>>
    %471 = vector.broadcast %470 : f32 to vector<16x16xf32>
    %472 = arith.mulf %441, %471 : vector<16x16xf32>
    %473 = arith.addf %387, %472 : vector<16x16xf32>
    %c5_231 = arith.constant 5 : index
    %c8_232 = arith.constant 8 : index
    %474 = memref.load %arg11[%c5_231, %c8_232] : memref<16x16xf32, #tpu.memory_space<smem>>
    %475 = vector.broadcast %474 : f32 to vector<16x16xf32>
    %476 = arith.mulf %441, %475 : vector<16x16xf32>
    %477 = arith.addf %391, %476 : vector<16x16xf32>
    %c5_233 = arith.constant 5 : index
    %c9_234 = arith.constant 9 : index
    %478 = memref.load %arg11[%c5_233, %c9_234] : memref<16x16xf32, #tpu.memory_space<smem>>
    %479 = vector.broadcast %478 : f32 to vector<16x16xf32>
    %480 = arith.mulf %441, %479 : vector<16x16xf32>
    %481 = arith.addf %395, %480 : vector<16x16xf32>
    %c5_235 = arith.constant 5 : index
    %c10_236 = arith.constant 10 : index
    %482 = memref.load %arg11[%c5_235, %c10_236] : memref<16x16xf32, #tpu.memory_space<smem>>
    %483 = vector.broadcast %482 : f32 to vector<16x16xf32>
    %484 = arith.mulf %441, %483 : vector<16x16xf32>
    %485 = arith.addf %399, %484 : vector<16x16xf32>
    %c5_237 = arith.constant 5 : index
    %c11_238 = arith.constant 11 : index
    %486 = memref.load %arg11[%c5_237, %c11_238] : memref<16x16xf32, #tpu.memory_space<smem>>
    %487 = vector.broadcast %486 : f32 to vector<16x16xf32>
    %488 = arith.mulf %441, %487 : vector<16x16xf32>
    %489 = arith.addf %403, %488 : vector<16x16xf32>
    %c5_239 = arith.constant 5 : index
    %c12_240 = arith.constant 12 : index
    %490 = memref.load %arg11[%c5_239, %c12_240] : memref<16x16xf32, #tpu.memory_space<smem>>
    %491 = vector.broadcast %490 : f32 to vector<16x16xf32>
    %492 = arith.mulf %441, %491 : vector<16x16xf32>
    %493 = arith.addf %407, %492 : vector<16x16xf32>
    %c5_241 = arith.constant 5 : index
    %c13_242 = arith.constant 13 : index
    %494 = memref.load %arg11[%c5_241, %c13_242] : memref<16x16xf32, #tpu.memory_space<smem>>
    %495 = vector.broadcast %494 : f32 to vector<16x16xf32>
    %496 = arith.mulf %441, %495 : vector<16x16xf32>
    %497 = arith.addf %411, %496 : vector<16x16xf32>
    %c5_243 = arith.constant 5 : index
    %c14_244 = arith.constant 14 : index
    %498 = memref.load %arg11[%c5_243, %c14_244] : memref<16x16xf32, #tpu.memory_space<smem>>
    %499 = vector.broadcast %498 : f32 to vector<16x16xf32>
    %500 = arith.mulf %441, %499 : vector<16x16xf32>
    %501 = arith.addf %415, %500 : vector<16x16xf32>
    %c5_245 = arith.constant 5 : index
    %c15_246 = arith.constant 15 : index
    %502 = memref.load %arg11[%c5_245, %c15_246] : memref<16x16xf32, #tpu.memory_space<smem>>
    %503 = vector.broadcast %502 : f32 to vector<16x16xf32>
    %504 = arith.mulf %441, %503 : vector<16x16xf32>
    %505 = arith.addf %419, %504 : vector<16x16xf32>
    %c0_247 = arith.constant 0 : index
    %c6_248 = arith.constant 6 : index
    %506 = memref.load %arg9[%c0_247, %c6_248] : memref<3x16xf32, #tpu.memory_space<smem>>
    %507 = vector.broadcast %506 : f32 to vector<16x16xf32>
    %508 = arith.mulf %1, %507 : vector<16x16xf32>
    %c1_249 = arith.constant 1 : index
    %c6_250 = arith.constant 6 : index
    %509 = memref.load %arg9[%c1_249, %c6_250] : memref<3x16xf32, #tpu.memory_space<smem>>
    %510 = vector.broadcast %509 : f32 to vector<16x16xf32>
    %511 = arith.mulf %3, %510 : vector<16x16xf32>
    %512 = arith.addf %508, %511 : vector<16x16xf32>
    %c2_251 = arith.constant 2 : index
    %c6_252 = arith.constant 6 : index
    %513 = memref.load %arg9[%c2_251, %c6_252] : memref<3x16xf32, #tpu.memory_space<smem>>
    %514 = vector.broadcast %513 : f32 to vector<16x16xf32>
    %515 = arith.mulf %5, %514 : vector<16x16xf32>
    %516 = arith.addf %512, %515 : vector<16x16xf32>
    %c6_253 = arith.constant 6 : index
    %517 = memref.load %arg10[%c6_253] : memref<16xf32, #tpu.memory_space<smem>>
    %518 = vector.broadcast %517 : f32 to vector<16x16xf32>
    %519 = arith.addf %516, %518 : vector<16x16xf32>
    %cst_254 = arith.constant 5.000000e-01 : f32
    %520 = vector.broadcast %cst_254 : f32 to vector<16x16xf32>
    %521 = arith.mulf %520, %519 : vector<16x16xf32>
    %cst_255 = arith.constant 5.000000e-01 : f32
    %522 = vector.broadcast %cst_255 : f32 to vector<16x16xf32>
    %523 = arith.mulf %522, %519 : vector<16x16xf32>
    %524 = math.tanh %523 : vector<16x16xf32>
    %cst_256 = arith.constant 1.000000e+00 : f32
    %525 = vector.broadcast %cst_256 : f32 to vector<16x16xf32>
    %526 = arith.addf %525, %524 : vector<16x16xf32>
    %527 = arith.mulf %521, %526 : vector<16x16xf32>
    %c6_257 = arith.constant 6 : index
    %c0_258 = arith.constant 0 : index
    %528 = memref.load %arg11[%c6_257, %c0_258] : memref<16x16xf32, #tpu.memory_space<smem>>
    %529 = vector.broadcast %528 : f32 to vector<16x16xf32>
    %530 = arith.mulf %527, %529 : vector<16x16xf32>
    %531 = arith.addf %445, %530 : vector<16x16xf32>
    %c6_259 = arith.constant 6 : index
    %c1_260 = arith.constant 1 : index
    %532 = memref.load %arg11[%c6_259, %c1_260] : memref<16x16xf32, #tpu.memory_space<smem>>
    %533 = vector.broadcast %532 : f32 to vector<16x16xf32>
    %534 = arith.mulf %527, %533 : vector<16x16xf32>
    %535 = arith.addf %449, %534 : vector<16x16xf32>
    %c6_261 = arith.constant 6 : index
    %c2_262 = arith.constant 2 : index
    %536 = memref.load %arg11[%c6_261, %c2_262] : memref<16x16xf32, #tpu.memory_space<smem>>
    %537 = vector.broadcast %536 : f32 to vector<16x16xf32>
    %538 = arith.mulf %527, %537 : vector<16x16xf32>
    %539 = arith.addf %453, %538 : vector<16x16xf32>
    %c6_263 = arith.constant 6 : index
    %c3_264 = arith.constant 3 : index
    %540 = memref.load %arg11[%c6_263, %c3_264] : memref<16x16xf32, #tpu.memory_space<smem>>
    %541 = vector.broadcast %540 : f32 to vector<16x16xf32>
    %542 = arith.mulf %527, %541 : vector<16x16xf32>
    %543 = arith.addf %457, %542 : vector<16x16xf32>
    %c6_265 = arith.constant 6 : index
    %c4_266 = arith.constant 4 : index
    %544 = memref.load %arg11[%c6_265, %c4_266] : memref<16x16xf32, #tpu.memory_space<smem>>
    %545 = vector.broadcast %544 : f32 to vector<16x16xf32>
    %546 = arith.mulf %527, %545 : vector<16x16xf32>
    %547 = arith.addf %461, %546 : vector<16x16xf32>
    %c6_267 = arith.constant 6 : index
    %c5_268 = arith.constant 5 : index
    %548 = memref.load %arg11[%c6_267, %c5_268] : memref<16x16xf32, #tpu.memory_space<smem>>
    %549 = vector.broadcast %548 : f32 to vector<16x16xf32>
    %550 = arith.mulf %527, %549 : vector<16x16xf32>
    %551 = arith.addf %465, %550 : vector<16x16xf32>
    %c6_269 = arith.constant 6 : index
    %c6_270 = arith.constant 6 : index
    %552 = memref.load %arg11[%c6_269, %c6_270] : memref<16x16xf32, #tpu.memory_space<smem>>
    %553 = vector.broadcast %552 : f32 to vector<16x16xf32>
    %554 = arith.mulf %527, %553 : vector<16x16xf32>
    %555 = arith.addf %469, %554 : vector<16x16xf32>
    %c6_271 = arith.constant 6 : index
    %c7_272 = arith.constant 7 : index
    %556 = memref.load %arg11[%c6_271, %c7_272] : memref<16x16xf32, #tpu.memory_space<smem>>
    %557 = vector.broadcast %556 : f32 to vector<16x16xf32>
    %558 = arith.mulf %527, %557 : vector<16x16xf32>
    %559 = arith.addf %473, %558 : vector<16x16xf32>
    %c6_273 = arith.constant 6 : index
    %c8_274 = arith.constant 8 : index
    %560 = memref.load %arg11[%c6_273, %c8_274] : memref<16x16xf32, #tpu.memory_space<smem>>
    %561 = vector.broadcast %560 : f32 to vector<16x16xf32>
    %562 = arith.mulf %527, %561 : vector<16x16xf32>
    %563 = arith.addf %477, %562 : vector<16x16xf32>
    %c6_275 = arith.constant 6 : index
    %c9_276 = arith.constant 9 : index
    %564 = memref.load %arg11[%c6_275, %c9_276] : memref<16x16xf32, #tpu.memory_space<smem>>
    %565 = vector.broadcast %564 : f32 to vector<16x16xf32>
    %566 = arith.mulf %527, %565 : vector<16x16xf32>
    %567 = arith.addf %481, %566 : vector<16x16xf32>
    %c6_277 = arith.constant 6 : index
    %c10_278 = arith.constant 10 : index
    %568 = memref.load %arg11[%c6_277, %c10_278] : memref<16x16xf32, #tpu.memory_space<smem>>
    %569 = vector.broadcast %568 : f32 to vector<16x16xf32>
    %570 = arith.mulf %527, %569 : vector<16x16xf32>
    %571 = arith.addf %485, %570 : vector<16x16xf32>
    %c6_279 = arith.constant 6 : index
    %c11_280 = arith.constant 11 : index
    %572 = memref.load %arg11[%c6_279, %c11_280] : memref<16x16xf32, #tpu.memory_space<smem>>
    %573 = vector.broadcast %572 : f32 to vector<16x16xf32>
    %574 = arith.mulf %527, %573 : vector<16x16xf32>
    %575 = arith.addf %489, %574 : vector<16x16xf32>
    %c6_281 = arith.constant 6 : index
    %c12_282 = arith.constant 12 : index
    %576 = memref.load %arg11[%c6_281, %c12_282] : memref<16x16xf32, #tpu.memory_space<smem>>
    %577 = vector.broadcast %576 : f32 to vector<16x16xf32>
    %578 = arith.mulf %527, %577 : vector<16x16xf32>
    %579 = arith.addf %493, %578 : vector<16x16xf32>
    %c6_283 = arith.constant 6 : index
    %c13_284 = arith.constant 13 : index
    %580 = memref.load %arg11[%c6_283, %c13_284] : memref<16x16xf32, #tpu.memory_space<smem>>
    %581 = vector.broadcast %580 : f32 to vector<16x16xf32>
    %582 = arith.mulf %527, %581 : vector<16x16xf32>
    %583 = arith.addf %497, %582 : vector<16x16xf32>
    %c6_285 = arith.constant 6 : index
    %c14_286 = arith.constant 14 : index
    %584 = memref.load %arg11[%c6_285, %c14_286] : memref<16x16xf32, #tpu.memory_space<smem>>
    %585 = vector.broadcast %584 : f32 to vector<16x16xf32>
    %586 = arith.mulf %527, %585 : vector<16x16xf32>
    %587 = arith.addf %501, %586 : vector<16x16xf32>
    %c6_287 = arith.constant 6 : index
    %c15_288 = arith.constant 15 : index
    %588 = memref.load %arg11[%c6_287, %c15_288] : memref<16x16xf32, #tpu.memory_space<smem>>
    %589 = vector.broadcast %588 : f32 to vector<16x16xf32>
    %590 = arith.mulf %527, %589 : vector<16x16xf32>
    %591 = arith.addf %505, %590 : vector<16x16xf32>
    %c0_289 = arith.constant 0 : index
    %c7_290 = arith.constant 7 : index
    %592 = memref.load %arg9[%c0_289, %c7_290] : memref<3x16xf32, #tpu.memory_space<smem>>
    %593 = vector.broadcast %592 : f32 to vector<16x16xf32>
    %594 = arith.mulf %1, %593 : vector<16x16xf32>
    %c1_291 = arith.constant 1 : index
    %c7_292 = arith.constant 7 : index
    %595 = memref.load %arg9[%c1_291, %c7_292] : memref<3x16xf32, #tpu.memory_space<smem>>
    %596 = vector.broadcast %595 : f32 to vector<16x16xf32>
    %597 = arith.mulf %3, %596 : vector<16x16xf32>
    %598 = arith.addf %594, %597 : vector<16x16xf32>
    %c2_293 = arith.constant 2 : index
    %c7_294 = arith.constant 7 : index
    %599 = memref.load %arg9[%c2_293, %c7_294] : memref<3x16xf32, #tpu.memory_space<smem>>
    %600 = vector.broadcast %599 : f32 to vector<16x16xf32>
    %601 = arith.mulf %5, %600 : vector<16x16xf32>
    %602 = arith.addf %598, %601 : vector<16x16xf32>
    %c7_295 = arith.constant 7 : index
    %603 = memref.load %arg10[%c7_295] : memref<16xf32, #tpu.memory_space<smem>>
    %604 = vector.broadcast %603 : f32 to vector<16x16xf32>
    %605 = arith.addf %602, %604 : vector<16x16xf32>
    %cst_296 = arith.constant 5.000000e-01 : f32
    %606 = vector.broadcast %cst_296 : f32 to vector<16x16xf32>
    %607 = arith.mulf %606, %605 : vector<16x16xf32>
    %cst_297 = arith.constant 5.000000e-01 : f32
    %608 = vector.broadcast %cst_297 : f32 to vector<16x16xf32>
    %609 = arith.mulf %608, %605 : vector<16x16xf32>
    %610 = math.tanh %609 : vector<16x16xf32>
    %cst_298 = arith.constant 1.000000e+00 : f32
    %611 = vector.broadcast %cst_298 : f32 to vector<16x16xf32>
    %612 = arith.addf %611, %610 : vector<16x16xf32>
    %613 = arith.mulf %607, %612 : vector<16x16xf32>
    %c7_299 = arith.constant 7 : index
    %c0_300 = arith.constant 0 : index
    %614 = memref.load %arg11[%c7_299, %c0_300] : memref<16x16xf32, #tpu.memory_space<smem>>
    %615 = vector.broadcast %614 : f32 to vector<16x16xf32>
    %616 = arith.mulf %613, %615 : vector<16x16xf32>
    %617 = arith.addf %531, %616 : vector<16x16xf32>
    %c7_301 = arith.constant 7 : index
    %c1_302 = arith.constant 1 : index
    %618 = memref.load %arg11[%c7_301, %c1_302] : memref<16x16xf32, #tpu.memory_space<smem>>
    %619 = vector.broadcast %618 : f32 to vector<16x16xf32>
    %620 = arith.mulf %613, %619 : vector<16x16xf32>
    %621 = arith.addf %535, %620 : vector<16x16xf32>
    %c7_303 = arith.constant 7 : index
    %c2_304 = arith.constant 2 : index
    %622 = memref.load %arg11[%c7_303, %c2_304] : memref<16x16xf32, #tpu.memory_space<smem>>
    %623 = vector.broadcast %622 : f32 to vector<16x16xf32>
    %624 = arith.mulf %613, %623 : vector<16x16xf32>
    %625 = arith.addf %539, %624 : vector<16x16xf32>
    %c7_305 = arith.constant 7 : index
    %c3_306 = arith.constant 3 : index
    %626 = memref.load %arg11[%c7_305, %c3_306] : memref<16x16xf32, #tpu.memory_space<smem>>
    %627 = vector.broadcast %626 : f32 to vector<16x16xf32>
    %628 = arith.mulf %613, %627 : vector<16x16xf32>
    %629 = arith.addf %543, %628 : vector<16x16xf32>
    %c7_307 = arith.constant 7 : index
    %c4_308 = arith.constant 4 : index
    %630 = memref.load %arg11[%c7_307, %c4_308] : memref<16x16xf32, #tpu.memory_space<smem>>
    %631 = vector.broadcast %630 : f32 to vector<16x16xf32>
    %632 = arith.mulf %613, %631 : vector<16x16xf32>
    %633 = arith.addf %547, %632 : vector<16x16xf32>
    %c7_309 = arith.constant 7 : index
    %c5_310 = arith.constant 5 : index
    %634 = memref.load %arg11[%c7_309, %c5_310] : memref<16x16xf32, #tpu.memory_space<smem>>
    %635 = vector.broadcast %634 : f32 to vector<16x16xf32>
    %636 = arith.mulf %613, %635 : vector<16x16xf32>
    %637 = arith.addf %551, %636 : vector<16x16xf32>
    %c7_311 = arith.constant 7 : index
    %c6_312 = arith.constant 6 : index
    %638 = memref.load %arg11[%c7_311, %c6_312] : memref<16x16xf32, #tpu.memory_space<smem>>
    %639 = vector.broadcast %638 : f32 to vector<16x16xf32>
    %640 = arith.mulf %613, %639 : vector<16x16xf32>
    %641 = arith.addf %555, %640 : vector<16x16xf32>
    %c7_313 = arith.constant 7 : index
    %c7_314 = arith.constant 7 : index
    %642 = memref.load %arg11[%c7_313, %c7_314] : memref<16x16xf32, #tpu.memory_space<smem>>
    %643 = vector.broadcast %642 : f32 to vector<16x16xf32>
    %644 = arith.mulf %613, %643 : vector<16x16xf32>
    %645 = arith.addf %559, %644 : vector<16x16xf32>
    %c7_315 = arith.constant 7 : index
    %c8_316 = arith.constant 8 : index
    %646 = memref.load %arg11[%c7_315, %c8_316] : memref<16x16xf32, #tpu.memory_space<smem>>
    %647 = vector.broadcast %646 : f32 to vector<16x16xf32>
    %648 = arith.mulf %613, %647 : vector<16x16xf32>
    %649 = arith.addf %563, %648 : vector<16x16xf32>
    %c7_317 = arith.constant 7 : index
    %c9_318 = arith.constant 9 : index
    %650 = memref.load %arg11[%c7_317, %c9_318] : memref<16x16xf32, #tpu.memory_space<smem>>
    %651 = vector.broadcast %650 : f32 to vector<16x16xf32>
    %652 = arith.mulf %613, %651 : vector<16x16xf32>
    %653 = arith.addf %567, %652 : vector<16x16xf32>
    %c7_319 = arith.constant 7 : index
    %c10_320 = arith.constant 10 : index
    %654 = memref.load %arg11[%c7_319, %c10_320] : memref<16x16xf32, #tpu.memory_space<smem>>
    %655 = vector.broadcast %654 : f32 to vector<16x16xf32>
    %656 = arith.mulf %613, %655 : vector<16x16xf32>
    %657 = arith.addf %571, %656 : vector<16x16xf32>
    %c7_321 = arith.constant 7 : index
    %c11_322 = arith.constant 11 : index
    %658 = memref.load %arg11[%c7_321, %c11_322] : memref<16x16xf32, #tpu.memory_space<smem>>
    %659 = vector.broadcast %658 : f32 to vector<16x16xf32>
    %660 = arith.mulf %613, %659 : vector<16x16xf32>
    %661 = arith.addf %575, %660 : vector<16x16xf32>
    %c7_323 = arith.constant 7 : index
    %c12_324 = arith.constant 12 : index
    %662 = memref.load %arg11[%c7_323, %c12_324] : memref<16x16xf32, #tpu.memory_space<smem>>
    %663 = vector.broadcast %662 : f32 to vector<16x16xf32>
    %664 = arith.mulf %613, %663 : vector<16x16xf32>
    %665 = arith.addf %579, %664 : vector<16x16xf32>
    %c7_325 = arith.constant 7 : index
    %c13_326 = arith.constant 13 : index
    %666 = memref.load %arg11[%c7_325, %c13_326] : memref<16x16xf32, #tpu.memory_space<smem>>
    %667 = vector.broadcast %666 : f32 to vector<16x16xf32>
    %668 = arith.mulf %613, %667 : vector<16x16xf32>
    %669 = arith.addf %583, %668 : vector<16x16xf32>
    %c7_327 = arith.constant 7 : index
    %c14_328 = arith.constant 14 : index
    %670 = memref.load %arg11[%c7_327, %c14_328] : memref<16x16xf32, #tpu.memory_space<smem>>
    %671 = vector.broadcast %670 : f32 to vector<16x16xf32>
    %672 = arith.mulf %613, %671 : vector<16x16xf32>
    %673 = arith.addf %587, %672 : vector<16x16xf32>
    %c7_329 = arith.constant 7 : index
    %c15_330 = arith.constant 15 : index
    %674 = memref.load %arg11[%c7_329, %c15_330] : memref<16x16xf32, #tpu.memory_space<smem>>
    %675 = vector.broadcast %674 : f32 to vector<16x16xf32>
    %676 = arith.mulf %613, %675 : vector<16x16xf32>
    %677 = arith.addf %591, %676 : vector<16x16xf32>
    %c0_331 = arith.constant 0 : index
    %c8_332 = arith.constant 8 : index
    %678 = memref.load %arg9[%c0_331, %c8_332] : memref<3x16xf32, #tpu.memory_space<smem>>
    %679 = vector.broadcast %678 : f32 to vector<16x16xf32>
    %680 = arith.mulf %1, %679 : vector<16x16xf32>
    %c1_333 = arith.constant 1 : index
    %c8_334 = arith.constant 8 : index
    %681 = memref.load %arg9[%c1_333, %c8_334] : memref<3x16xf32, #tpu.memory_space<smem>>
    %682 = vector.broadcast %681 : f32 to vector<16x16xf32>
    %683 = arith.mulf %3, %682 : vector<16x16xf32>
    %684 = arith.addf %680, %683 : vector<16x16xf32>
    %c2_335 = arith.constant 2 : index
    %c8_336 = arith.constant 8 : index
    %685 = memref.load %arg9[%c2_335, %c8_336] : memref<3x16xf32, #tpu.memory_space<smem>>
    %686 = vector.broadcast %685 : f32 to vector<16x16xf32>
    %687 = arith.mulf %5, %686 : vector<16x16xf32>
    %688 = arith.addf %684, %687 : vector<16x16xf32>
    %c8_337 = arith.constant 8 : index
    %689 = memref.load %arg10[%c8_337] : memref<16xf32, #tpu.memory_space<smem>>
    %690 = vector.broadcast %689 : f32 to vector<16x16xf32>
    %691 = arith.addf %688, %690 : vector<16x16xf32>
    %cst_338 = arith.constant 5.000000e-01 : f32
    %692 = vector.broadcast %cst_338 : f32 to vector<16x16xf32>
    %693 = arith.mulf %692, %691 : vector<16x16xf32>
    %cst_339 = arith.constant 5.000000e-01 : f32
    %694 = vector.broadcast %cst_339 : f32 to vector<16x16xf32>
    %695 = arith.mulf %694, %691 : vector<16x16xf32>
    %696 = math.tanh %695 : vector<16x16xf32>
    %cst_340 = arith.constant 1.000000e+00 : f32
    %697 = vector.broadcast %cst_340 : f32 to vector<16x16xf32>
    %698 = arith.addf %697, %696 : vector<16x16xf32>
    %699 = arith.mulf %693, %698 : vector<16x16xf32>
    %c8_341 = arith.constant 8 : index
    %c0_342 = arith.constant 0 : index
    %700 = memref.load %arg11[%c8_341, %c0_342] : memref<16x16xf32, #tpu.memory_space<smem>>
    %701 = vector.broadcast %700 : f32 to vector<16x16xf32>
    %702 = arith.mulf %699, %701 : vector<16x16xf32>
    %703 = arith.addf %617, %702 : vector<16x16xf32>
    %c8_343 = arith.constant 8 : index
    %c1_344 = arith.constant 1 : index
    %704 = memref.load %arg11[%c8_343, %c1_344] : memref<16x16xf32, #tpu.memory_space<smem>>
    %705 = vector.broadcast %704 : f32 to vector<16x16xf32>
    %706 = arith.mulf %699, %705 : vector<16x16xf32>
    %707 = arith.addf %621, %706 : vector<16x16xf32>
    %c8_345 = arith.constant 8 : index
    %c2_346 = arith.constant 2 : index
    %708 = memref.load %arg11[%c8_345, %c2_346] : memref<16x16xf32, #tpu.memory_space<smem>>
    %709 = vector.broadcast %708 : f32 to vector<16x16xf32>
    %710 = arith.mulf %699, %709 : vector<16x16xf32>
    %711 = arith.addf %625, %710 : vector<16x16xf32>
    %c8_347 = arith.constant 8 : index
    %c3_348 = arith.constant 3 : index
    %712 = memref.load %arg11[%c8_347, %c3_348] : memref<16x16xf32, #tpu.memory_space<smem>>
    %713 = vector.broadcast %712 : f32 to vector<16x16xf32>
    %714 = arith.mulf %699, %713 : vector<16x16xf32>
    %715 = arith.addf %629, %714 : vector<16x16xf32>
    %c8_349 = arith.constant 8 : index
    %c4_350 = arith.constant 4 : index
    %716 = memref.load %arg11[%c8_349, %c4_350] : memref<16x16xf32, #tpu.memory_space<smem>>
    %717 = vector.broadcast %716 : f32 to vector<16x16xf32>
    %718 = arith.mulf %699, %717 : vector<16x16xf32>
    %719 = arith.addf %633, %718 : vector<16x16xf32>
    %c8_351 = arith.constant 8 : index
    %c5_352 = arith.constant 5 : index
    %720 = memref.load %arg11[%c8_351, %c5_352] : memref<16x16xf32, #tpu.memory_space<smem>>
    %721 = vector.broadcast %720 : f32 to vector<16x16xf32>
    %722 = arith.mulf %699, %721 : vector<16x16xf32>
    %723 = arith.addf %637, %722 : vector<16x16xf32>
    %c8_353 = arith.constant 8 : index
    %c6_354 = arith.constant 6 : index
    %724 = memref.load %arg11[%c8_353, %c6_354] : memref<16x16xf32, #tpu.memory_space<smem>>
    %725 = vector.broadcast %724 : f32 to vector<16x16xf32>
    %726 = arith.mulf %699, %725 : vector<16x16xf32>
    %727 = arith.addf %641, %726 : vector<16x16xf32>
    %c8_355 = arith.constant 8 : index
    %c7_356 = arith.constant 7 : index
    %728 = memref.load %arg11[%c8_355, %c7_356] : memref<16x16xf32, #tpu.memory_space<smem>>
    %729 = vector.broadcast %728 : f32 to vector<16x16xf32>
    %730 = arith.mulf %699, %729 : vector<16x16xf32>
    %731 = arith.addf %645, %730 : vector<16x16xf32>
    %c8_357 = arith.constant 8 : index
    %c8_358 = arith.constant 8 : index
    %732 = memref.load %arg11[%c8_357, %c8_358] : memref<16x16xf32, #tpu.memory_space<smem>>
    %733 = vector.broadcast %732 : f32 to vector<16x16xf32>
    %734 = arith.mulf %699, %733 : vector<16x16xf32>
    %735 = arith.addf %649, %734 : vector<16x16xf32>
    %c8_359 = arith.constant 8 : index
    %c9_360 = arith.constant 9 : index
    %736 = memref.load %arg11[%c8_359, %c9_360] : memref<16x16xf32, #tpu.memory_space<smem>>
    %737 = vector.broadcast %736 : f32 to vector<16x16xf32>
    %738 = arith.mulf %699, %737 : vector<16x16xf32>
    %739 = arith.addf %653, %738 : vector<16x16xf32>
    %c8_361 = arith.constant 8 : index
    %c10_362 = arith.constant 10 : index
    %740 = memref.load %arg11[%c8_361, %c10_362] : memref<16x16xf32, #tpu.memory_space<smem>>
    %741 = vector.broadcast %740 : f32 to vector<16x16xf32>
    %742 = arith.mulf %699, %741 : vector<16x16xf32>
    %743 = arith.addf %657, %742 : vector<16x16xf32>
    %c8_363 = arith.constant 8 : index
    %c11_364 = arith.constant 11 : index
    %744 = memref.load %arg11[%c8_363, %c11_364] : memref<16x16xf32, #tpu.memory_space<smem>>
    %745 = vector.broadcast %744 : f32 to vector<16x16xf32>
    %746 = arith.mulf %699, %745 : vector<16x16xf32>
    %747 = arith.addf %661, %746 : vector<16x16xf32>
    %c8_365 = arith.constant 8 : index
    %c12_366 = arith.constant 12 : index
    %748 = memref.load %arg11[%c8_365, %c12_366] : memref<16x16xf32, #tpu.memory_space<smem>>
    %749 = vector.broadcast %748 : f32 to vector<16x16xf32>
    %750 = arith.mulf %699, %749 : vector<16x16xf32>
    %751 = arith.addf %665, %750 : vector<16x16xf32>
    %c8_367 = arith.constant 8 : index
    %c13_368 = arith.constant 13 : index
    %752 = memref.load %arg11[%c8_367, %c13_368] : memref<16x16xf32, #tpu.memory_space<smem>>
    %753 = vector.broadcast %752 : f32 to vector<16x16xf32>
    %754 = arith.mulf %699, %753 : vector<16x16xf32>
    %755 = arith.addf %669, %754 : vector<16x16xf32>
    %c8_369 = arith.constant 8 : index
    %c14_370 = arith.constant 14 : index
    %756 = memref.load %arg11[%c8_369, %c14_370] : memref<16x16xf32, #tpu.memory_space<smem>>
    %757 = vector.broadcast %756 : f32 to vector<16x16xf32>
    %758 = arith.mulf %699, %757 : vector<16x16xf32>
    %759 = arith.addf %673, %758 : vector<16x16xf32>
    %c8_371 = arith.constant 8 : index
    %c15_372 = arith.constant 15 : index
    %760 = memref.load %arg11[%c8_371, %c15_372] : memref<16x16xf32, #tpu.memory_space<smem>>
    %761 = vector.broadcast %760 : f32 to vector<16x16xf32>
    %762 = arith.mulf %699, %761 : vector<16x16xf32>
    %763 = arith.addf %677, %762 : vector<16x16xf32>
    %c0_373 = arith.constant 0 : index
    %c9_374 = arith.constant 9 : index
    %764 = memref.load %arg9[%c0_373, %c9_374] : memref<3x16xf32, #tpu.memory_space<smem>>
    %765 = vector.broadcast %764 : f32 to vector<16x16xf32>
    %766 = arith.mulf %1, %765 : vector<16x16xf32>
    %c1_375 = arith.constant 1 : index
    %c9_376 = arith.constant 9 : index
    %767 = memref.load %arg9[%c1_375, %c9_376] : memref<3x16xf32, #tpu.memory_space<smem>>
    %768 = vector.broadcast %767 : f32 to vector<16x16xf32>
    %769 = arith.mulf %3, %768 : vector<16x16xf32>
    %770 = arith.addf %766, %769 : vector<16x16xf32>
    %c2_377 = arith.constant 2 : index
    %c9_378 = arith.constant 9 : index
    %771 = memref.load %arg9[%c2_377, %c9_378] : memref<3x16xf32, #tpu.memory_space<smem>>
    %772 = vector.broadcast %771 : f32 to vector<16x16xf32>
    %773 = arith.mulf %5, %772 : vector<16x16xf32>
    %774 = arith.addf %770, %773 : vector<16x16xf32>
    %c9_379 = arith.constant 9 : index
    %775 = memref.load %arg10[%c9_379] : memref<16xf32, #tpu.memory_space<smem>>
    %776 = vector.broadcast %775 : f32 to vector<16x16xf32>
    %777 = arith.addf %774, %776 : vector<16x16xf32>
    %cst_380 = arith.constant 5.000000e-01 : f32
    %778 = vector.broadcast %cst_380 : f32 to vector<16x16xf32>
    %779 = arith.mulf %778, %777 : vector<16x16xf32>
    %cst_381 = arith.constant 5.000000e-01 : f32
    %780 = vector.broadcast %cst_381 : f32 to vector<16x16xf32>
    %781 = arith.mulf %780, %777 : vector<16x16xf32>
    %782 = math.tanh %781 : vector<16x16xf32>
    %cst_382 = arith.constant 1.000000e+00 : f32
    %783 = vector.broadcast %cst_382 : f32 to vector<16x16xf32>
    %784 = arith.addf %783, %782 : vector<16x16xf32>
    %785 = arith.mulf %779, %784 : vector<16x16xf32>
    %c9_383 = arith.constant 9 : index
    %c0_384 = arith.constant 0 : index
    %786 = memref.load %arg11[%c9_383, %c0_384] : memref<16x16xf32, #tpu.memory_space<smem>>
    %787 = vector.broadcast %786 : f32 to vector<16x16xf32>
    %788 = arith.mulf %785, %787 : vector<16x16xf32>
    %789 = arith.addf %703, %788 : vector<16x16xf32>
    %c9_385 = arith.constant 9 : index
    %c1_386 = arith.constant 1 : index
    %790 = memref.load %arg11[%c9_385, %c1_386] : memref<16x16xf32, #tpu.memory_space<smem>>
    %791 = vector.broadcast %790 : f32 to vector<16x16xf32>
    %792 = arith.mulf %785, %791 : vector<16x16xf32>
    %793 = arith.addf %707, %792 : vector<16x16xf32>
    %c9_387 = arith.constant 9 : index
    %c2_388 = arith.constant 2 : index
    %794 = memref.load %arg11[%c9_387, %c2_388] : memref<16x16xf32, #tpu.memory_space<smem>>
    %795 = vector.broadcast %794 : f32 to vector<16x16xf32>
    %796 = arith.mulf %785, %795 : vector<16x16xf32>
    %797 = arith.addf %711, %796 : vector<16x16xf32>
    %c9_389 = arith.constant 9 : index
    %c3_390 = arith.constant 3 : index
    %798 = memref.load %arg11[%c9_389, %c3_390] : memref<16x16xf32, #tpu.memory_space<smem>>
    %799 = vector.broadcast %798 : f32 to vector<16x16xf32>
    %800 = arith.mulf %785, %799 : vector<16x16xf32>
    %801 = arith.addf %715, %800 : vector<16x16xf32>
    %c9_391 = arith.constant 9 : index
    %c4_392 = arith.constant 4 : index
    %802 = memref.load %arg11[%c9_391, %c4_392] : memref<16x16xf32, #tpu.memory_space<smem>>
    %803 = vector.broadcast %802 : f32 to vector<16x16xf32>
    %804 = arith.mulf %785, %803 : vector<16x16xf32>
    %805 = arith.addf %719, %804 : vector<16x16xf32>
    %c9_393 = arith.constant 9 : index
    %c5_394 = arith.constant 5 : index
    %806 = memref.load %arg11[%c9_393, %c5_394] : memref<16x16xf32, #tpu.memory_space<smem>>
    %807 = vector.broadcast %806 : f32 to vector<16x16xf32>
    %808 = arith.mulf %785, %807 : vector<16x16xf32>
    %809 = arith.addf %723, %808 : vector<16x16xf32>
    %c9_395 = arith.constant 9 : index
    %c6_396 = arith.constant 6 : index
    %810 = memref.load %arg11[%c9_395, %c6_396] : memref<16x16xf32, #tpu.memory_space<smem>>
    %811 = vector.broadcast %810 : f32 to vector<16x16xf32>
    %812 = arith.mulf %785, %811 : vector<16x16xf32>
    %813 = arith.addf %727, %812 : vector<16x16xf32>
    %c9_397 = arith.constant 9 : index
    %c7_398 = arith.constant 7 : index
    %814 = memref.load %arg11[%c9_397, %c7_398] : memref<16x16xf32, #tpu.memory_space<smem>>
    %815 = vector.broadcast %814 : f32 to vector<16x16xf32>
    %816 = arith.mulf %785, %815 : vector<16x16xf32>
    %817 = arith.addf %731, %816 : vector<16x16xf32>
    %c9_399 = arith.constant 9 : index
    %c8_400 = arith.constant 8 : index
    %818 = memref.load %arg11[%c9_399, %c8_400] : memref<16x16xf32, #tpu.memory_space<smem>>
    %819 = vector.broadcast %818 : f32 to vector<16x16xf32>
    %820 = arith.mulf %785, %819 : vector<16x16xf32>
    %821 = arith.addf %735, %820 : vector<16x16xf32>
    %c9_401 = arith.constant 9 : index
    %c9_402 = arith.constant 9 : index
    %822 = memref.load %arg11[%c9_401, %c9_402] : memref<16x16xf32, #tpu.memory_space<smem>>
    %823 = vector.broadcast %822 : f32 to vector<16x16xf32>
    %824 = arith.mulf %785, %823 : vector<16x16xf32>
    %825 = arith.addf %739, %824 : vector<16x16xf32>
    %c9_403 = arith.constant 9 : index
    %c10_404 = arith.constant 10 : index
    %826 = memref.load %arg11[%c9_403, %c10_404] : memref<16x16xf32, #tpu.memory_space<smem>>
    %827 = vector.broadcast %826 : f32 to vector<16x16xf32>
    %828 = arith.mulf %785, %827 : vector<16x16xf32>
    %829 = arith.addf %743, %828 : vector<16x16xf32>
    %c9_405 = arith.constant 9 : index
    %c11_406 = arith.constant 11 : index
    %830 = memref.load %arg11[%c9_405, %c11_406] : memref<16x16xf32, #tpu.memory_space<smem>>
    %831 = vector.broadcast %830 : f32 to vector<16x16xf32>
    %832 = arith.mulf %785, %831 : vector<16x16xf32>
    %833 = arith.addf %747, %832 : vector<16x16xf32>
    %c9_407 = arith.constant 9 : index
    %c12_408 = arith.constant 12 : index
    %834 = memref.load %arg11[%c9_407, %c12_408] : memref<16x16xf32, #tpu.memory_space<smem>>
    %835 = vector.broadcast %834 : f32 to vector<16x16xf32>
    %836 = arith.mulf %785, %835 : vector<16x16xf32>
    %837 = arith.addf %751, %836 : vector<16x16xf32>
    %c9_409 = arith.constant 9 : index
    %c13_410 = arith.constant 13 : index
    %838 = memref.load %arg11[%c9_409, %c13_410] : memref<16x16xf32, #tpu.memory_space<smem>>
    %839 = vector.broadcast %838 : f32 to vector<16x16xf32>
    %840 = arith.mulf %785, %839 : vector<16x16xf32>
    %841 = arith.addf %755, %840 : vector<16x16xf32>
    %c9_411 = arith.constant 9 : index
    %c14_412 = arith.constant 14 : index
    %842 = memref.load %arg11[%c9_411, %c14_412] : memref<16x16xf32, #tpu.memory_space<smem>>
    %843 = vector.broadcast %842 : f32 to vector<16x16xf32>
    %844 = arith.mulf %785, %843 : vector<16x16xf32>
    %845 = arith.addf %759, %844 : vector<16x16xf32>
    %c9_413 = arith.constant 9 : index
    %c15_414 = arith.constant 15 : index
    %846 = memref.load %arg11[%c9_413, %c15_414] : memref<16x16xf32, #tpu.memory_space<smem>>
    %847 = vector.broadcast %846 : f32 to vector<16x16xf32>
    %848 = arith.mulf %785, %847 : vector<16x16xf32>
    %849 = arith.addf %763, %848 : vector<16x16xf32>
    %c0_415 = arith.constant 0 : index
    %c10_416 = arith.constant 10 : index
    %850 = memref.load %arg9[%c0_415, %c10_416] : memref<3x16xf32, #tpu.memory_space<smem>>
    %851 = vector.broadcast %850 : f32 to vector<16x16xf32>
    %852 = arith.mulf %1, %851 : vector<16x16xf32>
    %c1_417 = arith.constant 1 : index
    %c10_418 = arith.constant 10 : index
    %853 = memref.load %arg9[%c1_417, %c10_418] : memref<3x16xf32, #tpu.memory_space<smem>>
    %854 = vector.broadcast %853 : f32 to vector<16x16xf32>
    %855 = arith.mulf %3, %854 : vector<16x16xf32>
    %856 = arith.addf %852, %855 : vector<16x16xf32>
    %c2_419 = arith.constant 2 : index
    %c10_420 = arith.constant 10 : index
    %857 = memref.load %arg9[%c2_419, %c10_420] : memref<3x16xf32, #tpu.memory_space<smem>>
    %858 = vector.broadcast %857 : f32 to vector<16x16xf32>
    %859 = arith.mulf %5, %858 : vector<16x16xf32>
    %860 = arith.addf %856, %859 : vector<16x16xf32>
    %c10_421 = arith.constant 10 : index
    %861 = memref.load %arg10[%c10_421] : memref<16xf32, #tpu.memory_space<smem>>
    %862 = vector.broadcast %861 : f32 to vector<16x16xf32>
    %863 = arith.addf %860, %862 : vector<16x16xf32>
    %cst_422 = arith.constant 5.000000e-01 : f32
    %864 = vector.broadcast %cst_422 : f32 to vector<16x16xf32>
    %865 = arith.mulf %864, %863 : vector<16x16xf32>
    %cst_423 = arith.constant 5.000000e-01 : f32
    %866 = vector.broadcast %cst_423 : f32 to vector<16x16xf32>
    %867 = arith.mulf %866, %863 : vector<16x16xf32>
    %868 = math.tanh %867 : vector<16x16xf32>
    %cst_424 = arith.constant 1.000000e+00 : f32
    %869 = vector.broadcast %cst_424 : f32 to vector<16x16xf32>
    %870 = arith.addf %869, %868 : vector<16x16xf32>
    %871 = arith.mulf %865, %870 : vector<16x16xf32>
    %c10_425 = arith.constant 10 : index
    %c0_426 = arith.constant 0 : index
    %872 = memref.load %arg11[%c10_425, %c0_426] : memref<16x16xf32, #tpu.memory_space<smem>>
    %873 = vector.broadcast %872 : f32 to vector<16x16xf32>
    %874 = arith.mulf %871, %873 : vector<16x16xf32>
    %875 = arith.addf %789, %874 : vector<16x16xf32>
    %c10_427 = arith.constant 10 : index
    %c1_428 = arith.constant 1 : index
    %876 = memref.load %arg11[%c10_427, %c1_428] : memref<16x16xf32, #tpu.memory_space<smem>>
    %877 = vector.broadcast %876 : f32 to vector<16x16xf32>
    %878 = arith.mulf %871, %877 : vector<16x16xf32>
    %879 = arith.addf %793, %878 : vector<16x16xf32>
    %c10_429 = arith.constant 10 : index
    %c2_430 = arith.constant 2 : index
    %880 = memref.load %arg11[%c10_429, %c2_430] : memref<16x16xf32, #tpu.memory_space<smem>>
    %881 = vector.broadcast %880 : f32 to vector<16x16xf32>
    %882 = arith.mulf %871, %881 : vector<16x16xf32>
    %883 = arith.addf %797, %882 : vector<16x16xf32>
    %c10_431 = arith.constant 10 : index
    %c3_432 = arith.constant 3 : index
    %884 = memref.load %arg11[%c10_431, %c3_432] : memref<16x16xf32, #tpu.memory_space<smem>>
    %885 = vector.broadcast %884 : f32 to vector<16x16xf32>
    %886 = arith.mulf %871, %885 : vector<16x16xf32>
    %887 = arith.addf %801, %886 : vector<16x16xf32>
    %c10_433 = arith.constant 10 : index
    %c4_434 = arith.constant 4 : index
    %888 = memref.load %arg11[%c10_433, %c4_434] : memref<16x16xf32, #tpu.memory_space<smem>>
    %889 = vector.broadcast %888 : f32 to vector<16x16xf32>
    %890 = arith.mulf %871, %889 : vector<16x16xf32>
    %891 = arith.addf %805, %890 : vector<16x16xf32>
    %c10_435 = arith.constant 10 : index
    %c5_436 = arith.constant 5 : index
    %892 = memref.load %arg11[%c10_435, %c5_436] : memref<16x16xf32, #tpu.memory_space<smem>>
    %893 = vector.broadcast %892 : f32 to vector<16x16xf32>
    %894 = arith.mulf %871, %893 : vector<16x16xf32>
    %895 = arith.addf %809, %894 : vector<16x16xf32>
    %c10_437 = arith.constant 10 : index
    %c6_438 = arith.constant 6 : index
    %896 = memref.load %arg11[%c10_437, %c6_438] : memref<16x16xf32, #tpu.memory_space<smem>>
    %897 = vector.broadcast %896 : f32 to vector<16x16xf32>
    %898 = arith.mulf %871, %897 : vector<16x16xf32>
    %899 = arith.addf %813, %898 : vector<16x16xf32>
    %c10_439 = arith.constant 10 : index
    %c7_440 = arith.constant 7 : index
    %900 = memref.load %arg11[%c10_439, %c7_440] : memref<16x16xf32, #tpu.memory_space<smem>>
    %901 = vector.broadcast %900 : f32 to vector<16x16xf32>
    %902 = arith.mulf %871, %901 : vector<16x16xf32>
    %903 = arith.addf %817, %902 : vector<16x16xf32>
    %c10_441 = arith.constant 10 : index
    %c8_442 = arith.constant 8 : index
    %904 = memref.load %arg11[%c10_441, %c8_442] : memref<16x16xf32, #tpu.memory_space<smem>>
    %905 = vector.broadcast %904 : f32 to vector<16x16xf32>
    %906 = arith.mulf %871, %905 : vector<16x16xf32>
    %907 = arith.addf %821, %906 : vector<16x16xf32>
    %c10_443 = arith.constant 10 : index
    %c9_444 = arith.constant 9 : index
    %908 = memref.load %arg11[%c10_443, %c9_444] : memref<16x16xf32, #tpu.memory_space<smem>>
    %909 = vector.broadcast %908 : f32 to vector<16x16xf32>
    %910 = arith.mulf %871, %909 : vector<16x16xf32>
    %911 = arith.addf %825, %910 : vector<16x16xf32>
    %c10_445 = arith.constant 10 : index
    %c10_446 = arith.constant 10 : index
    %912 = memref.load %arg11[%c10_445, %c10_446] : memref<16x16xf32, #tpu.memory_space<smem>>
    %913 = vector.broadcast %912 : f32 to vector<16x16xf32>
    %914 = arith.mulf %871, %913 : vector<16x16xf32>
    %915 = arith.addf %829, %914 : vector<16x16xf32>
    %c10_447 = arith.constant 10 : index
    %c11_448 = arith.constant 11 : index
    %916 = memref.load %arg11[%c10_447, %c11_448] : memref<16x16xf32, #tpu.memory_space<smem>>
    %917 = vector.broadcast %916 : f32 to vector<16x16xf32>
    %918 = arith.mulf %871, %917 : vector<16x16xf32>
    %919 = arith.addf %833, %918 : vector<16x16xf32>
    %c10_449 = arith.constant 10 : index
    %c12_450 = arith.constant 12 : index
    %920 = memref.load %arg11[%c10_449, %c12_450] : memref<16x16xf32, #tpu.memory_space<smem>>
    %921 = vector.broadcast %920 : f32 to vector<16x16xf32>
    %922 = arith.mulf %871, %921 : vector<16x16xf32>
    %923 = arith.addf %837, %922 : vector<16x16xf32>
    %c10_451 = arith.constant 10 : index
    %c13_452 = arith.constant 13 : index
    %924 = memref.load %arg11[%c10_451, %c13_452] : memref<16x16xf32, #tpu.memory_space<smem>>
    %925 = vector.broadcast %924 : f32 to vector<16x16xf32>
    %926 = arith.mulf %871, %925 : vector<16x16xf32>
    %927 = arith.addf %841, %926 : vector<16x16xf32>
    %c10_453 = arith.constant 10 : index
    %c14_454 = arith.constant 14 : index
    %928 = memref.load %arg11[%c10_453, %c14_454] : memref<16x16xf32, #tpu.memory_space<smem>>
    %929 = vector.broadcast %928 : f32 to vector<16x16xf32>
    %930 = arith.mulf %871, %929 : vector<16x16xf32>
    %931 = arith.addf %845, %930 : vector<16x16xf32>
    %c10_455 = arith.constant 10 : index
    %c15_456 = arith.constant 15 : index
    %932 = memref.load %arg11[%c10_455, %c15_456] : memref<16x16xf32, #tpu.memory_space<smem>>
    %933 = vector.broadcast %932 : f32 to vector<16x16xf32>
    %934 = arith.mulf %871, %933 : vector<16x16xf32>
    %935 = arith.addf %849, %934 : vector<16x16xf32>
    %c0_457 = arith.constant 0 : index
    %c11_458 = arith.constant 11 : index
    %936 = memref.load %arg9[%c0_457, %c11_458] : memref<3x16xf32, #tpu.memory_space<smem>>
    %937 = vector.broadcast %936 : f32 to vector<16x16xf32>
    %938 = arith.mulf %1, %937 : vector<16x16xf32>
    %c1_459 = arith.constant 1 : index
    %c11_460 = arith.constant 11 : index
    %939 = memref.load %arg9[%c1_459, %c11_460] : memref<3x16xf32, #tpu.memory_space<smem>>
    %940 = vector.broadcast %939 : f32 to vector<16x16xf32>
    %941 = arith.mulf %3, %940 : vector<16x16xf32>
    %942 = arith.addf %938, %941 : vector<16x16xf32>
    %c2_461 = arith.constant 2 : index
    %c11_462 = arith.constant 11 : index
    %943 = memref.load %arg9[%c2_461, %c11_462] : memref<3x16xf32, #tpu.memory_space<smem>>
    %944 = vector.broadcast %943 : f32 to vector<16x16xf32>
    %945 = arith.mulf %5, %944 : vector<16x16xf32>
    %946 = arith.addf %942, %945 : vector<16x16xf32>
    %c11_463 = arith.constant 11 : index
    %947 = memref.load %arg10[%c11_463] : memref<16xf32, #tpu.memory_space<smem>>
    %948 = vector.broadcast %947 : f32 to vector<16x16xf32>
    %949 = arith.addf %946, %948 : vector<16x16xf32>
    %cst_464 = arith.constant 5.000000e-01 : f32
    %950 = vector.broadcast %cst_464 : f32 to vector<16x16xf32>
    %951 = arith.mulf %950, %949 : vector<16x16xf32>
    %cst_465 = arith.constant 5.000000e-01 : f32
    %952 = vector.broadcast %cst_465 : f32 to vector<16x16xf32>
    %953 = arith.mulf %952, %949 : vector<16x16xf32>
    %954 = math.tanh %953 : vector<16x16xf32>
    %cst_466 = arith.constant 1.000000e+00 : f32
    %955 = vector.broadcast %cst_466 : f32 to vector<16x16xf32>
    %956 = arith.addf %955, %954 : vector<16x16xf32>
    %957 = arith.mulf %951, %956 : vector<16x16xf32>
    %c11_467 = arith.constant 11 : index
    %c0_468 = arith.constant 0 : index
    %958 = memref.load %arg11[%c11_467, %c0_468] : memref<16x16xf32, #tpu.memory_space<smem>>
    %959 = vector.broadcast %958 : f32 to vector<16x16xf32>
    %960 = arith.mulf %957, %959 : vector<16x16xf32>
    %961 = arith.addf %875, %960 : vector<16x16xf32>
    %c11_469 = arith.constant 11 : index
    %c1_470 = arith.constant 1 : index
    %962 = memref.load %arg11[%c11_469, %c1_470] : memref<16x16xf32, #tpu.memory_space<smem>>
    %963 = vector.broadcast %962 : f32 to vector<16x16xf32>
    %964 = arith.mulf %957, %963 : vector<16x16xf32>
    %965 = arith.addf %879, %964 : vector<16x16xf32>
    %c11_471 = arith.constant 11 : index
    %c2_472 = arith.constant 2 : index
    %966 = memref.load %arg11[%c11_471, %c2_472] : memref<16x16xf32, #tpu.memory_space<smem>>
    %967 = vector.broadcast %966 : f32 to vector<16x16xf32>
    %968 = arith.mulf %957, %967 : vector<16x16xf32>
    %969 = arith.addf %883, %968 : vector<16x16xf32>
    %c11_473 = arith.constant 11 : index
    %c3_474 = arith.constant 3 : index
    %970 = memref.load %arg11[%c11_473, %c3_474] : memref<16x16xf32, #tpu.memory_space<smem>>
    %971 = vector.broadcast %970 : f32 to vector<16x16xf32>
    %972 = arith.mulf %957, %971 : vector<16x16xf32>
    %973 = arith.addf %887, %972 : vector<16x16xf32>
    %c11_475 = arith.constant 11 : index
    %c4_476 = arith.constant 4 : index
    %974 = memref.load %arg11[%c11_475, %c4_476] : memref<16x16xf32, #tpu.memory_space<smem>>
    %975 = vector.broadcast %974 : f32 to vector<16x16xf32>
    %976 = arith.mulf %957, %975 : vector<16x16xf32>
    %977 = arith.addf %891, %976 : vector<16x16xf32>
    %c11_477 = arith.constant 11 : index
    %c5_478 = arith.constant 5 : index
    %978 = memref.load %arg11[%c11_477, %c5_478] : memref<16x16xf32, #tpu.memory_space<smem>>
    %979 = vector.broadcast %978 : f32 to vector<16x16xf32>
    %980 = arith.mulf %957, %979 : vector<16x16xf32>
    %981 = arith.addf %895, %980 : vector<16x16xf32>
    %c11_479 = arith.constant 11 : index
    %c6_480 = arith.constant 6 : index
    %982 = memref.load %arg11[%c11_479, %c6_480] : memref<16x16xf32, #tpu.memory_space<smem>>
    %983 = vector.broadcast %982 : f32 to vector<16x16xf32>
    %984 = arith.mulf %957, %983 : vector<16x16xf32>
    %985 = arith.addf %899, %984 : vector<16x16xf32>
    %c11_481 = arith.constant 11 : index
    %c7_482 = arith.constant 7 : index
    %986 = memref.load %arg11[%c11_481, %c7_482] : memref<16x16xf32, #tpu.memory_space<smem>>
    %987 = vector.broadcast %986 : f32 to vector<16x16xf32>
    %988 = arith.mulf %957, %987 : vector<16x16xf32>
    %989 = arith.addf %903, %988 : vector<16x16xf32>
    %c11_483 = arith.constant 11 : index
    %c8_484 = arith.constant 8 : index
    %990 = memref.load %arg11[%c11_483, %c8_484] : memref<16x16xf32, #tpu.memory_space<smem>>
    %991 = vector.broadcast %990 : f32 to vector<16x16xf32>
    %992 = arith.mulf %957, %991 : vector<16x16xf32>
    %993 = arith.addf %907, %992 : vector<16x16xf32>
    %c11_485 = arith.constant 11 : index
    %c9_486 = arith.constant 9 : index
    %994 = memref.load %arg11[%c11_485, %c9_486] : memref<16x16xf32, #tpu.memory_space<smem>>
    %995 = vector.broadcast %994 : f32 to vector<16x16xf32>
    %996 = arith.mulf %957, %995 : vector<16x16xf32>
    %997 = arith.addf %911, %996 : vector<16x16xf32>
    %c11_487 = arith.constant 11 : index
    %c10_488 = arith.constant 10 : index
    %998 = memref.load %arg11[%c11_487, %c10_488] : memref<16x16xf32, #tpu.memory_space<smem>>
    %999 = vector.broadcast %998 : f32 to vector<16x16xf32>
    %1000 = arith.mulf %957, %999 : vector<16x16xf32>
    %1001 = arith.addf %915, %1000 : vector<16x16xf32>
    %c11_489 = arith.constant 11 : index
    %c11_490 = arith.constant 11 : index
    %1002 = memref.load %arg11[%c11_489, %c11_490] : memref<16x16xf32, #tpu.memory_space<smem>>
    %1003 = vector.broadcast %1002 : f32 to vector<16x16xf32>
    %1004 = arith.mulf %957, %1003 : vector<16x16xf32>
    %1005 = arith.addf %919, %1004 : vector<16x16xf32>
    %c11_491 = arith.constant 11 : index
    %c12_492 = arith.constant 12 : index
    %1006 = memref.load %arg11[%c11_491, %c12_492] : memref<16x16xf32, #tpu.memory_space<smem>>
    %1007 = vector.broadcast %1006 : f32 to vector<16x16xf32>
    %1008 = arith.mulf %957, %1007 : vector<16x16xf32>
    %1009 = arith.addf %923, %1008 : vector<16x16xf32>
    %c11_493 = arith.constant 11 : index
    %c13_494 = arith.constant 13 : index
    %1010 = memref.load %arg11[%c11_493, %c13_494] : memref<16x16xf32, #tpu.memory_space<smem>>
    %1011 = vector.broadcast %1010 : f32 to vector<16x16xf32>
    %1012 = arith.mulf %957, %1011 : vector<16x16xf32>
    %1013 = arith.addf %927, %1012 : vector<16x16xf32>
    %c11_495 = arith.constant 11 : index
    %c14_496 = arith.constant 14 : index
    %1014 = memref.load %arg11[%c11_495, %c14_496] : memref<16x16xf32, #tpu.memory_space<smem>>
    %1015 = vector.broadcast %1014 : f32 to vector<16x16xf32>
    %1016 = arith.mulf %957, %1015 : vector<16x16xf32>
    %1017 = arith.addf %931, %1016 : vector<16x16xf32>
    %c11_497 = arith.constant 11 : index
    %c15_498 = arith.constant 15 : index
    %1018 = memref.load %arg11[%c11_497, %c15_498] : memref<16x16xf32, #tpu.memory_space<smem>>
    %1019 = vector.broadcast %1018 : f32 to vector<16x16xf32>
    %1020 = arith.mulf %957, %1019 : vector<16x16xf32>
    %1021 = arith.addf %935, %1020 : vector<16x16xf32>
    %c0_499 = arith.constant 0 : index
    %c12_500 = arith.constant 12 : index
    %1022 = memref.load %arg9[%c0_499, %c12_500] : memref<3x16xf32, #tpu.memory_space<smem>>
    %1023 = vector.broadcast %1022 : f32 to vector<16x16xf32>
    %1024 = arith.mulf %1, %1023 : vector<16x16xf32>
    %c1_501 = arith.constant 1 : index
    %c12_502 = arith.constant 12 : index
    %1025 = memref.load %arg9[%c1_501, %c12_502] : memref<3x16xf32, #tpu.memory_space<smem>>
    %1026 = vector.broadcast %1025 : f32 to vector<16x16xf32>
    %1027 = arith.mulf %3, %1026 : vector<16x16xf32>
    %1028 = arith.addf %1024, %1027 : vector<16x16xf32>
    %c2_503 = arith.constant 2 : index
    %c12_504 = arith.constant 12 : index
    %1029 = memref.load %arg9[%c2_503, %c12_504] : memref<3x16xf32, #tpu.memory_space<smem>>
    %1030 = vector.broadcast %1029 : f32 to vector<16x16xf32>
    %1031 = arith.mulf %5, %1030 : vector<16x16xf32>
    %1032 = arith.addf %1028, %1031 : vector<16x16xf32>
    %c12_505 = arith.constant 12 : index
    %1033 = memref.load %arg10[%c12_505] : memref<16xf32, #tpu.memory_space<smem>>
    %1034 = vector.broadcast %1033 : f32 to vector<16x16xf32>
    %1035 = arith.addf %1032, %1034 : vector<16x16xf32>
    %cst_506 = arith.constant 5.000000e-01 : f32
    %1036 = vector.broadcast %cst_506 : f32 to vector<16x16xf32>
    %1037 = arith.mulf %1036, %1035 : vector<16x16xf32>
    %cst_507 = arith.constant 5.000000e-01 : f32
    %1038 = vector.broadcast %cst_507 : f32 to vector<16x16xf32>
    %1039 = arith.mulf %1038, %1035 : vector<16x16xf32>
    %1040 = math.tanh %1039 : vector<16x16xf32>
    %cst_508 = arith.constant 1.000000e+00 : f32
    %1041 = vector.broadcast %cst_508 : f32 to vector<16x16xf32>
    %1042 = arith.addf %1041, %1040 : vector<16x16xf32>
    %1043 = arith.mulf %1037, %1042 : vector<16x16xf32>
    %c12_509 = arith.constant 12 : index
    %c0_510 = arith.constant 0 : index
    %1044 = memref.load %arg11[%c12_509, %c0_510] : memref<16x16xf32, #tpu.memory_space<smem>>
    %1045 = vector.broadcast %1044 : f32 to vector<16x16xf32>
    %1046 = arith.mulf %1043, %1045 : vector<16x16xf32>
    %1047 = arith.addf %961, %1046 : vector<16x16xf32>
    %c12_511 = arith.constant 12 : index
    %c1_512 = arith.constant 1 : index
    %1048 = memref.load %arg11[%c12_511, %c1_512] : memref<16x16xf32, #tpu.memory_space<smem>>
    %1049 = vector.broadcast %1048 : f32 to vector<16x16xf32>
    %1050 = arith.mulf %1043, %1049 : vector<16x16xf32>
    %1051 = arith.addf %965, %1050 : vector<16x16xf32>
    %c12_513 = arith.constant 12 : index
    %c2_514 = arith.constant 2 : index
    %1052 = memref.load %arg11[%c12_513, %c2_514] : memref<16x16xf32, #tpu.memory_space<smem>>
    %1053 = vector.broadcast %1052 : f32 to vector<16x16xf32>
    %1054 = arith.mulf %1043, %1053 : vector<16x16xf32>
    %1055 = arith.addf %969, %1054 : vector<16x16xf32>
    %c12_515 = arith.constant 12 : index
    %c3_516 = arith.constant 3 : index
    %1056 = memref.load %arg11[%c12_515, %c3_516] : memref<16x16xf32, #tpu.memory_space<smem>>
    %1057 = vector.broadcast %1056 : f32 to vector<16x16xf32>
    %1058 = arith.mulf %1043, %1057 : vector<16x16xf32>
    %1059 = arith.addf %973, %1058 : vector<16x16xf32>
    %c12_517 = arith.constant 12 : index
    %c4_518 = arith.constant 4 : index
    %1060 = memref.load %arg11[%c12_517, %c4_518] : memref<16x16xf32, #tpu.memory_space<smem>>
    %1061 = vector.broadcast %1060 : f32 to vector<16x16xf32>
    %1062 = arith.mulf %1043, %1061 : vector<16x16xf32>
    %1063 = arith.addf %977, %1062 : vector<16x16xf32>
    %c12_519 = arith.constant 12 : index
    %c5_520 = arith.constant 5 : index
    %1064 = memref.load %arg11[%c12_519, %c5_520] : memref<16x16xf32, #tpu.memory_space<smem>>
    %1065 = vector.broadcast %1064 : f32 to vector<16x16xf32>
    %1066 = arith.mulf %1043, %1065 : vector<16x16xf32>
    %1067 = arith.addf %981, %1066 : vector<16x16xf32>
    %c12_521 = arith.constant 12 : index
    %c6_522 = arith.constant 6 : index
    %1068 = memref.load %arg11[%c12_521, %c6_522] : memref<16x16xf32, #tpu.memory_space<smem>>
    %1069 = vector.broadcast %1068 : f32 to vector<16x16xf32>
    %1070 = arith.mulf %1043, %1069 : vector<16x16xf32>
    %1071 = arith.addf %985, %1070 : vector<16x16xf32>
    %c12_523 = arith.constant 12 : index
    %c7_524 = arith.constant 7 : index
    %1072 = memref.load %arg11[%c12_523, %c7_524] : memref<16x16xf32, #tpu.memory_space<smem>>
    %1073 = vector.broadcast %1072 : f32 to vector<16x16xf32>
    %1074 = arith.mulf %1043, %1073 : vector<16x16xf32>
    %1075 = arith.addf %989, %1074 : vector<16x16xf32>
    %c12_525 = arith.constant 12 : index
    %c8_526 = arith.constant 8 : index
    %1076 = memref.load %arg11[%c12_525, %c8_526] : memref<16x16xf32, #tpu.memory_space<smem>>
    %1077 = vector.broadcast %1076 : f32 to vector<16x16xf32>
    %1078 = arith.mulf %1043, %1077 : vector<16x16xf32>
    %1079 = arith.addf %993, %1078 : vector<16x16xf32>
    %c12_527 = arith.constant 12 : index
    %c9_528 = arith.constant 9 : index
    %1080 = memref.load %arg11[%c12_527, %c9_528] : memref<16x16xf32, #tpu.memory_space<smem>>
    %1081 = vector.broadcast %1080 : f32 to vector<16x16xf32>
    %1082 = arith.mulf %1043, %1081 : vector<16x16xf32>
    %1083 = arith.addf %997, %1082 : vector<16x16xf32>
    %c12_529 = arith.constant 12 : index
    %c10_530 = arith.constant 10 : index
    %1084 = memref.load %arg11[%c12_529, %c10_530] : memref<16x16xf32, #tpu.memory_space<smem>>
    %1085 = vector.broadcast %1084 : f32 to vector<16x16xf32>
    %1086 = arith.mulf %1043, %1085 : vector<16x16xf32>
    %1087 = arith.addf %1001, %1086 : vector<16x16xf32>
    %c12_531 = arith.constant 12 : index
    %c11_532 = arith.constant 11 : index
    %1088 = memref.load %arg11[%c12_531, %c11_532] : memref<16x16xf32, #tpu.memory_space<smem>>
    %1089 = vector.broadcast %1088 : f32 to vector<16x16xf32>
    %1090 = arith.mulf %1043, %1089 : vector<16x16xf32>
    %1091 = arith.addf %1005, %1090 : vector<16x16xf32>
    %c12_533 = arith.constant 12 : index
    %c12_534 = arith.constant 12 : index
    %1092 = memref.load %arg11[%c12_533, %c12_534] : memref<16x16xf32, #tpu.memory_space<smem>>
    %1093 = vector.broadcast %1092 : f32 to vector<16x16xf32>
    %1094 = arith.mulf %1043, %1093 : vector<16x16xf32>
    %1095 = arith.addf %1009, %1094 : vector<16x16xf32>
    %c12_535 = arith.constant 12 : index
    %c13_536 = arith.constant 13 : index
    %1096 = memref.load %arg11[%c12_535, %c13_536] : memref<16x16xf32, #tpu.memory_space<smem>>
    %1097 = vector.broadcast %1096 : f32 to vector<16x16xf32>
    %1098 = arith.mulf %1043, %1097 : vector<16x16xf32>
    %1099 = arith.addf %1013, %1098 : vector<16x16xf32>
    %c12_537 = arith.constant 12 : index
    %c14_538 = arith.constant 14 : index
    %1100 = memref.load %arg11[%c12_537, %c14_538] : memref<16x16xf32, #tpu.memory_space<smem>>
    %1101 = vector.broadcast %1100 : f32 to vector<16x16xf32>
    %1102 = arith.mulf %1043, %1101 : vector<16x16xf32>
    %1103 = arith.addf %1017, %1102 : vector<16x16xf32>
    %c12_539 = arith.constant 12 : index
    %c15_540 = arith.constant 15 : index
    %1104 = memref.load %arg11[%c12_539, %c15_540] : memref<16x16xf32, #tpu.memory_space<smem>>
    %1105 = vector.broadcast %1104 : f32 to vector<16x16xf32>
    %1106 = arith.mulf %1043, %1105 : vector<16x16xf32>
    %1107 = arith.addf %1021, %1106 : vector<16x16xf32>
    %c0_541 = arith.constant 0 : index
    %c13_542 = arith.constant 13 : index
    %1108 = memref.load %arg9[%c0_541, %c13_542] : memref<3x16xf32, #tpu.memory_space<smem>>
    %1109 = vector.broadcast %1108 : f32 to vector<16x16xf32>
    %1110 = arith.mulf %1, %1109 : vector<16x16xf32>
    %c1_543 = arith.constant 1 : index
    %c13_544 = arith.constant 13 : index
    %1111 = memref.load %arg9[%c1_543, %c13_544] : memref<3x16xf32, #tpu.memory_space<smem>>
    %1112 = vector.broadcast %1111 : f32 to vector<16x16xf32>
    %1113 = arith.mulf %3, %1112 : vector<16x16xf32>
    %1114 = arith.addf %1110, %1113 : vector<16x16xf32>
    %c2_545 = arith.constant 2 : index
    %c13_546 = arith.constant 13 : index
    %1115 = memref.load %arg9[%c2_545, %c13_546] : memref<3x16xf32, #tpu.memory_space<smem>>
    %1116 = vector.broadcast %1115 : f32 to vector<16x16xf32>
    %1117 = arith.mulf %5, %1116 : vector<16x16xf32>
    %1118 = arith.addf %1114, %1117 : vector<16x16xf32>
    %c13_547 = arith.constant 13 : index
    %1119 = memref.load %arg10[%c13_547] : memref<16xf32, #tpu.memory_space<smem>>
    %1120 = vector.broadcast %1119 : f32 to vector<16x16xf32>
    %1121 = arith.addf %1118, %1120 : vector<16x16xf32>
    %cst_548 = arith.constant 5.000000e-01 : f32
    %1122 = vector.broadcast %cst_548 : f32 to vector<16x16xf32>
    %1123 = arith.mulf %1122, %1121 : vector<16x16xf32>
    %cst_549 = arith.constant 5.000000e-01 : f32
    %1124 = vector.broadcast %cst_549 : f32 to vector<16x16xf32>
    %1125 = arith.mulf %1124, %1121 : vector<16x16xf32>
    %1126 = math.tanh %1125 : vector<16x16xf32>
    %cst_550 = arith.constant 1.000000e+00 : f32
    %1127 = vector.broadcast %cst_550 : f32 to vector<16x16xf32>
    %1128 = arith.addf %1127, %1126 : vector<16x16xf32>
    %1129 = arith.mulf %1123, %1128 : vector<16x16xf32>
    %c13_551 = arith.constant 13 : index
    %c0_552 = arith.constant 0 : index
    %1130 = memref.load %arg11[%c13_551, %c0_552] : memref<16x16xf32, #tpu.memory_space<smem>>
    %1131 = vector.broadcast %1130 : f32 to vector<16x16xf32>
    %1132 = arith.mulf %1129, %1131 : vector<16x16xf32>
    %1133 = arith.addf %1047, %1132 : vector<16x16xf32>
    %c13_553 = arith.constant 13 : index
    %c1_554 = arith.constant 1 : index
    %1134 = memref.load %arg11[%c13_553, %c1_554] : memref<16x16xf32, #tpu.memory_space<smem>>
    %1135 = vector.broadcast %1134 : f32 to vector<16x16xf32>
    %1136 = arith.mulf %1129, %1135 : vector<16x16xf32>
    %1137 = arith.addf %1051, %1136 : vector<16x16xf32>
    %c13_555 = arith.constant 13 : index
    %c2_556 = arith.constant 2 : index
    %1138 = memref.load %arg11[%c13_555, %c2_556] : memref<16x16xf32, #tpu.memory_space<smem>>
    %1139 = vector.broadcast %1138 : f32 to vector<16x16xf32>
    %1140 = arith.mulf %1129, %1139 : vector<16x16xf32>
    %1141 = arith.addf %1055, %1140 : vector<16x16xf32>
    %c13_557 = arith.constant 13 : index
    %c3_558 = arith.constant 3 : index
    %1142 = memref.load %arg11[%c13_557, %c3_558] : memref<16x16xf32, #tpu.memory_space<smem>>
    %1143 = vector.broadcast %1142 : f32 to vector<16x16xf32>
    %1144 = arith.mulf %1129, %1143 : vector<16x16xf32>
    %1145 = arith.addf %1059, %1144 : vector<16x16xf32>
    %c13_559 = arith.constant 13 : index
    %c4_560 = arith.constant 4 : index
    %1146 = memref.load %arg11[%c13_559, %c4_560] : memref<16x16xf32, #tpu.memory_space<smem>>
    %1147 = vector.broadcast %1146 : f32 to vector<16x16xf32>
    %1148 = arith.mulf %1129, %1147 : vector<16x16xf32>
    %1149 = arith.addf %1063, %1148 : vector<16x16xf32>
    %c13_561 = arith.constant 13 : index
    %c5_562 = arith.constant 5 : index
    %1150 = memref.load %arg11[%c13_561, %c5_562] : memref<16x16xf32, #tpu.memory_space<smem>>
    %1151 = vector.broadcast %1150 : f32 to vector<16x16xf32>
    %1152 = arith.mulf %1129, %1151 : vector<16x16xf32>
    %1153 = arith.addf %1067, %1152 : vector<16x16xf32>
    %c13_563 = arith.constant 13 : index
    %c6_564 = arith.constant 6 : index
    %1154 = memref.load %arg11[%c13_563, %c6_564] : memref<16x16xf32, #tpu.memory_space<smem>>
    %1155 = vector.broadcast %1154 : f32 to vector<16x16xf32>
    %1156 = arith.mulf %1129, %1155 : vector<16x16xf32>
    %1157 = arith.addf %1071, %1156 : vector<16x16xf32>
    %c13_565 = arith.constant 13 : index
    %c7_566 = arith.constant 7 : index
    %1158 = memref.load %arg11[%c13_565, %c7_566] : memref<16x16xf32, #tpu.memory_space<smem>>
    %1159 = vector.broadcast %1158 : f32 to vector<16x16xf32>
    %1160 = arith.mulf %1129, %1159 : vector<16x16xf32>
    %1161 = arith.addf %1075, %1160 : vector<16x16xf32>
    %c13_567 = arith.constant 13 : index
    %c8_568 = arith.constant 8 : index
    %1162 = memref.load %arg11[%c13_567, %c8_568] : memref<16x16xf32, #tpu.memory_space<smem>>
    %1163 = vector.broadcast %1162 : f32 to vector<16x16xf32>
    %1164 = arith.mulf %1129, %1163 : vector<16x16xf32>
    %1165 = arith.addf %1079, %1164 : vector<16x16xf32>
    %c13_569 = arith.constant 13 : index
    %c9_570 = arith.constant 9 : index
    %1166 = memref.load %arg11[%c13_569, %c9_570] : memref<16x16xf32, #tpu.memory_space<smem>>
    %1167 = vector.broadcast %1166 : f32 to vector<16x16xf32>
    %1168 = arith.mulf %1129, %1167 : vector<16x16xf32>
    %1169 = arith.addf %1083, %1168 : vector<16x16xf32>
    %c13_571 = arith.constant 13 : index
    %c10_572 = arith.constant 10 : index
    %1170 = memref.load %arg11[%c13_571, %c10_572] : memref<16x16xf32, #tpu.memory_space<smem>>
    %1171 = vector.broadcast %1170 : f32 to vector<16x16xf32>
    %1172 = arith.mulf %1129, %1171 : vector<16x16xf32>
    %1173 = arith.addf %1087, %1172 : vector<16x16xf32>
    %c13_573 = arith.constant 13 : index
    %c11_574 = arith.constant 11 : index
    %1174 = memref.load %arg11[%c13_573, %c11_574] : memref<16x16xf32, #tpu.memory_space<smem>>
    %1175 = vector.broadcast %1174 : f32 to vector<16x16xf32>
    %1176 = arith.mulf %1129, %1175 : vector<16x16xf32>
    %1177 = arith.addf %1091, %1176 : vector<16x16xf32>
    %c13_575 = arith.constant 13 : index
    %c12_576 = arith.constant 12 : index
    %1178 = memref.load %arg11[%c13_575, %c12_576] : memref<16x16xf32, #tpu.memory_space<smem>>
    %1179 = vector.broadcast %1178 : f32 to vector<16x16xf32>
    %1180 = arith.mulf %1129, %1179 : vector<16x16xf32>
    %1181 = arith.addf %1095, %1180 : vector<16x16xf32>
    %c13_577 = arith.constant 13 : index
    %c13_578 = arith.constant 13 : index
    %1182 = memref.load %arg11[%c13_577, %c13_578] : memref<16x16xf32, #tpu.memory_space<smem>>
    %1183 = vector.broadcast %1182 : f32 to vector<16x16xf32>
    %1184 = arith.mulf %1129, %1183 : vector<16x16xf32>
    %1185 = arith.addf %1099, %1184 : vector<16x16xf32>
    %c13_579 = arith.constant 13 : index
    %c14_580 = arith.constant 14 : index
    %1186 = memref.load %arg11[%c13_579, %c14_580] : memref<16x16xf32, #tpu.memory_space<smem>>
    %1187 = vector.broadcast %1186 : f32 to vector<16x16xf32>
    %1188 = arith.mulf %1129, %1187 : vector<16x16xf32>
    %1189 = arith.addf %1103, %1188 : vector<16x16xf32>
    %c13_581 = arith.constant 13 : index
    %c15_582 = arith.constant 15 : index
    %1190 = memref.load %arg11[%c13_581, %c15_582] : memref<16x16xf32, #tpu.memory_space<smem>>
    %1191 = vector.broadcast %1190 : f32 to vector<16x16xf32>
    %1192 = arith.mulf %1129, %1191 : vector<16x16xf32>
    %1193 = arith.addf %1107, %1192 : vector<16x16xf32>
    %c0_583 = arith.constant 0 : index
    %c14_584 = arith.constant 14 : index
    %1194 = memref.load %arg9[%c0_583, %c14_584] : memref<3x16xf32, #tpu.memory_space<smem>>
    %1195 = vector.broadcast %1194 : f32 to vector<16x16xf32>
    %1196 = arith.mulf %1, %1195 : vector<16x16xf32>
    %c1_585 = arith.constant 1 : index
    %c14_586 = arith.constant 14 : index
    %1197 = memref.load %arg9[%c1_585, %c14_586] : memref<3x16xf32, #tpu.memory_space<smem>>
    %1198 = vector.broadcast %1197 : f32 to vector<16x16xf32>
    %1199 = arith.mulf %3, %1198 : vector<16x16xf32>
    %1200 = arith.addf %1196, %1199 : vector<16x16xf32>
    %c2_587 = arith.constant 2 : index
    %c14_588 = arith.constant 14 : index
    %1201 = memref.load %arg9[%c2_587, %c14_588] : memref<3x16xf32, #tpu.memory_space<smem>>
    %1202 = vector.broadcast %1201 : f32 to vector<16x16xf32>
    %1203 = arith.mulf %5, %1202 : vector<16x16xf32>
    %1204 = arith.addf %1200, %1203 : vector<16x16xf32>
    %c14_589 = arith.constant 14 : index
    %1205 = memref.load %arg10[%c14_589] : memref<16xf32, #tpu.memory_space<smem>>
    %1206 = vector.broadcast %1205 : f32 to vector<16x16xf32>
    %1207 = arith.addf %1204, %1206 : vector<16x16xf32>
    %cst_590 = arith.constant 5.000000e-01 : f32
    %1208 = vector.broadcast %cst_590 : f32 to vector<16x16xf32>
    %1209 = arith.mulf %1208, %1207 : vector<16x16xf32>
    %cst_591 = arith.constant 5.000000e-01 : f32
    %1210 = vector.broadcast %cst_591 : f32 to vector<16x16xf32>
    %1211 = arith.mulf %1210, %1207 : vector<16x16xf32>
    %1212 = math.tanh %1211 : vector<16x16xf32>
    %cst_592 = arith.constant 1.000000e+00 : f32
    %1213 = vector.broadcast %cst_592 : f32 to vector<16x16xf32>
    %1214 = arith.addf %1213, %1212 : vector<16x16xf32>
    %1215 = arith.mulf %1209, %1214 : vector<16x16xf32>
    %c14_593 = arith.constant 14 : index
    %c0_594 = arith.constant 0 : index
    %1216 = memref.load %arg11[%c14_593, %c0_594] : memref<16x16xf32, #tpu.memory_space<smem>>
    %1217 = vector.broadcast %1216 : f32 to vector<16x16xf32>
    %1218 = arith.mulf %1215, %1217 : vector<16x16xf32>
    %1219 = arith.addf %1133, %1218 : vector<16x16xf32>
    %c14_595 = arith.constant 14 : index
    %c1_596 = arith.constant 1 : index
    %1220 = memref.load %arg11[%c14_595, %c1_596] : memref<16x16xf32, #tpu.memory_space<smem>>
    %1221 = vector.broadcast %1220 : f32 to vector<16x16xf32>
    %1222 = arith.mulf %1215, %1221 : vector<16x16xf32>
    %1223 = arith.addf %1137, %1222 : vector<16x16xf32>
    %c14_597 = arith.constant 14 : index
    %c2_598 = arith.constant 2 : index
    %1224 = memref.load %arg11[%c14_597, %c2_598] : memref<16x16xf32, #tpu.memory_space<smem>>
    %1225 = vector.broadcast %1224 : f32 to vector<16x16xf32>
    %1226 = arith.mulf %1215, %1225 : vector<16x16xf32>
    %1227 = arith.addf %1141, %1226 : vector<16x16xf32>
    %c14_599 = arith.constant 14 : index
    %c3_600 = arith.constant 3 : index
    %1228 = memref.load %arg11[%c14_599, %c3_600] : memref<16x16xf32, #tpu.memory_space<smem>>
    %1229 = vector.broadcast %1228 : f32 to vector<16x16xf32>
    %1230 = arith.mulf %1215, %1229 : vector<16x16xf32>
    %1231 = arith.addf %1145, %1230 : vector<16x16xf32>
    %c14_601 = arith.constant 14 : index
    %c4_602 = arith.constant 4 : index
    %1232 = memref.load %arg11[%c14_601, %c4_602] : memref<16x16xf32, #tpu.memory_space<smem>>
    %1233 = vector.broadcast %1232 : f32 to vector<16x16xf32>
    %1234 = arith.mulf %1215, %1233 : vector<16x16xf32>
    %1235 = arith.addf %1149, %1234 : vector<16x16xf32>
    %c14_603 = arith.constant 14 : index
    %c5_604 = arith.constant 5 : index
    %1236 = memref.load %arg11[%c14_603, %c5_604] : memref<16x16xf32, #tpu.memory_space<smem>>
    %1237 = vector.broadcast %1236 : f32 to vector<16x16xf32>
    %1238 = arith.mulf %1215, %1237 : vector<16x16xf32>
    %1239 = arith.addf %1153, %1238 : vector<16x16xf32>
    %c14_605 = arith.constant 14 : index
    %c6_606 = arith.constant 6 : index
    %1240 = memref.load %arg11[%c14_605, %c6_606] : memref<16x16xf32, #tpu.memory_space<smem>>
    %1241 = vector.broadcast %1240 : f32 to vector<16x16xf32>
    %1242 = arith.mulf %1215, %1241 : vector<16x16xf32>
    %1243 = arith.addf %1157, %1242 : vector<16x16xf32>
    %c14_607 = arith.constant 14 : index
    %c7_608 = arith.constant 7 : index
    %1244 = memref.load %arg11[%c14_607, %c7_608] : memref<16x16xf32, #tpu.memory_space<smem>>
    %1245 = vector.broadcast %1244 : f32 to vector<16x16xf32>
    %1246 = arith.mulf %1215, %1245 : vector<16x16xf32>
    %1247 = arith.addf %1161, %1246 : vector<16x16xf32>
    %c14_609 = arith.constant 14 : index
    %c8_610 = arith.constant 8 : index
    %1248 = memref.load %arg11[%c14_609, %c8_610] : memref<16x16xf32, #tpu.memory_space<smem>>
    %1249 = vector.broadcast %1248 : f32 to vector<16x16xf32>
    %1250 = arith.mulf %1215, %1249 : vector<16x16xf32>
    %1251 = arith.addf %1165, %1250 : vector<16x16xf32>
    %c14_611 = arith.constant 14 : index
    %c9_612 = arith.constant 9 : index
    %1252 = memref.load %arg11[%c14_611, %c9_612] : memref<16x16xf32, #tpu.memory_space<smem>>
    %1253 = vector.broadcast %1252 : f32 to vector<16x16xf32>
    %1254 = arith.mulf %1215, %1253 : vector<16x16xf32>
    %1255 = arith.addf %1169, %1254 : vector<16x16xf32>
    %c14_613 = arith.constant 14 : index
    %c10_614 = arith.constant 10 : index
    %1256 = memref.load %arg11[%c14_613, %c10_614] : memref<16x16xf32, #tpu.memory_space<smem>>
    %1257 = vector.broadcast %1256 : f32 to vector<16x16xf32>
    %1258 = arith.mulf %1215, %1257 : vector<16x16xf32>
    %1259 = arith.addf %1173, %1258 : vector<16x16xf32>
    %c14_615 = arith.constant 14 : index
    %c11_616 = arith.constant 11 : index
    %1260 = memref.load %arg11[%c14_615, %c11_616] : memref<16x16xf32, #tpu.memory_space<smem>>
    %1261 = vector.broadcast %1260 : f32 to vector<16x16xf32>
    %1262 = arith.mulf %1215, %1261 : vector<16x16xf32>
    %1263 = arith.addf %1177, %1262 : vector<16x16xf32>
    %c14_617 = arith.constant 14 : index
    %c12_618 = arith.constant 12 : index
    %1264 = memref.load %arg11[%c14_617, %c12_618] : memref<16x16xf32, #tpu.memory_space<smem>>
    %1265 = vector.broadcast %1264 : f32 to vector<16x16xf32>
    %1266 = arith.mulf %1215, %1265 : vector<16x16xf32>
    %1267 = arith.addf %1181, %1266 : vector<16x16xf32>
    %c14_619 = arith.constant 14 : index
    %c13_620 = arith.constant 13 : index
    %1268 = memref.load %arg11[%c14_619, %c13_620] : memref<16x16xf32, #tpu.memory_space<smem>>
    %1269 = vector.broadcast %1268 : f32 to vector<16x16xf32>
    %1270 = arith.mulf %1215, %1269 : vector<16x16xf32>
    %1271 = arith.addf %1185, %1270 : vector<16x16xf32>
    %c14_621 = arith.constant 14 : index
    %c14_622 = arith.constant 14 : index
    %1272 = memref.load %arg11[%c14_621, %c14_622] : memref<16x16xf32, #tpu.memory_space<smem>>
    %1273 = vector.broadcast %1272 : f32 to vector<16x16xf32>
    %1274 = arith.mulf %1215, %1273 : vector<16x16xf32>
    %1275 = arith.addf %1189, %1274 : vector<16x16xf32>
    %c14_623 = arith.constant 14 : index
    %c15_624 = arith.constant 15 : index
    %1276 = memref.load %arg11[%c14_623, %c15_624] : memref<16x16xf32, #tpu.memory_space<smem>>
    %1277 = vector.broadcast %1276 : f32 to vector<16x16xf32>
    %1278 = arith.mulf %1215, %1277 : vector<16x16xf32>
    %1279 = arith.addf %1193, %1278 : vector<16x16xf32>
    %c0_625 = arith.constant 0 : index
    %c15_626 = arith.constant 15 : index
    %1280 = memref.load %arg9[%c0_625, %c15_626] : memref<3x16xf32, #tpu.memory_space<smem>>
    %1281 = vector.broadcast %1280 : f32 to vector<16x16xf32>
    %1282 = arith.mulf %1, %1281 : vector<16x16xf32>
    %c1_627 = arith.constant 1 : index
    %c15_628 = arith.constant 15 : index
    %1283 = memref.load %arg9[%c1_627, %c15_628] : memref<3x16xf32, #tpu.memory_space<smem>>
    %1284 = vector.broadcast %1283 : f32 to vector<16x16xf32>
    %1285 = arith.mulf %3, %1284 : vector<16x16xf32>
    %1286 = arith.addf %1282, %1285 : vector<16x16xf32>
    %c2_629 = arith.constant 2 : index
    %c15_630 = arith.constant 15 : index
    %1287 = memref.load %arg9[%c2_629, %c15_630] : memref<3x16xf32, #tpu.memory_space<smem>>
    %1288 = vector.broadcast %1287 : f32 to vector<16x16xf32>
    %1289 = arith.mulf %5, %1288 : vector<16x16xf32>
    %1290 = arith.addf %1286, %1289 : vector<16x16xf32>
    %c15_631 = arith.constant 15 : index
    %1291 = memref.load %arg10[%c15_631] : memref<16xf32, #tpu.memory_space<smem>>
    %1292 = vector.broadcast %1291 : f32 to vector<16x16xf32>
    %1293 = arith.addf %1290, %1292 : vector<16x16xf32>
    %cst_632 = arith.constant 5.000000e-01 : f32
    %1294 = vector.broadcast %cst_632 : f32 to vector<16x16xf32>
    %1295 = arith.mulf %1294, %1293 : vector<16x16xf32>
    %cst_633 = arith.constant 5.000000e-01 : f32
    %1296 = vector.broadcast %cst_633 : f32 to vector<16x16xf32>
    %1297 = arith.mulf %1296, %1293 : vector<16x16xf32>
    %1298 = math.tanh %1297 : vector<16x16xf32>
    %cst_634 = arith.constant 1.000000e+00 : f32
    %1299 = vector.broadcast %cst_634 : f32 to vector<16x16xf32>
    %1300 = arith.addf %1299, %1298 : vector<16x16xf32>
    %1301 = arith.mulf %1295, %1300 : vector<16x16xf32>
    %c15_635 = arith.constant 15 : index
    %c0_636 = arith.constant 0 : index
    %1302 = memref.load %arg11[%c15_635, %c0_636] : memref<16x16xf32, #tpu.memory_space<smem>>
    %1303 = vector.broadcast %1302 : f32 to vector<16x16xf32>
    %1304 = arith.mulf %1301, %1303 : vector<16x16xf32>
    %1305 = arith.addf %1219, %1304 : vector<16x16xf32>
    %c15_637 = arith.constant 15 : index
    %c1_638 = arith.constant 1 : index
    %1306 = memref.load %arg11[%c15_637, %c1_638] : memref<16x16xf32, #tpu.memory_space<smem>>
    %1307 = vector.broadcast %1306 : f32 to vector<16x16xf32>
    %1308 = arith.mulf %1301, %1307 : vector<16x16xf32>
    %1309 = arith.addf %1223, %1308 : vector<16x16xf32>
    %c15_639 = arith.constant 15 : index
    %c2_640 = arith.constant 2 : index
    %1310 = memref.load %arg11[%c15_639, %c2_640] : memref<16x16xf32, #tpu.memory_space<smem>>
    %1311 = vector.broadcast %1310 : f32 to vector<16x16xf32>
    %1312 = arith.mulf %1301, %1311 : vector<16x16xf32>
    %1313 = arith.addf %1227, %1312 : vector<16x16xf32>
    %c15_641 = arith.constant 15 : index
    %c3_642 = arith.constant 3 : index
    %1314 = memref.load %arg11[%c15_641, %c3_642] : memref<16x16xf32, #tpu.memory_space<smem>>
    %1315 = vector.broadcast %1314 : f32 to vector<16x16xf32>
    %1316 = arith.mulf %1301, %1315 : vector<16x16xf32>
    %1317 = arith.addf %1231, %1316 : vector<16x16xf32>
    %c15_643 = arith.constant 15 : index
    %c4_644 = arith.constant 4 : index
    %1318 = memref.load %arg11[%c15_643, %c4_644] : memref<16x16xf32, #tpu.memory_space<smem>>
    %1319 = vector.broadcast %1318 : f32 to vector<16x16xf32>
    %1320 = arith.mulf %1301, %1319 : vector<16x16xf32>
    %1321 = arith.addf %1235, %1320 : vector<16x16xf32>
    %c15_645 = arith.constant 15 : index
    %c5_646 = arith.constant 5 : index
    %1322 = memref.load %arg11[%c15_645, %c5_646] : memref<16x16xf32, #tpu.memory_space<smem>>
    %1323 = vector.broadcast %1322 : f32 to vector<16x16xf32>
    %1324 = arith.mulf %1301, %1323 : vector<16x16xf32>
    %1325 = arith.addf %1239, %1324 : vector<16x16xf32>
    %c15_647 = arith.constant 15 : index
    %c6_648 = arith.constant 6 : index
    %1326 = memref.load %arg11[%c15_647, %c6_648] : memref<16x16xf32, #tpu.memory_space<smem>>
    %1327 = vector.broadcast %1326 : f32 to vector<16x16xf32>
    %1328 = arith.mulf %1301, %1327 : vector<16x16xf32>
    %1329 = arith.addf %1243, %1328 : vector<16x16xf32>
    %c15_649 = arith.constant 15 : index
    %c7_650 = arith.constant 7 : index
    %1330 = memref.load %arg11[%c15_649, %c7_650] : memref<16x16xf32, #tpu.memory_space<smem>>
    %1331 = vector.broadcast %1330 : f32 to vector<16x16xf32>
    %1332 = arith.mulf %1301, %1331 : vector<16x16xf32>
    %1333 = arith.addf %1247, %1332 : vector<16x16xf32>
    %c15_651 = arith.constant 15 : index
    %c8_652 = arith.constant 8 : index
    %1334 = memref.load %arg11[%c15_651, %c8_652] : memref<16x16xf32, #tpu.memory_space<smem>>
    %1335 = vector.broadcast %1334 : f32 to vector<16x16xf32>
    %1336 = arith.mulf %1301, %1335 : vector<16x16xf32>
    %1337 = arith.addf %1251, %1336 : vector<16x16xf32>
    %c15_653 = arith.constant 15 : index
    %c9_654 = arith.constant 9 : index
    %1338 = memref.load %arg11[%c15_653, %c9_654] : memref<16x16xf32, #tpu.memory_space<smem>>
    %1339 = vector.broadcast %1338 : f32 to vector<16x16xf32>
    %1340 = arith.mulf %1301, %1339 : vector<16x16xf32>
    %1341 = arith.addf %1255, %1340 : vector<16x16xf32>
    %c15_655 = arith.constant 15 : index
    %c10_656 = arith.constant 10 : index
    %1342 = memref.load %arg11[%c15_655, %c10_656] : memref<16x16xf32, #tpu.memory_space<smem>>
    %1343 = vector.broadcast %1342 : f32 to vector<16x16xf32>
    %1344 = arith.mulf %1301, %1343 : vector<16x16xf32>
    %1345 = arith.addf %1259, %1344 : vector<16x16xf32>
    %c15_657 = arith.constant 15 : index
    %c11_658 = arith.constant 11 : index
    %1346 = memref.load %arg11[%c15_657, %c11_658] : memref<16x16xf32, #tpu.memory_space<smem>>
    %1347 = vector.broadcast %1346 : f32 to vector<16x16xf32>
    %1348 = arith.mulf %1301, %1347 : vector<16x16xf32>
    %1349 = arith.addf %1263, %1348 : vector<16x16xf32>
    %c15_659 = arith.constant 15 : index
    %c12_660 = arith.constant 12 : index
    %1350 = memref.load %arg11[%c15_659, %c12_660] : memref<16x16xf32, #tpu.memory_space<smem>>
    %1351 = vector.broadcast %1350 : f32 to vector<16x16xf32>
    %1352 = arith.mulf %1301, %1351 : vector<16x16xf32>
    %1353 = arith.addf %1267, %1352 : vector<16x16xf32>
    %c15_661 = arith.constant 15 : index
    %c13_662 = arith.constant 13 : index
    %1354 = memref.load %arg11[%c15_661, %c13_662] : memref<16x16xf32, #tpu.memory_space<smem>>
    %1355 = vector.broadcast %1354 : f32 to vector<16x16xf32>
    %1356 = arith.mulf %1301, %1355 : vector<16x16xf32>
    %1357 = arith.addf %1271, %1356 : vector<16x16xf32>
    %c15_663 = arith.constant 15 : index
    %c14_664 = arith.constant 14 : index
    %1358 = memref.load %arg11[%c15_663, %c14_664] : memref<16x16xf32, #tpu.memory_space<smem>>
    %1359 = vector.broadcast %1358 : f32 to vector<16x16xf32>
    %1360 = arith.mulf %1301, %1359 : vector<16x16xf32>
    %1361 = arith.addf %1275, %1360 : vector<16x16xf32>
    %c15_665 = arith.constant 15 : index
    %c15_666 = arith.constant 15 : index
    %1362 = memref.load %arg11[%c15_665, %c15_666] : memref<16x16xf32, #tpu.memory_space<smem>>
    %1363 = vector.broadcast %1362 : f32 to vector<16x16xf32>
    %1364 = arith.mulf %1301, %1363 : vector<16x16xf32>
    %1365 = arith.addf %1279, %1364 : vector<16x16xf32>
    %c0_667 = arith.constant 0 : index
    %1366 = memref.load %arg12[%c0_667] : memref<16xf32, #tpu.memory_space<smem>>
    %1367 = vector.broadcast %1366 : f32 to vector<16x16xf32>
    %1368 = arith.addf %1305, %1367 : vector<16x16xf32>
    %cst_668 = arith.constant 5.000000e-01 : f32
    %1369 = vector.broadcast %cst_668 : f32 to vector<16x16xf32>
    %1370 = arith.mulf %1369, %1368 : vector<16x16xf32>
    %cst_669 = arith.constant 5.000000e-01 : f32
    %1371 = vector.broadcast %cst_669 : f32 to vector<16x16xf32>
    %1372 = arith.mulf %1371, %1368 : vector<16x16xf32>
    %1373 = math.tanh %1372 : vector<16x16xf32>
    %cst_670 = arith.constant 1.000000e+00 : f32
    %1374 = vector.broadcast %cst_670 : f32 to vector<16x16xf32>
    %1375 = arith.addf %1374, %1373 : vector<16x16xf32>
    %1376 = arith.mulf %1370, %1375 : vector<16x16xf32>
    %c0_671 = arith.constant 0 : index
    %c0_672 = arith.constant 0 : index
    %1377 = memref.load %arg13[%c0_671, %c0_672] : memref<16x4xf32, #tpu.memory_space<smem>>
    %1378 = vector.broadcast %1377 : f32 to vector<16x16xf32>
    %1379 = arith.mulf %1376, %1378 : vector<16x16xf32>
    %c0_673 = arith.constant 0 : index
    %c1_674 = arith.constant 1 : index
    %1380 = memref.load %arg13[%c0_673, %c1_674] : memref<16x4xf32, #tpu.memory_space<smem>>
    %1381 = vector.broadcast %1380 : f32 to vector<16x16xf32>
    %1382 = arith.mulf %1376, %1381 : vector<16x16xf32>
    %c0_675 = arith.constant 0 : index
    %c2_676 = arith.constant 2 : index
    %1383 = memref.load %arg13[%c0_675, %c2_676] : memref<16x4xf32, #tpu.memory_space<smem>>
    %1384 = vector.broadcast %1383 : f32 to vector<16x16xf32>
    %1385 = arith.mulf %1376, %1384 : vector<16x16xf32>
    %c0_677 = arith.constant 0 : index
    %c3_678 = arith.constant 3 : index
    %1386 = memref.load %arg13[%c0_677, %c3_678] : memref<16x4xf32, #tpu.memory_space<smem>>
    %1387 = vector.broadcast %1386 : f32 to vector<16x16xf32>
    %1388 = arith.mulf %1376, %1387 : vector<16x16xf32>
    %c1_679 = arith.constant 1 : index
    %1389 = memref.load %arg12[%c1_679] : memref<16xf32, #tpu.memory_space<smem>>
    %1390 = vector.broadcast %1389 : f32 to vector<16x16xf32>
    %1391 = arith.addf %1309, %1390 : vector<16x16xf32>
    %cst_680 = arith.constant 5.000000e-01 : f32
    %1392 = vector.broadcast %cst_680 : f32 to vector<16x16xf32>
    %1393 = arith.mulf %1392, %1391 : vector<16x16xf32>
    %cst_681 = arith.constant 5.000000e-01 : f32
    %1394 = vector.broadcast %cst_681 : f32 to vector<16x16xf32>
    %1395 = arith.mulf %1394, %1391 : vector<16x16xf32>
    %1396 = math.tanh %1395 : vector<16x16xf32>
    %cst_682 = arith.constant 1.000000e+00 : f32
    %1397 = vector.broadcast %cst_682 : f32 to vector<16x16xf32>
    %1398 = arith.addf %1397, %1396 : vector<16x16xf32>
    %1399 = arith.mulf %1393, %1398 : vector<16x16xf32>
    %c1_683 = arith.constant 1 : index
    %c0_684 = arith.constant 0 : index
    %1400 = memref.load %arg13[%c1_683, %c0_684] : memref<16x4xf32, #tpu.memory_space<smem>>
    %1401 = vector.broadcast %1400 : f32 to vector<16x16xf32>
    %1402 = arith.mulf %1399, %1401 : vector<16x16xf32>
    %1403 = arith.addf %1379, %1402 : vector<16x16xf32>
    %c1_685 = arith.constant 1 : index
    %c1_686 = arith.constant 1 : index
    %1404 = memref.load %arg13[%c1_685, %c1_686] : memref<16x4xf32, #tpu.memory_space<smem>>
    %1405 = vector.broadcast %1404 : f32 to vector<16x16xf32>
    %1406 = arith.mulf %1399, %1405 : vector<16x16xf32>
    %1407 = arith.addf %1382, %1406 : vector<16x16xf32>
    %c1_687 = arith.constant 1 : index
    %c2_688 = arith.constant 2 : index
    %1408 = memref.load %arg13[%c1_687, %c2_688] : memref<16x4xf32, #tpu.memory_space<smem>>
    %1409 = vector.broadcast %1408 : f32 to vector<16x16xf32>
    %1410 = arith.mulf %1399, %1409 : vector<16x16xf32>
    %1411 = arith.addf %1385, %1410 : vector<16x16xf32>
    %c1_689 = arith.constant 1 : index
    %c3_690 = arith.constant 3 : index
    %1412 = memref.load %arg13[%c1_689, %c3_690] : memref<16x4xf32, #tpu.memory_space<smem>>
    %1413 = vector.broadcast %1412 : f32 to vector<16x16xf32>
    %1414 = arith.mulf %1399, %1413 : vector<16x16xf32>
    %1415 = arith.addf %1388, %1414 : vector<16x16xf32>
    %c2_691 = arith.constant 2 : index
    %1416 = memref.load %arg12[%c2_691] : memref<16xf32, #tpu.memory_space<smem>>
    %1417 = vector.broadcast %1416 : f32 to vector<16x16xf32>
    %1418 = arith.addf %1313, %1417 : vector<16x16xf32>
    %cst_692 = arith.constant 5.000000e-01 : f32
    %1419 = vector.broadcast %cst_692 : f32 to vector<16x16xf32>
    %1420 = arith.mulf %1419, %1418 : vector<16x16xf32>
    %cst_693 = arith.constant 5.000000e-01 : f32
    %1421 = vector.broadcast %cst_693 : f32 to vector<16x16xf32>
    %1422 = arith.mulf %1421, %1418 : vector<16x16xf32>
    %1423 = math.tanh %1422 : vector<16x16xf32>
    %cst_694 = arith.constant 1.000000e+00 : f32
    %1424 = vector.broadcast %cst_694 : f32 to vector<16x16xf32>
    %1425 = arith.addf %1424, %1423 : vector<16x16xf32>
    %1426 = arith.mulf %1420, %1425 : vector<16x16xf32>
    %c2_695 = arith.constant 2 : index
    %c0_696 = arith.constant 0 : index
    %1427 = memref.load %arg13[%c2_695, %c0_696] : memref<16x4xf32, #tpu.memory_space<smem>>
    %1428 = vector.broadcast %1427 : f32 to vector<16x16xf32>
    %1429 = arith.mulf %1426, %1428 : vector<16x16xf32>
    %1430 = arith.addf %1403, %1429 : vector<16x16xf32>
    %c2_697 = arith.constant 2 : index
    %c1_698 = arith.constant 1 : index
    %1431 = memref.load %arg13[%c2_697, %c1_698] : memref<16x4xf32, #tpu.memory_space<smem>>
    %1432 = vector.broadcast %1431 : f32 to vector<16x16xf32>
    %1433 = arith.mulf %1426, %1432 : vector<16x16xf32>
    %1434 = arith.addf %1407, %1433 : vector<16x16xf32>
    %c2_699 = arith.constant 2 : index
    %c2_700 = arith.constant 2 : index
    %1435 = memref.load %arg13[%c2_699, %c2_700] : memref<16x4xf32, #tpu.memory_space<smem>>
    %1436 = vector.broadcast %1435 : f32 to vector<16x16xf32>
    %1437 = arith.mulf %1426, %1436 : vector<16x16xf32>
    %1438 = arith.addf %1411, %1437 : vector<16x16xf32>
    %c2_701 = arith.constant 2 : index
    %c3_702 = arith.constant 3 : index
    %1439 = memref.load %arg13[%c2_701, %c3_702] : memref<16x4xf32, #tpu.memory_space<smem>>
    %1440 = vector.broadcast %1439 : f32 to vector<16x16xf32>
    %1441 = arith.mulf %1426, %1440 : vector<16x16xf32>
    %1442 = arith.addf %1415, %1441 : vector<16x16xf32>
    %c3_703 = arith.constant 3 : index
    %1443 = memref.load %arg12[%c3_703] : memref<16xf32, #tpu.memory_space<smem>>
    %1444 = vector.broadcast %1443 : f32 to vector<16x16xf32>
    %1445 = arith.addf %1317, %1444 : vector<16x16xf32>
    %cst_704 = arith.constant 5.000000e-01 : f32
    %1446 = vector.broadcast %cst_704 : f32 to vector<16x16xf32>
    %1447 = arith.mulf %1446, %1445 : vector<16x16xf32>
    %cst_705 = arith.constant 5.000000e-01 : f32
    %1448 = vector.broadcast %cst_705 : f32 to vector<16x16xf32>
    %1449 = arith.mulf %1448, %1445 : vector<16x16xf32>
    %1450 = math.tanh %1449 : vector<16x16xf32>
    %cst_706 = arith.constant 1.000000e+00 : f32
    %1451 = vector.broadcast %cst_706 : f32 to vector<16x16xf32>
    %1452 = arith.addf %1451, %1450 : vector<16x16xf32>
    %1453 = arith.mulf %1447, %1452 : vector<16x16xf32>
    %c3_707 = arith.constant 3 : index
    %c0_708 = arith.constant 0 : index
    %1454 = memref.load %arg13[%c3_707, %c0_708] : memref<16x4xf32, #tpu.memory_space<smem>>
    %1455 = vector.broadcast %1454 : f32 to vector<16x16xf32>
    %1456 = arith.mulf %1453, %1455 : vector<16x16xf32>
    %1457 = arith.addf %1430, %1456 : vector<16x16xf32>
    %c3_709 = arith.constant 3 : index
    %c1_710 = arith.constant 1 : index
    %1458 = memref.load %arg13[%c3_709, %c1_710] : memref<16x4xf32, #tpu.memory_space<smem>>
    %1459 = vector.broadcast %1458 : f32 to vector<16x16xf32>
    %1460 = arith.mulf %1453, %1459 : vector<16x16xf32>
    %1461 = arith.addf %1434, %1460 : vector<16x16xf32>
    %c3_711 = arith.constant 3 : index
    %c2_712 = arith.constant 2 : index
    %1462 = memref.load %arg13[%c3_711, %c2_712] : memref<16x4xf32, #tpu.memory_space<smem>>
    %1463 = vector.broadcast %1462 : f32 to vector<16x16xf32>
    %1464 = arith.mulf %1453, %1463 : vector<16x16xf32>
    %1465 = arith.addf %1438, %1464 : vector<16x16xf32>
    %c3_713 = arith.constant 3 : index
    %c3_714 = arith.constant 3 : index
    %1466 = memref.load %arg13[%c3_713, %c3_714] : memref<16x4xf32, #tpu.memory_space<smem>>
    %1467 = vector.broadcast %1466 : f32 to vector<16x16xf32>
    %1468 = arith.mulf %1453, %1467 : vector<16x16xf32>
    %1469 = arith.addf %1442, %1468 : vector<16x16xf32>
    %c4_715 = arith.constant 4 : index
    %1470 = memref.load %arg12[%c4_715] : memref<16xf32, #tpu.memory_space<smem>>
    %1471 = vector.broadcast %1470 : f32 to vector<16x16xf32>
    %1472 = arith.addf %1321, %1471 : vector<16x16xf32>
    %cst_716 = arith.constant 5.000000e-01 : f32
    %1473 = vector.broadcast %cst_716 : f32 to vector<16x16xf32>
    %1474 = arith.mulf %1473, %1472 : vector<16x16xf32>
    %cst_717 = arith.constant 5.000000e-01 : f32
    %1475 = vector.broadcast %cst_717 : f32 to vector<16x16xf32>
    %1476 = arith.mulf %1475, %1472 : vector<16x16xf32>
    %1477 = math.tanh %1476 : vector<16x16xf32>
    %cst_718 = arith.constant 1.000000e+00 : f32
    %1478 = vector.broadcast %cst_718 : f32 to vector<16x16xf32>
    %1479 = arith.addf %1478, %1477 : vector<16x16xf32>
    %1480 = arith.mulf %1474, %1479 : vector<16x16xf32>
    %c4_719 = arith.constant 4 : index
    %c0_720 = arith.constant 0 : index
    %1481 = memref.load %arg13[%c4_719, %c0_720] : memref<16x4xf32, #tpu.memory_space<smem>>
    %1482 = vector.broadcast %1481 : f32 to vector<16x16xf32>
    %1483 = arith.mulf %1480, %1482 : vector<16x16xf32>
    %1484 = arith.addf %1457, %1483 : vector<16x16xf32>
    %c4_721 = arith.constant 4 : index
    %c1_722 = arith.constant 1 : index
    %1485 = memref.load %arg13[%c4_721, %c1_722] : memref<16x4xf32, #tpu.memory_space<smem>>
    %1486 = vector.broadcast %1485 : f32 to vector<16x16xf32>
    %1487 = arith.mulf %1480, %1486 : vector<16x16xf32>
    %1488 = arith.addf %1461, %1487 : vector<16x16xf32>
    %c4_723 = arith.constant 4 : index
    %c2_724 = arith.constant 2 : index
    %1489 = memref.load %arg13[%c4_723, %c2_724] : memref<16x4xf32, #tpu.memory_space<smem>>
    %1490 = vector.broadcast %1489 : f32 to vector<16x16xf32>
    %1491 = arith.mulf %1480, %1490 : vector<16x16xf32>
    %1492 = arith.addf %1465, %1491 : vector<16x16xf32>
    %c4_725 = arith.constant 4 : index
    %c3_726 = arith.constant 3 : index
    %1493 = memref.load %arg13[%c4_725, %c3_726] : memref<16x4xf32, #tpu.memory_space<smem>>
    %1494 = vector.broadcast %1493 : f32 to vector<16x16xf32>
    %1495 = arith.mulf %1480, %1494 : vector<16x16xf32>
    %1496 = arith.addf %1469, %1495 : vector<16x16xf32>
    %c5_727 = arith.constant 5 : index
    %1497 = memref.load %arg12[%c5_727] : memref<16xf32, #tpu.memory_space<smem>>
    %1498 = vector.broadcast %1497 : f32 to vector<16x16xf32>
    %1499 = arith.addf %1325, %1498 : vector<16x16xf32>
    %cst_728 = arith.constant 5.000000e-01 : f32
    %1500 = vector.broadcast %cst_728 : f32 to vector<16x16xf32>
    %1501 = arith.mulf %1500, %1499 : vector<16x16xf32>
    %cst_729 = arith.constant 5.000000e-01 : f32
    %1502 = vector.broadcast %cst_729 : f32 to vector<16x16xf32>
    %1503 = arith.mulf %1502, %1499 : vector<16x16xf32>
    %1504 = math.tanh %1503 : vector<16x16xf32>
    %cst_730 = arith.constant 1.000000e+00 : f32
    %1505 = vector.broadcast %cst_730 : f32 to vector<16x16xf32>
    %1506 = arith.addf %1505, %1504 : vector<16x16xf32>
    %1507 = arith.mulf %1501, %1506 : vector<16x16xf32>
    %c5_731 = arith.constant 5 : index
    %c0_732 = arith.constant 0 : index
    %1508 = memref.load %arg13[%c5_731, %c0_732] : memref<16x4xf32, #tpu.memory_space<smem>>
    %1509 = vector.broadcast %1508 : f32 to vector<16x16xf32>
    %1510 = arith.mulf %1507, %1509 : vector<16x16xf32>
    %1511 = arith.addf %1484, %1510 : vector<16x16xf32>
    %c5_733 = arith.constant 5 : index
    %c1_734 = arith.constant 1 : index
    %1512 = memref.load %arg13[%c5_733, %c1_734] : memref<16x4xf32, #tpu.memory_space<smem>>
    %1513 = vector.broadcast %1512 : f32 to vector<16x16xf32>
    %1514 = arith.mulf %1507, %1513 : vector<16x16xf32>
    %1515 = arith.addf %1488, %1514 : vector<16x16xf32>
    %c5_735 = arith.constant 5 : index
    %c2_736 = arith.constant 2 : index
    %1516 = memref.load %arg13[%c5_735, %c2_736] : memref<16x4xf32, #tpu.memory_space<smem>>
    %1517 = vector.broadcast %1516 : f32 to vector<16x16xf32>
    %1518 = arith.mulf %1507, %1517 : vector<16x16xf32>
    %1519 = arith.addf %1492, %1518 : vector<16x16xf32>
    %c5_737 = arith.constant 5 : index
    %c3_738 = arith.constant 3 : index
    %1520 = memref.load %arg13[%c5_737, %c3_738] : memref<16x4xf32, #tpu.memory_space<smem>>
    %1521 = vector.broadcast %1520 : f32 to vector<16x16xf32>
    %1522 = arith.mulf %1507, %1521 : vector<16x16xf32>
    %1523 = arith.addf %1496, %1522 : vector<16x16xf32>
    %c6_739 = arith.constant 6 : index
    %1524 = memref.load %arg12[%c6_739] : memref<16xf32, #tpu.memory_space<smem>>
    %1525 = vector.broadcast %1524 : f32 to vector<16x16xf32>
    %1526 = arith.addf %1329, %1525 : vector<16x16xf32>
    %cst_740 = arith.constant 5.000000e-01 : f32
    %1527 = vector.broadcast %cst_740 : f32 to vector<16x16xf32>
    %1528 = arith.mulf %1527, %1526 : vector<16x16xf32>
    %cst_741 = arith.constant 5.000000e-01 : f32
    %1529 = vector.broadcast %cst_741 : f32 to vector<16x16xf32>
    %1530 = arith.mulf %1529, %1526 : vector<16x16xf32>
    %1531 = math.tanh %1530 : vector<16x16xf32>
    %cst_742 = arith.constant 1.000000e+00 : f32
    %1532 = vector.broadcast %cst_742 : f32 to vector<16x16xf32>
    %1533 = arith.addf %1532, %1531 : vector<16x16xf32>
    %1534 = arith.mulf %1528, %1533 : vector<16x16xf32>
    %c6_743 = arith.constant 6 : index
    %c0_744 = arith.constant 0 : index
    %1535 = memref.load %arg13[%c6_743, %c0_744] : memref<16x4xf32, #tpu.memory_space<smem>>
    %1536 = vector.broadcast %1535 : f32 to vector<16x16xf32>
    %1537 = arith.mulf %1534, %1536 : vector<16x16xf32>
    %1538 = arith.addf %1511, %1537 : vector<16x16xf32>
    %c6_745 = arith.constant 6 : index
    %c1_746 = arith.constant 1 : index
    %1539 = memref.load %arg13[%c6_745, %c1_746] : memref<16x4xf32, #tpu.memory_space<smem>>
    %1540 = vector.broadcast %1539 : f32 to vector<16x16xf32>
    %1541 = arith.mulf %1534, %1540 : vector<16x16xf32>
    %1542 = arith.addf %1515, %1541 : vector<16x16xf32>
    %c6_747 = arith.constant 6 : index
    %c2_748 = arith.constant 2 : index
    %1543 = memref.load %arg13[%c6_747, %c2_748] : memref<16x4xf32, #tpu.memory_space<smem>>
    %1544 = vector.broadcast %1543 : f32 to vector<16x16xf32>
    %1545 = arith.mulf %1534, %1544 : vector<16x16xf32>
    %1546 = arith.addf %1519, %1545 : vector<16x16xf32>
    %c6_749 = arith.constant 6 : index
    %c3_750 = arith.constant 3 : index
    %1547 = memref.load %arg13[%c6_749, %c3_750] : memref<16x4xf32, #tpu.memory_space<smem>>
    %1548 = vector.broadcast %1547 : f32 to vector<16x16xf32>
    %1549 = arith.mulf %1534, %1548 : vector<16x16xf32>
    %1550 = arith.addf %1523, %1549 : vector<16x16xf32>
    %c7_751 = arith.constant 7 : index
    %1551 = memref.load %arg12[%c7_751] : memref<16xf32, #tpu.memory_space<smem>>
    %1552 = vector.broadcast %1551 : f32 to vector<16x16xf32>
    %1553 = arith.addf %1333, %1552 : vector<16x16xf32>
    %cst_752 = arith.constant 5.000000e-01 : f32
    %1554 = vector.broadcast %cst_752 : f32 to vector<16x16xf32>
    %1555 = arith.mulf %1554, %1553 : vector<16x16xf32>
    %cst_753 = arith.constant 5.000000e-01 : f32
    %1556 = vector.broadcast %cst_753 : f32 to vector<16x16xf32>
    %1557 = arith.mulf %1556, %1553 : vector<16x16xf32>
    %1558 = math.tanh %1557 : vector<16x16xf32>
    %cst_754 = arith.constant 1.000000e+00 : f32
    %1559 = vector.broadcast %cst_754 : f32 to vector<16x16xf32>
    %1560 = arith.addf %1559, %1558 : vector<16x16xf32>
    %1561 = arith.mulf %1555, %1560 : vector<16x16xf32>
    %c7_755 = arith.constant 7 : index
    %c0_756 = arith.constant 0 : index
    %1562 = memref.load %arg13[%c7_755, %c0_756] : memref<16x4xf32, #tpu.memory_space<smem>>
    %1563 = vector.broadcast %1562 : f32 to vector<16x16xf32>
    %1564 = arith.mulf %1561, %1563 : vector<16x16xf32>
    %1565 = arith.addf %1538, %1564 : vector<16x16xf32>
    %c7_757 = arith.constant 7 : index
    %c1_758 = arith.constant 1 : index
    %1566 = memref.load %arg13[%c7_757, %c1_758] : memref<16x4xf32, #tpu.memory_space<smem>>
    %1567 = vector.broadcast %1566 : f32 to vector<16x16xf32>
    %1568 = arith.mulf %1561, %1567 : vector<16x16xf32>
    %1569 = arith.addf %1542, %1568 : vector<16x16xf32>
    %c7_759 = arith.constant 7 : index
    %c2_760 = arith.constant 2 : index
    %1570 = memref.load %arg13[%c7_759, %c2_760] : memref<16x4xf32, #tpu.memory_space<smem>>
    %1571 = vector.broadcast %1570 : f32 to vector<16x16xf32>
    %1572 = arith.mulf %1561, %1571 : vector<16x16xf32>
    %1573 = arith.addf %1546, %1572 : vector<16x16xf32>
    %c7_761 = arith.constant 7 : index
    %c3_762 = arith.constant 3 : index
    %1574 = memref.load %arg13[%c7_761, %c3_762] : memref<16x4xf32, #tpu.memory_space<smem>>
    %1575 = vector.broadcast %1574 : f32 to vector<16x16xf32>
    %1576 = arith.mulf %1561, %1575 : vector<16x16xf32>
    %1577 = arith.addf %1550, %1576 : vector<16x16xf32>
    %c8_763 = arith.constant 8 : index
    %1578 = memref.load %arg12[%c8_763] : memref<16xf32, #tpu.memory_space<smem>>
    %1579 = vector.broadcast %1578 : f32 to vector<16x16xf32>
    %1580 = arith.addf %1337, %1579 : vector<16x16xf32>
    %cst_764 = arith.constant 5.000000e-01 : f32
    %1581 = vector.broadcast %cst_764 : f32 to vector<16x16xf32>
    %1582 = arith.mulf %1581, %1580 : vector<16x16xf32>
    %cst_765 = arith.constant 5.000000e-01 : f32
    %1583 = vector.broadcast %cst_765 : f32 to vector<16x16xf32>
    %1584 = arith.mulf %1583, %1580 : vector<16x16xf32>
    %1585 = math.tanh %1584 : vector<16x16xf32>
    %cst_766 = arith.constant 1.000000e+00 : f32
    %1586 = vector.broadcast %cst_766 : f32 to vector<16x16xf32>
    %1587 = arith.addf %1586, %1585 : vector<16x16xf32>
    %1588 = arith.mulf %1582, %1587 : vector<16x16xf32>
    %c8_767 = arith.constant 8 : index
    %c0_768 = arith.constant 0 : index
    %1589 = memref.load %arg13[%c8_767, %c0_768] : memref<16x4xf32, #tpu.memory_space<smem>>
    %1590 = vector.broadcast %1589 : f32 to vector<16x16xf32>
    %1591 = arith.mulf %1588, %1590 : vector<16x16xf32>
    %1592 = arith.addf %1565, %1591 : vector<16x16xf32>
    %c8_769 = arith.constant 8 : index
    %c1_770 = arith.constant 1 : index
    %1593 = memref.load %arg13[%c8_769, %c1_770] : memref<16x4xf32, #tpu.memory_space<smem>>
    %1594 = vector.broadcast %1593 : f32 to vector<16x16xf32>
    %1595 = arith.mulf %1588, %1594 : vector<16x16xf32>
    %1596 = arith.addf %1569, %1595 : vector<16x16xf32>
    %c8_771 = arith.constant 8 : index
    %c2_772 = arith.constant 2 : index
    %1597 = memref.load %arg13[%c8_771, %c2_772] : memref<16x4xf32, #tpu.memory_space<smem>>
    %1598 = vector.broadcast %1597 : f32 to vector<16x16xf32>
    %1599 = arith.mulf %1588, %1598 : vector<16x16xf32>
    %1600 = arith.addf %1573, %1599 : vector<16x16xf32>
    %c8_773 = arith.constant 8 : index
    %c3_774 = arith.constant 3 : index
    %1601 = memref.load %arg13[%c8_773, %c3_774] : memref<16x4xf32, #tpu.memory_space<smem>>
    %1602 = vector.broadcast %1601 : f32 to vector<16x16xf32>
    %1603 = arith.mulf %1588, %1602 : vector<16x16xf32>
    %1604 = arith.addf %1577, %1603 : vector<16x16xf32>
    %c9_775 = arith.constant 9 : index
    %1605 = memref.load %arg12[%c9_775] : memref<16xf32, #tpu.memory_space<smem>>
    %1606 = vector.broadcast %1605 : f32 to vector<16x16xf32>
    %1607 = arith.addf %1341, %1606 : vector<16x16xf32>
    %cst_776 = arith.constant 5.000000e-01 : f32
    %1608 = vector.broadcast %cst_776 : f32 to vector<16x16xf32>
    %1609 = arith.mulf %1608, %1607 : vector<16x16xf32>
    %cst_777 = arith.constant 5.000000e-01 : f32
    %1610 = vector.broadcast %cst_777 : f32 to vector<16x16xf32>
    %1611 = arith.mulf %1610, %1607 : vector<16x16xf32>
    %1612 = math.tanh %1611 : vector<16x16xf32>
    %cst_778 = arith.constant 1.000000e+00 : f32
    %1613 = vector.broadcast %cst_778 : f32 to vector<16x16xf32>
    %1614 = arith.addf %1613, %1612 : vector<16x16xf32>
    %1615 = arith.mulf %1609, %1614 : vector<16x16xf32>
    %c9_779 = arith.constant 9 : index
    %c0_780 = arith.constant 0 : index
    %1616 = memref.load %arg13[%c9_779, %c0_780] : memref<16x4xf32, #tpu.memory_space<smem>>
    %1617 = vector.broadcast %1616 : f32 to vector<16x16xf32>
    %1618 = arith.mulf %1615, %1617 : vector<16x16xf32>
    %1619 = arith.addf %1592, %1618 : vector<16x16xf32>
    %c9_781 = arith.constant 9 : index
    %c1_782 = arith.constant 1 : index
    %1620 = memref.load %arg13[%c9_781, %c1_782] : memref<16x4xf32, #tpu.memory_space<smem>>
    %1621 = vector.broadcast %1620 : f32 to vector<16x16xf32>
    %1622 = arith.mulf %1615, %1621 : vector<16x16xf32>
    %1623 = arith.addf %1596, %1622 : vector<16x16xf32>
    %c9_783 = arith.constant 9 : index
    %c2_784 = arith.constant 2 : index
    %1624 = memref.load %arg13[%c9_783, %c2_784] : memref<16x4xf32, #tpu.memory_space<smem>>
    %1625 = vector.broadcast %1624 : f32 to vector<16x16xf32>
    %1626 = arith.mulf %1615, %1625 : vector<16x16xf32>
    %1627 = arith.addf %1600, %1626 : vector<16x16xf32>
    %c9_785 = arith.constant 9 : index
    %c3_786 = arith.constant 3 : index
    %1628 = memref.load %arg13[%c9_785, %c3_786] : memref<16x4xf32, #tpu.memory_space<smem>>
    %1629 = vector.broadcast %1628 : f32 to vector<16x16xf32>
    %1630 = arith.mulf %1615, %1629 : vector<16x16xf32>
    %1631 = arith.addf %1604, %1630 : vector<16x16xf32>
    %c10_787 = arith.constant 10 : index
    %1632 = memref.load %arg12[%c10_787] : memref<16xf32, #tpu.memory_space<smem>>
    %1633 = vector.broadcast %1632 : f32 to vector<16x16xf32>
    %1634 = arith.addf %1345, %1633 : vector<16x16xf32>
    %cst_788 = arith.constant 5.000000e-01 : f32
    %1635 = vector.broadcast %cst_788 : f32 to vector<16x16xf32>
    %1636 = arith.mulf %1635, %1634 : vector<16x16xf32>
    %cst_789 = arith.constant 5.000000e-01 : f32
    %1637 = vector.broadcast %cst_789 : f32 to vector<16x16xf32>
    %1638 = arith.mulf %1637, %1634 : vector<16x16xf32>
    %1639 = math.tanh %1638 : vector<16x16xf32>
    %cst_790 = arith.constant 1.000000e+00 : f32
    %1640 = vector.broadcast %cst_790 : f32 to vector<16x16xf32>
    %1641 = arith.addf %1640, %1639 : vector<16x16xf32>
    %1642 = arith.mulf %1636, %1641 : vector<16x16xf32>
    %c10_791 = arith.constant 10 : index
    %c0_792 = arith.constant 0 : index
    %1643 = memref.load %arg13[%c10_791, %c0_792] : memref<16x4xf32, #tpu.memory_space<smem>>
    %1644 = vector.broadcast %1643 : f32 to vector<16x16xf32>
    %1645 = arith.mulf %1642, %1644 : vector<16x16xf32>
    %1646 = arith.addf %1619, %1645 : vector<16x16xf32>
    %c10_793 = arith.constant 10 : index
    %c1_794 = arith.constant 1 : index
    %1647 = memref.load %arg13[%c10_793, %c1_794] : memref<16x4xf32, #tpu.memory_space<smem>>
    %1648 = vector.broadcast %1647 : f32 to vector<16x16xf32>
    %1649 = arith.mulf %1642, %1648 : vector<16x16xf32>
    %1650 = arith.addf %1623, %1649 : vector<16x16xf32>
    %c10_795 = arith.constant 10 : index
    %c2_796 = arith.constant 2 : index
    %1651 = memref.load %arg13[%c10_795, %c2_796] : memref<16x4xf32, #tpu.memory_space<smem>>
    %1652 = vector.broadcast %1651 : f32 to vector<16x16xf32>
    %1653 = arith.mulf %1642, %1652 : vector<16x16xf32>
    %1654 = arith.addf %1627, %1653 : vector<16x16xf32>
    %c10_797 = arith.constant 10 : index
    %c3_798 = arith.constant 3 : index
    %1655 = memref.load %arg13[%c10_797, %c3_798] : memref<16x4xf32, #tpu.memory_space<smem>>
    %1656 = vector.broadcast %1655 : f32 to vector<16x16xf32>
    %1657 = arith.mulf %1642, %1656 : vector<16x16xf32>
    %1658 = arith.addf %1631, %1657 : vector<16x16xf32>
    %c11_799 = arith.constant 11 : index
    %1659 = memref.load %arg12[%c11_799] : memref<16xf32, #tpu.memory_space<smem>>
    %1660 = vector.broadcast %1659 : f32 to vector<16x16xf32>
    %1661 = arith.addf %1349, %1660 : vector<16x16xf32>
    %cst_800 = arith.constant 5.000000e-01 : f32
    %1662 = vector.broadcast %cst_800 : f32 to vector<16x16xf32>
    %1663 = arith.mulf %1662, %1661 : vector<16x16xf32>
    %cst_801 = arith.constant 5.000000e-01 : f32
    %1664 = vector.broadcast %cst_801 : f32 to vector<16x16xf32>
    %1665 = arith.mulf %1664, %1661 : vector<16x16xf32>
    %1666 = math.tanh %1665 : vector<16x16xf32>
    %cst_802 = arith.constant 1.000000e+00 : f32
    %1667 = vector.broadcast %cst_802 : f32 to vector<16x16xf32>
    %1668 = arith.addf %1667, %1666 : vector<16x16xf32>
    %1669 = arith.mulf %1663, %1668 : vector<16x16xf32>
    %c11_803 = arith.constant 11 : index
    %c0_804 = arith.constant 0 : index
    %1670 = memref.load %arg13[%c11_803, %c0_804] : memref<16x4xf32, #tpu.memory_space<smem>>
    %1671 = vector.broadcast %1670 : f32 to vector<16x16xf32>
    %1672 = arith.mulf %1669, %1671 : vector<16x16xf32>
    %1673 = arith.addf %1646, %1672 : vector<16x16xf32>
    %c11_805 = arith.constant 11 : index
    %c1_806 = arith.constant 1 : index
    %1674 = memref.load %arg13[%c11_805, %c1_806] : memref<16x4xf32, #tpu.memory_space<smem>>
    %1675 = vector.broadcast %1674 : f32 to vector<16x16xf32>
    %1676 = arith.mulf %1669, %1675 : vector<16x16xf32>
    %1677 = arith.addf %1650, %1676 : vector<16x16xf32>
    %c11_807 = arith.constant 11 : index
    %c2_808 = arith.constant 2 : index
    %1678 = memref.load %arg13[%c11_807, %c2_808] : memref<16x4xf32, #tpu.memory_space<smem>>
    %1679 = vector.broadcast %1678 : f32 to vector<16x16xf32>
    %1680 = arith.mulf %1669, %1679 : vector<16x16xf32>
    %1681 = arith.addf %1654, %1680 : vector<16x16xf32>
    %c11_809 = arith.constant 11 : index
    %c3_810 = arith.constant 3 : index
    %1682 = memref.load %arg13[%c11_809, %c3_810] : memref<16x4xf32, #tpu.memory_space<smem>>
    %1683 = vector.broadcast %1682 : f32 to vector<16x16xf32>
    %1684 = arith.mulf %1669, %1683 : vector<16x16xf32>
    %1685 = arith.addf %1658, %1684 : vector<16x16xf32>
    %c12_811 = arith.constant 12 : index
    %1686 = memref.load %arg12[%c12_811] : memref<16xf32, #tpu.memory_space<smem>>
    %1687 = vector.broadcast %1686 : f32 to vector<16x16xf32>
    %1688 = arith.addf %1353, %1687 : vector<16x16xf32>
    %cst_812 = arith.constant 5.000000e-01 : f32
    %1689 = vector.broadcast %cst_812 : f32 to vector<16x16xf32>
    %1690 = arith.mulf %1689, %1688 : vector<16x16xf32>
    %cst_813 = arith.constant 5.000000e-01 : f32
    %1691 = vector.broadcast %cst_813 : f32 to vector<16x16xf32>
    %1692 = arith.mulf %1691, %1688 : vector<16x16xf32>
    %1693 = math.tanh %1692 : vector<16x16xf32>
    %cst_814 = arith.constant 1.000000e+00 : f32
    %1694 = vector.broadcast %cst_814 : f32 to vector<16x16xf32>
    %1695 = arith.addf %1694, %1693 : vector<16x16xf32>
    %1696 = arith.mulf %1690, %1695 : vector<16x16xf32>
    %c12_815 = arith.constant 12 : index
    %c0_816 = arith.constant 0 : index
    %1697 = memref.load %arg13[%c12_815, %c0_816] : memref<16x4xf32, #tpu.memory_space<smem>>
    %1698 = vector.broadcast %1697 : f32 to vector<16x16xf32>
    %1699 = arith.mulf %1696, %1698 : vector<16x16xf32>
    %1700 = arith.addf %1673, %1699 : vector<16x16xf32>
    %c12_817 = arith.constant 12 : index
    %c1_818 = arith.constant 1 : index
    %1701 = memref.load %arg13[%c12_817, %c1_818] : memref<16x4xf32, #tpu.memory_space<smem>>
    %1702 = vector.broadcast %1701 : f32 to vector<16x16xf32>
    %1703 = arith.mulf %1696, %1702 : vector<16x16xf32>
    %1704 = arith.addf %1677, %1703 : vector<16x16xf32>
    %c12_819 = arith.constant 12 : index
    %c2_820 = arith.constant 2 : index
    %1705 = memref.load %arg13[%c12_819, %c2_820] : memref<16x4xf32, #tpu.memory_space<smem>>
    %1706 = vector.broadcast %1705 : f32 to vector<16x16xf32>
    %1707 = arith.mulf %1696, %1706 : vector<16x16xf32>
    %1708 = arith.addf %1681, %1707 : vector<16x16xf32>
    %c12_821 = arith.constant 12 : index
    %c3_822 = arith.constant 3 : index
    %1709 = memref.load %arg13[%c12_821, %c3_822] : memref<16x4xf32, #tpu.memory_space<smem>>
    %1710 = vector.broadcast %1709 : f32 to vector<16x16xf32>
    %1711 = arith.mulf %1696, %1710 : vector<16x16xf32>
    %1712 = arith.addf %1685, %1711 : vector<16x16xf32>
    %c13_823 = arith.constant 13 : index
    %1713 = memref.load %arg12[%c13_823] : memref<16xf32, #tpu.memory_space<smem>>
    %1714 = vector.broadcast %1713 : f32 to vector<16x16xf32>
    %1715 = arith.addf %1357, %1714 : vector<16x16xf32>
    %cst_824 = arith.constant 5.000000e-01 : f32
    %1716 = vector.broadcast %cst_824 : f32 to vector<16x16xf32>
    %1717 = arith.mulf %1716, %1715 : vector<16x16xf32>
    %cst_825 = arith.constant 5.000000e-01 : f32
    %1718 = vector.broadcast %cst_825 : f32 to vector<16x16xf32>
    %1719 = arith.mulf %1718, %1715 : vector<16x16xf32>
    %1720 = math.tanh %1719 : vector<16x16xf32>
    %cst_826 = arith.constant 1.000000e+00 : f32
    %1721 = vector.broadcast %cst_826 : f32 to vector<16x16xf32>
    %1722 = arith.addf %1721, %1720 : vector<16x16xf32>
    %1723 = arith.mulf %1717, %1722 : vector<16x16xf32>
    %c13_827 = arith.constant 13 : index
    %c0_828 = arith.constant 0 : index
    %1724 = memref.load %arg13[%c13_827, %c0_828] : memref<16x4xf32, #tpu.memory_space<smem>>
    %1725 = vector.broadcast %1724 : f32 to vector<16x16xf32>
    %1726 = arith.mulf %1723, %1725 : vector<16x16xf32>
    %1727 = arith.addf %1700, %1726 : vector<16x16xf32>
    %c13_829 = arith.constant 13 : index
    %c1_830 = arith.constant 1 : index
    %1728 = memref.load %arg13[%c13_829, %c1_830] : memref<16x4xf32, #tpu.memory_space<smem>>
    %1729 = vector.broadcast %1728 : f32 to vector<16x16xf32>
    %1730 = arith.mulf %1723, %1729 : vector<16x16xf32>
    %1731 = arith.addf %1704, %1730 : vector<16x16xf32>
    %c13_831 = arith.constant 13 : index
    %c2_832 = arith.constant 2 : index
    %1732 = memref.load %arg13[%c13_831, %c2_832] : memref<16x4xf32, #tpu.memory_space<smem>>
    %1733 = vector.broadcast %1732 : f32 to vector<16x16xf32>
    %1734 = arith.mulf %1723, %1733 : vector<16x16xf32>
    %1735 = arith.addf %1708, %1734 : vector<16x16xf32>
    %c13_833 = arith.constant 13 : index
    %c3_834 = arith.constant 3 : index
    %1736 = memref.load %arg13[%c13_833, %c3_834] : memref<16x4xf32, #tpu.memory_space<smem>>
    %1737 = vector.broadcast %1736 : f32 to vector<16x16xf32>
    %1738 = arith.mulf %1723, %1737 : vector<16x16xf32>
    %1739 = arith.addf %1712, %1738 : vector<16x16xf32>
    %c14_835 = arith.constant 14 : index
    %1740 = memref.load %arg12[%c14_835] : memref<16xf32, #tpu.memory_space<smem>>
    %1741 = vector.broadcast %1740 : f32 to vector<16x16xf32>
    %1742 = arith.addf %1361, %1741 : vector<16x16xf32>
    %cst_836 = arith.constant 5.000000e-01 : f32
    %1743 = vector.broadcast %cst_836 : f32 to vector<16x16xf32>
    %1744 = arith.mulf %1743, %1742 : vector<16x16xf32>
    %cst_837 = arith.constant 5.000000e-01 : f32
    %1745 = vector.broadcast %cst_837 : f32 to vector<16x16xf32>
    %1746 = arith.mulf %1745, %1742 : vector<16x16xf32>
    %1747 = math.tanh %1746 : vector<16x16xf32>
    %cst_838 = arith.constant 1.000000e+00 : f32
    %1748 = vector.broadcast %cst_838 : f32 to vector<16x16xf32>
    %1749 = arith.addf %1748, %1747 : vector<16x16xf32>
    %1750 = arith.mulf %1744, %1749 : vector<16x16xf32>
    %c14_839 = arith.constant 14 : index
    %c0_840 = arith.constant 0 : index
    %1751 = memref.load %arg13[%c14_839, %c0_840] : memref<16x4xf32, #tpu.memory_space<smem>>
    %1752 = vector.broadcast %1751 : f32 to vector<16x16xf32>
    %1753 = arith.mulf %1750, %1752 : vector<16x16xf32>
    %1754 = arith.addf %1727, %1753 : vector<16x16xf32>
    %c14_841 = arith.constant 14 : index
    %c1_842 = arith.constant 1 : index
    %1755 = memref.load %arg13[%c14_841, %c1_842] : memref<16x4xf32, #tpu.memory_space<smem>>
    %1756 = vector.broadcast %1755 : f32 to vector<16x16xf32>
    %1757 = arith.mulf %1750, %1756 : vector<16x16xf32>
    %1758 = arith.addf %1731, %1757 : vector<16x16xf32>
    %c14_843 = arith.constant 14 : index
    %c2_844 = arith.constant 2 : index
    %1759 = memref.load %arg13[%c14_843, %c2_844] : memref<16x4xf32, #tpu.memory_space<smem>>
    %1760 = vector.broadcast %1759 : f32 to vector<16x16xf32>
    %1761 = arith.mulf %1750, %1760 : vector<16x16xf32>
    %1762 = arith.addf %1735, %1761 : vector<16x16xf32>
    %c14_845 = arith.constant 14 : index
    %c3_846 = arith.constant 3 : index
    %1763 = memref.load %arg13[%c14_845, %c3_846] : memref<16x4xf32, #tpu.memory_space<smem>>
    %1764 = vector.broadcast %1763 : f32 to vector<16x16xf32>
    %1765 = arith.mulf %1750, %1764 : vector<16x16xf32>
    %1766 = arith.addf %1739, %1765 : vector<16x16xf32>
    %c15_847 = arith.constant 15 : index
    %1767 = memref.load %arg12[%c15_847] : memref<16xf32, #tpu.memory_space<smem>>
    %1768 = vector.broadcast %1767 : f32 to vector<16x16xf32>
    %1769 = arith.addf %1365, %1768 : vector<16x16xf32>
    %cst_848 = arith.constant 5.000000e-01 : f32
    %1770 = vector.broadcast %cst_848 : f32 to vector<16x16xf32>
    %1771 = arith.mulf %1770, %1769 : vector<16x16xf32>
    %cst_849 = arith.constant 5.000000e-01 : f32
    %1772 = vector.broadcast %cst_849 : f32 to vector<16x16xf32>
    %1773 = arith.mulf %1772, %1769 : vector<16x16xf32>
    %1774 = math.tanh %1773 : vector<16x16xf32>
    %cst_850 = arith.constant 1.000000e+00 : f32
    %1775 = vector.broadcast %cst_850 : f32 to vector<16x16xf32>
    %1776 = arith.addf %1775, %1774 : vector<16x16xf32>
    %1777 = arith.mulf %1771, %1776 : vector<16x16xf32>
    %c15_851 = arith.constant 15 : index
    %c0_852 = arith.constant 0 : index
    %1778 = memref.load %arg13[%c15_851, %c0_852] : memref<16x4xf32, #tpu.memory_space<smem>>
    %1779 = vector.broadcast %1778 : f32 to vector<16x16xf32>
    %1780 = arith.mulf %1777, %1779 : vector<16x16xf32>
    %1781 = arith.addf %1754, %1780 : vector<16x16xf32>
    %c15_853 = arith.constant 15 : index
    %c1_854 = arith.constant 1 : index
    %1782 = memref.load %arg13[%c15_853, %c1_854] : memref<16x4xf32, #tpu.memory_space<smem>>
    %1783 = vector.broadcast %1782 : f32 to vector<16x16xf32>
    %1784 = arith.mulf %1777, %1783 : vector<16x16xf32>
    %1785 = arith.addf %1758, %1784 : vector<16x16xf32>
    %c15_855 = arith.constant 15 : index
    %c2_856 = arith.constant 2 : index
    %1786 = memref.load %arg13[%c15_855, %c2_856] : memref<16x4xf32, #tpu.memory_space<smem>>
    %1787 = vector.broadcast %1786 : f32 to vector<16x16xf32>
    %1788 = arith.mulf %1777, %1787 : vector<16x16xf32>
    %1789 = arith.addf %1762, %1788 : vector<16x16xf32>
    %c15_857 = arith.constant 15 : index
    %c3_858 = arith.constant 3 : index
    %1790 = memref.load %arg13[%c15_857, %c3_858] : memref<16x4xf32, #tpu.memory_space<smem>>
    %1791 = vector.broadcast %1790 : f32 to vector<16x16xf32>
    %1792 = arith.mulf %1777, %1791 : vector<16x16xf32>
    %1793 = arith.addf %1766, %1792 : vector<16x16xf32>
    %c0_859 = arith.constant 0 : index
    %1794 = memref.load %arg14[%c0_859] : memref<4xf32, #tpu.memory_space<smem>>
    %1795 = vector.broadcast %1794 : f32 to vector<16x16xf32>
    %1796 = arith.addf %1781, %1795 : vector<16x16xf32>
    %cst_860 = arith.constant 5.000000e-01 : f32
    %1797 = vector.broadcast %cst_860 : f32 to vector<16x16xf32>
    %1798 = arith.mulf %1797, %1796 : vector<16x16xf32>
    %cst_861 = arith.constant 5.000000e-01 : f32
    %1799 = vector.broadcast %cst_861 : f32 to vector<16x16xf32>
    %1800 = arith.mulf %1799, %1796 : vector<16x16xf32>
    %1801 = math.tanh %1800 : vector<16x16xf32>
    %cst_862 = arith.constant 1.000000e+00 : f32
    %1802 = vector.broadcast %cst_862 : f32 to vector<16x16xf32>
    %1803 = arith.addf %1802, %1801 : vector<16x16xf32>
    %1804 = arith.mulf %1798, %1803 : vector<16x16xf32>
    %c1_863 = arith.constant 1 : index
    %1805 = memref.load %arg14[%c1_863] : memref<4xf32, #tpu.memory_space<smem>>
    %1806 = vector.broadcast %1805 : f32 to vector<16x16xf32>
    %1807 = arith.addf %1785, %1806 : vector<16x16xf32>
    %cst_864 = arith.constant 5.000000e-01 : f32
    %1808 = vector.broadcast %cst_864 : f32 to vector<16x16xf32>
    %1809 = arith.mulf %1808, %1807 : vector<16x16xf32>
    %cst_865 = arith.constant 5.000000e-01 : f32
    %1810 = vector.broadcast %cst_865 : f32 to vector<16x16xf32>
    %1811 = arith.mulf %1810, %1807 : vector<16x16xf32>
    %1812 = math.tanh %1811 : vector<16x16xf32>
    %cst_866 = arith.constant 1.000000e+00 : f32
    %1813 = vector.broadcast %cst_866 : f32 to vector<16x16xf32>
    %1814 = arith.addf %1813, %1812 : vector<16x16xf32>
    %1815 = arith.mulf %1809, %1814 : vector<16x16xf32>
    %c2_867 = arith.constant 2 : index
    %1816 = memref.load %arg14[%c2_867] : memref<4xf32, #tpu.memory_space<smem>>
    %1817 = vector.broadcast %1816 : f32 to vector<16x16xf32>
    %1818 = arith.addf %1789, %1817 : vector<16x16xf32>
    %cst_868 = arith.constant 5.000000e-01 : f32
    %1819 = vector.broadcast %cst_868 : f32 to vector<16x16xf32>
    %1820 = arith.mulf %1819, %1818 : vector<16x16xf32>
    %cst_869 = arith.constant 5.000000e-01 : f32
    %1821 = vector.broadcast %cst_869 : f32 to vector<16x16xf32>
    %1822 = arith.mulf %1821, %1818 : vector<16x16xf32>
    %1823 = math.tanh %1822 : vector<16x16xf32>
    %cst_870 = arith.constant 1.000000e+00 : f32
    %1824 = vector.broadcast %cst_870 : f32 to vector<16x16xf32>
    %1825 = arith.addf %1824, %1823 : vector<16x16xf32>
    %1826 = arith.mulf %1820, %1825 : vector<16x16xf32>
    %c3_871 = arith.constant 3 : index
    %1827 = memref.load %arg14[%c3_871] : memref<4xf32, #tpu.memory_space<smem>>
    %1828 = vector.broadcast %1827 : f32 to vector<16x16xf32>
    %1829 = arith.addf %1793, %1828 : vector<16x16xf32>
    %cst_872 = arith.constant 5.000000e-01 : f32
    %1830 = vector.broadcast %cst_872 : f32 to vector<16x16xf32>
    %1831 = arith.mulf %1830, %1829 : vector<16x16xf32>
    %cst_873 = arith.constant 5.000000e-01 : f32
    %1832 = vector.broadcast %cst_873 : f32 to vector<16x16xf32>
    %1833 = arith.mulf %1832, %1829 : vector<16x16xf32>
    %1834 = math.tanh %1833 : vector<16x16xf32>
    %cst_874 = arith.constant 1.000000e+00 : f32
    %1835 = vector.broadcast %cst_874 : f32 to vector<16x16xf32>
    %1836 = arith.addf %1835, %1834 : vector<16x16xf32>
    %1837 = arith.mulf %1831, %1836 : vector<16x16xf32>
    %c0_875 = arith.constant 0 : index
    %c0_876 = arith.constant 0 : index
    %c0_877 = arith.constant 0 : index
    %1838 = vector.load %arg6[%c0_875, %c0_876, %c0_877] : memref<1x1x16xf32, #tpu.memory_space<vmem>>, vector<1x1x16xf32>
    %1839 = vector.shape_cast %1838 : vector<1x1x16xf32> to vector<1x16xf32>
    %cst_878 = arith.constant 5.000000e-01 : f32
    %1840 = vector.broadcast %cst_878 : f32 to vector<1x16xf32>
    %1841 = arith.cmpf ogt, %1839, %1840 : vector<1x16xf32>
    %cst_879 = arith.constant 0.000000e+00 : f32
    %1842 = vector.broadcast %cst_879 : f32 to vector<16x32xf32>
    %c0_880 = arith.constant 0 : index
    %c0_881 = arith.constant 0 : index
    %c0_882 = arith.constant 0 : index
    %c0_883 = arith.constant 0 : index
    %1843 = vector.load %arg3[%c0_880, %c0_881, %c0_882, %c0_883] : memref<1x4x16x4xf32, #tpu.memory_space<vmem>>, vector<1x1x16x4xf32>
    %1844 = vector.shape_cast %1843 : vector<1x1x16x4xf32> to vector<16x4xf32>
    %c0_884 = arith.constant 0 : index
    %c0_885 = arith.constant 0 : index
    %c0_886 = arith.constant 0 : index
    %c0_887 = arith.constant 0 : index
    %1845 = vector.load %arg4[%c0_884, %c0_885, %c0_886, %c0_887] : memref<1x4x4x16xf32, #tpu.memory_space<vmem>>, vector<1x1x4x16xf32>
    %1846 = vector.shape_cast %1845 : vector<1x1x4x16xf32> to vector<4x16xf32>
    %cst_888 = arith.constant dense<0.000000e+00> : vector<16x16xf32>
    %1847 = tpu.matmul %1844, %1846, %cst_888 {dimension_numbers = #tpu.dot_dimension_numbers<[1], [0], [0], [1], [0, 0, 1, 1], [], []>} : vector<16x4xf32>, vector<4x16xf32>, vector<16x16xf32> -> vector<16x16xf32>
    %1848 = arith.addf %1847, %1804 : vector<16x16xf32>
    %cst_889 = arith.constant -9.99999968E+37 : f32
    %1849 = vector.shape_cast %1841 : vector<1x16xi1> to vector<1x16xi1>
    %1850 = vector.broadcast %1849 : vector<1x16xi1> to vector<16x16xi1>
    %1851 = vector.broadcast %cst_889 : f32 to vector<16x16xf32>
    %1852 = arith.select %1850, %1848, %1851 : vector<16x16xi1>, vector<16x16xf32>
    %cst_890 = arith.constant dense<0xFF800000> : vector<16xf32>
    %1853 = vector.multi_reduction <maximumf>, %1852, %cst_890 [1] : vector<16x16xf32> to vector<16xf32>
    %1854 = vector.shape_cast %1853 : vector<16xf32> to vector<16x1xf32>
    %1855 = vector.broadcast %1854 : vector<16x1xf32> to vector<16x16xf32>
    %1856 = arith.subf %1852, %1855 : vector<16x16xf32>
    %1857 = math.exp %1856 : vector<16x16xf32>
    %cst_891 = arith.constant dense<0.000000e+00> : vector<16xf32>
    %1858 = vector.multi_reduction <add>, %1857, %cst_891 [1] : vector<16x16xf32> to vector<16xf32>
    %1859 = vector.shape_cast %1858 : vector<16xf32> to vector<16x1xf32>
    %1860 = tpu.reciprocal %1859 {approx = true} : vector<16x1xf32> -> vector<16x1xf32>
    %1861 = vector.broadcast %1860 : vector<16x1xf32> to vector<16x16xf32>
    %1862 = arith.mulf %1857, %1861 : vector<16x16xf32>
    %c0_892 = arith.constant 0 : index
    %c0_893 = arith.constant 0 : index
    %c0_894 = arith.constant 0 : index
    %c0_895 = arith.constant 0 : index
    %1863 = vector.load %arg5[%c0_892, %c0_893, %c0_894, %c0_895] : memref<1x4x8x16xf32, #tpu.memory_space<vmem>>, vector<1x1x8x16xf32>
    %1864 = vector.shape_cast %1863 : vector<1x1x8x16xf32> to vector<8x16xf32>
    %cst_896 = arith.constant dense<0.000000e+00> : vector<16x8xf32>
    %1865 = tpu.matmul %1862, %1864, %cst_896 {dimension_numbers = #tpu.dot_dimension_numbers<[1], [1], [0], [0], [0, 0, 1, 0], [], []>} : vector<16x16xf32>, vector<8x16xf32>, vector<16x8xf32> -> vector<16x8xf32>
    %c0_897 = arith.constant 0 : index
    %c0_898 = arith.constant 0 : index
    %c0_899 = arith.constant 0 : index
    %1866 = vector.load %arg7[%c0_897, %c0_898, %c0_899] : memref<4x8x32xf32, #tpu.memory_space<vmem>>, vector<1x8x32xf32>
    %1867 = vector.shape_cast %1866 : vector<1x8x32xf32> to vector<8x32xf32>
    %cst_900 = arith.constant dense<0.000000e+00> : vector<16x32xf32>
    %1868 = tpu.matmul %1865, %1867, %cst_900 {dimension_numbers = #tpu.dot_dimension_numbers<[1], [0], [0], [1], [0, 0, 1, 1], [], []>} : vector<16x8xf32>, vector<8x32xf32>, vector<16x32xf32> -> vector<16x32xf32>
    %1869 = arith.addf %1842, %1868 : vector<16x32xf32>
    %c0_901 = arith.constant 0 : index
    %c1_902 = arith.constant 1 : index
    %c0_903 = arith.constant 0 : index
    %c0_904 = arith.constant 0 : index
    %1870 = vector.load %arg3[%c0_901, %c1_902, %c0_903, %c0_904] : memref<1x4x16x4xf32, #tpu.memory_space<vmem>>, vector<1x1x16x4xf32>
    %1871 = vector.shape_cast %1870 : vector<1x1x16x4xf32> to vector<16x4xf32>
    %c0_905 = arith.constant 0 : index
    %c1_906 = arith.constant 1 : index
    %c0_907 = arith.constant 0 : index
    %c0_908 = arith.constant 0 : index
    %1872 = vector.load %arg4[%c0_905, %c1_906, %c0_907, %c0_908] : memref<1x4x4x16xf32, #tpu.memory_space<vmem>>, vector<1x1x4x16xf32>
    %1873 = vector.shape_cast %1872 : vector<1x1x4x16xf32> to vector<4x16xf32>
    %cst_909 = arith.constant dense<0.000000e+00> : vector<16x16xf32>
    %1874 = tpu.matmul %1871, %1873, %cst_909 {dimension_numbers = #tpu.dot_dimension_numbers<[1], [0], [0], [1], [0, 0, 1, 1], [], []>} : vector<16x4xf32>, vector<4x16xf32>, vector<16x16xf32> -> vector<16x16xf32>
    %1875 = arith.addf %1874, %1815 : vector<16x16xf32>
    %cst_910 = arith.constant -9.99999968E+37 : f32
    %1876 = vector.shape_cast %1841 : vector<1x16xi1> to vector<1x16xi1>
    %1877 = vector.broadcast %1876 : vector<1x16xi1> to vector<16x16xi1>
    %1878 = vector.broadcast %cst_910 : f32 to vector<16x16xf32>
    %1879 = arith.select %1877, %1875, %1878 : vector<16x16xi1>, vector<16x16xf32>
    %cst_911 = arith.constant dense<0xFF800000> : vector<16xf32>
    %1880 = vector.multi_reduction <maximumf>, %1879, %cst_911 [1] : vector<16x16xf32> to vector<16xf32>
    %1881 = vector.shape_cast %1880 : vector<16xf32> to vector<16x1xf32>
    %1882 = vector.broadcast %1881 : vector<16x1xf32> to vector<16x16xf32>
    %1883 = arith.subf %1879, %1882 : vector<16x16xf32>
    %1884 = math.exp %1883 : vector<16x16xf32>
    %cst_912 = arith.constant dense<0.000000e+00> : vector<16xf32>
    %1885 = vector.multi_reduction <add>, %1884, %cst_912 [1] : vector<16x16xf32> to vector<16xf32>
    %1886 = vector.shape_cast %1885 : vector<16xf32> to vector<16x1xf32>
    %1887 = tpu.reciprocal %1886 {approx = true} : vector<16x1xf32> -> vector<16x1xf32>
    %1888 = vector.broadcast %1887 : vector<16x1xf32> to vector<16x16xf32>
    %1889 = arith.mulf %1884, %1888 : vector<16x16xf32>
    %c0_913 = arith.constant 0 : index
    %c1_914 = arith.constant 1 : index
    %c0_915 = arith.constant 0 : index
    %c0_916 = arith.constant 0 : index
    %1890 = vector.load %arg5[%c0_913, %c1_914, %c0_915, %c0_916] : memref<1x4x8x16xf32, #tpu.memory_space<vmem>>, vector<1x1x8x16xf32>
    %1891 = vector.shape_cast %1890 : vector<1x1x8x16xf32> to vector<8x16xf32>
    %cst_917 = arith.constant dense<0.000000e+00> : vector<16x8xf32>
    %1892 = tpu.matmul %1889, %1891, %cst_917 {dimension_numbers = #tpu.dot_dimension_numbers<[1], [1], [0], [0], [0, 0, 1, 0], [], []>} : vector<16x16xf32>, vector<8x16xf32>, vector<16x8xf32> -> vector<16x8xf32>
    %c1_918 = arith.constant 1 : index
    %c0_919 = arith.constant 0 : index
    %c0_920 = arith.constant 0 : index
    %1893 = vector.load %arg7[%c1_918, %c0_919, %c0_920] : memref<4x8x32xf32, #tpu.memory_space<vmem>>, vector<1x8x32xf32>
    %1894 = vector.shape_cast %1893 : vector<1x8x32xf32> to vector<8x32xf32>
    %cst_921 = arith.constant dense<0.000000e+00> : vector<16x32xf32>
    %1895 = tpu.matmul %1892, %1894, %cst_921 {dimension_numbers = #tpu.dot_dimension_numbers<[1], [0], [0], [1], [0, 0, 1, 1], [], []>} : vector<16x8xf32>, vector<8x32xf32>, vector<16x32xf32> -> vector<16x32xf32>
    %1896 = arith.addf %1869, %1895 : vector<16x32xf32>
    %c0_922 = arith.constant 0 : index
    %c2_923 = arith.constant 2 : index
    %c0_924 = arith.constant 0 : index
    %c0_925 = arith.constant 0 : index
    %1897 = vector.load %arg3[%c0_922, %c2_923, %c0_924, %c0_925] : memref<1x4x16x4xf32, #tpu.memory_space<vmem>>, vector<1x1x16x4xf32>
    %1898 = vector.shape_cast %1897 : vector<1x1x16x4xf32> to vector<16x4xf32>
    %c0_926 = arith.constant 0 : index
    %c2_927 = arith.constant 2 : index
    %c0_928 = arith.constant 0 : index
    %c0_929 = arith.constant 0 : index
    %1899 = vector.load %arg4[%c0_926, %c2_927, %c0_928, %c0_929] : memref<1x4x4x16xf32, #tpu.memory_space<vmem>>, vector<1x1x4x16xf32>
    %1900 = vector.shape_cast %1899 : vector<1x1x4x16xf32> to vector<4x16xf32>
    %cst_930 = arith.constant dense<0.000000e+00> : vector<16x16xf32>
    %1901 = tpu.matmul %1898, %1900, %cst_930 {dimension_numbers = #tpu.dot_dimension_numbers<[1], [0], [0], [1], [0, 0, 1, 1], [], []>} : vector<16x4xf32>, vector<4x16xf32>, vector<16x16xf32> -> vector<16x16xf32>
    %1902 = arith.addf %1901, %1826 : vector<16x16xf32>
    %cst_931 = arith.constant -9.99999968E+37 : f32
    %1903 = vector.shape_cast %1841 : vector<1x16xi1> to vector<1x16xi1>
    %1904 = vector.broadcast %1903 : vector<1x16xi1> to vector<16x16xi1>
    %1905 = vector.broadcast %cst_931 : f32 to vector<16x16xf32>
    %1906 = arith.select %1904, %1902, %1905 : vector<16x16xi1>, vector<16x16xf32>
    %cst_932 = arith.constant dense<0xFF800000> : vector<16xf32>
    %1907 = vector.multi_reduction <maximumf>, %1906, %cst_932 [1] : vector<16x16xf32> to vector<16xf32>
    %1908 = vector.shape_cast %1907 : vector<16xf32> to vector<16x1xf32>
    %1909 = vector.broadcast %1908 : vector<16x1xf32> to vector<16x16xf32>
    %1910 = arith.subf %1906, %1909 : vector<16x16xf32>
    %1911 = math.exp %1910 : vector<16x16xf32>
    %cst_933 = arith.constant dense<0.000000e+00> : vector<16xf32>
    %1912 = vector.multi_reduction <add>, %1911, %cst_933 [1] : vector<16x16xf32> to vector<16xf32>
    %1913 = vector.shape_cast %1912 : vector<16xf32> to vector<16x1xf32>
    %1914 = tpu.reciprocal %1913 {approx = true} : vector<16x1xf32> -> vector<16x1xf32>
    %1915 = vector.broadcast %1914 : vector<16x1xf32> to vector<16x16xf32>
    %1916 = arith.mulf %1911, %1915 : vector<16x16xf32>
    %c0_934 = arith.constant 0 : index
    %c2_935 = arith.constant 2 : index
    %c0_936 = arith.constant 0 : index
    %c0_937 = arith.constant 0 : index
    %1917 = vector.load %arg5[%c0_934, %c2_935, %c0_936, %c0_937] : memref<1x4x8x16xf32, #tpu.memory_space<vmem>>, vector<1x1x8x16xf32>
    %1918 = vector.shape_cast %1917 : vector<1x1x8x16xf32> to vector<8x16xf32>
    %cst_938 = arith.constant dense<0.000000e+00> : vector<16x8xf32>
    %1919 = tpu.matmul %1916, %1918, %cst_938 {dimension_numbers = #tpu.dot_dimension_numbers<[1], [1], [0], [0], [0, 0, 1, 0], [], []>} : vector<16x16xf32>, vector<8x16xf32>, vector<16x8xf32> -> vector<16x8xf32>
    %c2_939 = arith.constant 2 : index
    %c0_940 = arith.constant 0 : index
    %c0_941 = arith.constant 0 : index
    %1920 = vector.load %arg7[%c2_939, %c0_940, %c0_941] : memref<4x8x32xf32, #tpu.memory_space<vmem>>, vector<1x8x32xf32>
    %1921 = vector.shape_cast %1920 : vector<1x8x32xf32> to vector<8x32xf32>
    %cst_942 = arith.constant dense<0.000000e+00> : vector<16x32xf32>
    %1922 = tpu.matmul %1919, %1921, %cst_942 {dimension_numbers = #tpu.dot_dimension_numbers<[1], [0], [0], [1], [0, 0, 1, 1], [], []>} : vector<16x8xf32>, vector<8x32xf32>, vector<16x32xf32> -> vector<16x32xf32>
    %1923 = arith.addf %1896, %1922 : vector<16x32xf32>
    %c0_943 = arith.constant 0 : index
    %c3_944 = arith.constant 3 : index
    %c0_945 = arith.constant 0 : index
    %c0_946 = arith.constant 0 : index
    %1924 = vector.load %arg3[%c0_943, %c3_944, %c0_945, %c0_946] : memref<1x4x16x4xf32, #tpu.memory_space<vmem>>, vector<1x1x16x4xf32>
    %1925 = vector.shape_cast %1924 : vector<1x1x16x4xf32> to vector<16x4xf32>
    %c0_947 = arith.constant 0 : index
    %c3_948 = arith.constant 3 : index
    %c0_949 = arith.constant 0 : index
    %c0_950 = arith.constant 0 : index
    %1926 = vector.load %arg4[%c0_947, %c3_948, %c0_949, %c0_950] : memref<1x4x4x16xf32, #tpu.memory_space<vmem>>, vector<1x1x4x16xf32>
    %1927 = vector.shape_cast %1926 : vector<1x1x4x16xf32> to vector<4x16xf32>
    %cst_951 = arith.constant dense<0.000000e+00> : vector<16x16xf32>
    %1928 = tpu.matmul %1925, %1927, %cst_951 {dimension_numbers = #tpu.dot_dimension_numbers<[1], [0], [0], [1], [0, 0, 1, 1], [], []>} : vector<16x4xf32>, vector<4x16xf32>, vector<16x16xf32> -> vector<16x16xf32>
    %1929 = arith.addf %1928, %1837 : vector<16x16xf32>
    %cst_952 = arith.constant -9.99999968E+37 : f32
    %1930 = vector.shape_cast %1841 : vector<1x16xi1> to vector<1x16xi1>
    %1931 = vector.broadcast %1930 : vector<1x16xi1> to vector<16x16xi1>
    %1932 = vector.broadcast %cst_952 : f32 to vector<16x16xf32>
    %1933 = arith.select %1931, %1929, %1932 : vector<16x16xi1>, vector<16x16xf32>
    %cst_953 = arith.constant dense<0xFF800000> : vector<16xf32>
    %1934 = vector.multi_reduction <maximumf>, %1933, %cst_953 [1] : vector<16x16xf32> to vector<16xf32>
    %1935 = vector.shape_cast %1934 : vector<16xf32> to vector<16x1xf32>
    %1936 = vector.broadcast %1935 : vector<16x1xf32> to vector<16x16xf32>
    %1937 = arith.subf %1933, %1936 : vector<16x16xf32>
    %1938 = math.exp %1937 : vector<16x16xf32>
    %cst_954 = arith.constant dense<0.000000e+00> : vector<16xf32>
    %1939 = vector.multi_reduction <add>, %1938, %cst_954 [1] : vector<16x16xf32> to vector<16xf32>
    %1940 = vector.shape_cast %1939 : vector<16xf32> to vector<16x1xf32>
    %1941 = tpu.reciprocal %1940 {approx = true} : vector<16x1xf32> -> vector<16x1xf32>
    %1942 = vector.broadcast %1941 : vector<16x1xf32> to vector<16x16xf32>
    %1943 = arith.mulf %1938, %1942 : vector<16x16xf32>
    %c0_955 = arith.constant 0 : index
    %c3_956 = arith.constant 3 : index
    %c0_957 = arith.constant 0 : index
    %c0_958 = arith.constant 0 : index
    %1944 = vector.load %arg5[%c0_955, %c3_956, %c0_957, %c0_958] : memref<1x4x8x16xf32, #tpu.memory_space<vmem>>, vector<1x1x8x16xf32>
    %1945 = vector.shape_cast %1944 : vector<1x1x8x16xf32> to vector<8x16xf32>
    %cst_959 = arith.constant dense<0.000000e+00> : vector<16x8xf32>
    %1946 = tpu.matmul %1943, %1945, %cst_959 {dimension_numbers = #tpu.dot_dimension_numbers<[1], [1], [0], [0], [0, 0, 1, 0], [], []>} : vector<16x16xf32>, vector<8x16xf32>, vector<16x8xf32> -> vector<16x8xf32>
    %c3_960 = arith.constant 3 : index
    %c0_961 = arith.constant 0 : index
    %c0_962 = arith.constant 0 : index
    %1947 = vector.load %arg7[%c3_960, %c0_961, %c0_962] : memref<4x8x32xf32, #tpu.memory_space<vmem>>, vector<1x8x32xf32>
    %1948 = vector.shape_cast %1947 : vector<1x8x32xf32> to vector<8x32xf32>
    %cst_963 = arith.constant dense<0.000000e+00> : vector<16x32xf32>
    %1949 = tpu.matmul %1946, %1948, %cst_963 {dimension_numbers = #tpu.dot_dimension_numbers<[1], [0], [0], [1], [0, 0, 1, 1], [], []>} : vector<16x8xf32>, vector<8x32xf32>, vector<16x32xf32> -> vector<16x32xf32>
    %1950 = arith.addf %1923, %1949 : vector<16x32xf32>
    %c0_964 = arith.constant 0 : index
    %c0_965 = arith.constant 0 : index
    %1951 = vector.load %arg8[%c0_964, %c0_965] : memref<1x32xf32, #tpu.memory_space<vmem>>, vector<1x32xf32>
    %1952 = vector.broadcast %1951 : vector<1x32xf32> to vector<16x32xf32>
    %1953 = arith.addf %1950, %1952 : vector<16x32xf32>
    %c0_966 = arith.constant 0 : index
    %c0_967 = arith.constant 0 : index
    %c0_968 = arith.constant 0 : index
    %1954 = vector.load %arg15[%c0_966, %c0_967, %c0_968] : memref<1x16x32xf32, #tpu.memory_space<vmem>>, vector<1x16x32xf32>
    %1955 = vector.shape_cast %1954 : vector<1x16x32xf32> to vector<16x32xf32>
    %1956 = vector.shape_cast %1953 : vector<16x32xf32> to vector<1x16x32xf32>
    tpu.vector_store %arg15[%c0_966, %c0_967, %c0_968], %1956 {strides = array<i32>} : memref<1x16x32xf32, #tpu.memory_space<vmem>>, vector<1x16x32xf32>,
    return
  }
  func.func @transform_0(%arg0: i32, %arg1: i32) -> (i32, i32, i32, i32) {
    %c0_i32 = arith.constant 0 : i32
    %c0_i32_0 = arith.constant 0 : i32
    %c0_i32_1 = arith.constant 0 : i32
    return %arg0, %c0_i32, %arg1, %c0_i32_0 : i32, i32, i32, i32
  }
  func.func @transform_1(%arg0: i32, %arg1: i32) -> (i32, i32, i32, i32) {
    %c0_i32 = arith.constant 0 : i32
    %c0_i32_0 = arith.constant 0 : i32
    %c0_i32_1 = arith.constant 0 : i32
    return %arg0, %c0_i32, %arg1, %c0_i32_0 : i32, i32, i32, i32
  }
  func.func @transform_2(%arg0: i32, %arg1: i32) -> (i32, i32, i32, i32) {
    %c0_i32 = arith.constant 0 : i32
    %c0_i32_0 = arith.constant 0 : i32
    %c0_i32_1 = arith.constant 0 : i32
    %c0_i32_2 = arith.constant 0 : i32
    return %arg0, %c0_i32, %c0_i32_0, %c0_i32_1 : i32, i32, i32, i32
  }
  func.func @transform_3(%arg0: i32, %arg1: i32) -> (i32, i32, i32, i32) {
    %c0_i32 = arith.constant 0 : i32
    %c0_i32_0 = arith.constant 0 : i32
    %c0_i32_1 = arith.constant 0 : i32
    %c0_i32_2 = arith.constant 0 : i32
    return %arg0, %c0_i32, %c0_i32_0, %c0_i32_1 : i32, i32, i32, i32
  }
  func.func @transform_4(%arg0: i32, %arg1: i32) -> (i32, i32, i32) {
    %c0_i32 = arith.constant 0 : i32
    %c0_i32_0 = arith.constant 0 : i32
    %c0_i32_1 = arith.constant 0 : i32
    return %arg0, %c0_i32, %c0_i32_0 : i32, i32, i32
  }
  func.func @transform_5(%arg0: i32, %arg1: i32) -> (i32, i32, i32) {
    %c0_i32 = arith.constant 0 : i32
    %c0_i32_0 = arith.constant 0 : i32
    %c0_i32_1 = arith.constant 0 : i32
    %c0_i32_2 = arith.constant 0 : i32
    return %c0_i32, %c0_i32_0, %c0_i32_1 : i32, i32, i32
  }
  func.func @transform_6(%arg0: i32, %arg1: i32) -> (i32, i32) {
    %c0_i32 = arith.constant 0 : i32
    %c0_i32_0 = arith.constant 0 : i32
    %c0_i32_1 = arith.constant 0 : i32
    return %c0_i32, %c0_i32_0 : i32, i32
  }
  func.func @transform_7(%arg0: i32, %arg1: i32) -> (i32, i32) {
    %c0_i32 = arith.constant 0 : i32
    %c0_i32_0 = arith.constant 0 : i32
    %c0_i32_1 = arith.constant 0 : i32
    return %c0_i32, %c0_i32_0 : i32, i32
  }
  func.func @transform_8(%arg0: i32, %arg1: i32) -> i32 {
    %c0_i32 = arith.constant 0 : i32
    %c0_i32_0 = arith.constant 0 : i32
    return %c0_i32 : i32
  }
  func.func @transform_9(%arg0: i32, %arg1: i32) -> (i32, i32) {
    %c0_i32 = arith.constant 0 : i32
    %c0_i32_0 = arith.constant 0 : i32
    %c0_i32_1 = arith.constant 0 : i32
    return %c0_i32, %c0_i32_0 : i32, i32
  }
  func.func @transform_10(%arg0: i32, %arg1: i32) -> i32 {
    %c0_i32 = arith.constant 0 : i32
    %c0_i32_0 = arith.constant 0 : i32
    return %c0_i32 : i32
  }
  func.func @transform_11(%arg0: i32, %arg1: i32) -> (i32, i32) {
    %c0_i32 = arith.constant 0 : i32
    %c0_i32_0 = arith.constant 0 : i32
    %c0_i32_1 = arith.constant 0 : i32
    return %c0_i32, %c0_i32_0 : i32, i32
  }
  func.func @transform_12(%arg0: i32, %arg1: i32) -> i32 {
    %c0_i32 = arith.constant 0 : i32
    %c0_i32_0 = arith.constant 0 : i32
    return %c0_i32 : i32
  }
  func.func @transform_13(%arg0: i32, %arg1: i32) -> (i32, i32, i32) {
    %c0_i32 = arith.constant 0 : i32
    %c0_i32_0 = arith.constant 0 : i32
    return %arg0, %arg1, %c0_i32 : i32, i32, i32
  }
}

</mosaic_0001>

<bundles_post_ra>
// kernel: tpu_custom_call.1
= control target key start
LH: loop header
LB: loop body
LE: loop exit
PB: predicated region body
PF: predicated region fallthrough
CT: control target
= control target key end

     0   :  { %s10705_s0 = inlined_call_operand.vmem [shape: f32[2,3,16,16], index: 0, kind: input, shape index: {}]   ;;  %s10706_s1 = inlined_call_operand.vmem [shape: f32[2,4,16,4], index: 1, kind: input, shape index: {}]   ;;  %s10707_s2 = inlined_call_operand.hbm [shape: f32[2,4,4,16], index: 2, kind: input, shape index: {}]   ;;  %s10708_s3 = inlined_call_operand.vmem [shape: f32[2,4,8,16], index: 3, kind: input, shape index: {}]   ;;  %s10709_s4 = inlined_call_operand.vmem [shape: f32[2,1,16], index: 4, kind: input, shape index: {}]   ;;  %s10710_s5 = inlined_call_operand.hbm [shape: f32[4,8,32], index: 5, kind: input, shape index: {}]   ;;  %s10711_s6 = inlined_call_operand.vmem [shape: f32[1,32], index: 6, kind: input, shape index: {}]   ;;  %s10712_s7 = inlined_call_operand.vmem [shape: f32[3,16], index: 7, kind: input, shape index: {}]   ;;  %s10713_s8 = inlined_call_operand.vmem [shape: f32[16], index: 8, kind: input, shape index: {}]   ;;  %s10714_s9 = inlined_call_operand.vmem [shape: f32[16,16], index: 9, kind: input, shape index: {}]   ;;  %s10715_s10 = inlined_call_operand.vmem [shape: f32[16], index: 10, kind: input, shape index: {}]   ;;  %s10716_s11 = inlined_call_operand.vmem [shape: f32[16,4], index: 11, kind: input, shape index: {}]   ;;  %s10717_s12 = inlined_call_operand.vmem [shape: f32[4], index: 12, kind: input, shape index: {}]   ;;  %s10718_s13 = inlined_call_operand.hbm [shape: f32[2,16,32], index: 13, kind: output, shape index: {}]  }
   0x1   :  { %11531 = sst [smem:[#allocation305_spill]] %s10705_s0 }
   0x2   :  { %11532 = sst [smem:[#allocation306_spill]] %s10706_s1 }
   0x3   :  { %11533 = sst [smem:[#allocation307_spill]] %s10707_s2 }
   0x4   :  { %11534 = sst [smem:[#allocation308_spill]] %s10708_s3 }
   0x5   :  { %11535 = sst [smem:[#allocation309_spill]] %s10709_s4 }
   0x6   :  { %11536 = sst [smem:[#allocation310_spill]] %s10710_s5 }
   0x7   :  { %11537 = sst [smem:[#allocation311_spill]] %s10711_s6 }
   0x8   :  { %11538 = sst [smem:[#allocation312_spill]] %s10712_s7 }
   0x9   :  { %11539 = sst [smem:[#allocation313_spill]] %s10713_s8 }
   0xa   :  { %11540 = sst [smem:[#allocation314_spill]] %s10714_s9 }
   0xb   :  { %11541 = sst [smem:[#allocation315_spill]] %s10715_s10 }
   0xc   :  { %11542 = sst [smem:[#allocation316_spill]] %s10716_s11 }
   0xd   :  { %11543 = sst [smem:[#allocation317_spill]] %s10717_s12 }
   0xe   :  { %11544 = sst [smem:[#allocation318_spill]] %s10718_s13 }
   0xf   :  { %18 = vsyncpa [#allocation3], 0 }
  0x10   :  { %20 = vsyncpa [#allocation3 + $0x1], 0 }
  0x11   :  { %21 = vsyncpa [#allocation7], 0 }
  0x12   :  { %22 = vsyncpa [#allocation5], 0 }
  0x13   :  { %23 = vsyncpa [#allocation10], 0 }
  0x14   :  { %24 = vsyncpa [#allocation13], 0 }
  0x15   :  { %25 = vsyncpa [#allocation16], 0 }
  0x16   :  { %26 = vsyncpa [#allocation4], 0 }
  0x17   :  { %28 = vsyncpa [#allocation4 + $0x1], 0  ;;  %s5870_s25 = smov 0   ;;  %s5872_s26 = smov 0  }
  0x18   :  { %s5874_s27 = smov 0   ;;  %s5876_s28 = smov 0  }
  0x19   :  { %s5878_s29 = smov 0   ;;  %s5880_s30 = smov 0  }
  0x1a LB: > { %11545 = sst [smem:[#allocation25_spill]] %s5762_s25  ;;  %s10719_s17 = sadd.s32 4294967295, %s5782_s30   ;;  %s5782_s30 = sphi %s5880_s30, %s34_s30   ;;  %s5778_s29 = sphi %s5878_s29, %s13017_s29   ;;  %s5774_s28 = sphi %s5876_s28, %s13016_s28   ;;  %s5770_s27 = sphi %s5874_s27, %s13015_s27   ;;  %s5766_s26 = sphi %s5872_s26, %s13014_s26   ;;  %s5762_s25 = sphi %s5870_s25, %s13013_s25  }
  0x1b   : > { %11546 = sst [smem:[#allocation26_spill]] %s5766_s26  ;;  %p4633_p0 = scmp.ge.s32.totalorder %s5782_s30, 1 }
  0x1c   : > { %11547 = sst [smem:[#allocation27_spill]] %s5770_s27  ;;  %p5907_p1 = scmp.eq.s32.totalorder %s10719_s17, 0 }
  0x1d   : > { %11548 = sst [smem:[#allocation28_spill]] %s5774_s28  ;;  %p381_p2 = scmp.lt.s32.totalorder %s5782_s30, 3 }
  0x1e   : > { %11549 = sst [smem:[#allocation29_spill]] %s5778_s29  ;;  %s5784_s24 = smov [#allocation6]  }
  0x1f   : > { %11550 = sst [smem:[#allocation30_spill]] %s5782_s30  ;;  %p5912_p3 = pnand %p4633_p0, %p381_p2 }
  0x20   : > { %s11551_s8 = sld [smem:[#allocation313_spill]]  ;;  %s393_s14 = sshll.u32 %s5784_s24, 4  ;;  %s5928_s14 = int_to_ptr.vmem [resolvable:$true] %s393_s14 }
  0x21   : > { %s11552_s18 = scalar_select %p5907_p1, 1, 0 }
  0x22   : > { %s11553_s19 = scalar_select %p5912_p3, 1, 0 }
  0x23   : > { %s11554_s10 = sld [smem:[#allocation315_spill]]  ;;  %p5245_p5 = pneg %p5912_p3 }
  0x25   : > { %p5924_p6 = pnand %p5245_p5, %p5907_p1 }
  0x26   : > { %s421_s16 = sshll.u32 %s11551_s8, 4  ;;  %s422_s16 = int_to_ptr.vmem [resolvable:$true] %s421_s16 }
  0x27   : > { %s5538_s15 = scalar_lea.vmem %s422_s16, 16  ;;  %p5932_p8 = pneg %p5924_p6 }
  0x28   : > { %p5539_p7 = scmp.ne.s32.totalorder %s422_s16, %s5538_s15  ;;  %p5546_p11 = scmp.lt.s32.totalorder %s422_s16, %s422_s16 }
  0x29   : > { %s445_s22 = sshll.u32 %s11554_s10, 4  ;;  %p5547_p12 = scmp.lt.s32.totalorder %s5538_s15, %s5538_s15  ;;  %s446_s22 = int_to_ptr.vmem [resolvable:$true] %s445_s22 }
  0x2a   : > { %p5541_p9 = pnand %p5932_p8, %p5539_p7 }
  0x2b   : > { %p5548_p13 = por %p5547_p12, %p5546_p11 }
  0x2c   : > { %p5542_p10 = pneg %p5541_p9 }
  0x2e   : > { %p5549_p0 = pnand %p5548_p13, %p5542_p10 }
  0x30   : > { %5552 = shalt.err (!%p5549_p0)
}
  0x31   : > { %s5785_s20 = smov [#allocation9]   ;;  %s5553_s21 = scalar_lea.vmem %s446_s22, 16 }
  0x32   : > { %5254 = dma.vmem_to_smem (!%p5924_p6), %s422_s16, 16, %s5785_s20, [#allocation10]  }
  0x33   : > { %p5554_p2 = scmp.ne.s32.totalorder %s446_s22, %s5553_s21  ;;  %p5561_p3 = scmp.lt.s32.totalorder %s446_s22, %s446_s22 }
  0x34   : > { %p5562_p1 = scmp.lt.s32.totalorder %s5553_s21, %s5553_s21 }
  0x35   : > { %p5556_p5 = pnand %p5554_p2, %p5932_p8 }
  0x36   : > { %p5563_p7 = por %p5562_p1, %p5561_p3 }
  0x37   : > { %p5557_p4 = pneg %p5556_p5 }
  0x39   : > { %p5564_p9 = pnand %p5563_p7, %p5557_p4 }
  0x3b   : > { %5567 = shalt.err (!%p5564_p9)
}
  0x3c   : > { %s5786_s24 = smov [#allocation12]   ;;  %s11557_s7 = sld [smem:[#allocation312_spill]] }
  0x3d   : > { %5260 = dma.vmem_to_smem (!%p5924_p6), %s446_s22, 16, %s5786_s24, [#allocation13]  }
  0x3e   : > { %s5579_s8 = scalar_lea.vmem %s5928_s14, 512  ;;  %p5587_p1 = scmp.lt.s32.totalorder %s5928_s14, %s5928_s14 }
  0x3f   : > { %p5580_p10 = scmp.ne.s32.totalorder %s5928_s14, %s5579_s8  ;;  %p5588_p3 = scmp.lt.s32.totalorder %s5579_s8, %s5579_s8 }
  0x41   : > { %p5582_p11 = pnand %p5580_p10, %p5932_p8  ;;  %p5589_p4 = por %p5588_p3, %p5587_p1 }
  0x42   : > { %s410_s20 = sshll.u32 %s11557_s7, 4  ;;  %s411_s20 = int_to_ptr.vmem [resolvable:$true] %s410_s20 }
  0x43   : > { %p5583_p12 = pneg %p5582_p11 }
  0x45   : > { %p5590_p13 = pnand %p5589_p4, %p5583_p12 }
  0x47   : > { %5593 = shalt.err (!%p5590_p13)
}
  0x48   : > { %s10723_s21 = smov 128   ;;  %s10725_s22 = smov 8  }
  0x49   : > { %s11558_s5 = sld [smem:[#allocation310_spill]]  ;;  %s5594_s16 = scalar_lea.vmem %s411_s20, 64 }
  0x4a   : > { %p5595_p0 = scmp.ne.s32.totalorder %s411_s20, %s5594_s16  ;;  %p5602_p7 = scmp.lt.s32.totalorder %s411_s20, %s411_s20 }
  0x4b   : > { %p5603_p9 = scmp.lt.s32.totalorder %s5594_s16, %s5594_s16 }
  0x4c   : > { %p5597_p2 = pnand %p5595_p0, %p5932_p8 }
  0x4d   : > { %p5604_p10 = por %p5603_p9, %p5602_p7 }
  0x4e   : > { %p5598_p5 = pneg %p5597_p2 }
  0x4f   : > { %5248 = dma.hbm_to_vmem [thread:$0]  (!%p5924_p6), %s11558_s5, 512, %s5928_s14, [#allocation7], %s10723_s21, %s10723_s21, %s10725_s22  }
  0x50   : > { %p5605_p11 = pnand %p5604_p10, %p5598_p5 }
  0x52   : > { %5608 = shalt.err (!%p5605_p11)
}
  0x53   : > { %s5789_s8 = smov [#allocation8]   ;;  %s11559_s9 = sld [smem:[#allocation314_spill]] }
  0x54   : > { %5251 = dma.vmem_to_smem (!%p5924_p6), %s411_s20, 64, %s5789_s8, [#allocation5]  }
  0x55   : > { %s11560_s11 = sld [smem:[#allocation316_spill]] }
  0x59   : > { %s431_s14 = sshll.u32 %s11559_s9, 4  ;;  %s432_s14 = int_to_ptr.vmem [resolvable:$true] %s431_s14 }
  0x5a   : > { %s5609_s22 = scalar_lea.vmem %s432_s14, 256  ;;  %p5617_p4 = scmp.lt.s32.totalorder %s432_s14, %s432_s14 }
  0x5b   : > { %s455_s21 = sshll.u32 %s11560_s11, 4  ;;  %p5610_p12 = scmp.ne.s32.totalorder %s432_s14, %s5609_s22  ;;  %s456_s21 = int_to_ptr.vmem [resolvable:$true] %s455_s21 }
  0x5c   : > { %p5618_p13 = scmp.lt.s32.totalorder %s5609_s22, %s5609_s22 }
  0x5d   : > { %p5612_p1 = pnand %p5610_p12, %p5932_p8 }
  0x5e   : > { %p5619_p0 = por %p5618_p13, %p5617_p4 }
  0x5f   : > { %p5613_p3 = pneg %p5612_p1 }
  0x61   : > { %p5620_p2 = pnand %p5619_p0, %p5613_p3 }
  0x63   : > { %5623 = shalt.err (!%p5620_p2)
}
  0x64   : > { %s5790_s20 = smov [#allocation11]   ;;  %s11561_s7 = smov 8  }
  0x65   : > { %s11562_s10 = smov 128   ;;  %s5624_s16 = scalar_lea.vmem %s456_s21, 256 }
  0x66   : > { %5257 = dma.vmem_to_smem (!%p5924_p6), %s432_s14, 256, %s5790_s20, [#allocation10], %s11562_s10, %s11562_s10, %s11561_s7  }
  0x67   : > { %p5625_p5 = scmp.ne.s32.totalorder %s456_s21, %s5624_s16  ;;  %p5632_p10 = scmp.lt.s32.totalorder %s456_s21, %s456_s21 }
  0x68   : > { %p5633_p11 = scmp.lt.s32.totalorder %s5624_s16, %s5624_s16 }
  0x69   : > { %p5627_p7 = pnand %p5625_p5, %p5932_p8 }
  0x6a   : > { %p5634_p12 = por %p5633_p11, %p5632_p10 }
  0x6b   : > { %p5628_p9 = pneg %p5627_p7 }
  0x6d   : > { %p5635_p1 = pnand %p5634_p12, %p5628_p9 }
  0x6f   : > { %5638 = shalt.err (!%p5635_p1)
}
  0x70   : > { %s5791_s22 = smov [#allocation14]   ;;  %s11563_s12 = sld [smem:[#allocation317_spill]] }
  0x71   : > { %5263 = dma.vmem_to_smem (!%p5924_p6), %s456_s21, 256, %s5791_s22, [#allocation13], %s11562_s10, %s11562_s10, %s11561_s7  }
  0x76   : > { %s469_s24 = sshll.u32 %s11563_s12, 4  ;;  %s470_s24 = int_to_ptr.vmem [resolvable:$true] %s469_s24 }
  0x77   : > { %s5639_s15 = scalar_lea.vmem %s470_s24, 16  ;;  %p5647_p0 = scmp.lt.s32.totalorder %s470_s24, %s470_s24 }
  0x78   : > { %p5640_p3 = scmp.ne.s32.totalorder %s470_s24, %s5639_s15  ;;  %p5648_p2 = scmp.lt.s32.totalorder %s5639_s15, %s5639_s15 }
  0x7a   : > { %p5642_p4 = pnand %p5640_p3, %p5932_p8  ;;  %p5649_p5 = por %p5648_p2, %p5647_p0 }
  0x7c   : > { %p5643_p13 = pneg %p5642_p4 }
  0x7e   : > { %p5650_p7 = pnand %p5649_p5, %p5643_p13 }
  0x80   : > { %5653 = shalt.err (!%p5650_p7)
}
  0x81   : > { %s5792_s20 = smov [#allocation15]   ;;  %s4632_s17 = sadd.s32 4294967294, %s5782_s30  }
  0x82   : > { %5266 = dma.vmem_to_smem (!%p5924_p6), %s470_s24, 16, %s5792_s20, [#allocation16]  }
  0x83   : > { %s46_s21 = sadd.s32 1, %s5778_s29  ;;  %s109_s7 = sadd.s32 1, %s5770_s27 }
  0x84   : > { %p48_p8 = scmp.ge.s32.totalorder %s46_s21, 2  ;;  %p116_p9 = scmp.ne.s32.totalorder %s5770_s27, %s5766_s26 }
  0x85   : > { %p117_p10 = scmp.eq.s32.totalorder %s5782_s30, 0  ;;  %p122_p11 = scmp.ne.s32.totalorder %s5766_s26, %s5762_s25 }
  0x86   : > { %s13019_s21 = smov (%p48_p8, %s46_s21), 0  ;;  %p11566_p1 = scmp.ne.s32.totalorder %s11552_s18, 0 }
  0x87   : > { %11564 = sst [smem:[#allocation31_spill]] %s13019_s21  ;;  %p6003_p12 = por %p117_p10, %p116_p9 }
  0x88   : > { %p6009_p6 = por %p11566_p1, %p122_p11  ;;  %s106_s16 = ssub.s32 %s5778_s29, %s13019_s21 }
  0x89   : > { %s11568_s22 = sadd.s32 4294967295, %s5782_s30   ;;  %p107_p4 = scmp.eq.s32.totalorder %s106_s16, 0 }
  0x8a   : > { %p368_p3 = scmp.eq.s32.totalorder %s11568_s22, 1  ;;  %p374_p13 = scmp.eq.s32.totalorder %s4632_s17, 1 }
  0x8b   : > { %p5282_p2 = scmp.lt.s32.totalorder %s5782_s30, 2  ;;  %s506_s15 = sand.u32 1, %s5770_s27  }
  0x8c   : > { %p6017_p0 = por %p368_p3, %p116_p9  ;;  %p6025_p5 = por %p374_p13, %p122_p11 }
  0x8d   : > { %s6023_s14 = scalar_select %p107_p4, %s5770_s27, %s109_s7  }
  0x8e   : > { %s11569_s8 = scalar_select %p6017_p0, 1, 0 }
  0x8f   : > { %11571 = sst [smem:[#allocation33_spill]] %s6023_s14  ;;  %s4642_s20 = sshll.u32 %s506_s15, 4 }
  0x90   : > { %11570 = sst [smem:[#allocation32_spill]] %s11569_s8  ;;  %s5112_s5 = sshll.u32 %s5778_s29, 8 }
  0x91   : > { %s11572_s24 = scalar_select %p6025_p5, 1, 0 }
  0x92   : > { %s11574_s2 = sld [smem:[#allocation307_spill]]  ;;  %s510_s16 = scalar_lea.vmem [#allocation2], %s4642_s20 }
  0x93   : > { %11573 = sst [smem:[#allocation34_spill]] %s11572_s24  ;;  %s517_s17 = sshll.u32 %s510_s16, 4  ;;  %s518_s17 = int_to_ptr.vmem [resolvable:$true] %s517_s17 }
  0x94   : > { %p6036_p7 = pnand %p5282_p2, %p6003_p12  ;;  %s507_s7 = scalar_lea.sflag [#allocation3], %s506_s15 }
  0x95   : > { %s5667_s21 = scalar_lea.vmem %s518_s17, 256  ;;  %s5793_s29 = smov [#allocation2]  }
  0x96   : > { %p5656_p8 = pneg %p6036_p7  ;;  %p5668_p9 = scmp.ne.s32.totalorder %s518_s17, %s5667_s21 }
  0x97   : > { %s5672_s14 = sshll.u32 %s5793_s29, 4  ;;  %s5673_s14 = int_to_ptr.vmem [resolvable:$false] %s5672_s14 }
  0x98   : > { %s516_s22 = scalar_lea.hbm %s11574_s2, %s5112_s5  ;;  %p5670_p10 = pnand %p5668_p9, %p5656_p8 }
  0x99   : > { %s5674_s5 = scalar_lea.vmem %s5673_s14, 512  ;;  %p5675_p1 = scmp.lt.s32.totalorder %s518_s17, %s5673_s14 }
  0x9a   : > { %p5671_p11 = pneg %p5670_p10  ;;  %p5676_p3 = scmp.lt.s32.totalorder %s5674_s5, %s5667_s21 }
  0x9c   : > { %p5677_p4 = por %p5676_p3, %p5675_p1 }
  0x9e   : > { %p5678_p13 = pnand %p5677_p4, %p5671_p11 }
  0xa0   : > { %5681 = shalt.err (!%p5678_p13)
}
  0xa1   : > { %s5794_s9 = smov 64   ;;  %s5795_s11 = smov 4  }
  0xa2   : > { %5270 = dma.hbm_to_vmem [thread:$0]  (!%p6036_p7), %s516_s22, 256, %s518_s17, %s507_s7, %s5794_s9, %s5794_s9, %s5795_s11  }
  0xa3   : > { %p11576_p12 = scmp.ne.s32.totalorder %s11553_s19, 0 }
  0xa5   : > { %543 = sbr.rel (%p11576_p12) target bundleno = 3433 (0xd69), region = 72 }
  0xaa   : > { %s6047_s23 = sand.u32 1, %s5766_s26  }
  0xab   : > { %11577 = sst [smem:[#allocation35_spill]] %s6047_s23  ;;  %s10729_s29 = sshll.u32 %s6047_s23, 4 }
  0xac   : > { %s546_s21 = scalar_lea.sflag [#allocation3], %s6047_s23  ;;  %s6053_s14 = scalar_lea.vmem [#allocation2], %s10729_s29 }
  0xad   : > { %11578 = sst [smem:[#allocation36_spill]] %s6053_s14 }
  0xae   : > { %5733 = dma.done.wait (%p6009_p6), %s546_s21, 256  }
  0xaf   : > { %5735 = vsyncadd (%p6009_p6), %s546_s21, 4294967040  ;;  %p11579_p2 = scmp.ne.s32.totalorder %s11552_s18, 0 }
  0xb1   : > { %5737 = dma.done.wait (%p11579_p2), [#allocation7], 512  }
  0xb2   : > { %5739 = vsyncadd (%p11579_p2), [#allocation7], 4294966784 }
  0xb3   : > { %5741 = dma.done.wait (%p11579_p2), [#allocation5], 64  }
  0xb4   : > { %5743 = vsyncadd (%p11579_p2), [#allocation5], 4294967232 }
  0xb5   : > { %5745 = dma.done.wait (%p11579_p2), [#allocation10], 272  }
  0xb6   : > { %5747 = vsyncadd (%p11579_p2), [#allocation10], 4294967024 }
  0xb7   : > { %5749 = dma.done.wait (%p11579_p2), [#allocation13], 272  }
  0xb8   : > { %5751 = vsyncadd (%p11579_p2), [#allocation13], 4294967024 }
  0xb9   : > { %5753 = dma.done.wait (%p11579_p2), [#allocation16], 16  }
  0xba   : > { %5755 = vsyncadd (%p11579_p2), [#allocation16], 4294967280 }
  0xbb   : > { %582 = sfence }
  0xbc   : > { %v3256_v0 = vld [vmem:[%s6053_s14] sm:$0xf]  ;;  %vm3264_vm0 = vcmask 1043456   ;;  %p648_p6 = scmp.lt.s32.totalorder %s5774_s28, 1  ;;  %v5070_v1 = vld [vmem:[%s6053_s14 + $0x4] sm:$0xf] }
  0xbd   : > { %5152 = vmatprep.subr.msk.mxu0 %vm3264_vm0, %v3256_v0  ;;  %vm3257_vm1 = vcmask 31744   ;;  %s11581_s1 = sld [smem:[#allocation306_spill]]  ;;  %vm3351_vm4 = vcmask 130048   ;;  %vm3661_vm5 = vcmask 64512   ;;  %vm4401_vm6 = vcmask 261120  }
  0xbe   : > { %5153 = vmatpush3.msk.msra.mxu0 %vm3264_vm0, %v3256_v0  ;;  %s6085_s12 = scalar_select %p648_p6, %s5774_s28, 1 }
  0xbf   : > { %5162 = vmatprep.subr.msk.mxu0 %vm3264_vm0, %v5070_v1  ;;  %s6103_s20 = sld [smem:[#allocation8]] }
  0xc0   : > { %11580 = sst [smem:[#allocation37_spill]] %s6085_s12  ;;  %s5113_s18 = sshll.u32 %s6085_s12, 6 }
  0xc1   : > { %s6105_s22 = sld [smem:[#allocation8 + $0x80]] }
  0xc2   : > { %s6107_s16 = sld [smem:[#allocation8 + $0x100]] }
  0xc3   : > { %s6092_s15 = scalar_lea.vmem %s11581_s1, %s5113_s18  ;;  %s6109_s17 = sld [smem:[#allocation9]] }
  0xc4   : > { %11582 = sst [smem:[#allocation38_spill]] %s6092_s15  ;;  %v3254_v2 = vld [vmem:[%s6092_s15] sm:$0xff]  ;;  %v3255_v3 = vld [vmem:[%s6092_s15 + $0x8] sm:$0xff]  ;;  %v5068_v4 = vld [vmem:[%s6092_s15 + $0x10] sm:$0xff] }
  0xc5   : > { %5154 = vmatprep.mubr.msk.f32.mxu0 %vm3257_vm1, %v3254_v2  ;;  %v5069_v5 = vld [vmem:[%s6092_s15 + $0x18] sm:$0xff]  ;;  %11583 = sst [smem:[#allocation39_spill]] %s6103_s20  ;;  %s5212_s15 = smul.u32 48, %s6085_s12  ;;  %v10982_v8 = vstv %s6103_s20 }
  0xc6   : > { %5155 = vmatmul.mubr.msk.f32.vlgmr.msra.gmra.mxu0 %vm3257_vm1, %v3255_v3  ;;  %s6111_s7 = sld [smem:[#allocation11]] }
  0xc7   : > { %5163 = vmatpush3.msk.msra.mxu0 %vm3264_vm0, %v5070_v1  ;;  %5164 = vmatprep.mubr.msk.f32.mxu0 %vm3257_vm1, %v5068_v4  ;;  %11584 = sst [smem:[#allocation40_spill]] %s6105_s22  ;;  %v10981_v9 = vstv %s6105_s22 }
  0xc8   : > { %11585 = sst [smem:[#allocation41_spill]] %s6107_s16  ;;  %v10966_v13 = vstv %s6107_s16 }
  0xc9   : > { %11586 = sst [smem:[#allocation42_spill]] %s6109_s17  ;;  %v10853_v19 = vstv %s6109_s17 }
  0xca   : > { %5165 = vmatmul.mubr.msk.f32.vlgmr.msra.gmra.mxu0 %vm3257_vm1, %v5069_v5  ;;  %s6113_s5 = sld [smem:[#allocation11 + $0x1]] }
  0xcb   : > { %s6115_s9 = sld [smem:[#allocation11 + $0x2]] }
  0xcc   : > { %11587 = sst [smem:[#allocation43_spill]] %s6111_s7  ;;  %v10848_v42 = vstv %s6111_s7 }
  0xcd   : > { %s6117_s11 = sld [smem:[#allocation11 + $0x3]] }
  0xce   : > { %s6119_s21 = sld [smem:[#allocation11 + $0x4]] }
  0xcf   : > { %s6121_s18 = sld [smem:[#allocation11 + $0x5]] }
  0xd0   : > { %11588 = sst [smem:[#allocation44_spill]] %s6113_s5  ;;  %v10847_v43 = vstv %s6113_s5 }
  0xd1   : > { %11589 = sst [smem:[#allocation45_spill]] %s6115_s9  ;;  %v10845_v45 = vstv %s6115_s9 }
  0xd2   : > { %s6123_s19 = sld [smem:[#allocation11 + $0x6]] }
  0xd3   : > { %11590 = sst [smem:[#allocation46_spill]] %s6117_s11  ;;  %v10843_v46 = vstv %s6117_s11 }
  0xd4   : > { %11591 = sst [smem:[#allocation47_spill]] %s6119_s21  ;;  %v10839_v47 = vstv %s6119_s21 }
  0xd5   : > { %11592 = sst [smem:[#allocation48_spill]] %s6121_s18  ;;  %v10838_v48 = vstv %s6121_s18 }
  0xd6   : > { %s6125_s10 = sld [smem:[#allocation11 + $0x7]] }
  0xd7   : > { %s6127_s29 = sld [smem:[#allocation11 + $0x8]] }
  0xd8   : > { %11593 = sst [smem:[#allocation49_spill]] %s6123_s19  ;;  %v10837_v50 = vstv %s6123_s19 }
  0xd9   : > { %s6129_s1 = sld [smem:[#allocation11 + $0x9]] }
  0xda   : > { %s6131_s2 = sld [smem:[#allocation11 + $0xa]] }
  0xdb   : > { %s6133_s27 = sld [smem:[#allocation11 + $0xb]] }
  0xdc   : > { %11594 = sst [smem:[#allocation50_spill]] %s6125_s10  ;;  %v10835_v51 = vstv %s6125_s10 }
  0xdd   : > { %11595 = sst [smem:[#allocation51_spill]] %s6127_s29  ;;  %v10833_v52 = vstv %s6127_s29 }
  0xde   : > { %s6135_s26 = sld [smem:[#allocation11 + $0xc]] }
  0xdf   : > { %11596 = sst [smem:[#allocation52_spill]] %s6129_s1  ;;  %v10832_v53 = vstv %s6129_s1 }
  0xe0   : > { %11597 = sst [smem:[#allocation53_spill]] %s6131_s2  ;;  %v10830_v54 = vstv %s6131_s2 }
  0xe1   : > { %11598 = sst [smem:[#allocation54_spill]] %s6133_s27  ;;  %v10828_v55 = vstv %s6133_s27 }
  0xe2   : > { %s6137_s30 = sld [smem:[#allocation11 + $0xd]] }
  0xe3   : > { %s6139_s24 = sld [smem:[#allocation11 + $0xe]] }
  0xe4   : > { %11599 = sst [smem:[#allocation55_spill]] %s6135_s26 }
  0xe5   : > { %s6141_s25 = sld [smem:[#allocation11 + $0xf]] }
  0xe6   : > { %s6143_s13 = sld [smem:[#allocation8 + $0x1]] }
  0xe7   : > { %s6145_s8 = sld [smem:[#allocation8 + $0x81]] }
  0xe8   : > { %11600 = sst [smem:[#allocation56_spill]] %s6137_s30 }
  0xe9   : > { %11601 = sst [smem:[#allocation57_spill]] %s6139_s24 }
  0xea   : > { %s6147_s6 = sld [smem:[#allocation8 + $0x101]] }
  0xeb   : > { %11602 = sst [smem:[#allocation58_spill]] %s6141_s25 }
  0xec   : > { %11603 = sst [smem:[#allocation59_spill]] %s6143_s13  ;;  %v10975_v17 = vstv %s6143_s13 }
  0xed   : > { %11604 = sst [smem:[#allocation60_spill]] %s6145_s8  ;;  %v10973_v18 = vstv %s6145_s8 }
  0xee   : > { %s6149_s28 = sld [smem:[#allocation9 + $0x1]] }
  0xef   : > { %s6151_s23 = sld [smem:[#allocation11 + $0x80]] }
  0xf0   : > { %11605 = sst [smem:[#allocation61_spill]] %s6147_s6  ;;  %v10862_v23 = vstv %s6147_s6 }
  0xf1   : > { %s6154_s14 = sld [smem:[#allocation11 + $0x81]] }
  0xf2   : > { %s6156_s3 = sld [smem:[#allocation11 + $0x82]] }
  0xf3   : > { %s6158_s4 = sld [smem:[#allocation11 + $0x83]] }
  0xf4   : > { %11606 = sst [smem:[#allocation62_spill]] %s6149_s28  ;;  %v10852_v28 = vstv %s6149_s28 }
  0xf5   : > { %11607 = sst [smem:[#allocation63_spill]] %s6151_s23 }
  0xf6   : > { %s6160_s25 = sld [smem:[#allocation11 + $0x84]] }
  0xf7   : > { %11608 = sst [smem:[#allocation64_spill]] %s6154_s14 }
  0xf8   : > { %11609 = sst [smem:[#allocation65_spill]] %s6156_s3  ;;  %v10857_v3 = vstv %s6156_s3 }
  0xf9   : > { %11610 = sst [smem:[#allocation66_spill]] %s6158_s4  ;;  %v10863_v4 = vstv %s6158_s4 }
  0xfa   : > { %s11612_s0 = sld [smem:[#allocation305_spill]] }
  0xfb   : > { %s6167_s12 = sld [smem:[#allocation11 + $0x85]] }
  0xfc   : > { %11611 = sst [smem:[#allocation67_spill]] %s6160_s25  ;;  %v10864_v5 = vstv %s6160_s25 }
  0xfd   : > { %s6169_s23 = sld [smem:[#allocation11 + $0x86]] }
  0xfe   : > { %s6171_s14 = sld [smem:[#allocation11 + $0x87]] }
  0xff   : > { %s6181_s30 = sld [smem:[#allocation11 + $0x88]] }
 0x100   : > { %s6165_s26 = scalar_lea.vmem %s11612_s0, %s5212_s15  ;;  %s6183_s24 = sld [smem:[#allocation11 + $0x89]] }
 0x101   : > { %11613 = sst [smem:[#allocation68_spill]] %s6165_s26  ;;  %v6174_v6 = vld [vmem:[%s6165_s26 + $0x8] sm:$0xff]  ;;  %v6177_v7 = vld [vmem:[%s6165_s26 + $0x18] sm:$0xff] }
 0x102   : > { %11614 = sst [smem:[#allocation69_spill]] %s6167_s12  ;;  %v687_v10 = vmul.f32 %v10982_v8, %v6174_v6  ;;  %v691_v11 = vmul.f32 %v6177_v7, %v10981_v9  ;;  %v6196_v12 = vld [vmem:[%s6165_s26 + $0x28] sm:$0xff]  ;;  %v779_v20 = vmul.f32 %v10975_v17, %v6174_v6  ;;  %v783_v21 = vmul.f32 %v6177_v7, %v10973_v18 }
 0x103   : > { %11615 = sst [smem:[#allocation70_spill]] %s6169_s23  ;;  %v697_v15 = vmul.f32 %v6196_v12, %v10966_v13  ;;  %v789_v25 = vmul.f32 %v6196_v12, %v10862_v23 }
 0x104   : > { %11616 = sst [smem:[#allocation71_spill]] %s6171_s14  ;;  %v693_v14 = vadd.f32 %v691_v11, %v687_v10  ;;  %v785_v24 = vadd.f32 %v783_v21, %v779_v20 }
 0x105   : > { %11617 = sst [smem:[#allocation72_spill]] %s6181_s30 }
 0x106   : > { %11618 = sst [smem:[#allocation73_spill]] %s6183_s24  ;;  %v699_v16 = vadd.f32 %v697_v15, %v693_v14  ;;  %v791_v27 = vadd.f32 %v789_v25, %v785_v24 }
 0x107   : > { %s6185_s15 = sld [smem:[#allocation11 + $0x8a]] }
 0x108   : > { %s6193_s0 = sld [smem:[#allocation11 + $0x8b]]  ;;  %v703_v22 = vadd.f32 %v10853_v19, %v699_v16  ;;  %v795_v29 = vadd.f32 %v10852_v28, %v791_v27 }
 0x109   : > { %s6199_s14 = sld [smem:[#allocation11 + $0x8c]] }
 0x10a   : > { %s6201_s24 = sld [smem:[#allocation11 + $0x8d]]  ;;  %v705_v26 = vmul.f32 0.5, %v703_v22  ;;  %v6280_v34 = vmul.f32 0.5, %v795_v29 }
 0x10b   : > { %s6208_s22 = sld [smem:[#allocation11 + $0x8f]] }
 0x10c   : > { %s6210_s20 = sld [smem:[#allocation8 + $0x2]]  ;;  %5353 = vtanh.f32 %v705_v26 }
 0x10d   : > { %11619 = sst [smem:[#allocation74_spill]] %s6185_s15  ;;  %5355 = vtanh.f32 %v6280_v34 }
 0x10e   : > { %11620 = sst [smem:[#allocation75_spill]] %s6193_s0 }
 0x10f   : > { %11621 = sst [smem:[#allocation76_spill]] %s6199_s14 }
 0x110   : > { %11622 = sst [smem:[#allocation77_spill]] %s6201_s24 }
 0x111   : > { %s6203_s15 = sld [smem:[#allocation11 + $0x8e]] }
 0x112   : > { %11624 = sst [smem:[#allocation79_spill]] %s6208_s22  ;;  %v10971_v30 = vstv %s6210_s20 }
 0x113   : > { %11625 = sst [smem:[#allocation80_spill]] %s6210_s20  ;;  %v903_v32 = vmul.f32 %v10971_v30, %v6174_v6 }
 0x114   : > { %s6212_s26 = sld [smem:[#allocation8 + $0x82]] }
 0x115   : > { %s6214_s0 = sld [smem:[#allocation8 + $0x102]] }
 0x116   : > { %s6218_s24 = sld [smem:[#allocation9 + $0x2]] }
 0x117   : > { %11623 = sst [smem:[#allocation78_spill]] %s6203_s15 }
 0x118   : > { %s6221_s16 = sld [smem:[#allocation11 + $0x100]] }
 0x119   : > { %s6223_s15 = sld [smem:[#allocation11 + $0x101]]  ;;  %v5354_v38 = vpop.eup %5353 }
 0x11a   : > { %11626 = sst [smem:[#allocation81_spill]] %s6212_s26  ;;  %v10969_v31 = vstv %s6212_s26  ;;  %v709_v41 = vadd.f32 1.0, %v5354_v38  ;;  %v5356_v1 = vpop.eup %5355 }
 0x11b   : > { %11627 = sst [smem:[#allocation82_spill]] %s6214_s0  ;;  %v907_v33 = vmul.f32 %v6177_v7, %v10969_v31  ;;  %v10859_v35 = vstv %s6214_s0 }
 0x11c   : > { %11628 = sst [smem:[#allocation83_spill]] %s6218_s24  ;;  %v913_v37 = vmul.f32 %v6196_v12, %v10859_v35  ;;  %v10849_v40 = vstv %s6218_s24  ;;  %v711_v49 = vmul.f32 %v709_v41, %v705_v26  ;;  %v801_v26 = vadd.f32 1.0, %v5356_v1 }
 0x11d   : > { %s6231_s22 = sld [smem:[#allocation11 + $0x102]]  ;;  %v909_v36 = vadd.f32 %v907_v33, %v903_v32  ;;  %v10868_v1 = vstv %s6167_s12 }
 0x11e   : > { %11629 = sst [smem:[#allocation84_spill]] %s6221_s16  ;;  %v6348_v2 = vmul.f32 %v10848_v42, %v711_v49  ;;  %v6357_v10 = vmul.f32 %v10847_v43, %v711_v49  ;;  %v6361_v11 = vmul.f32 %v10845_v45, %v711_v49  ;;  %v6373_v16 = vmul.f32 %v10843_v46, %v711_v49 }
 0x11f   : > { %11630 = sst [smem:[#allocation85_spill]] %s6223_s15  ;;  %v915_v39 = vadd.f32 %v913_v37, %v909_v36  ;;  %v6377_v20 = vmul.f32 %v10839_v47, %v711_v49  ;;  %v6385_v22 = vmul.f32 %v10838_v48, %v711_v49  ;;  %v6389_v24 = vmul.f32 %v10837_v50, %v711_v49 }
 0x120   : > { %s6236_s14 = sld [smem:[#allocation11 + $0x103]]  ;;  %v6393_v25 = vmul.f32 %v10835_v51, %v711_v49  ;;  %v6399_v27 = vmul.f32 %v10833_v52, %v711_v49  ;;  %v6403_v29 = vmul.f32 %v10832_v53, %v711_v49  ;;  %v6407_v32 = vmul.f32 %v10830_v54, %v711_v49 }
 0x121   : > { %s6238_s30 = sld [smem:[#allocation11 + $0x104]]  ;;  %v919_v44 = vadd.f32 %v10849_v40, %v915_v39  ;;  %v6411_v33 = vmul.f32 %v10828_v55, %v711_v49  ;;  %v10899_v48 = vstv %s6223_s15 }
 0x122   : > { %s6240_s16 = sld [smem:[#allocation11 + $0x105]] }
 0x123   : > { %11631 = sst [smem:[#allocation86_spill]] %s6231_s22  ;;  %v6334_v58 = vmul.f32 0.5, %v919_v44 }
 0x124   : > { %s6245_s8 = sld [smem:[#allocation11 + $0x106]] }
 0x125   : > { %s6247_s17 = sld [smem:[#allocation11 + $0x107]]  ;;  %5357 = vtanh.f32 %v6334_v58 }
 0x126   : > { %11632 = sst [smem:[#allocation87_spill]] %s6236_s14 }
 0x127   : > { %11633 = sst [smem:[#allocation88_spill]] %s6238_s30 }
 0x128   : > { %11634 = sst [smem:[#allocation89_spill]] %s6240_s16 }
 0x129   : > { %s6249_s13 = sld [smem:[#allocation11 + $0x108]] }
 0x12a   : > { %11635 = sst [smem:[#allocation90_spill]] %s6245_s8 }
 0x12b   : > { %11636 = sst [smem:[#allocation91_spill]] %s6247_s17 }
 0x12c   : > { %s6251_s14 = sld [smem:[#allocation11 + $0x109]] }
 0x12d   : > { %s6253_s30 = sld [smem:[#allocation11 + $0x10a]] }
 0x12e   : > { %s6256_s6 = sld [smem:[#allocation11 + $0x10b]] }
 0x12f   : > { %11637 = sst [smem:[#allocation92_spill]] %s6249_s13 }
 0x130   : > { %s6258_s16 = sld [smem:[#allocation11 + $0x10c]] }
 0x131   : > { %s6260_s8 = sld [smem:[#allocation11 + $0x10d]] }
 0x132   : > { %11638 = sst [smem:[#allocation93_spill]] %s6251_s14  ;;  %v5358_v23 = vpop.eup %5357 }
 0x133   : > { %11639 = sst [smem:[#allocation94_spill]] %s6253_s30 }
 0x134   : > { %11640 = sst [smem:[#allocation95_spill]] %s6256_s6 }
 0x135   : > { %s6266_s13 = sld [smem:[#allocation11 + $0x10e]] }
 0x136   : > { %11641 = sst [smem:[#allocation96_spill]] %s6258_s16 }
 0x137   : > { %11642 = sst [smem:[#allocation97_spill]] %s6260_s8 }
 0x138   : > { %s6268_s14 = sld [smem:[#allocation11 + $0x10f]] }
 0x139   : > { %s6270_s17 = sld [smem:[#allocation8 + $0x3]] }
 0x13a   : > { %s6278_s16 = sld [smem:[#allocation8 + $0x83]] }
 0x13b   : > { %11643 = sst [smem:[#allocation98_spill]] %s6266_s13 }
 0x13c   : > { %s6283_s28 = sld [smem:[#allocation8 + $0x103]] }
 0x13d   : > { %s6285_s8 = sld [smem:[#allocation9 + $0x3]] }
 0x13e   : > { %11644 = sst [smem:[#allocation99_spill]] %s6268_s14 }
 0x13f   : > { %11645 = sst [smem:[#allocation100_spill]] %s6270_s17  ;;  %v10965_v59 = vstv %s6270_s17 }
 0x140   : > { %11646 = sst [smem:[#allocation101_spill]] %s6278_s16  ;;  %v10867_v60 = vstv %s6278_s16  ;;  %v1027_v14 = vmul.f32 %v10965_v59, %v6174_v6 }
 0x141   : > { %s6287_s13 = sld [smem:[#allocation11 + $0x180]]  ;;  %v1031_v15 = vmul.f32 %v6177_v7, %v10867_v60 }
 0x142   : > { %11647 = sst [smem:[#allocation102_spill]] %s6283_s28  ;;  %v10855_v21 = vstv %s6283_s28 }
 0x143   : > { %11648 = sst [smem:[#allocation103_spill]] %s6285_s8  ;;  %v1033_v38 = vadd.f32 %v1031_v15, %v1027_v14  ;;  %v1037_v39 = vmul.f32 %v6196_v12, %v10855_v21  ;;  %v6441_v14 = vmul.f32 %v801_v26, %v6280_v34  ;;  %v10865_v47 = vstv %s6285_s8 }
 0x144   : > { %s6292_s26 = sld [smem:[#allocation11 + $0x181]] }
 0x145   : > { %s6295_s20 = sld [smem:[#allocation11 + $0x182]]  ;;  %v1039_v26 = vadd.f32 %v1037_v39, %v1033_v38  ;;  %v819_v42 = vmul.f32 %v10857_v3, %v6441_v14  ;;  %v825_v28 = vmul.f32 %v10863_v4, %v6441_v14  ;;  %v831_v3 = vmul.f32 %v10864_v5, %v6441_v14 }
 0x146   : > { %s6297_s14 = sld [smem:[#allocation11 + $0x183]] }
 0x147   : > { %11649 = sst [smem:[#allocation104_spill]] %s6287_s13 }
 0x148   : > { %s6299_s13 = sld [smem:[#allocation11 + $0x184]] }
 0x149   : > { %s6301_s0 = sld [smem:[#allocation11 + $0x185]] }
 0x14a   : > { %11650 = sst [smem:[#allocation105_spill]] %s6292_s26 }
 0x14b   : > { %11651 = sst [smem:[#allocation106_spill]] %s6295_s20 }
 0x14c   : > { %11652 = sst [smem:[#allocation107_spill]] %s6297_s14 }
 0x14d   : > { %s6304_s26 = sld [smem:[#allocation11 + $0x186]] }
 0x14e   : > { %11653 = sst [smem:[#allocation108_spill]] %s6299_s13 }
 0x14f   : > { %11654 = sst [smem:[#allocation109_spill]] %s6301_s0 }
 0x150   : > { %s6306_s6 = sld [smem:[#allocation11 + $0x187]] }
 0x151   : > { %s6308_s20 = sld [smem:[#allocation11 + $0x188]] }
 0x152   : > { %s11658_s13 = sld [smem:[#allocation55_spill]] }
 0x153   : > { %11655 = sst [smem:[#allocation110_spill]] %s6304_s26 }
 0x154   : > { %s6314_s0 = sld [smem:[#allocation11 + $0x189]] }
 0x155   : > { %s11660_s14 = sld [smem:[#allocation56_spill]] }
 0x156   : > { %11656 = sst [smem:[#allocation111_spill]] %s6306_s6 }
 0x157   : > { %11657 = sst [smem:[#allocation112_spill]] %s6308_s20 }
 0x158   : > { %s6320_s6 = sld [smem:[#allocation11 + $0x18a]]  ;;  %v10822_v56 = vstv %s11658_s13 }
 0x159   : > { %s11662_s26 = sld [smem:[#allocation57_spill]]  ;;  %v6417_v36 = vmul.f32 %v10822_v56, %v711_v49 }
 0x15a   : > { %11659 = sst [smem:[#allocation113_spill]] %s6314_s0 }
 0x15b   : > { %s11663_s20 = sld [smem:[#allocation58_spill]]  ;;  %v10818_v57 = vstv %s11660_s14 }
 0x15c   : > { %s11664_s30 = sld [smem:[#allocation63_spill]]  ;;  %v6421_v37 = vmul.f32 %v10818_v57, %v711_v49  ;;  %v10870_v57 = vstv %s6169_s23 }
 0x15d   : > { %s11665_s24 = sld [smem:[#allocation64_spill]]  ;;  %v843_v5 = vmul.f32 %v10870_v57, %v6441_v14  ;;  %v6530_v57 = vadd.f32 %v825_v28, %v6373_v16 }
 0x15e   : > { %11661 = sst [smem:[#allocation114_spill]] %s6320_s6 }
 0x15f   : > { %s6325_s22 = sld [smem:[#allocation11 + $0x18b]]  ;;  %v10823_v61 = vstv %s11662_s26 }
 0x160   : > { %s6331_s0 = sld [smem:[#allocation11 + $0x18c]]  ;;  %v6430_v41 = vmul.f32 %v10823_v61, %v711_v49 }
 0x161   : > { %v10826_v62 = vstv %s11663_s20  ;;  %s6344_s6 = sld [smem:[#allocation11 + $0x18e]] }
 0x162   : > { %v10850_v63 = vstv %s11664_s30  ;;  %s6369_s7 = sld [smem:[#allocation8 + $0x84]]  ;;  %v6434_v44 = vmul.f32 %v10826_v62, %v711_v49 }
 0x163   : > { %v10854_v0 = vstv %s11665_s24  ;;  %s6381_s9 = sld [smem:[#allocation11 + $0x18f]]  ;;  %v807_v38 = vmul.f32 %v10850_v63, %v6441_v14 }
 0x164   : > { %s6395_s21 = sld [smem:[#allocation8 + $0x104]]  ;;  %v813_v43 = vmul.f32 %v10854_v0, %v6441_v14  ;;  %v1043_v0 = vadd.f32 %v10865_v47, %v1039_v26  ;;  %v837_v26 = vmul.f32 %v10868_v1, %v6441_v14 }
 0x165   : > { %11666 = sst [smem:[#allocation115_spill]] %s6325_s22  ;;  %v6505_v4 = vadd.f32 %v807_v38, %v6348_v2  ;;  %v6522_v2 = vadd.f32 %v819_v42, %v6361_v11  ;;  %v6554_v11 = vadd.f32 %v831_v3, %v6377_v20 }
 0x166   : > { %11667 = sst [smem:[#allocation116_spill]] %s6331_s0  ;;  %v6519_v60 = vadd.f32 %v813_v43, %v6357_v10  ;;  %v6538_v10 = vmul.f32 0.5, %v1043_v0 }
 0x167   : > { %s6338_s22 = sld [smem:[#allocation11 + $0x18d]] }
 0x168   : > { %11669 = sst [smem:[#allocation118_spill]] %s6344_s6  ;;  %v10860_v52 = vstv %s6369_s7  ;;  %5359 = vtanh.f32 %v6538_v10 }
 0x169   : > { %11671 = sst [smem:[#allocation120_spill]] %s6369_s7  ;;  %v1155_v63 = vmul.f32 %v6177_v7, %v10860_v52 }
 0x16a   : > { %11672 = sst [smem:[#allocation121_spill]] %s6381_s9  ;;  %v10964_v21 = vstv %s6395_s21 }
 0x16b   : > { %11673 = sst [smem:[#allocation122_spill]] %s6395_s21  ;;  %v1161_v1 = vmul.f32 %v6196_v12, %v10964_v21 }
 0x16c   : > { %s11674_s18 = sld [smem:[#allocation71_spill]] }
 0x16d   : > { %11668 = sst [smem:[#allocation117_spill]] %s6338_s22 }
 0x16e   : > { %s6353_s22 = sld [smem:[#allocation8 + $0x4]] }
 0x16f   : > { %s11675_s19 = sld [smem:[#allocation72_spill]] }
 0x170   : > { %s11676_s10 = sld [smem:[#allocation73_spill]] }
 0x171   : > { %s6413_s11 = sld [smem:[#allocation9 + $0x4]] }
 0x172   : > { %s11678_s5 = sld [smem:[#allocation74_spill]]  ;;  %v10871_v15 = vstv %s11674_s18 }
 0x173   : > { %s11679_s29 = sld [smem:[#allocation75_spill]]  ;;  %v849_v47 = vmul.f32 %v10871_v15, %v6441_v14 }
 0x174   : > { %11670 = sst [smem:[#allocation119_spill]] %s6353_s22  ;;  %v10858_v53 = vstv %s6353_s22 }
 0x175   : > { %s11680_s1 = sld [smem:[#allocation76_spill]]  ;;  %v10962_v56 = vstv %s11675_s19  ;;  %v1151_v40 = vmul.f32 %v10858_v53, %v6174_v6  ;;  %v6574_v3 = vadd.f32 %v849_v47, %v6393_v25 }
 0x176   : > { %s11681_s2 = sld [smem:[#allocation77_spill]]  ;;  %v10924_v61 = vstv %s11676_s10  ;;  %v855_v15 = vmul.f32 %v10962_v56, %v6441_v14 }
 0x177   : > { %11677 = sst [smem:[#allocation123_spill]] %s6413_s11  ;;  %v1157_v38 = vadd.f32 %v1155_v63, %v1151_v40  ;;  %v861_v43 = vmul.f32 %v10924_v61, %v6441_v14  ;;  %v925_v63 = vadd.f32 1.0, %v5358_v23  ;;  %v6571_v23 = vadd.f32 %v843_v5, %v6389_v24 }
 0x178   : > { %s6426_s27 = sld [smem:[#allocation11 + $0x200]]  ;;  %v10875_v49 = vstv %s11678_s5 }
 0x179   : > { %s11683_s16 = sld [smem:[#allocation78_spill]]  ;;  %v10904_v62 = vstv %s11679_s29  ;;  %v867_v40 = vmul.f32 %v10875_v49, %v6441_v14  ;;  %v1163_v20 = vadd.f32 %v1161_v1, %v1157_v38  ;;  %v927_v25 = vmul.f32 %v925_v63, %v6334_v58 }
 0x17a   : > { %s6438_s14 = sld [smem:[#allocation11 + $0x201]]  ;;  %v873_v42 = vmul.f32 %v10904_v62, %v6441_v14 }
 0x17b   : > { %s11685_s13 = sld [smem:[#allocation79_spill]]  ;;  %v10877_v55 = vstv %s11680_s1  ;;  %v6589_v47 = vadd.f32 %v867_v40, %v6407_v32  ;;  %v937_v38 = vmul.f32 %v10899_v48, %v927_v25 }
 0x17c   : > { %s11686_s28 = sld [smem:[#allocation84_spill]]  ;;  %v10903_v54 = vstv %s11681_s2  ;;  %v879_v28 = vmul.f32 %v10877_v55, %v6441_v14  ;;  %v6568_v55 = vadd.f32 %v837_v26, %v6385_v22  ;;  %v6592_v22 = vadd.f32 %v873_v42, %v6411_v33 }
 0x17d   : > { %s6446_s26 = sld [smem:[#allocation11 + $0x202]]  ;;  %v885_v0 = vmul.f32 %v10903_v54, %v6441_v14 }
 0x17e   : > { %11682 = sst [smem:[#allocation124_spill]] %s6426_s27  ;;  %v6595_v24 = vadd.f32 %v879_v28, %v6417_v36 }
 0x17f   : > { %s11688_s20 = sld [smem:[#allocation86_spill]]  ;;  %v10881_v34 = vstv %s11683_s16 }
 0x180   : > { %11684 = sst [smem:[#allocation125_spill]] %s6438_s14  ;;  %v891_v16 = vmul.f32 %v10881_v34, %v6441_v14  ;;  %v6579_v34 = vadd.f32 %v855_v15, %v6399_v27  ;;  %v6601_v27 = vadd.f32 %v885_v0, %v6421_v37 }
 0x181   : > { %s11689_s17 = sld [smem:[#allocation87_spill]]  ;;  %v10902_v51 = vstv %s11685_s13 }
 0x182   : > { %s11690_s27 = sld [smem:[#allocation88_spill]]  ;;  %v10900_v50 = vstv %s11686_s28  ;;  %v897_v49 = vmul.f32 %v10902_v51, %v6441_v14  ;;  %v6582_v14 = vadd.f32 %v861_v43, %v6403_v29  ;;  %v6604_v29 = vadd.f32 %v891_v16, %v6430_v41 }
 0x183   : > { %11687 = sst [smem:[#allocation126_spill]] %s6446_s26  ;;  %v931_v26 = vmul.f32 %v10900_v50, %v927_v25 }
 0x184   : > { %s6452_s14 = sld [smem:[#allocation11 + $0x203]]  ;;  %v6607_v32 = vadd.f32 %v897_v49, %v6434_v44 }
 0x185   : > { %s6457_s9 = sld [smem:[#allocation11 + $0x204]]  ;;  %v10905_v39 = vstv %s11688_s20 }
 0x186   : > { %s11693_s26 = sld [smem:[#allocation89_spill]]  ;;  %v943_v16 = vmul.f32 %v10905_v39, %v927_v25 }
 0x187   : > { %s6463_s6 = sld [smem:[#allocation11 + $0x205]]  ;;  %v10907_v46 = vstv %s11689_s17 }
 0x188   : > { %s11696_s0 = sld [smem:[#allocation91_spill]]  ;;  %v10908_v45 = vstv %s11690_s27 }
 0x189   : > { %s11697_s11 = sld [smem:[#allocation92_spill]]  ;;  %v955_v51 = vmul.f32 %v10908_v45, %v927_v25 }
 0x18a   : > { %11691 = sst [smem:[#allocation127_spill]] %s6452_s14 }
 0x18b   : > { %11692 = sst [smem:[#allocation128_spill]] %s6457_s9 }
 0x18c   : > { %s11695_s14 = sld [smem:[#allocation90_spill]]  ;;  %v10909_v19 = vstv %s11693_s26 }
 0x18d   : > { %11694 = sst [smem:[#allocation129_spill]] %s6463_s6  ;;  %v961_v54 = vmul.f32 %v10909_v19, %v927_v25 }
 0x18e   : > { %s6471_s9 = sld [smem:[#allocation11 + $0x206]]  ;;  %v10911_v35 = vstv %s11696_s0 }
 0x18f   : > { %s6485_s30 = sld [smem:[#allocation11 + $0x207]]  ;;  %v10919_v52 = vstv %s11697_s11  ;;  %v973_v39 = vmul.f32 %v10911_v35, %v927_v25 }
 0x190   : > { %s6494_s3 = sld [smem:[#allocation11 + $0x208]]  ;;  %v979_v35 = vmul.f32 %v10919_v52, %v927_v25 }
 0x191   : > { %s6502_s24 = sld [smem:[#allocation11 + $0x209]] }
 0x192   : > { %v10912_v53 = vstv %s11695_s14  ;;  %s6516_s25 = sld [smem:[#allocation11 + $0x20a]] }
 0x193   : > { %s6527_s23 = sld [smem:[#allocation11 + $0x20b]]  ;;  %v967_v62 = vmul.f32 %v10912_v53, %v927_v25 }
 0x194   : > { %11698 = sst [smem:[#allocation130_spill]] %s6471_s9 }
 0x195   : > { %11699 = sst [smem:[#allocation131_spill]] %s6485_s30 }
 0x196   : > { %11700 = sst [smem:[#allocation132_spill]] %s6494_s3 }
 0x197   : > { %11701 = sst [smem:[#allocation133_spill]] %s6502_s24 }
 0x198   : > { %11702 = sst [smem:[#allocation134_spill]] %s6516_s25 }
 0x199   : > { %11703 = sst [smem:[#allocation135_spill]] %s6527_s23 }
 0x19a   : > { %s6540_s18 = sld [smem:[#allocation11 + $0x20c]] }
 0x19b   : > { %s11705_s12 = sld [smem:[#allocation123_spill]] }
 0x19c   : > { %s6551_s19 = sld [smem:[#allocation8 + $0x5]] }
 0x19d   : > { %s6565_s29 = sld [smem:[#allocation8 + $0x85]] }
 0x19e   : > { %s11708_s1 = sld [smem:[#allocation93_spill]] }
 0x19f   : > { %s6576_s2 = sld [smem:[#allocation11 + $0x20d]] }
 0x1a0   : > { %11704 = sst [smem:[#allocation136_spill]] %s6540_s18 }
 0x1a1   : > { %s11710_s16 = sld [smem:[#allocation94_spill]]  ;;  %v10963_v5 = vstv %s11705_s12 }
 0x1a2   : > { %11706 = sst [smem:[#allocation137_spill]] %s6551_s19  ;;  %v1167_v37 = vadd.f32 %v10963_v5, %v1163_v20  ;;  %v10914_v63 = vstv %s6551_s19  ;;  %v949_v20 = vmul.f32 %v10907_v46, %v927_v25  ;;  %v6659_v46 = vadd.f32 %v931_v26, %v6505_v4 }
 0x1a3   : > { %11707 = sst [smem:[#allocation138_spill]] %s6565_s29  ;;  %v10916_v0 = vstv %s6565_s29  ;;  %v1275_v45 = vmul.f32 %v10914_v63, %v6174_v6 }
 0x1a4   : > { %s11711_s13 = sld [smem:[#allocation95_spill]]  ;;  %v10917_v33 = vstv %s11708_s1  ;;  %v6644_v50 = vmul.f32 0.5, %v1167_v37  ;;  %v6662_v37 = vadd.f32 %v937_v38, %v6519_v60  ;;  %v1279_v19 = vmul.f32 %v6177_v7, %v10916_v0 }
 0x1a5   : > { %11709 = sst [smem:[#allocation139_spill]] %s6576_s2  ;;  %v985_v53 = vmul.f32 %v10917_v33, %v927_v25  ;;  %v6691_v0 = vadd.f32 %v943_v16, %v6522_v2  ;;  %v6694_v33 = vadd.f32 %v949_v20, %v6530_v57  ;;  %v6714_v57 = vadd.f32 %v967_v62, %v6571_v23 }
 0x1a6   : > { %s11712_s5 = sld [smem:[#allocation96_spill]]  ;;  %5361 = vtanh.f32 %v6644_v50  ;;  %v1281_v61 = vadd.f32 %v1279_v19, %v1275_v45 }
 0x1a7   : > { %s6586_s10 = sld [smem:[#allocation11 + $0x20e]]  ;;  %v10918_v58 = vstv %s11710_s16  ;;  %v6723_v19 = vadd.f32 %v985_v53, %v6582_v14 }
 0x1a8   : > { %s11714_s4 = sld [smem:[#allocation97_spill]]  ;;  %v991_v4 = vmul.f32 %v10918_v58, %v927_v25 }
 0x1a9   : > { %s11715_s8 = sld [smem:[#allocation98_spill]] }
 0x1aa   : > { %s11716_s21 = sld [smem:[#allocation99_spill]]  ;;  %v10921_v36 = vstv %s11711_s13  ;;  %v6728_v45 = vadd.f32 %v991_v4, %v6589_v47 }
 0x1ab   : > { %s11717_s7 = sld [smem:[#allocation104_spill]]  ;;  %v997_v60 = vmul.f32 %v10921_v36, %v927_v25  ;;  %v5360_v36 = vpop.eup %5359 }
 0x1ac   : > { %s6598_s22 = sld [smem:[#allocation11 + $0x20f]]  ;;  %v10922_v1 = vstv %s11712_s5 }
 0x1ad   : > { %11713 = sst [smem:[#allocation140_spill]] %s6586_s10  ;;  %v1003_v38 = vmul.f32 %v10922_v1, %v927_v25  ;;  %v6703_v1 = vadd.f32 %v955_v51, %v6554_v11  ;;  %v6720_v51 = vadd.f32 %v979_v35, %v6579_v34  ;;  %v1049_v34 = vadd.f32 1.0, %v5360_v36 }
 0x1ae   : > { %s11719_s10 = sld [smem:[#allocation105_spill]]  ;;  %v10923_v41 = vstv %s11714_s4 }
 0x1af   : > { %s11720_s2 = sld [smem:[#allocation106_spill]]  ;;  %v10957_v44 = vstv %s11715_s8  ;;  %v1009_v63 = vmul.f32 %v10923_v41, %v927_v25  ;;  %v6706_v41 = vadd.f32 %v961_v54, %v6568_v55  ;;  %v6731_v54 = vadd.f32 %v997_v60, %v6592_v22 }
 0x1b0   : > { %s6610_s18 = sld [smem:[#allocation8 + $0x105]]  ;;  %v10955_v15 = vstv %s11716_s21  ;;  %v1015_v58 = vmul.f32 %v10957_v44, %v927_v25  ;;  %v6734_v55 = vadd.f32 %v1003_v38, %v6595_v24 }
 0x1b1   : > { %s11722_s23 = sld [smem:[#allocation107_spill]]  ;;  %v10974_v49 = vstv %s11717_s7  ;;  %v1021_v52 = vmul.f32 %v10955_v15, %v927_v25  ;;  %v6717_v25 = vadd.f32 %v973_v39, %v6574_v3  ;;  %v6737_v35 = vadd.f32 %v1009_v63, %v6601_v27 }
 0x1b2   : > { %11718 = sst [smem:[#allocation141_spill]] %s6598_s22  ;;  %v6742_v53 = vadd.f32 %v1015_v58, %v6604_v29  ;;  %v1051_v58 = vmul.f32 %v1049_v34, %v6538_v10  ;;  %v11044_v10 = vstv %s6471_s9  ;;  %v11012_v34 = vstv %s6485_s30 }
 0x1b3   : > { %s11723_s25 = sld [smem:[#allocation108_spill]]  ;;  %v6745_v62 = vadd.f32 %v1021_v52, %v6607_v32  ;;  %v5362_v56 = vpop.eup %5361 }
 0x1b4   : > { %s6617_s22 = sld [smem:[#allocation9 + $0x5]]  ;;  %v10978_v43 = vstv %s11719_s10  ;;  %v1055_v5 = vmul.f32 %v10974_v49, %v1051_v58 }
 0x1b5   : > { %s11725_s24 = sld [smem:[#allocation109_spill]]  ;;  %v10979_v40 = vstv %s11720_s2 }
 0x1b6   : > { %11721 = sst [smem:[#allocation142_spill]] %s6610_s18  ;;  %v10954_v26 = vstv %s6610_s18  ;;  %v1067_v31 = vmul.f32 %v10979_v40, %v1051_v58  ;;  %v1173_v40 = vadd.f32 1.0, %v5362_v56 }
 0x1b7   : > { %s6623_s3 = sld [smem:[#allocation11 + $0x280]]  ;;  %v10986_v42 = vstv %s11722_s23  ;;  %v1285_v2 = vmul.f32 %v6196_v12, %v10954_v26 }
 0x1b8   : > { %s6631_s12 = sld [smem:[#allocation11 + $0x281]]  ;;  %v1073_v18 = vmul.f32 %v10986_v42, %v1051_v58 }
 0x1b9   : > { %v10984_v28 = vstv %s11723_s25  ;;  %s6637_s7 = sld [smem:[#allocation11 + $0x282]]  ;;  %v1287_v3 = vadd.f32 %v1285_v2, %v1281_v61  ;;  %v11045_v2 = vstv %s6463_s6 }
 0x1ba   : > { %11724 = sst [smem:[#allocation143_spill]] %s6617_s22  ;;  %v10953_v14 = vstv %s6617_s22  ;;  %v1079_v49 = vmul.f32 %v10984_v28, %v1051_v58  ;;  %v1057_v28 = vadd.f32 %v1055_v5, %v6659_v46 }
 0x1bb   : > { %v11145_v48 = vstv %s11725_s24  ;;  %s6646_s15 = sld [smem:[#allocation11 + $0x283]]  ;;  %v1291_v36 = vadd.f32 %v10953_v14, %v1287_v3 }
 0x1bc   : > { %s6656_s17 = sld [smem:[#allocation11 + $0x284]] }
 0x1bd   : > { %11726 = sst [smem:[#allocation144_spill]] %s6623_s3  ;;  %v6799_v59 = vmul.f32 0.5, %v1291_v36 }
 0x1be   : > { %11727 = sst [smem:[#allocation145_spill]] %s6631_s12 }
 0x1bf   : > { %11728 = sst [smem:[#allocation146_spill]] %s6637_s7  ;;  %5363 = vtanh.f32 %v6799_v59 }
 0x1c0   : > { %s6670_s14 = sld [smem:[#allocation11 + $0x285]] }
 0x1c1   : > { %11729 = sst [smem:[#allocation147_spill]] %s6646_s15 }
 0x1c2   : > { %11730 = sst [smem:[#allocation148_spill]] %s6656_s17 }
 0x1c3   : > { %s6679_s0 = sld [smem:[#allocation11 + $0x286]] }
 0x1c4   : > { %s6688_s29 = sld [smem:[#allocation8 + $0x6]] }
 0x1c5   : > { %s6700_s19 = sld [smem:[#allocation8 + $0x86]] }
 0x1c6   : > { %11731 = sst [smem:[#allocation149_spill]] %s6670_s14 }
 0x1c7   : > { %s11735_s4 = sld [smem:[#allocation110_spill]] }
 0x1c8   : > { %s6711_s5 = sld [smem:[#allocation11 + $0x287]] }
 0x1c9   : > { %11732 = sst [smem:[#allocation150_spill]] %s6679_s0 }
 0x1ca   : > { %11733 = sst [smem:[#allocation151_spill]] %s6688_s29  ;;  %v10968_v63 = vstv %s6688_s29 }
 0x1cb   : > { %11734 = sst [smem:[#allocation152_spill]] %s6700_s19  ;;  %v10970_v16 = vstv %s6700_s19  ;;  %v1399_v15 = vmul.f32 %v10968_v63, %v6174_v6  ;;  %v1061_v63 = vmul.f32 %v10978_v43, %v1051_v58  ;;  %v1085_v43 = vmul.f32 %v11145_v48, %v1051_v58 }
 0x1cc   : > { %s11737_s8 = sld [smem:[#allocation111_spill]]  ;;  %v1403_v44 = vmul.f32 %v6177_v7, %v10970_v16 }
 0x1cd   : > { %s11738_s21 = sld [smem:[#allocation112_spill]]  ;;  %v10991_v39 = vstv %s11735_s4  ;;  %v1063_v56 = vadd.f32 %v1061_v63, %v6662_v37  ;;  %v1175_v37 = vmul.f32 %v1173_v40, %v6644_v50 }
 0x1ce   : > { %11736 = sst [smem:[#allocation153_spill]] %s6711_s5  ;;  %v1405_v9 = vadd.f32 %v1403_v44, %v1399_v15  ;;  %v1091_v42 = vmul.f32 %v10991_v39, %v1051_v58  ;;  %v6837_v44 = vadd.f32 %v1067_v31, %v6691_v0 }
 0x1cf   : > { %s6725_s18 = sld [smem:[#allocation11 + $0x288]] }
 0x1d0   : > { %s11740_s13 = sld [smem:[#allocation113_spill]] }
 0x1d1   : > { %s11741_s16 = sld [smem:[#allocation114_spill]] }
 0x1d2   : > { %s11742_s1 = sld [smem:[#allocation115_spill]]  ;;  %v10990_v11 = vstv %s11737_s8 }
 0x1d3   : > { %s11743_s11 = sld [smem:[#allocation116_spill]]  ;;  %v11128_v23 = vstv %s11738_s21  ;;  %v1097_v17 = vmul.f32 %v10990_v11, %v1051_v58 }
 0x1d4   : > { %s6739_s26 = sld [smem:[#allocation11 + $0x289]]  ;;  %v1103_v15 = vmul.f32 %v11128_v23, %v1051_v58 }
 0x1d5   : > { %11739 = sst [smem:[#allocation154_spill]] %s6725_s18  ;;  %v1099_v50 = vadd.f32 %v1097_v17, %v6717_v25 }
 0x1d6   : > { %s11745_s27 = sld [smem:[#allocation117_spill]]  ;;  %v10994_v47 = vstv %s11740_s13 }
 0x1d7   : > { %s11746_s20 = sld [smem:[#allocation118_spill]]  ;;  %v10995_v52 = vstv %s11741_s16 }
 0x1d8   : > { %s11747_s28 = sld [smem:[#allocation121_spill]]  ;;  %v11125_v22 = vstv %s11742_s1  ;;  %v1115_v46 = vmul.f32 %v10995_v52, %v1051_v58  ;;  %v1081_v52 = vadd.f32 %v1079_v49, %v6703_v1 }
 0x1d9   : > { %s11748_s18 = sld [smem:[#allocation124_spill]]  ;;  %v10996_v24 = vstv %s11743_s11  ;;  %v1121_v5 = vmul.f32 %v11125_v22, %v1051_v58 }
 0x1da   : > { %11744 = sst [smem:[#allocation155_spill]] %s6739_s26  ;;  %v1127_v11 = vmul.f32 %v10996_v24, %v1051_v58  ;;  %v1087_v24 = vadd.f32 %v1085_v43, %v6706_v41 }
 0x1db   : > { %s6748_s5 = sld [smem:[#allocation8 + $0x106]] }
 0x1dc   : > { %s6753_s26 = sld [smem:[#allocation11 + $0x28a]]  ;;  %v10997_v27 = vstv %s11745_s27  ;;  %v1129_v1 = vadd.f32 %v1127_v11, %v6734_v55  ;;  %v1221_v11 = vmul.f32 %v11012_v34, %v1175_v37 }
 0x1dd   : > { %s11751_s0 = sld [smem:[#allocation125_spill]]  ;;  %v10999_v29 = vstv %s11746_s20  ;;  %v1133_v39 = vmul.f32 %v10997_v27, %v1051_v58 }
 0x1de   : > { %s11752_s14 = sld [smem:[#allocation126_spill]]  ;;  %v11124_v61 = vstv %s11747_s28  ;;  %v1139_v31 = vmul.f32 %v10999_v29, %v1051_v58  ;;  %v1093_v29 = vadd.f32 %v1091_v42, %v6714_v57 }
 0x1df   : > { %s11753_s17 = sld [smem:[#allocation127_spill]]  ;;  %v11057_v32 = vstv %s11748_s18  ;;  %v1145_v0 = vmul.f32 %v11124_v61, %v1051_v58  ;;  %v1135_v17 = vadd.f32 %v1133_v39, %v6737_v35 }
 0x1e0   : > { %s11754_s15 = sld [smem:[#allocation128_spill]]  ;;  %v1141_v41 = vadd.f32 %v1139_v31, %v6742_v53  ;;  %v1179_v49 = vmul.f32 %v11057_v32, %v1175_v37  ;;  %v1209_v53 = vmul.f32 %v11045_v2, %v1175_v37 }
 0x1e1   : > { %11749 = sst [smem:[#allocation156_spill]] %s6748_s5  ;;  %v10988_v13 = vstv %s6748_s5 }
 0x1e2   : > { %11750 = sst [smem:[#allocation157_spill]] %s6753_s26  ;;  %v1409_v8 = vmul.f32 %v6196_v12, %v10988_v13  ;;  %v1109_v13 = vmul.f32 %v10994_v47, %v1051_v58  ;;  %v1075_v47 = vadd.f32 %v1073_v18, %v6694_v33  ;;  %v1117_v18 = vadd.f32 %v1115_v46, %v6728_v45 }
 0x1e3   : > { %s6759_s7 = sld [smem:[#allocation11 + $0x28b]]  ;;  %v11051_v20 = vstv %s11751_s0  ;;  %v1123_v33 = vadd.f32 %v1121_v5, %v6731_v54  ;;  %v6912_v39 = vadd.f32 %v1179_v49, %v1057_v28  ;;  %v5364_v28 = vpop.eup %5363 }
 0x1e4   : > { %s11756_s12 = sld [smem:[#allocation132_spill]]  ;;  %v11050_v4 = vstv %s11752_s14  ;;  %v1411_v63 = vadd.f32 %v1409_v8, %v1405_v9  ;;  %v1105_v8 = vadd.f32 %v1103_v15, %v6720_v51  ;;  %v1111_v9 = vadd.f32 %v1109_v13, %v6723_v19 }
 0x1e5   : > { %s6765_s3 = sld [smem:[#allocation11 + $0x28c]]  ;;  %v11047_v60 = vstv %s11753_s17  ;;  %v1147_v13 = vadd.f32 %v1145_v0, %v6745_v62  ;;  %v1185_v40 = vmul.f32 %v11051_v20, %v1175_v37  ;;  %v1191_v51 = vmul.f32 %v11050_v4, %v1175_v37 }
 0x1e6   : > { %s11758_s26 = sld [smem:[#allocation133_spill]]  ;;  %v11046_v38 = vstv %s11754_s15  ;;  %v1197_v55 = vmul.f32 %v11047_v60, %v1175_v37  ;;  %v1215_v62 = vmul.f32 %v11044_v10, %v1175_v37 }
 0x1e7   : > { %s11759_s16 = sld [smem:[#allocation134_spill]]  ;;  %v1203_v35 = vmul.f32 %v11046_v38, %v1175_v37  ;;  %v6922_v46 = vadd.f32 %v1185_v40, %v1063_v56  ;;  %v6943_v56 = vadd.f32 %v1191_v51, %v6837_v44 }
 0x1e8   : > { %s6770_s11 = sld [smem:[#allocation11 + $0x28d]]  ;;  %v6945_v40 = vadd.f32 %v1197_v55, %v1075_v47 }
 0x1e9   : > { %11755 = sst [smem:[#allocation158_spill]] %s6759_s7 }
 0x1ea   : > { %s11762_s28 = sld [smem:[#allocation135_spill]]  ;;  %v11011_v3 = vstv %s11756_s12 }
 0x1eb   : > { %11757 = sst [smem:[#allocation159_spill]] %s6765_s3  ;;  %v1227_v58 = vmul.f32 %v11011_v3, %v1175_v37 }
 0x1ec   : > { %s6778_s3 = sld [smem:[#allocation11 + $0x28e]]  ;;  %v11041_v14 = vstv %s11758_s26 }
 0x1ed   : > { %s11764_s22 = sld [smem:[#allocation136_spill]]  ;;  %v11014_v26 = vstv %s11759_s16  ;;  %v1233_v5 = vmul.f32 %v11041_v14, %v1175_v37 }
 0x1ee   : > { %11760 = sst [smem:[#allocation160_spill]] %s6770_s11  ;;  %v1239_v31 = vmul.f32 %v11014_v26, %v1175_v37  ;;  %v6947_v26 = vadd.f32 %v1203_v35, %v1081_v52 }
 0x1ef   : > { %s11765_s11 = sld [smem:[#allocation139_spill]]  ;;  %v6962_v47 = vadd.f32 %v1233_v5, %v1111_v9 }
 0x1f0   : > { %s6784_s18 = sld [smem:[#allocation11 + $0x28f]]  ;;  %v11015_v21 = vstv %s11762_s28  ;;  %v6964_v52 = vadd.f32 %v1239_v31, %v1117_v18 }
 0x1f1   : > { %s11768_s6 = sld [smem:[#allocation141_spill]]  ;;  %v1245_v0 = vmul.f32 %v11015_v21, %v1175_v37  ;;  %v6949_v21 = vadd.f32 %v1209_v53, %v1087_v24 }
 0x1f2   : > { %11763 = sst [smem:[#allocation161_spill]] %s6778_s3 }
 0x1f3   : > { %s11767_s3 = sld [smem:[#allocation140_spill]]  ;;  %v11018_v16 = vstv %s11764_s22  ;;  %v6966_v24 = vadd.f32 %v1245_v0, %v1123_v33 }
 0x1f4   : > { %s6794_s9 = sld [smem:[#allocation9 + $0x6]] }
 0x1f5   : > { %v11038_v30 = vstv %s11765_s11  ;;  %s6810_s19 = sld [smem:[#allocation11 + $0x301]] }
 0x1f6   : > { %11766 = sst [smem:[#allocation162_spill]] %s6784_s18  ;;  %v1257_v49 = vmul.f32 %v11038_v30, %v1175_v37 }
 0x1f7   : > { %s6802_s18 = sld [smem:[#allocation11 + $0x300]]  ;;  %v11799_v3 = vstv %s11768_s6 }
 0x1f8   : > { %s6818_s29 = sld [smem:[#allocation11 + $0x302]]  ;;  %v1269_v34 = vmul.f32 %v11799_v3, %v1175_v37  ;;  %v6957_v3 = vadd.f32 %v1227_v58, %v1105_v8 }
 0x1f9   : > { %v11020_v36 = vstv %s11767_s3  ;;  %s6825_s23 = sld [smem:[#allocation11 + $0x303]] }
 0x1fa   : > { %11769 = sst [smem:[#allocation163_spill]] %s6794_s9  ;;  %v11062_v27 = vstv %s6794_s9  ;;  %v6976_v8 = vadd.f32 %v1269_v34, %v1147_v13 }
 0x1fb   : > { %11771 = sst [smem:[#allocation165_spill]] %s6810_s19  ;;  %v1415_v43 = vadd.f32 %v11062_v27, %v1411_v63  ;;  %v1251_v63 = vmul.f32 %v11018_v16, %v1175_v37  ;;  %v6953_v16 = vadd.f32 %v1215_v62, %v1093_v29  ;;  %v1297_v29 = vadd.f32 1.0, %v5364_v28 }
 0x1fc   : > { %s6833_s24 = sld [smem:[#allocation11 + $0x304]]  ;;  %v11085_v5 = vstv %s6810_s19 }
 0x1fd   : > { %11770 = sst [smem:[#allocation164_spill]] %s6802_s18  ;;  %v6918_v15 = vmul.f32 0.5, %v1415_v43  ;;  %v1263_v43 = vmul.f32 %v11020_v36, %v1175_v37  ;;  %v6955_v36 = vadd.f32 %v1221_v11, %v1099_v50  ;;  %v6970_v44 = vadd.f32 %v1251_v63, %v1129_v1 }
 0x1fe   : > { %11772 = sst [smem:[#allocation166_spill]] %s6818_s29  ;;  %v6972_v37 = vadd.f32 %v1257_v49, %v1135_v17  ;;  %v6993_v13 = vmul.f32 %v1297_v29, %v6799_v59  ;;  %v11084_v11 = vstv %s6802_s18  ;;  %v11088_v31 = vstv %s6818_s29 }
 0x1ff   : > { %11775 = sst [smem:[#allocation167_spill]] %s6825_s23  ;;  %5365 = vtanh.f32 %v6918_v15  ;;  %v6974_v50 = vadd.f32 %v1263_v43, %v1141_v41  ;;  %v11093_v0 = vstv %s6825_s23 }
 0x200   : > { %s6843_s5 = sld [smem:[#allocation11 + $0x305]] }
 0x201   : > { %s6853_s8 = sld [smem:[#allocation11 + $0x306]] }
 0x202   : > { %11777 = sst [smem:[#allocation168_spill]] %s6833_s24  ;;  %v11094_v63 = vstv %s6833_s24 }
 0x203   : > { %s6860_s13 = sld [smem:[#allocation11 + $0x307]] }
 0x204   : > { %s6866_s27 = sld [smem:[#allocation11 + $0x308]] }
 0x205   : > { %s11783_s25 = sld [smem:[#allocation144_spill]] }
 0x206   : > { %11778 = sst [smem:[#allocation169_spill]] %s6843_s5  ;;  %v11099_v49 = vstv %s6843_s5 }
 0x207   : > { %11779 = sst [smem:[#allocation170_spill]] %s6853_s8 }
 0x208   : > { %s11784_s20 = sld [smem:[#allocation145_spill]] }
 0x209   : > { %11780 = sst [smem:[#allocation171_spill]] %s6860_s13 }
 0x20a   : > { %11782 = sst [smem:[#allocation172_spill]] %s6866_s27 }
 0x20b   : > { %s11785_s1 = sld [smem:[#allocation146_spill]]  ;;  %v11049_v42 = vstv %s11783_s25 }
 0x20c   : > { %s6872_s10 = sld [smem:[#allocation11 + $0x309]] }
 0x20d   : > { %s11787_s21 = sld [smem:[#allocation147_spill]] }
 0x20e   : > { %s11788_s4 = sld [smem:[#allocation148_spill]]  ;;  %v11053_v57 = vstv %s11784_s20 }
 0x20f   : > { %s11789_s7 = sld [smem:[#allocation149_spill]]  ;;  %v1309_v10 = vmul.f32 %v11053_v57, %v6993_v13 }
 0x210   : > { %s6878_s27 = sld [smem:[#allocation11 + $0x30a]] }
 0x211   : > { %s6886_s8 = sld [smem:[#allocation11 + $0x30b]]  ;;  %v11058_v25 = vstv %s11785_s1 }
 0x212   : > { %11786 = sst [smem:[#allocation173_spill]] %s6872_s10 }
 0x213   : > { %v11059_v19 = vstv %s11787_s21  ;;  %s6900_s2 = sld [smem:[#allocation8 + $0x7]] }
 0x214   : > { %v11061_v45 = vstv %s11788_s4  ;;  %s6910_s14 = sld [smem:[#allocation8 + $0x87]]  ;;  %v1321_v4 = vmul.f32 %v11059_v19, %v6993_v13 }
 0x215   : > { %v11065_v54 = vstv %s11789_s7  ;;  %s6920_s15 = sld [smem:[#allocation11 + $0x30d]] }
 0x216   : > { %11790 = sst [smem:[#allocation174_spill]] %s6878_s27 }
 0x217   : > { %11793 = sst [smem:[#allocation175_spill]] %s6886_s8  ;;  %v11127_v2 = vstv %s6886_s8 }
 0x218   : > { %s6893_s27 = sld [smem:[#allocation11 + $0x30c]] }
 0x219   : > { %11795 = sst [smem:[#allocation177_spill]] %s6900_s2  ;;  %v11107_v33 = vstv %s6900_s2 }
 0x21a   : > { %11796 = sst [smem:[#allocation178_spill]] %s6910_s14  ;;  %v11064_v1 = vstv %s6910_s14  ;;  %v1523_v58 = vmul.f32 %v11107_v33, %v6174_v6 }
 0x21b   : > { %11797 = sst [smem:[#allocation179_spill]] %s6920_s15  ;;  %v1527_v59 = vmul.f32 %v6177_v7, %v11064_v1  ;;  %v1303_v7 = vmul.f32 %v11049_v42, %v6993_v13  ;;  %v1315_v42 = vmul.f32 %v11058_v25, %v6993_v13  ;;  %v11131_v57 = vstv %s6920_s15  ;;  %v5366_v25 = vpop.eup %5365 }
 0x21c   : > { %s6930_s13 = sld [smem:[#allocation11 + $0x30e]]  ;;  %v7072_v1 = vadd.f32 %v1309_v10, %v6922_v46 }
 0x21d   : > { %s6940_s12 = sld [smem:[#allocation11 + $0x30f]]  ;;  %v1529_v38 = vadd.f32 %v1527_v59, %v1523_v58  ;;  %v1327_v58 = vmul.f32 %v11061_v45, %v6993_v13  ;;  %v7058_v19 = vadd.f32 %v1303_v7, %v6912_v39 }
 0x21e   : > { %11794 = sst [smem:[#allocation176_spill]] %s6893_s27  ;;  %v11129_v20 = vstv %s6893_s27 }
 0x21f   : > { %s6951_s28 = sld [smem:[#allocation8 + $0x107]] }
 0x220   : > { %s11802_s22 = sld [smem:[#allocation150_spill]] }
 0x221   : > { %s11803_s3 = sld [smem:[#allocation153_spill]] }
 0x222   : > { %11798 = sst [smem:[#allocation180_spill]] %s6930_s13  ;;  %v11144_v59 = vstv %s6930_s13 }
 0x223   : > { %11800 = sst [smem:[#allocation181_spill]] %s6940_s12 }
 0x224   : > { %s6960_s6 = sld [smem:[#allocation9 + $0x7]] }
 0x225   : > { %11801 = sst [smem:[#allocation182_spill]] %s6951_s28  ;;  %v11060_v28 = vstv %s6951_s28 }
 0x226   : > { %s11805_s11 = sld [smem:[#allocation154_spill]]  ;;  %v11066_v9 = vstv %s11802_s22  ;;  %v1533_v60 = vmul.f32 %v6196_v12, %v11060_v28  ;;  %v1333_v28 = vmul.f32 %v11065_v54, %v6993_v13 }
 0x227   : > { %s11806_s16 = sld [smem:[#allocation155_spill]]  ;;  %v11067_v18 = vstv %s11803_s3  ;;  %v1339_v45 = vmul.f32 %v11066_v9, %v6993_v13  ;;  %v7083_v9 = vadd.f32 %v1315_v42, %v6943_v56  ;;  %v7108_v56 = vadd.f32 %v1327_v58, %v6947_v26 }
 0x228   : > { %s11807_s26 = sld [smem:[#allocation157_spill]]  ;;  %v1345_v27 = vmul.f32 %v11067_v18, %v6993_v13  ;;  %v1535_v54 = vadd.f32 %v1533_v60, %v1529_v38  ;;  %v7086_v18 = vadd.f32 %v1321_v4, %v6945_v40  ;;  %v1421_v4 = vadd.f32 1.0, %v5366_v25 }
 0x229   : > { %s11808_s30 = sld [smem:[#allocation158_spill]]  ;;  %v7111_v40 = vadd.f32 %v1333_v28, %v6949_v21 }
 0x22a   : > { %11804 = sst [smem:[#allocation183_spill]] %s6960_s6 }
 0x22b   : > { %s6968_s10 = sld [smem:[#allocation11 + $0x380]] }
 0x22c   : > { %s11810_s17 = sld [smem:[#allocation159_spill]]  ;;  %v11092_v17 = vstv %s11805_s11 }
 0x22d   : > { %s11811_s0 = sld [smem:[#allocation160_spill]]  ;;  %v11091_v41 = vstv %s11806_s16  ;;  %v1351_v39 = vmul.f32 %v11092_v17, %v6993_v13 }
 0x22e   : > { %s11812_s9 = sld [smem:[#allocation161_spill]]  ;;  %v11087_v51 = vstv %s11807_s26  ;;  %v1357_v7 = vmul.f32 %v11091_v41, %v6993_v13 }
 0x22f   : > { %s6978_s7 = sld [smem:[#allocation11 + $0x381]]  ;;  %v11069_v34 = vstv %s11808_s30  ;;  %v1363_v10 = vmul.f32 %v11087_v51, %v6993_v13  ;;  %v7125_v25 = vadd.f32 %v1351_v39, %v6957_v3 }
 0x230   : > { %s11814_s6 = sld [smem:[#allocation162_spill]]  ;;  %v1369_v46 = vmul.f32 %v11069_v34, %v6993_v13  ;;  %v7114_v34 = vadd.f32 %v1339_v45, %v6953_v16  ;;  %v7128_v26 = vadd.f32 %v1357_v7, %v6962_v47 }
 0x231   : > { %11809 = sst [smem:[#allocation184_spill]] %s6968_s10  ;;  %v7135_v16 = vadd.f32 %v1363_v10, %v6964_v52  ;;  %v7154_v52 = vmul.f32 %v1421_v4, %v6918_v15 }
 0x232   : > { %s6984_s10 = sld [smem:[#allocation11 + $0x382]]  ;;  %v11086_v55 = vstv %s11810_s17 }
 0x233   : > { %s6990_s12 = sld [smem:[#allocation11 + $0x383]]  ;;  %v11070_v35 = vstv %s11811_s0  ;;  %v1375_v60 = vmul.f32 %v11086_v55, %v6993_v13  ;;  %v1457_v41 = vmul.f32 %v11099_v49, %v7154_v52  ;;  %v1505_v23 = vmul.f32 %v11131_v57, %v7154_v52 }
 0x234   : > { %s11818_s3 = sld [smem:[#allocation171_spill]]  ;;  %v11072_v53 = vstv %s11812_s9  ;;  %v1381_v38 = vmul.f32 %v11070_v35, %v6993_v13 }
 0x235   : > { %11813 = sst [smem:[#allocation185_spill]] %s6978_s7  ;;  %v1387_v42 = vmul.f32 %v11072_v53, %v6993_v13  ;;  %v7122_v53 = vadd.f32 %v1345_v27, %v6955_v36  ;;  %v7138_v27 = vadd.f32 %v1369_v46, %v6966_v24  ;;  %v7145_v3 = vadd.f32 %v1375_v60, %v6970_v44 }
 0x236   : > { %s11817_s7 = sld [smem:[#allocation170_spill]]  ;;  %v11083_v62 = vstv %s11814_s6  ;;  %v1427_v60 = vmul.f32 %v11084_v11, %v7154_v52  ;;  %v1445_v11 = vmul.f32 %v11093_v0, %v7154_v52 }
 0x237   : > { %s11820_s16 = sld [smem:[#allocation172_spill]]  ;;  %v1393_v35 = vmul.f32 %v11083_v62, %v6993_v13  ;;  %v7151_v47 = vadd.f32 %v1387_v42, %v6974_v50  ;;  %v1439_v42 = vmul.f32 %v11088_v31, %v7154_v52 }
 0x238   : > { %11815 = sst [smem:[#allocation186_spill]] %s6984_s10  ;;  %v7240_v49 = vadd.f32 %v1427_v60, %v7058_v19  ;;  %v7257_v19 = vadd.f32 %v1445_v11, %v7086_v18 }
 0x239   : > { %11816 = sst [smem:[#allocation187_spill]] %s6990_s12  ;;  %v7159_v24 = vadd.f32 %v1393_v35, %v6976_v8  ;;  %v7254_v33 = vadd.f32 %v1439_v42, %v7083_v9 }
 0x23a   : > { %s6998_s10 = sld [smem:[#allocation11 + $0x384]]  ;;  %v11103_v43 = vstv %s11818_s3 }
 0x23b   : > { %s11821_s30 = sld [smem:[#allocation173_spill]] }
 0x23c   : > { %s11822_s12 = sld [smem:[#allocation174_spill]]  ;;  %v11101_v6 = vstv %s11817_s7 }
 0x23d   : > { %s7008_s26 = sld [smem:[#allocation11 + $0x385]]  ;;  %v11122_v29 = vstv %s11820_s16 }
 0x23e   : > { %s7020_s14 = sld [smem:[#allocation11 + $0x387]] }
 0x23f   : > { %s11826_s2 = sld [smem:[#allocation181_spill]] }
 0x240   : > { %11819 = sst [smem:[#allocation188_spill]] %s6998_s10 }
 0x241   : > { %s7014_s10 = sld [smem:[#allocation11 + $0x386]]  ;;  %v11123_v30 = vstv %s11821_s30 }
 0x242   : > { %s11827_s23 = sld [smem:[#allocation183_spill]]  ;;  %v11126_v14 = vstv %s11822_s12 }
 0x243   : > { %11823 = sst [smem:[#allocation189_spill]] %s7008_s26  ;;  %v11206_v10 = vstv %s7008_s26 }
 0x244   : > { %11825 = sst [smem:[#allocation191_spill]] %s7020_s14  ;;  %v11177_v4 = vstv %s7020_s14 }
 0x245   : > { %s7028_s29 = sld [smem:[#allocation11 + $0x388]]  ;;  %v11139_v12 = vstv %s11826_s2 }
 0x246   : > { %s7037_s3 = sld [smem:[#allocation8 + $0x8]] }
 0x247   : > { %11824 = sst [smem:[#allocation190_spill]] %s7014_s10  ;;  %v11176_v46 = vstv %s7014_s10 }
 0x248   : > { %s7047_s8 = sld [smem:[#allocation8 + $0x88]]  ;;  %v11095_v32 = vstv %s11827_s23 }
 0x249   : > { %s7055_s30 = sld [smem:[#allocation11 + $0x389]]  ;;  %v1539_v21 = vadd.f32 %v11095_v32, %v1535_v54  ;;  %v7148_v54 = vadd.f32 %v1381_v38, %v6972_v37  ;;  %v1433_v38 = vmul.f32 %v11085_v5, %v7154_v52  ;;  %v1451_v5 = vmul.f32 %v11094_v63, %v7154_v52 }
 0x24a   : > { %s7069_s4 = sld [smem:[#allocation11 + $0x38a]] }
 0x24b   : > { %11828 = sst [smem:[#allocation192_spill]] %s7028_s29  ;;  %v7176_v8 = vmul.f32 0.5, %v1539_v21  ;;  %v11192_v17 = vstv %s7028_s29 }
 0x24c   : > { %11831 = sst [smem:[#allocation193_spill]] %s7037_s3  ;;  %v11104_v36 = vstv %s7037_s3 }
 0x24d   : > { %s7080_s7 = sld [smem:[#allocation8 + $0x108]]  ;;  %5367 = vtanh.f32 %v7176_v8 }
 0x24e   : > { %11833 = sst [smem:[#allocation194_spill]] %s7047_s8  ;;  %v11102_v45 = vstv %s7047_s8 }
 0x24f   : > { %11836 = sst [smem:[#allocation195_spill]] %s7055_s30  ;;  %v11178_v0 = vstv %s7055_s30 }
 0x250   : > { %11837 = sst [smem:[#allocation196_spill]] %s7069_s4  ;;  %v11191_v63 = vstv %s7069_s4 }
 0x251   : > { %s7094_s11 = sld [smem:[#allocation11 + $0x38b]] }
 0x252   : > { %s7105_s28 = sld [smem:[#allocation11 + $0x38c]] }
 0x253   : > { %11838 = sst [smem:[#allocation197_spill]] %s7080_s7  ;;  %v11100_v58 = vstv %s7080_s7 }
 0x254   : > { %s7119_s0 = sld [smem:[#allocation11 + $0x38d]] }
 0x255   : > { %s11842_s9 = sld [smem:[#allocation184_spill]] }
 0x256   : > { %s11843_s17 = sld [smem:[#allocation68_spill]] }
 0x257   : > { %11839 = sst [smem:[#allocation198_spill]] %s7094_s11  ;;  %v11188_v32 = vstv %s7094_s11 }
 0x258   : > { %11840 = sst [smem:[#allocation199_spill]] %s7105_s28 }
 0x259   : > { %s7132_s12 = sld [smem:[#allocation11 + $0x38e]] }
 0x25a   : > { %11841 = sst [smem:[#allocation200_spill]] %s7119_s0 }
 0x25b   : > { %s7140_s6 = sld [smem:[#allocation11 + $0x38f]]  ;;  %v11162_v44 = vstv %s11842_s9 }
 0x25c   : > { %s11846_s20 = sld [smem:[#allocation185_spill]]  ;;  %v7163_v13 = vld [vmem:[%s11843_s17 + $0x8] sm:$0xff]  ;;  %v7169_v50 = vld [vmem:[%s11843_s17 + $0x18] sm:$0xff]  ;;  %v7202_v21 = vld [vmem:[%s11843_s17] sm:$0xff] }
 0x25d   : > { %s11847_s25 = sld [smem:[#allocation186_spill]]  ;;  %v1647_v37 = vmul.f32 %v7163_v13, %v11104_v36  ;;  %v1651_v15 = vmul.f32 %v7169_v50, %v11102_v45  ;;  %v7205_v62 = vld [vmem:[%s11843_s17 + $0x10] sm:$0xff]  ;;  %v7214_v51 = vld [vmem:[%s11843_s17 + $0x28] sm:$0xff] }
 0x25e   : > { %s11848_s22 = sld [smem:[#allocation187_spill]]  ;;  %v1657_v31 = vmul.f32 %v7214_v51, %v11100_v58  ;;  %v7243_v58 = vadd.f32 %v1433_v38, %v7072_v1  ;;  %v7260_v1 = vadd.f32 %v1451_v5, %v7108_v56 }
 0x25f   : > { %11844 = sst [smem:[#allocation201_spill]] %s7132_s12  ;;  %v1653_v55 = vadd.f32 %v1651_v15, %v1647_v37  ;;  %v1463_v37 = vmul.f32 %v11101_v6, %v7154_v52  ;;  %v1469_v15 = vmul.f32 %v11103_v43, %v7154_v52 }
 0x260   : > { %s11849_s21 = sld [smem:[#allocation188_spill]] }
 0x261   : > { %11845 = sst [smem:[#allocation202_spill]] %s7140_s6  ;;  %v1659_v60 = vadd.f32 %v1657_v31, %v1653_v55  ;;  %v7280_v31 = vadd.f32 %v1463_v37, %v7114_v34  ;;  %v1487_v34 = vmul.f32 %v11126_v14, %v7154_v52  ;;  %v1493_v37 = vmul.f32 %v11127_v2, %v7154_v52 }
 0x262   : > { %s7156_s1 = sld [smem:[#allocation9 + $0x8]]  ;;  %v11168_v35 = vstv %s11846_s20  ;;  %v1499_v2 = vmul.f32 %v11129_v20, %v7154_v52  ;;  %v7340_v57 = vadd.f32 %v1469_v15, %v7122_v53 }
 0x263   : > { %s7174_s6 = sld [smem:[#allocation11 + $0x400]]  ;;  %v11173_v28 = vstv %s11847_s25 }
 0x264   : > { %s7181_s3 = sld [smem:[#allocation11 + $0x401]]  ;;  %v11175_v39 = vstv %s11848_s22 }
 0x265   : > { %s7187_s8 = sld [smem:[#allocation11 + $0x402]] }
 0x266   : > { %v11174_v7 = vstv %s11849_s21  ;;  %s7199_s21 = sld [smem:[#allocation11 + $0x403]] }
 0x267   : > { %s11859_s23 = sld [smem:[#allocation39_spill]] }
 0x268   : > { %11850 = sst [smem:[#allocation203_spill]] %s7156_s1  ;;  %v11130_v9 = vstv %s7156_s1 }
 0x269   : > { %11852 = sst [smem:[#allocation204_spill]] %s7174_s6 }
 0x26a   : > { %11854 = sst [smem:[#allocation205_spill]] %s7181_s3 }
 0x26b   : > { %11855 = sst [smem:[#allocation206_spill]] %s7187_s8 }
 0x26c   : > { %11858 = sst [smem:[#allocation207_spill]] %s7199_s21 }
 0x26d   : > { %s11860_s19 = sld [smem:[#allocation40_spill]]  ;;  %v11867_v6 = vstv %s11859_s23 }
 0x26e   : > { %s7219_s18 = sld [smem:[#allocation11 + $0x404]]  ;;  %v686_v45 = vmul.f32 %v11867_v6, %v7202_v21  ;;  %v7265_v6 = vld [vmem:[%s11843_s17 + $0x20] sm:$0xff] }
 0x26f   : > { %s7227_s9 = sld [smem:[#allocation11 + $0x405]] }
 0x270   : > { %s11863_s24 = sld [smem:[#allocation59_spill]] }
 0x271   : > { %s7237_s7 = sld [smem:[#allocation11 + $0x406]] }
 0x272   : > { %s11865_s5 = sld [smem:[#allocation60_spill]] }
 0x273   : > { %s7245_s25 = sld [smem:[#allocation11 + $0x407]]  ;;  %v11868_v43 = vstv %s11860_s19 }
 0x274   : > { %11861 = sst [smem:[#allocation39_spill]] %s7219_s18  ;;  %v690_v36 = vmul.f32 %v7205_v62, %v11868_v43  ;;  %v7268_v43 = vadd.f32 %v1457_v41, %v7111_v40  ;;  %v1475_v41 = vmul.f32 %v11122_v29, %v7154_v52 }
 0x275   : > { %11862 = sst [smem:[#allocation40_spill]] %s7227_s9 }
 0x276   : > { %s11869_s22 = sld [smem:[#allocation80_spill]]  ;;  %v11877_v18 = vstv %s11863_s24 }
 0x277   : > { %11864 = sst [smem:[#allocation59_spill]] %s7237_s7  ;;  %v778_v11 = vmul.f32 %v11877_v18, %v7202_v21  ;;  %v1481_v18 = vmul.f32 %v11123_v30, %v7154_v52 }
 0x278   : > { %s11870_s11 = sld [smem:[#allocation81_spill]]  ;;  %v11879_v5 = vstv %s11865_s5 }
 0x279   : > { %11866 = sst [smem:[#allocation60_spill]] %s7245_s25  ;;  %v782_v55 = vmul.f32 %v7205_v62, %v11879_v5  ;;  %v692_v5 = vadd.f32 %v690_v36, %v686_v45 }
 0x27a   : > { %s7262_s23 = sld [smem:[#allocation11 + $0x408]] }
 0x27b   : > { %s11875_s19 = sld [smem:[#allocation41_spill]]  ;;  %v784_v36 = vadd.f32 %v782_v55, %v778_v11  ;;  %v7343_v11 = vadd.f32 %v1475_v41, %v7125_v25  ;;  %v7346_v55 = vadd.f32 %v1481_v18, %v7128_v26  ;;  %v7361_v26 = vadd.f32 %v1493_v37, %v7138_v27 }
 0x27c   : > { %s7271_s14 = sld [smem:[#allocation11 + $0x409]]  ;;  %v11882_v56 = vstv %s11869_s22  ;;  %v7367_v41 = vadd.f32 %v1505_v23, %v7148_v54  ;;  %v11179_v27 = vstv %s7105_s28  ;;  %v11187_v23 = vstv %s7119_s0 }
 0x27d   : > { %s11878_s10 = sld [smem:[#allocation100_spill]]  ;;  %v902_v40 = vmul.f32 %v11882_v56, %v7202_v21  ;;  %v1663_v56 = vadd.f32 %v11130_v9, %v1659_v60 }
 0x27e   : > { %s11880_s26 = sld [smem:[#allocation101_spill]]  ;;  %v11883_v38 = vstv %s11870_s11 }
 0x27f   : > { %s7285_s17 = sld [smem:[#allocation11 + $0x40a]]  ;;  %v906_v42 = vmul.f32 %v7205_v62, %v11883_v38 }
 0x280   : > { %11874 = sst [smem:[#allocation80_spill]] %s7262_s23 }
 0x281   : > { %s11884_s24 = sld [smem:[#allocation61_spill]]  ;;  %v11888_v38 = vstv %s11875_s19 }
 0x282   : > { %11876 = sst [smem:[#allocation81_spill]] %s7271_s14  ;;  %v696_v29 = vmul.f32 %v7265_v6, %v11888_v38  ;;  %v1511_v38 = vmul.f32 %v11144_v59, %v7154_v52 }
 0x283   : > { %s7302_s5 = sld [smem:[#allocation11 + $0x40b]]  ;;  %v11889_v30 = vstv %s11878_s10 }
 0x284   : > { %s11886_s16 = sld [smem:[#allocation82_spill]]  ;;  %v1026_v61 = vmul.f32 %v11889_v30, %v7202_v21  ;;  %v11890_v22 = vstv %s11880_s26  ;;  %v1517_v30 = vmul.f32 %v11139_v12, %v7154_v52  ;;  %v7353_v52 = vmul.f32 0.5, %v1663_v56 }
 0x285   : > { %11881 = sst [smem:[#allocation41_spill]] %s7285_s17  ;;  %v1030_v14 = vmul.f32 %v7205_v62, %v11890_v22  ;;  %v908_v22 = vadd.f32 %v906_v42, %v902_v40  ;;  %v11203_v56 = vstv %s7174_s6  ;;  %v11220_v12 = vstv %s7245_s25 }
 0x286   : > { %s7306_s22 = sld [smem:[#allocation11 + $0x40c]]  ;;  %v7375_v40 = vadd.f32 %v1517_v30, %v7159_v24  ;;  %5369 = vtanh.f32 %v7353_v52  ;;  %v11216_v30 = vstv %s7219_s18 }
 0x287   : > { %s7323_s11 = sld [smem:[#allocation11 + $0x40d]]  ;;  %v11892_v45 = vstv %s11884_s24  ;;  %v1032_v53 = vadd.f32 %v1030_v14, %v1026_v61  ;;  %v5368_v14 = vpop.eup %5367  ;;  %v7372_v61 = vadd.f32 %v1511_v38, %v7151_v47  ;;  %v11213_v38 = vstv %s7199_s21 }
 0x288   : > { %s11893_s19 = sld [smem:[#allocation102_spill]]  ;;  %v788_v60 = vmul.f32 %v7265_v6, %v11892_v45  ;;  %v7349_v45 = vadd.f32 %v1487_v34, %v7135_v16  ;;  %v7364_v16 = vadd.f32 %v1499_v2, %v7145_v3  ;;  %v11186_v3 = vstv %s7132_s12 }
 0x289   : > { %11885 = sst [smem:[#allocation100_spill]] %s7302_s5 }
 0x28a   : > { %s7334_s26 = sld [smem:[#allocation8 + $0x9]]  ;;  %v11895_v20 = vstv %s11886_s16 }
 0x28b   : > { %v912_v9 = vmul.f32 %v7265_v6, %v11895_v20  ;;  %s7351_s10 = sld [smem:[#allocation8 + $0x89]]  ;;  %v698_v20 = vadd.f32 %v696_v29, %v692_v5  ;;  %v790_v29 = vadd.f32 %v788_v60, %v784_v36  ;;  %v1545_v5 = vadd.f32 1.0, %v5368_v14 }
 0x28c   : > { %11887 = sst [smem:[#allocation101_spill]] %s7306_s22  ;;  %v11210_v60 = vstv %s7187_s8  ;;  %v11250_v59 = vstv %s7306_s22 }
 0x28d   : > { %11891 = sst [smem:[#allocation61_spill]] %s7323_s11  ;;  %v914_v2 = vadd.f32 %v912_v9, %v908_v22 }
 0x28e   : > { %s7355_s16 = sld [smem:[#allocation11 + $0x40e]]  ;;  %v11898_v15 = vstv %s11893_s19 }
 0x28f   : > { %s11899_s24 = sld [smem:[#allocation119_spill]]  ;;  %v1036_v25 = vmul.f32 %v7265_v6, %v11898_v15 }
 0x290   : > { %11894 = sst [smem:[#allocation82_spill]] %s7334_s26 }
 0x291   : > { %11896 = sst [smem:[#allocation102_spill]] %s7351_s10  ;;  %v1038_v37 = vadd.f32 %v1036_v25, %v1032_v53  ;;  %v11151_v53 = vstv %s7334_s26  ;;  %v11148_v15 = vstv %s7351_s10 }
 0x292   : > { %s11900_s2 = sld [smem:[#allocation120_spill]] }
 0x293   : > { %s11901_s13 = sld [smem:[#allocation202_spill]] }
 0x294   : > { %11897 = sst [smem:[#allocation208_spill]] %s7355_s16 }
 0x295   : > { %s7369_s15 = sld [smem:[#allocation11 + $0x40f]]  ;;  %v11907_v54 = vstv %s11899_s24 }
 0x296   : > { %s11903_s27 = sld [smem:[#allocation42_spill]]  ;;  %v1150_v47 = vmul.f32 %v11907_v54, %v7202_v21  ;;  %v11195_v21 = vstv %s7181_s3  ;;  %v11217_v54 = vstv %s7227_s9 }
 0x297   : > { %s7378_s19 = sld [smem:[#allocation8 + $0x109]] }
 0x298   : > { %s11905_s29 = sld [smem:[#allocation62_spill]]  ;;  %v11908_v42 = vstv %s11900_s2 }
 0x299   : > { %s7382_s30 = sld [smem:[#allocation9 + $0x9]]  ;;  %v1154_v24 = vmul.f32 %v7205_v62, %v11908_v42  ;;  %v11183_v18 = vstv %s11901_s13  ;;  %v11218_v42 = vstv %s7237_s7 }
 0x29a   : > { %s11909_s4 = sld [smem:[#allocation83_spill]] }
 0x29b   : > { %11902 = sst [smem:[#allocation119_spill]] %s7369_s15  ;;  %v1156_v25 = vadd.f32 %v1154_v24, %v1150_v47  ;;  %v11221_v47 = vstv %s7262_s23  ;;  %v11223_v24 = vstv %s7271_s14 }
 0x29c   : > { %s7392_s1 = sld [smem:[#allocation11 + $0x480]]  ;;  %v11911_v9 = vstv %s11903_s27 }
 0x29d   : > { %11904 = sst [smem:[#allocation120_spill]] %s7378_s19  ;;  %v702_v34 = vadd.f32 %v11911_v9, %v698_v20 }
 0x29e   : > { %s11912_s12 = sld [smem:[#allocation122_spill]]  ;;  %v11914_v36 = vstv %s11905_s29 }
 0x29f   : > { %11906 = sst [smem:[#allocation42_spill]] %s7382_s30  ;;  %v794_v62 = vadd.f32 %v11914_v36, %v790_v29  ;;  %v7420_v9 = vmul.f32 0.5, %v702_v34  ;;  %v1771_v34 = vmul.f32 %v7163_v13, %v11151_v53  ;;  %v11219_v48 = vstv %s7382_s30 }
 0x2a0   : > { %s7398_s2 = sld [smem:[#allocation11 + $0x481]]  ;;  %v11917_v22 = vstv %s11909_s4 }
 0x2a1   : > { %s11915_s24 = sld [smem:[#allocation103_spill]]  ;;  %v918_v20 = vadd.f32 %v11917_v22, %v914_v2  ;;  %v7425_v22 = vmul.f32 %v1545_v5, %v7176_v8  ;;  %v11169_v5 = vstv %s7378_s19  ;;  %5371 = vtanh.f32 %v7420_v9 }
 0x2a2   : > { %11910 = sst [smem:[#allocation62_spill]] %s7392_s1 }
 0x2a3   : > { %s7405_s13 = sld [smem:[#allocation11 + $0x482]]  ;;  %v1551_v53 = vmul.f32 %v11162_v44, %v7425_v22  ;;  %v1563_v44 = vmul.f32 %v11173_v28, %v7425_v22  ;;  %v5370_v28 = vpop.eup %5369  ;;  %v1599_v8 = vmul.f32 %v11192_v17, %v7425_v22 }
 0x2a4   : > { %s7411_s27 = sld [smem:[#allocation11 + $0x483]]  ;;  %v11919_v14 = vstv %s11912_s12 }
 0x2a5   : > { %v1160_v29 = vmul.f32 %v7265_v6, %v11919_v14  ;;  %s7418_s29 = sld [smem:[#allocation11 + $0x484]]  ;;  %v7431_v6 = vmul.f32 0.5, %v794_v62  ;;  %v11222_v14 = vstv %s7285_s17  ;;  %v7447_v62 = vmul.f32 0.5, %v918_v20 }
 0x2a6   : > { %11913 = sst [smem:[#allocation83_spill]] %s7398_s2  ;;  %v7495_v20 = vadd.f32 %v1551_v53, %v7240_v49  ;;  %v1605_v49 = vmul.f32 %v11178_v0, %v7425_v22 }
 0x2a7   : > { %v11921_v2 = vstv %s11915_s24  ;;  %s7429_s4 = sld [smem:[#allocation11 + $0x485]]  ;;  %5373 = vtanh.f32 %v7431_v6 }
 0x2a8   : > { %v1042_v36 = vadd.f32 %v11921_v2, %v1038_v37  ;;  %v1775_v37 = vmul.f32 %v7169_v50, %v11148_v15  ;;  %s7441_s24 = sld [smem:[#allocation11 + $0x486]]  ;;  %v1162_v2 = vadd.f32 %v1160_v29, %v1156_v25  ;;  %v1557_v25 = vmul.f32 %v11168_v35, %v7425_v22 }
 0x2a9   : > { %11916 = sst [smem:[#allocation122_spill]] %s7405_s13  ;;  %5375 = vtanh.f32 %v7447_v62  ;;  %v1569_v35 = vmul.f32 %v11175_v39, %v7425_v22 }
 0x2aa   : > { %11918 = sst [smem:[#allocation103_spill]] %s7411_s27  ;;  %v7454_v15 = vmul.f32 0.5, %v1042_v36  ;;  %v1777_v29 = vadd.f32 %v1775_v37, %v1771_v34  ;;  %v1781_v36 = vmul.f32 %v7214_v51, %v11169_v5  ;;  %v1575_v5 = vmul.f32 %v11174_v7, %v7425_v22 }
 0x2ab   : > { %11920 = sst [smem:[#allocation209_spill]] %s7418_s29  ;;  %v1593_v7 = vmul.f32 %v11177_v4, %v7425_v22  ;;  %v7509_v39 = vadd.f32 %v1557_v25, %v7243_v58  ;;  %v1611_v4 = vmul.f32 %v11191_v63, %v7425_v22  ;;  %v1617_v58 = vmul.f32 %v11188_v32, %v7425_v22 }
 0x2ac   : > { %s7445_s23 = sld [smem:[#allocation11 + $0x487]]  ;;  %5377 = vtanh.f32 %v7454_v15  ;;  %v1783_v53 = vadd.f32 %v1781_v36, %v1777_v29  ;;  %v1623_v25 = vmul.f32 %v11179_v27, %v7425_v22  ;;  %v7534_v0 = vadd.f32 %v1569_v35, %v7257_v19 }
 0x2ad   : > { %11922 = sst [smem:[#allocation210_spill]] %s7429_s4  ;;  %v7537_v29 = vadd.f32 %v1575_v5, %v7260_v1  ;;  %v1635_v35 = vmul.f32 %v11186_v3, %v7425_v22  ;;  %v1641_v19 = vmul.f32 %v11183_v18, %v7425_v22  ;;  %v7562_v1 = vadd.f32 %v1599_v8, %v7343_v11 }
 0x2ae   : > { %11924 = sst [smem:[#allocation211_spill]] %s7441_s24  ;;  %v7572_v5 = vadd.f32 %v1611_v4, %v7349_v45 }
 0x2af   : > { %s7451_s26 = sld [smem:[#allocation11 + $0x488]]  ;;  %v7597_v8 = vadd.f32 %v1641_v19, %v7375_v40  ;;  %v11297_v40 = vstv %s7429_s4 }
 0x2b0   : > { %s11928_s10 = sld [smem:[#allocation123_spill]] }
 0x2b1   : > { %s7461_s25 = sld [smem:[#allocation11 + $0x489]] }
 0x2b2   : > { %11925 = sst [smem:[#allocation212_spill]] %s7445_s23 }
 0x2b3   : > { %s7471_s7 = sld [smem:[#allocation11 + $0x48a]] }
 0x2b4   : > { %s7477_s16 = sld [smem:[#allocation8 + $0xa]] }
 0x2b5   : > { %11927 = sst [smem:[#allocation213_spill]] %s7451_s26 }
 0x2b6   : > { %v11939_v34 = vstv %s11928_s10  ;;  %s7491_s9 = sld [smem:[#allocation8 + $0x8a]] }
 0x2b7   : > { %11931 = sst [smem:[#allocation123_spill]] %s7461_s25  ;;  %v7482_v37 = vadd.f32 %v11939_v34, %v1162_v2  ;;  %v1581_v2 = vmul.f32 %v11206_v10, %v7425_v22  ;;  %v1587_v34 = vmul.f32 %v11176_v46, %v7425_v22  ;;  %v7520_v46 = vadd.f32 %v1563_v44, %v7254_v33 }
 0x2b8   : > { %s7506_s10 = sld [smem:[#allocation8 + $0x10a]]  ;;  %v1629_v33 = vmul.f32 %v11187_v23, %v7425_v22  ;;  %v1669_v44 = vadd.f32 1.0, %v5370_v28  ;;  %v7559_v28 = vadd.f32 %v1593_v7, %v7340_v57  ;;  %v7575_v22 = vadd.f32 %v1617_v58, %v7361_v26  ;;  %v5372_v26 = vpop.eup %5371 }
 0x2b9   : > { %11935 = sst [smem:[#allocation214_spill]] %s7471_s7  ;;  %v7545_v36 = vadd.f32 %v1581_v2, %v7268_v43  ;;  %v7548_v27 = vadd.f32 %v1587_v34, %v7280_v31  ;;  %v7565_v43 = vadd.f32 %v1605_v49, %v7346_v55  ;;  %v1787_v31 = vadd.f32 %v11219_v48, %v1783_v53  ;;  %v7605_v2 = vpop.eup %5373 }
 0x2ba   : > { %11937 = sst [smem:[#allocation215_spill]] %s7477_s16  ;;  %v7578_v57 = vadd.f32 %v1623_v25, %v7364_v16  ;;  %v11215_v7 = vstv %s7477_s16  ;;  %v7584_v11 = vadd.f32 %v1629_v33, %v7367_v41  ;;  %v1671_v55 = vmul.f32 %v1669_v44, %v7353_v52  ;;  %v5376_v44 = vpop.eup %5375 }
 0x2bb   : > { %s7517_s22 = sld [smem:[#allocation11 + $0x48b]]  ;;  %v1895_v4 = vmul.f32 %v7163_v13, %v11215_v7  ;;  %v7594_v16 = vadd.f32 %v1635_v35, %v7372_v61  ;;  %v7607_v34 = vmul.f32 0.5, %v1787_v31  ;;  %v11264_v49 = vstv %s7405_s13  ;;  %v5378_v3 = vpop.eup %5377 }
 0x2bc   : > { %11942 = sst [smem:[#allocation216_spill]] %s7491_s9  ;;  %v11214_v45 = vstv %s7491_s9  ;;  %v11266_v61 = vstv %s7411_s27  ;;  %v11265_v53 = vstv %s7418_s29  ;;  %v11268_v58 = vstv %s7441_s24 }
 0x2bd   : > { %s7531_s20 = sld [smem:[#allocation11 + $0x48c]]  ;;  %v1899_v52 = vmul.f32 %v7169_v50, %v11214_v45  ;;  %v11272_v25 = vstv %s7445_s23  ;;  %v11269_v33 = vstv %s7451_s26  ;;  %v1675_v35 = vmul.f32 %v11203_v56, %v1671_v55 }
 0x2be   : > { %11943 = sst [smem:[#allocation217_spill]] %s7506_s10  ;;  %v11208_v41 = vstv %s7506_s10  ;;  %v1681_v19 = vmul.f32 %v11195_v21, %v1671_v55  ;;  %v11270_v23 = vstv %s7461_s25  ;;  %v11271_v32 = vstv %s7471_s7 }
 0x2bf   : > { %s7542_s19 = sld [smem:[#allocation11 + $0x48d]]  ;;  %v1901_v31 = vadd.f32 %v1899_v52, %v1895_v4  ;;  %v1905_v18 = vmul.f32 %v7214_v51, %v11208_v41  ;;  %v1687_v21 = vmul.f32 %v11210_v60, %v1671_v55  ;;  %v1693_v4 = vmul.f32 %v11213_v38, %v1671_v55 }
 0x2c0   : > { %s7556_s0 = sld [smem:[#allocation11 + $0x48e]]  ;;  %5379 = vtanh.f32 %v7607_v34  ;;  %v1699_v56 = vmul.f32 %v11216_v30, %v1671_v55  ;;  %v1705_v10 = vmul.f32 %v11217_v54, %v1671_v55  ;;  %v1711_v41 = vmul.f32 %v11218_v42, %v1671_v55 }
 0x2c1   : > { %11946 = sst [smem:[#allocation218_spill]] %s7517_s22  ;;  %v1717_v60 = vmul.f32 %v11220_v12, %v1671_v55  ;;  %v7654_v38 = vadd.f32 %v1675_v35, %v7495_v20  ;;  %v7657_v45 = vadd.f32 %v1681_v19, %v7509_v39  ;;  %v1723_v7 = vmul.f32 %v11221_v47, %v1671_v55 }
 0x2c2   : > { %s7569_s14 = sld [smem:[#allocation11 + $0x48f]]  ;;  %v1907_v30 = vadd.f32 %v1905_v18, %v1901_v31  ;;  %v1729_v54 = vmul.f32 %v11223_v24, %v1671_v55  ;;  %v1735_v42 = vmul.f32 %v11222_v14, %v1671_v55  ;;  %v1747_v20 = vmul.f32 %v11250_v59, %v1671_v55 }
 0x2c3   : > { %11947 = sst [smem:[#allocation219_spill]] %s7531_s20  ;;  %v7683_v31 = vadd.f32 %v1687_v21, %v7520_v46  ;;  %v7686_v14 = vadd.f32 %v1693_v4, %v7534_v0  ;;  %v7692_v24 = vadd.f32 %v1705_v10, %v7545_v36  ;;  %v708_v0 = vadd.f32 1.0, %v5372_v26 }
 0x2c4   : > { %s7581_s11 = sld [smem:[#allocation9 + $0xa]]  ;;  %v7710_v10 = vadd.f32 %v1729_v54, %v7565_v43  ;;  %v7713_v21 = vadd.f32 %v1735_v42, %v7572_v5  ;;  %v800_v36 = vadd.f32 1.0, %v7605_v2  ;;  %v1048_v5 = vadd.f32 1.0, %v5378_v3 }
 0x2c5   : > { %11948 = sst [smem:[#allocation220_spill]] %s7542_s19  ;;  %v7745_v43 = vmul.f32 %v708_v0, %v7420_v9 }
 0x2c6   : > { %11949 = sst [smem:[#allocation221_spill]] %s7556_s0 }
 0x2c7   : > { %s7591_s28 = sld [smem:[#allocation11 + $0x500]] }
 0x2c8   : > { %11950 = sst [smem:[#allocation222_spill]] %s7569_s14 }
 0x2c9   : > { %s7603_s17 = sld [smem:[#allocation11 + $0x501]] }
 0x2ca   : > { %11951 = sst [smem:[#allocation223_spill]] %s7581_s11  ;;  %v11251_v52 = vstv %s7581_s11 }
 0x2cb   : > { %s7612_s15 = sld [smem:[#allocation11 + $0x502]]  ;;  %v1911_v46 = vadd.f32 %v11251_v52, %v1907_v30 }
 0x2cc   : > { %s7618_s12 = sld [smem:[#allocation11 + $0x503]] }
 0x2cd   : > { %11952 = sst [smem:[#allocation224_spill]] %s7591_s28  ;;  %v5380_v9 = vpop.eup %5379 }
 0x2ce   : > { %s7627_s30 = sld [smem:[#allocation11 + $0x504]] }
 0x2cf   : > { %11953 = sst [smem:[#allocation225_spill]] %s7603_s17 }
 0x2d0   : > { %s7633_s6 = sld [smem:[#allocation11 + $0x505]] }
 0x2d1   : > { %11954 = sst [smem:[#allocation226_spill]] %s7612_s15 }
 0x2d2   : > { %11955 = sst [smem:[#allocation227_spill]] %s7618_s12 }
 0x2d3   : > { %s11964_s10 = sld [smem:[#allocation100_spill]] }
 0x2d4   : > { %11959 = sst [smem:[#allocation228_spill]] %s7627_s30 }
 0x2d5   : > { %s7641_s24 = sld [smem:[#allocation11 + $0x506]] }
 0x2d6   : > { %11961 = sst [smem:[#allocation229_spill]] %s7633_s6 }
 0x2d7   : > { %s11967_s20 = sld [smem:[#allocation61_spill]] }
 0x2d8   : > { %s11968_s8 = sld [smem:[#allocation208_spill]] }
 0x2d9   : > { %s11969_s21 = sld [smem:[#allocation119_spill]]  ;;  %v11972_v48 = vstv %s11964_s10 }
 0x2da   : > { %s7651_s22 = sld [smem:[#allocation11 + $0x507]]  ;;  %v1741_v12 = vmul.f32 %v11972_v48, %v1671_v55  ;;  %v7689_v48 = vadd.f32 %v1699_v56, %v7537_v29  ;;  %v7707_v56 = vadd.f32 %v1723_v7, %v7562_v1  ;;  %v7739_v1 = vmul.f32 0.5, %v1911_v46 }
 0x2db   : > { %11965 = sst [smem:[#allocation230_spill]] %s7641_s24 }
 0x2dc   : > { %s7661_s5 = sld [smem:[#allocation11 + $0x508]]  ;;  %5381 = vtanh.f32 %v7739_v1 }
 0x2dd   : > { %s7670_s16 = sld [smem:[#allocation11 + $0x509]]  ;;  %v11974_v35 = vstv %s11967_s20 }
 0x2de   : > { %v1753_v39 = vmul.f32 %v11974_v35, %v1671_v55  ;;  %v11975_v19 = vstv %s11968_s8  ;;  %s7680_s26 = sld [smem:[#allocation11 + $0x50a]]  ;;  %v7697_v35 = vadd.f32 %v1711_v41, %v7548_v27  ;;  %v7716_v27 = vadd.f32 %v1741_v12, %v7575_v22 }
 0x2df   : > { %v1759_v17 = vmul.f32 %v11975_v19, %v1671_v55  ;;  %v11976_v47 = vstv %s11969_s21  ;;  %s7694_s20 = sld [smem:[#allocation11 + $0x50b]]  ;;  %v7763_v41 = vmul.f32 %v800_v36, %v7431_v6  ;;  %v7779_v6 = vmul.f32 %v1048_v5, %v7454_v15 }
 0x2e0   : > { %11970 = sst [smem:[#allocation231_spill]] %s7651_s22  ;;  %v1765_v18 = vmul.f32 %v11976_v47, %v1671_v55  ;;  %v7700_v47 = vadd.f32 %v1717_v60, %v7559_v28  ;;  %v7721_v60 = vadd.f32 %v1747_v20, %v7578_v57  ;;  %v7724_v30 = vadd.f32 %v1753_v39, %v7584_v11 }
 0x2e1   : > { %s7704_s21 = sld [smem:[#allocation11 + $0x50c]]  ;;  %v7727_v54 = vadd.f32 %v1759_v17, %v7594_v16  ;;  %v924_v28 = vadd.f32 1.0, %v5376_v44  ;;  %v7769_v44 = vmul.f32 0.5, %v7482_v37 }
 0x2e2   : > { %11971 = sst [smem:[#allocation232_spill]] %s7661_s5  ;;  %v7730_v42 = vadd.f32 %v1765_v18, %v7597_v8 }
 0x2e3   : > { %11973 = sst [smem:[#allocation233_spill]] %s7670_s16  ;;  %v7766_v2 = vmul.f32 %v924_v28, %v7447_v62  ;;  %11992 = vst [vmem:[#allocation241_spill] sm:$0xff] %v7769_v44  ;;  %v1793_v28 = vadd.f32 1.0, %v5380_v9 }
 0x2e4   : > { %11977 = sst [smem:[#allocation234_spill]] %s7680_s26 }
 0x2e5   : > { %11978 = sst [smem:[#allocation235_spill]] %s7694_s20 }
 0x2e6   : > { %s7718_s8 = sld [smem:[#allocation8 + $0xb]] }
 0x2e7   : > { %11979 = sst [smem:[#allocation236_spill]] %s7704_s21 }
 0x2e8   : > { %s7732_s7 = sld [smem:[#allocation8 + $0x8b]] }
 0x2e9   : > { %s7736_s10 = sld [smem:[#allocation11 + $0x50d]] }
 0x2ea   : > { %s7742_s23 = sld [smem:[#allocation11 + $0x50e]] }
 0x2eb   : > { %s11984_s3 = sld [smem:[#allocation43_spill]] }
 0x2ec   : > { %11980 = sst [smem:[#allocation237_spill]] %s7718_s8  ;;  %v11257_v15 = vstv %s7718_s8 }
 0x2ed   : > { %s7751_s9 = sld [smem:[#allocation11 + $0x50f]]  ;;  %v2019_v26 = vmul.f32 %v7163_v13, %v11257_v15 }
 0x2ee   : > { %11981 = sst [smem:[#allocation238_spill]] %s7732_s7  ;;  %v11258_v5 = vstv %s7732_s7 }
 0x2ef   : > { %11982 = sst [smem:[#allocation239_spill]] %s7736_s10 }
 0x2f0   : > { %11983 = sst [smem:[#allocation240_spill]] %s7742_s23 }
 0x2f1   : > { %s11986_s18 = sld [smem:[#allocation44_spill]]  ;;  %v11994_v20 = vstv %s11984_s3 }
 0x2f2   : > { %s11987_s11 = sld [smem:[#allocation45_spill]]  ;;  %v714_v39 = vmul.f32 %v11994_v20, %v7745_v43 }
 0x2f3   : > { %11985 = sst [smem:[#allocation43_spill]] %s7751_s9 }
 0x2f4   : > { %s7757_s28 = sld [smem:[#allocation8 + $0x10b]] }
 0x2f5   : > { %s11989_s14 = sld [smem:[#allocation46_spill]] }
 0x2f6   : > { %s7760_s15 = sld [smem:[#allocation9 + $0xb]] }
 0x2f7   : > { %s11991_s22 = sld [smem:[#allocation47_spill]]  ;;  %v11999_v37 = vstv %s11986_s18 }
 0x2f8   : > { %s7773_s16 = sld [smem:[#allocation11 + $0x580]]  ;;  %v718_v19 = vmul.f32 %v11999_v37, %v7745_v43  ;;  %v12001_v18 = vstv %s11987_s11 }
 0x2f9   : > { %s11995_s5 = sld [smem:[#allocation48_spill]]  ;;  %v722_v46 = vmul.f32 %v12001_v18, %v7745_v43 }
 0x2fa   : > { %11988 = sst [smem:[#allocation44_spill]] %s7757_s28 }
 0x2fb   : > { %s11996_s24 = sld [smem:[#allocation49_spill]]  ;;  %v12003_v0 = vstv %s11989_s14 }
 0x2fc   : > { %11990 = sst [smem:[#allocation45_spill]] %s7760_s15  ;;  %v726_v36 = vmul.f32 %v12003_v0, %v7745_v43 }
 0x2fd   : > { %s11997_s6 = sld [smem:[#allocation50_spill]]  ;;  %v12006_v20 = vstv %s11991_s22 }
 0x2fe   : > { %11993 = sst [smem:[#allocation46_spill]] %s7773_s16  ;;  %v730_v37 = vmul.f32 %v12006_v20, %v7745_v43 }
 0x2ff   : > { %s7782_s30 = sld [smem:[#allocation11 + $0x581]]  ;;  %v12009_v18 = vstv %s11995_s5 }
 0x300   : > { %s12000_s12 = sld [smem:[#allocation51_spill]]  ;;  %v7807_v0 = vmul.f32 %v12009_v18, %v7745_v43 }
 0x301   : > { %s12002_s26 = sld [smem:[#allocation63_spill]]  ;;  %v12011_v9 = vstv %s11996_s24 }
 0x302   : > { %s12004_s3 = sld [smem:[#allocation64_spill]]  ;;  %v7812_v62 = vmul.f32 %v12011_v9, %v7745_v43 }
 0x303   : > { %s7795_s20 = sld [smem:[#allocation11 + $0x582]]  ;;  %v12014_v20 = vstv %s11997_s6 }
 0x304   : > { %s12007_s18 = sld [smem:[#allocation52_spill]]  ;;  %v7819_v59 = vmul.f32 %v12014_v20, %v7745_v43  ;;  %v2023_v20 = vmul.f32 %v7169_v50, %v11258_v5 }
 0x305   : > { %11998 = sst [smem:[#allocation47_spill]] %s7782_s30  ;;  %v11346_v63 = vstv %s7782_s30 }
 0x306   : > { %s7802_s11 = sld [smem:[#allocation11 + $0x583]]  ;;  %v12015_v52 = vstv %s12000_s12  ;;  %v2025_v12 = vadd.f32 %v2023_v20, %v2019_v26 }
 0x307   : > { %s12010_s14 = sld [smem:[#allocation53_spill]]  ;;  %v7824_v4 = vmul.f32 %v12015_v52, %v7745_v43  ;;  %v12017_v18 = vstv %s12002_s26 }
 0x308   : > { %s12012_s17 = sld [smem:[#allocation65_spill]]  ;;  %v806_v3 = vmul.f32 %v12017_v18, %v7763_v41  ;;  %v12019_v8 = vstv %s12004_s3  ;;  %v7847_v18 = vmul.f32 %v1793_v28, %v7607_v34 }
 0x309   : > { %12005 = sst [smem:[#allocation48_spill]] %s7795_s20  ;;  %v812_v9 = vmul.f32 %v12019_v8, %v7763_v41  ;;  %v11259_v8 = vstv %s7757_s28 }
 0x30a   : > { %s7814_s20 = sld [smem:[#allocation11 + $0x584]]  ;;  %v12023_v52 = vstv %s12007_s18  ;;  %v7883_v17 = vadd.f32 %v806_v3, %v714_v39  ;;  %v12040_v39 = vstv %s7392_s1  ;;  %v1817_v26 = vmul.f32 %v11266_v61, %v7847_v18 }
 0x30b   : > { %s12016_s22 = sld [smem:[#allocation54_spill]]  ;;  %v7844_v55 = vmul.f32 %v12023_v52, %v7745_v43 }
 0x30c   : > { %12008 = sst [smem:[#allocation49_spill]] %s7802_s11 }
 0x30d   : > { %s12018_s5 = sld [smem:[#allocation55_spill]]  ;;  %v12026_v15 = vstv %s12010_s14 }
 0x30e   : > { %s12020_s24 = sld [smem:[#allocation66_spill]]  ;;  %v7855_v16 = vmul.f32 %v12026_v15, %v7745_v43  ;;  %v12027_v5 = vstv %s12012_s17 }
 0x30f   : > { %s12021_s10 = sld [smem:[#allocation56_spill]]  ;;  %v818_v11 = vmul.f32 %v12027_v5, %v7763_v41 }
 0x310   : > { %12013 = sst [smem:[#allocation50_spill]] %s7814_s20 }
 0x311   : > { %s7839_s6 = sld [smem:[#allocation11 + $0x585]]  ;;  %v12030_v34 = vstv %s12016_s22  ;;  %v7910_v20 = vadd.f32 %v818_v11, %v722_v46  ;;  %v1823_v11 = vmul.f32 %v11265_v53, %v7847_v18  ;;  %v1841_v53 = vmul.f32 %v11272_v25, %v7847_v18 }
 0x312   : > { %s12024_s12 = sld [smem:[#allocation67_spill]]  ;;  %v7866_v28 = vmul.f32 %v12030_v34, %v7745_v43  ;;  %v7885_v34 = vadd.f32 %v812_v9, %v718_v19  ;;  %v1799_v19 = vmul.f32 %v12040_v39, %v7847_v18  ;;  %v12041_v9 = vstv %s7398_s2 }
 0x313   : > { %s7850_s26 = sld [smem:[#allocation11 + $0x586]]  ;;  %v12031_v52 = vstv %s12018_s5  ;;  %v12061_v25 = vstv %s7556_s0 }
 0x314   : > { %s12028_s3 = sld [smem:[#allocation57_spill]]  ;;  %v7871_v57 = vmul.f32 %v12031_v52, %v7745_v43  ;;  %v12032_v15 = vstv %s12020_s24 }
 0x315   : > { %s7861_s18 = sld [smem:[#allocation11 + $0x587]]  ;;  %v824_v22 = vmul.f32 %v12032_v15, %v7763_v41  ;;  %v12034_v5 = vstv %s12021_s10  ;;  %v2029_v15 = vmul.f32 %v7214_v51, %v11259_v8  ;;  %v1811_v8 = vmul.f32 %v11264_v49, %v7847_v18 }
 0x316   : > { %s7876_s17 = sld [smem:[#allocation11 + $0x588]]  ;;  %v7881_v7 = vmul.f32 %v12034_v5, %v7745_v43 }
 0x317   : > { %12022 = sst [smem:[#allocation51_spill]] %s7839_s6  ;;  %v2031_v61 = vadd.f32 %v2029_v15, %v2025_v12  ;;  %v7966_v12 = vadd.f32 %v1811_v8, %v7683_v31  ;;  %v12059_v31 = vstv %s7542_s19 }
 0x318   : > { %s12035_s14 = sld [smem:[#allocation58_spill]]  ;;  %v12036_v29 = vstv %s12024_s12  ;;  %v1877_v8 = vmul.f32 %v12059_v31, %v7847_v18 }
 0x319   : > { %12025 = sst [smem:[#allocation63_spill]] %s7850_s26  ;;  %v830_v52 = vmul.f32 %v12036_v29, %v7763_v41  ;;  %v1805_v29 = vmul.f32 %v12041_v9, %v7847_v18  ;;  %v7923_v9 = vadd.f32 %v824_v22, %v726_v36  ;;  %v1829_v22 = vmul.f32 %v11297_v40, %v7847_v18 }
 0x31a   : > { %s7894_s22 = sld [smem:[#allocation11 + $0x589]]  ;;  %v12038_v5 = vstv %s12028_s3  ;;  %v1835_v36 = vmul.f32 %v11268_v58, %v7847_v18  ;;  %v1853_v58 = vmul.f32 %v11270_v23, %v7847_v18  ;;  %v7983_v23 = vadd.f32 %v1823_v11, %v7689_v48 }
 0x31b   : > { %12029 = sst [smem:[#allocation64_spill]] %s7861_s18  ;;  %v7899_v3 = vmul.f32 %v12038_v5, %v7745_v43  ;;  %v7933_v46 = vadd.f32 %v830_v52, %v730_v37  ;;  %v7952_v37 = vadd.f32 %v1799_v19, %v7654_v38  ;;  %v1847_v52 = vmul.f32 %v11269_v33, %v7847_v18 }
 0x31c   : > { %12033 = sst [smem:[#allocation52_spill]] %s7876_s17  ;;  %v1859_v38 = vmul.f32 %v11271_v32, %v7847_v18  ;;  %v7980_v33 = vadd.f32 %v1817_v26, %v7686_v14  ;;  %v1883_v14 = vmul.f32 %v12061_v25, %v7847_v18  ;;  %v12062_v26 = vstv %s7760_s15 }
 0x31d   : > { %s12039_s10 = sld [smem:[#allocation69_spill]]  ;;  %v2035_v48 = vadd.f32 %v12062_v26, %v2031_v61  ;;  %v8004_v11 = vadd.f32 %v1841_v53, %v7700_v47  ;;  %v8030_v47 = vadd.f32 %v1877_v8, %v7724_v30 }
 0x31e   : > { %s7908_s12 = sld [smem:[#allocation11 + $0x58a]]  ;;  %v12046_v5 = vstv %s12035_s14  ;;  %v8018_v61 = vadd.f32 %v1859_v38, %v7713_v21 }
 0x31f   : > { %s7916_s3 = sld [smem:[#allocation8 + $0xc]]  ;;  %v7921_v39 = vmul.f32 %v12046_v5, %v7745_v43  ;;  %v5382_v5 = vpop.eup %5381 }
 0x320   : > { %12037 = sst [smem:[#allocation53_spill]] %s7894_s22  ;;  %v1917_v32 = vadd.f32 1.0, %v5382_v5  ;;  %v8007_v5 = vadd.f32 %v1847_v52, %v7707_v56 }
 0x321   : > { %s7931_s13 = sld [smem:[#allocation8 + $0x8c]] }
 0x322   : > { %s12050_s28 = sld [smem:[#allocation218_spill]]  ;;  %v1919_v56 = vmul.f32 %v1917_v32, %v7739_v1  ;;  %v12105_v1 = vstv %s7742_s23 }
 0x323   : > { %v12051_v49 = vstv %s12039_s10  ;;  %s12052_s14 = sld [smem:[#allocation219_spill]] }
 0x324   : > { %12044 = sst [smem:[#allocation65_spill]] %s7908_s12  ;;  %v7938_v43 = vmul.f32 %v12051_v49, %v7763_v41  ;;  %v7955_v49 = vadd.f32 %v1805_v29, %v7657_v45 }
 0x325   : > { %12045 = sst [smem:[#allocation54_spill]] %s7916_s3 }
 0x326   : > { %s7949_s29 = sld [smem:[#allocation8 + $0x10c]] }
 0x327   : > { %12049 = sst [smem:[#allocation55_spill]] %s7931_s13  ;;  %v11300_v21 = vstv %s7931_s13 }
 0x328   : > { %s7963_s10 = sld [smem:[#allocation11 + $0x58b]]  ;;  %v12055_v15 = vstv %s12050_s28  ;;  %v2147_v30 = vmul.f32 %v7169_v50, %v11300_v21 }
 0x329   : > { %v1865_v45 = vmul.f32 %v12055_v15, %v7847_v18  ;;  %v12056_v19 = vstv %s12052_s14  ;;  %s12057_s1 = sld [smem:[#allocation222_spill]]  ;;  %v7991_v15 = vadd.f32 %v1829_v22, %v7692_v24  ;;  %v8010_v24 = vadd.f32 %v1853_v58, %v7710_v10 }
 0x32a   : > { %v1871_v29 = vmul.f32 %v12056_v19, %v7847_v18  ;;  %s7977_s24 = sld [smem:[#allocation11 + $0x58c]]  ;;  %v7994_v19 = vadd.f32 %v1835_v36, %v7697_v35  ;;  %v11301_v58 = vstv %s7916_s3 }
 0x32b   : > { %s7988_s2 = sld [smem:[#allocation11 + $0x58d]]  ;;  %v8021_v53 = vadd.f32 %v1865_v45, %v7716_v27  ;;  %v2143_v10 = vmul.f32 %v7163_v13, %v11301_v58  ;;  %v8040_v27 = vadd.f32 %v1883_v14, %v7727_v54 }
 0x32c   : > { %12053 = sst [smem:[#allocation66_spill]] %s7949_s29  ;;  %v8024_v25 = vadd.f32 %v1871_v29, %v7721_v60  ;;  %v8042_v60 = vmul.f32 0.5, %v2035_v48  ;;  %v11299_v32 = vstv %s7949_s29 }
 0x32d   : > { %s8001_s14 = sld [smem:[#allocation11 + $0x58e]]  ;;  %v2149_v31 = vadd.f32 %v2147_v30, %v2143_v10  ;;  %v2153_v8 = vmul.f32 %v7214_v51, %v11299_v32 }
 0x32e   : > { %12054 = sst [smem:[#allocation56_spill]] %s7963_s10  ;;  %5383 = vtanh.f32 %v8042_v60 }
 0x32f   : > { %v12064_v35 = vstv %s12057_s1  ;;  %s8015_s0 = sld [smem:[#allocation11 + $0x58f]]  ;;  %v2155_v52 = vadd.f32 %v2153_v8, %v2149_v31  ;;  %v12106_v31 = vstv %s7751_s9 }
 0x330   : > { %12058 = sst [smem:[#allocation67_spill]] %s7977_s24  ;;  %v1889_v22 = vmul.f32 %v12064_v35, %v7847_v18  ;;  %v2013_v8 = vmul.f32 %v12106_v31, %v1919_v56 }
 0x331   : > { %12060 = sst [smem:[#allocation57_spill]] %s7988_s2 }
 0x332   : > { %s12066_s19 = sld [smem:[#allocation48_spill]]  ;;  %v1891_v13 = vadd.f32 %v1889_v22, %v7730_v42 }
 0x333   : > { %12063 = sst [smem:[#allocation58_spill]] %s8001_s14 }
 0x334   : > { %s8027_s28 = sld [smem:[#allocation9 + $0xc]] }
 0x335   : > { %12065 = sst [smem:[#allocation69_spill]] %s8015_s0 }
 0x336   : > { %s8037_s1 = sld [smem:[#allocation11 + $0x600]] }
 0x337   : > { %s12069_s25 = sld [smem:[#allocation224_spill]] }
 0x338   : > { %s8048_s5 = sld [smem:[#allocation11 + $0x601]] }
 0x339   : > { %s8054_s4 = sld [smem:[#allocation11 + $0x602]] }
 0x33a   : > { %12067 = sst [smem:[#allocation242_spill]] %s8027_s28 }
 0x33b   : > { %s12072_s27 = sld [smem:[#allocation225_spill]] }
 0x33c   : > { %12068 = sst [smem:[#allocation243_spill]] %s8037_s1 }
 0x33d   : > { %s12073_s15 = sld [smem:[#allocation226_spill]]  ;;  %v12076_v45 = vstv %s12069_s25 }
 0x33e   : > { %12070 = sst [smem:[#allocation244_spill]] %s8048_s5  ;;  %v1923_v42 = vmul.f32 %v12076_v45, %v1919_v56 }
 0x33f   : > { %12071 = sst [smem:[#allocation245_spill]] %s8054_s4 }
 0x340   : > { %s12074_s13 = sld [smem:[#allocation227_spill]] }
 0x341   : > { %s8060_s3 = sld [smem:[#allocation11 + $0x603]]  ;;  %v12085_v35 = vstv %s12072_s27 }
 0x342   : > { %s12077_s7 = sld [smem:[#allocation228_spill]]  ;;  %v1929_v22 = vmul.f32 %v12085_v35, %v1919_v56 }
 0x343   : > { %s12078_s8 = sld [smem:[#allocation229_spill]]  ;;  %v12087_v45 = vstv %s12073_s15 }
 0x344   : > { %s12079_s11 = sld [smem:[#allocation230_spill]]  ;;  %v1935_v10 = vmul.f32 %v12087_v45, %v1919_v56  ;;  %v8096_v45 = vadd.f32 %v1923_v42, %v7952_v37  ;;  %v8114_v37 = vadd.f32 %v1929_v22, %v7955_v49 }
 0x345   : > { %s12080_s20 = sld [smem:[#allocation231_spill]] }
 0x346   : > { %s8068_s6 = sld [smem:[#allocation11 + $0x604]]  ;;  %v12089_v30 = vstv %s12074_s13 }
 0x347   : > { %12075 = sst [smem:[#allocation246_spill]] %s8060_s3  ;;  %v1941_v51 = vmul.f32 %v12089_v30, %v1919_v56 }
 0x348   : > { %s12082_s18 = sld [smem:[#allocation232_spill]]  ;;  %v12091_v32 = vstv %s12077_s7 }
 0x349   : > { %s12083_s17 = sld [smem:[#allocation233_spill]]  ;;  %v1947_v21 = vmul.f32 %v12091_v32, %v1919_v56  ;;  %v12092_v58 = vstv %s12078_s8 }
 0x34a   : > { %s8074_s25 = sld [smem:[#allocation11 + $0x605]]  ;;  %v1953_v48 = vmul.f32 %v12092_v58, %v1919_v56  ;;  %v12094_v26 = vstv %s12079_s11 }
 0x34b   : > { %s12086_s26 = sld [smem:[#allocation234_spill]]  ;;  %v1959_v14 = vmul.f32 %v12094_v26, %v1919_v56  ;;  %v12095_v29 = vstv %s12080_s20  ;;  %v12102_v26 = vstv %s7704_s21 }
 0x34c   : > { %12081 = sst [smem:[#allocation247_spill]] %s8068_s6  ;;  %v1965_v35 = vmul.f32 %v12095_v29, %v1919_v56  ;;  %v1995_v18 = vmul.f32 %v12102_v26, %v1919_v56  ;;  %v11320_v29 = vstv %s8027_s28  ;;  %v8131_v26 = vadd.f32 %v1947_v21, %v7983_v23 }
 0x34d   : > { %s12088_s22 = sld [smem:[#allocation235_spill]]  ;;  %v8134_v49 = vadd.f32 %v1953_v48, %v7991_v15  ;;  %v2159_v23 = vadd.f32 %v11320_v29, %v2155_v52  ;;  %v11360_v21 = vstv %s8001_s14 }
 0x34e   : > { %s8083_s29 = sld [smem:[#allocation11 + $0x606]]  ;;  %v12097_v30 = vstv %s12082_s18 }
 0x34f   : > { %s12093_s10 = sld [smem:[#allocation239_spill]]  ;;  %v1971_v40 = vmul.f32 %v12097_v30, %v1919_v56  ;;  %v12098_v38 = vstv %s12083_s17 }
 0x350   : > { %12084 = sst [smem:[#allocation248_spill]] %s8074_s25  ;;  %v1977_v50 = vmul.f32 %v12098_v38, %v1919_v56  ;;  %v2007_v38 = vmul.f32 %v12105_v1, %v1919_v56 }
 0x351   : > { %s8093_s15 = sld [smem:[#allocation11 + $0x607]]  ;;  %v12100_v32 = vstv %s12086_s26 }
 0x352   : > { %s8102_s7 = sld [smem:[#allocation11 + $0x608]]  ;;  %v1983_v58 = vmul.f32 %v12100_v32, %v1919_v56  ;;  %v8125_v32 = vadd.f32 %v1935_v10, %v7966_v12  ;;  %v8142_v12 = vadd.f32 %v1965_v35, %v8004_v11  ;;  %v8152_v15 = vadd.f32 %v1977_v50, %v8010_v24 }
 0x353   : > { %v12101_v54 = vstv %s12088_s22  ;;  %s8111_s20 = sld [smem:[#allocation11 + $0x609]]  ;;  %v8169_v24 = vadd.f32 %v2007_v38, %v8040_v27  ;;  %v8209_v38 = vadd.f32 %v7938_v43, %v7807_v0 }
 0x354   : > { %12090 = sst [smem:[#allocation249_spill]] %s8083_s29  ;;  %v1989_v36 = vmul.f32 %v12101_v54, %v1919_v56  ;;  %v8128_v54 = vadd.f32 %v1941_v51, %v7980_v33  ;;  %v8145_v33 = vadd.f32 %v1971_v40, %v8007_v5  ;;  %v8161_v40 = vadd.f32 %v1995_v18, %v8024_v25 }
 0x355   : > { %v12104_v42 = vstv %s12093_s10  ;;  %s8122_s17 = sld [smem:[#allocation11 + $0x60a]] }
 0x356   : > { %v2001_v30 = vmul.f32 %v12104_v42, %v1919_v56  ;;  %s8136_s10 = sld [smem:[#allocation11 + $0x60b]]  ;;  %v8139_v56 = vadd.f32 %v1959_v14, %v7994_v19  ;;  %v8155_v19 = vadd.f32 %v1983_v58, %v8018_v61  ;;  %v8158_v11 = vadd.f32 %v1989_v36, %v8021_v53  ;;  %v5384_v58 = vpop.eup %5383 }
 0x357   : > { %12096 = sst [smem:[#allocation250_spill]] %s8093_s15  ;;  %v8171_v61 = vadd.f32 %v2013_v8, %v1891_v13  ;;  %v8186_v36 = vmul.f32 0.5, %v2159_v23  ;;  %v12191_v53 = vstv %s7977_s24 }
 0x358   : > { %12099 = sst [smem:[#allocation251_spill]] %s8102_s7  ;;  %v8166_v5 = vadd.f32 %v2001_v30, %v8030_v47 }
 0x359   : > { %12103 = sst [smem:[#allocation252_spill]] %s8111_s20  ;;  %5385 = vtanh.f32 %v8186_v36 }
 0x35a   : > { %s12109_s9 = sld [smem:[#allocation70_spill]] }
 0x35b   : > { %12107 = sst [smem:[#allocation253_spill]] %s8122_s17 }
 0x35c   : > { %12108 = sst [smem:[#allocation254_spill]] %s8136_s10 }
 0x35d   : > { %s12110_s23 = sld [smem:[#allocation71_spill]] }
 0x35e   : > { %s8149_s21 = sld [smem:[#allocation11 + $0x60c]] }
 0x35f   : > { %s12112_s22 = sld [smem:[#allocation72_spill]] }
 0x360   : > { %s8163_s26 = sld [smem:[#allocation11 + $0x60d]]  ;;  %v12117_v47 = vstv %s12109_s9 }
 0x361   : > { %s12114_s18 = sld [smem:[#allocation73_spill]]  ;;  %v842_v1 = vmul.f32 %v12117_v47, %v7763_v41 }
 0x362   : > { %s8174_s11 = sld [smem:[#allocation8 + $0xd]] }
 0x363   : > { %s8178_s8 = sld [smem:[#allocation8 + $0x8d]]  ;;  %v12118_v18 = vstv %s12110_s23 }
 0x364   : > { %12111 = sst [smem:[#allocation70_spill]] %s8149_s21  ;;  %v848_v27 = vmul.f32 %v12118_v18, %v7763_v41  ;;  %v8219_v18 = vadd.f32 %v842_v1, %v7812_v62  ;;  %v2041_v1 = vadd.f32 1.0, %v5384_v58 }
 0x365   : > { %s12119_s13 = sld [smem:[#allocation74_spill]]  ;;  %v12121_v50 = vstv %s12112_s22 }
 0x366   : > { %12113 = sst [smem:[#allocation71_spill]] %s8163_s26  ;;  %v854_v14 = vmul.f32 %v12121_v50, %v7763_v41  ;;  %v8222_v50 = vadd.f32 %v848_v27, %v7819_v59  ;;  %v8278_v42 = vmul.f32 %v2041_v1, %v8042_v60 }
 0x367   : > { %s8190_s27 = sld [smem:[#allocation11 + $0x60e]]  ;;  %v12123_v51 = vstv %s12114_s18 }
 0x368   : > { %12115 = sst [smem:[#allocation72_spill]] %s8174_s11  ;;  %v860_v35 = vmul.f32 %v12123_v51, %v7763_v41  ;;  %v8229_v43 = vadd.f32 %v854_v14, %v7824_v4  ;;  %v11330_v47 = vstv %s8174_s11 }
 0x369   : > { %12116 = sst [smem:[#allocation73_spill]] %s8178_s8 }
 0x36a   : > { %s8198_s9 = sld [smem:[#allocation11 + $0x60f]]  ;;  %v8237_v59 = vadd.f32 %v860_v35, %v7844_v55 }
 0x36b   : > { %s12124_s23 = sld [smem:[#allocation75_spill]]  ;;  %v12127_v31 = vstv %s12119_s13 }
 0x36c   : > { %s8205_s28 = sld [smem:[#allocation8 + $0x10d]]  ;;  %v866_v8 = vmul.f32 %v12127_v31, %v7763_v41 }
 0x36d   : > { %12120 = sst [smem:[#allocation74_spill]] %s8190_s27 }
 0x36e   : > { %s12126_s4 = sld [smem:[#allocation76_spill]]  ;;  %v8250_v58 = vadd.f32 %v866_v8, %v7855_v16 }
 0x36f   : > { %s12128_s22 = sld [smem:[#allocation77_spill]] }
 0x370   : > { %12122 = sst [smem:[#allocation255_spill]] %s8198_s9 }
 0x371   : > { %s8216_s18 = sld [smem:[#allocation9 + $0xd]]  ;;  %v12132_v51 = vstv %s12124_s23 }
 0x372   : > { %12125 = sst [smem:[#allocation75_spill]] %s8205_s28  ;;  %v872_v62 = vmul.f32 %v12132_v51, %v7763_v41 }
 0x373   : > { %s12130_s15 = sld [smem:[#allocation78_spill]] }
 0x374   : > { %s8226_s13 = sld [smem:[#allocation11 + $0x680]]  ;;  %v12136_v27 = vstv %s12126_s4  ;;  %v8266_v16 = vadd.f32 %v872_v62, %v7866_v28 }
 0x375   : > { %s12133_s20 = sld [smem:[#allocation79_spill]]  ;;  %v878_v31 = vmul.f32 %v12136_v27, %v7763_v41  ;;  %v12138_v29 = vstv %s12128_s22  ;;  %v11329_v27 = vstv %s8178_s8 }
 0x376   : > { %s8234_s7 = sld [smem:[#allocation11 + $0x681]]  ;;  %v884_v4 = vmul.f32 %v12138_v29, %v7763_v41 }
 0x377   : > { %12129 = sst [smem:[#allocation76_spill]] %s8216_s18 }
 0x378   : > { %s12135_s29 = sld [smem:[#allocation84_spill]]  ;;  %v8286_v28 = vadd.f32 %v884_v4, %v7881_v7 }
 0x379   : > { %s12137_s17 = sld [smem:[#allocation85_spill]]  ;;  %v12141_v51 = vstv %s12130_s15 }
 0x37a   : > { %12131 = sst [smem:[#allocation77_spill]] %s8226_s13  ;;  %v890_v55 = vmul.f32 %v12141_v51, %v7763_v41 }
 0x37b   : > { %s12139_s25 = sld [smem:[#allocation86_spill]]  ;;  %v12145_v29 = vstv %s12133_s20 }
 0x37c   : > { %12134 = sst [smem:[#allocation78_spill]] %s8234_s7  ;;  %v896_v0 = vmul.f32 %v12145_v29, %v7763_v41  ;;  %v8283_v41 = vadd.f32 %v878_v31, %v7871_v57  ;;  %v11340_v57 = vstv %s8205_s28 }
 0x37d   : > { %s8247_s23 = sld [smem:[#allocation11 + $0x682]] }
 0x37e   : > { %s12142_s6 = sld [smem:[#allocation87_spill]]  ;;  %v12148_v8 = vstv %s12135_s29 }
 0x37f   : > { %s12143_s3 = sld [smem:[#allocation68_spill]]  ;;  %v930_v51 = vmul.f32 %v12148_v8, %v7766_v2  ;;  %v12149_v35 = vstv %s12137_s17  ;;  %v8313_v8 = vadd.f32 %v890_v55, %v7899_v3 }
 0x380   : > { %s8258_s4 = sld [smem:[#allocation11 + $0x683]]  ;;  %v936_v14 = vmul.f32 %v12149_v35, %v7766_v2 }
 0x381   : > { %s8263_s22 = sld [smem:[#allocation11 + $0x684]]  ;;  %v12150_v23 = vstv %s12139_s25 }
 0x382   : > { %s12147_s21 = sld [smem:[#allocation88_spill]]  ;;  %v942_v30 = vmul.f32 %v12150_v23, %v7766_v2  ;;  %v8328_v4 = vadd.f32 %v936_v14, %v7885_v34  ;;  %v2053_v34 = vmul.f32 %v11346_v63, %v8278_v42 }
 0x383   : > { %12140 = sst [smem:[#allocation79_spill]] %s8247_s23 }
 0x384   : > { %s12151_s20 = sld [smem:[#allocation89_spill]]  ;;  %v12153_v62 = vstv %s12142_s6  ;;  %v8331_v3 = vadd.f32 %v942_v30, %v7910_v20  ;;  %v8404_v13 = vadd.f32 %v2053_v34, %v8114_v37 }
 0x385   : > { %s8280_s15 = sld [smem:[#allocation11 + $0x685]]  ;;  %v948_v29 = vmul.f32 %v12153_v62, %v7766_v2  ;;  %v8292_v35 = vld [vmem:[%s12143_s3 + $0x8] sm:$0xff]  ;;  %v8298_v60 = vld [vmem:[%s12143_s3 + $0x18] sm:$0xff]  ;;  %v8316_v62 = vadd.f32 %v896_v0, %v7921_v39  ;;  %v12159_v39 = vstv %s7773_s16 }
 0x386   : > { %12144 = sst [smem:[#allocation84_spill]] %s8258_s4  ;;  %v2267_v23 = vmul.f32 %v8292_v35, %v11330_v47  ;;  %v2271_v1 = vmul.f32 %v8298_v60, %v11329_v27  ;;  %v2047_v0 = vmul.f32 %v12159_v39, %v8278_v42  ;;  %v8337_v55 = vld [vmem:[%s12143_s3 + $0x28] sm:$0xff] }
 0x387   : > { %12146 = sst [smem:[#allocation85_spill]] %s8263_s22 }
 0x388   : > { %s8304_s25 = sld [smem:[#allocation11 + $0x686]]  ;;  %v12155_v7 = vstv %s12147_s21  ;;  %v2273_v20 = vadd.f32 %v2271_v1, %v2267_v23  ;;  %v8390_v30 = vadd.f32 %v2047_v0, %v8096_v45 }
 0x389   : > { %v954_v31 = vmul.f32 %v12155_v7, %v7766_v2  ;;  %s8310_s29 = sld [smem:[#allocation11 + $0x687]]  ;;  %v8325_v7 = vadd.f32 %v930_v51, %v7883_v17  ;;  %v8346_v17 = vadd.f32 %v948_v29, %v7923_v9  ;;  %v12170_v51 = vstv %s12066_s19 }
 0x38a   : > { %v12157_v27 = vstv %s12151_s20  ;;  %s8322_s6 = sld [smem:[#allocation11 + $0x688]]  ;;  %v2059_v39 = vmul.f32 %v12170_v51, %v8278_v42 }
 0x38b   : > { %12152 = sst [smem:[#allocation86_spill]] %s8280_s15  ;;  %v960_v47 = vmul.f32 %v12157_v27, %v7766_v2  ;;  %v2277_v27 = vmul.f32 %v8337_v55, %v11340_v57  ;;  %v8355_v14 = vadd.f32 %v954_v31, %v7933_v46 }
 0x38c   : > { %s12160_s21 = sld [smem:[#allocation90_spill]] }
 0x38d   : > { %s12161_s17 = sld [smem:[#allocation49_spill]]  ;;  %v8364_v9 = vadd.f32 %v960_v47, %v8209_v38 }
 0x38e   : > { %12154 = sst [smem:[#allocation87_spill]] %s8304_s25 }
 0x38f   : > { %12156 = sst [smem:[#allocation88_spill]] %s8310_s29  ;;  %12174 = vst [vmem:[#allocation256_spill] sm:$0xff] %v8364_v9 }
 0x390   : > { %12158 = sst [smem:[#allocation89_spill]] %s8322_s6 }
 0x391   : > { %s12162_s20 = sld [smem:[#allocation50_spill]] }
 0x392   : > { %s12163_s8 = sld [smem:[#allocation91_spill]]  ;;  %v12175_v29 = vstv %s12160_s21 }
 0x393   : > { %s8343_s11 = sld [smem:[#allocation11 + $0x689]]  ;;  %v8369_v23 = vmul.f32 %v12175_v29, %v7766_v2  ;;  %v12176_v1 = vstv %s12161_s17  ;;  %v5386_v29 = vpop.eup %5385 }
 0x394   : > { %s12165_s9 = sld [smem:[#allocation92_spill]]  ;;  %v2065_v63 = vmul.f32 %v12176_v1, %v8278_v42 }
 0x395   : > { %s12166_s16 = sld [smem:[#allocation51_spill]] }
 0x396   : > { %s12167_s3 = sld [smem:[#allocation63_spill]] }
 0x397   : > { %s8352_s27 = sld [smem:[#allocation11 + $0x68a]]  ;;  %v12177_v46 = vstv %s12162_s20 }
 0x398   : > { %s12169_s28 = sld [smem:[#allocation64_spill]]  ;;  %v2071_v31 = vmul.f32 %v12177_v46, %v8278_v42  ;;  %v12179_v51 = vstv %s12163_s8 }
 0x399   : > { %12164 = sst [smem:[#allocation90_spill]] %s8343_s11  ;;  %v8382_v57 = vmul.f32 %v12179_v51, %v7766_v2 }
 0x39a   : > { %s12171_s26 = sld [smem:[#allocation52_spill]]  ;;  %v12181_v38 = vstv %s12165_s9 }
 0x39b   : > { %s8361_s10 = sld [smem:[#allocation8 + $0xe]]  ;;  %v8387_v47 = vmul.f32 %v12181_v38, %v7766_v2  ;;  %v12182_v1 = vstv %s12166_s16 }
 0x39c   : > { %s12173_s30 = sld [smem:[#allocation53_spill]]  ;;  %v2077_v46 = vmul.f32 %v12182_v1, %v8278_v42  ;;  %v12183_v22 = vstv %s12167_s3  ;;  %v2279_v1 = vadd.f32 %v2277_v27, %v2273_v20  ;;  %v8432_v27 = vadd.f32 %v2071_v31, %v8131_v26 }
 0x39d   : > { %12168 = sst [smem:[#allocation91_spill]] %s8352_s27  ;;  %v2083_v48 = vmul.f32 %v12183_v22, %v8278_v42  ;;  %v8415_v22 = vadd.f32 %v2059_v39, %v8125_v32  ;;  %v12193_v32 = vstv %s7988_s2  ;;  %v2165_v39 = vadd.f32 1.0, %v5386_v29 }
 0x39e   : > { %s8377_s19 = sld [smem:[#allocation8 + $0x8e]]  ;;  %v12184_v52 = vstv %s12169_s28  ;;  %v2125_v20 = vmul.f32 %v12193_v32, %v8278_v42  ;;  %v12206_v32 = vstv %s8037_s1 }
 0x39f   : > { %s12180_s7 = sld [smem:[#allocation56_spill]]  ;;  %v2089_v51 = vmul.f32 %v12184_v52, %v8278_v42  ;;  %v12189_v52 = vstv %s7908_s12 }
 0x3a0   : > { %s8401_s8 = sld [smem:[#allocation8 + $0x10e]]  ;;  %v12186_v38 = vstv %s12171_s26  ;;  %v2107_v10 = vmul.f32 %v12189_v52, %v8278_v42  ;;  %v8440_v52 = vadd.f32 %v2077_v46, %v8134_v49 }
 0x3a1   : > { %12172 = sst [smem:[#allocation92_spill]] %s8361_s10  ;;  %v2095_v25 = vmul.f32 %v12186_v38, %v8278_v42  ;;  %v2119_v38 = vmul.f32 %v12191_v53, %v8278_v42  ;;  %v8443_v53 = vadd.f32 %v2083_v48, %v8139_v56  ;;  %v8454_v31 = vadd.f32 %v2089_v51, %v8142_v12 }
 0x3a2   : > { %v12187_v45 = vstv %s12173_s30  ;;  %s8412_s9 = sld [smem:[#allocation11 + $0x68b]]  ;;  %v12197_v56 = vstv %s8216_s18  ;;  %v8467_v46 = vadd.f32 %v2107_v10, %v8155_v19  ;;  %v2167_v19 = vmul.f32 %v2165_v39, %v8186_v36 }
 0x3a3   : > { %v2101_v0 = vmul.f32 %v12187_v45, %v8278_v42  ;;  %s8426_s21 = sld [smem:[#allocation11 + $0x68c]]  ;;  %v8429_v45 = vadd.f32 %v2065_v63, %v8128_v54  ;;  %v2131_v63 = vmul.f32 %v11360_v21, %v8278_v42  ;;  %v12195_v54 = vstv %s8015_s0 }
 0x3a4   : > { %12178 = sst [smem:[#allocation257_spill]] %s8377_s19  ;;  %v2137_v26 = vmul.f32 %v12195_v54, %v8278_v42  ;;  %v8457_v29 = vadd.f32 %v2095_v25, %v8145_v33  ;;  %v2283_v48 = vadd.f32 %v12197_v56, %v2279_v1  ;;  %v8473_v12 = vadd.f32 %v2119_v38, %v8161_v40 }
 0x3a5   : > { %v12190_v37 = vstv %s12180_s7  ;;  %s8437_s12 = sld [smem:[#allocation11 + $0x68d]]  ;;  %v8460_v49 = vadd.f32 %v2101_v0, %v8152_v15  ;;  %v11365_v33 = vstv %s8361_s10  ;;  %v8479_v15 = vadd.f32 %v2125_v20, %v8166_v5 }
 0x3a6   : > { %12185 = sst [smem:[#allocation258_spill]] %s8401_s8  ;;  %v2113_v34 = vmul.f32 %v12190_v37, %v8278_v42  ;;  %v11363_v25 = vstv %s8377_s19  ;;  %v8489_v40 = vadd.f32 %v2131_v63, %v8169_v24  ;;  %v8492_v10 = vadd.f32 %v2137_v26, %v8171_v61 }
 0x3a7   : > { %s8451_s2 = sld [smem:[#allocation11 + $0x68e]]  ;;  %v2395_v5 = vmul.f32 %v8298_v60, %v11363_v25  ;;  %v11371_v36 = vstv %s8401_s8  ;;  %v8500_v51 = vmul.f32 0.5, %v2283_v48  ;;  %v2171_v20 = vmul.f32 %v12206_v32, %v2167_v19 }
 0x3a8   : > { %12188 = sst [smem:[#allocation259_spill]] %s8412_s9  ;;  %v8470_v42 = vadd.f32 %v2113_v34, %v8158_v11  ;;  %v2391_v11 = vmul.f32 %v8292_v35, %v11365_v33  ;;  %v2401_v54 = vmul.f32 %v8337_v55, %v11371_v36  ;;  %v12215_v25 = vstv %s8048_s5 }
 0x3a9   : > { %12192 = sst [smem:[#allocation260_spill]] %s8426_s21  ;;  %v2177_v32 = vmul.f32 %v12215_v25, %v2167_v19  ;;  %5387 = vtanh.f32 %v8500_v51 }
 0x3aa   : > { %s8464_s14 = sld [smem:[#allocation11 + $0x68f]]  ;;  %v2397_v63 = vadd.f32 %v2395_v5, %v2391_v11 }
 0x3ab   : > { %12194 = sst [smem:[#allocation261_spill]] %s8437_s12 }
 0x3ac   : > { %s8476_s0 = sld [smem:[#allocation9 + $0xe]]  ;;  %v2403_v1 = vadd.f32 %v2401_v54, %v2397_v63 }
 0x3ad   : > { %12196 = sst [smem:[#allocation262_spill]] %s8451_s2 }
 0x3ae   : > { %s8486_s24 = sld [smem:[#allocation11 + $0x700]] }
 0x3af   : > { %s8498_s7 = sld [smem:[#allocation11 + $0x701]] }
 0x3b0   : > { %12198 = sst [smem:[#allocation263_spill]] %s8464_s14 }
 0x3b1   : > { %s8505_s30 = sld [smem:[#allocation11 + $0x702]] }
 0x3b2   : > { %12199 = sst [smem:[#allocation264_spill]] %s8476_s0 }
 0x3b3   : > { %s12203_s26 = sld [smem:[#allocation245_spill]] }
 0x3b4   : > { %12200 = sst [smem:[#allocation265_spill]] %s8486_s24 }
 0x3b5   : > { %12201 = sst [smem:[#allocation266_spill]] %s8498_s7 }
 0x3b6   : > { %s12204_s28 = sld [smem:[#allocation246_spill]] }
 0x3b7   : > { %12202 = sst [smem:[#allocation267_spill]] %s8505_s30 }
 0x3b8   : > { %s8511_s3 = sld [smem:[#allocation11 + $0x703]] }
 0x3b9   : > { %s12207_s16 = sld [smem:[#allocation247_spill]]  ;;  %v12217_v33 = vstv %s12203_s26 }
 0x3ba   : > { %s12208_s20 = sld [smem:[#allocation248_spill]]  ;;  %v2183_v11 = vmul.f32 %v12217_v33, %v2167_v19  ;;  %v8547_v33 = vadd.f32 %v2171_v20, %v8390_v30  ;;  %v8565_v30 = vadd.f32 %v2177_v32, %v8404_v13 }
 0x3bb   : > { %s12209_s17 = sld [smem:[#allocation249_spill]] }
 0x3bc   : > { %s12210_s18 = sld [smem:[#allocation250_spill]]  ;;  %v12219_v5 = vstv %s12204_s28  ;;  %12230 = vst [vmem:[#allocation273_spill] sm:$0xff] %v8547_v33 }
 0x3bd   : > { %s8519_s19 = sld [smem:[#allocation11 + $0x704]]  ;;  %v2189_v39 = vmul.f32 %v12219_v5, %v2167_v19 }
 0x3be   : > { %12205 = sst [smem:[#allocation268_spill]] %s8511_s3 }
 0x3bf   : > { %s12212_s10 = sld [smem:[#allocation251_spill]]  ;;  %v12222_v36 = vstv %s12207_s16 }
 0x3c0   : > { %s12213_s29 = sld [smem:[#allocation252_spill]]  ;;  %v2195_v56 = vmul.f32 %v12222_v36, %v2167_v19  ;;  %v12223_v48 = vstv %s12208_s20 }
 0x3c1   : > { %s8525_s6 = sld [smem:[#allocation11 + $0x705]]  ;;  %v2201_v21 = vmul.f32 %v12223_v48, %v2167_v19  ;;  %v12225_v26 = vstv %s12209_s17 }
 0x3c2   : > { %s12216_s1 = sld [smem:[#allocation253_spill]]  ;;  %v2207_v38 = vmul.f32 %v12225_v26, %v2167_v19  ;;  %v12227_v25 = vstv %s12210_s18 }
 0x3c3   : > { %12211 = sst [smem:[#allocation269_spill]] %s8519_s19  ;;  %v2213_v34 = vmul.f32 %v12227_v25, %v2167_v19  ;;  %v11391_v25 = vstv %s8476_s0  ;;  %v8585_v13 = vadd.f32 %v2201_v21, %v8440_v52 }
 0x3c4   : > { %s12218_s11 = sld [smem:[#allocation254_spill]] }
 0x3c5   : > { %s12220_s8 = sld [smem:[#allocation70_spill]]  ;;  %v12231_v5 = vstv %s12212_s10 }
 0x3c6   : > { %s8534_s27 = sld [smem:[#allocation11 + $0x706]]  ;;  %v2219_v37 = vmul.f32 %v12231_v5, %v2167_v19  ;;  %v12232_v61 = vstv %s12213_s29 }
 0x3c7   : > { %12214 = sst [smem:[#allocation270_spill]] %s8525_s6  ;;  %v2225_v24 = vmul.f32 %v12232_v61, %v2167_v19 }
 0x3c8   : > { %s12224_s12 = sld [smem:[#allocation71_spill]]  ;;  %v12234_v36 = vstv %s12216_s1 }
 0x3c9   : > { %s12226_s5 = sld [smem:[#allocation74_spill]]  ;;  %v2231_v48 = vmul.f32 %v12234_v36, %v2167_v19  ;;  %v8576_v36 = vadd.f32 %v2183_v11, %v8415_v22  ;;  %v8593_v22 = vadd.f32 %v2213_v34, %v8454_v31  ;;  %v8603_v21 = vadd.f32 %v2225_v24, %v8460_v49 }
 0x3ca   : > { %s12228_s26 = sld [smem:[#allocation255_spill]]  ;;  %v12235_v0 = vstv %s12218_s11 }
 0x3cb   : > { %s8544_s21 = sld [smem:[#allocation11 + $0x707]]  ;;  %v2237_v44 = vmul.f32 %v12235_v0, %v2167_v19  ;;  %v12236_v26 = vstv %s12220_s8  ;;  %v8579_v0 = vadd.f32 %v2189_v39, %v8429_v45  ;;  %v8596_v45 = vadd.f32 %v2219_v37, %v8457_v29 }
 0x3cc   : > { %12221 = sst [smem:[#allocation271_spill]] %s8534_s27  ;;  %v2243_v9 = vmul.f32 %v12236_v26, %v2167_v19  ;;  %v8582_v26 = vadd.f32 %v2195_v56, %v8432_v27  ;;  %v2407_v27 = vadd.f32 %v11391_v25, %v2403_v1  ;;  %v8606_v52 = vadd.f32 %v2231_v48, %v8467_v46 }
 0x3cd   : > { %s8553_s16 = sld [smem:[#allocation11 + $0x708]]  ;;  %v968_v48 = vadd.f32 %v8369_v23, %v8219_v18  ;;  %v12316_v1 = vstv %s8412_s9 }
 0x3ce   : > { %s8562_s18 = sld [smem:[#allocation11 + $0x709]]  ;;  %v12238_v20 = vstv %s12224_s12  ;;  %v8612_v31 = vadd.f32 %v2243_v9, %v8473_v12 }
 0x3cf   : > { %v2249_v5 = vmul.f32 %v12238_v20, %v2167_v19  ;;  %v12239_v33 = vstv %s12226_s5  ;;  %s8573_s29 = sld [smem:[#allocation11 + $0x70a]] }
 0x3d0   : > { %v2255_v61 = vmul.f32 %v12239_v33, %v2167_v19  ;;  %v12240_v63 = vstv %s12228_s26  ;;  %s8587_s5 = sld [smem:[#allocation8 + $0xf]] }
 0x3d1   : > { %12229 = sst [smem:[#allocation272_spill]] %s8544_s21  ;;  %v2261_v54 = vmul.f32 %v12240_v63, %v2167_v19  ;;  %v8590_v19 = vadd.f32 %v2207_v38, %v8443_v53  ;;  %v8609_v53 = vadd.f32 %v2237_v44, %v8470_v42  ;;  %v8617_v29 = vadd.f32 %v2249_v5, %v8479_v15 }
 0x3d2   : > { %s8600_s26 = sld [smem:[#allocation8 + $0x8f]]  ;;  %v8620_v49 = vadd.f32 %v2255_v61, %v8489_v40  ;;  %v11433_v44 = vstv %s8451_s2  ;;  %v11432_v42 = vstv %s8464_s14  ;;  %v8632_v15 = vmul.f32 0.5, %v2407_v27 }
 0x3d3   : > { %12233 = sst [smem:[#allocation274_spill]] %s8553_s16  ;;  %v8623_v46 = vadd.f32 %v2261_v54, %v8492_v10  ;;  %v5388_v54 = vpop.eup %5387 }
 0x3d4   : > { %12237 = sst [smem:[#allocation275_spill]] %s8562_s18  ;;  %5389 = vtanh.f32 %v8632_v15 }
 0x3d5   : > { %12241 = sst [smem:[#allocation276_spill]] %s8573_s29 }
 0x3d6   : > { %12242 = sst [smem:[#allocation277_spill]] %s8587_s5  ;;  %v11402_v18 = vstv %s8587_s5 }
 0x3d7   : > { %s12244_s12 = sld [smem:[#allocation93_spill]] }
 0x3d8   : > { %12243 = sst [smem:[#allocation278_spill]] %s8600_s26  ;;  %v11400_v23 = vstv %s8600_s26 }
 0x3d9   : > { %s8614_s8 = sld [smem:[#allocation11 + $0x70b]] }
 0x3da   : > { %s12246_s11 = sld [smem:[#allocation94_spill]] }
 0x3db   : > { %s12247_s1 = sld [smem:[#allocation95_spill]] }
 0x3dc   : > { %s12248_s10 = sld [smem:[#allocation96_spill]] }
 0x3dd   : > { %s12249_s17 = sld [smem:[#allocation97_spill]]  ;;  %v12252_v10 = vstv %s12244_s12 }
 0x3de   : > { %s8630_s20 = sld [smem:[#allocation11 + $0x70c]]  ;;  %v984_v37 = vmul.f32 %v12252_v10, %v7766_v2 }
 0x3df   : > { %12245 = sst [smem:[#allocation93_spill]] %s8614_s8 }
 0x3e0   : > { %s8636_s28 = sld [smem:[#allocation8 + $0x10f]]  ;;  %v12254_v39 = vstv %s12246_s11 }
 0x3e1   : > { %s8643_s0 = sld [smem:[#allocation11 + $0x70d]]  ;;  %v990_v56 = vmul.f32 %v12254_v39, %v7766_v2  ;;  %v12255_v32 = vstv %s12247_s1  ;;  %v974_v39 = vadd.f32 %v8382_v57, %v8222_v50 }
 0x3e2   : > { %v996_v11 = vmul.f32 %v12255_v32, %v7766_v2  ;;  %s8652_s19 = sld [smem:[#allocation11 + $0x70e]]  ;;  %v12257_v20 = vstv %s12248_s10  ;;  %v8668_v32 = vadd.f32 %v8387_v47, %v8229_v43 }
 0x3e3   : > { %v1002_v5 = vmul.f32 %v12257_v20, %v7766_v2  ;;  %v12258_v61 = vstv %s12249_s17  ;;  %s12259_s1 = sld [smem:[#allocation98_spill]]  ;;  %v8676_v20 = vadd.f32 %v984_v37, %v8237_v59  ;;  %v8683_v43 = vadd.f32 %v990_v56, %v8250_v58 }
 0x3e4   : > { %12250 = sst [smem:[#allocation94_spill]] %s8630_s20  ;;  %v1008_v63 = vmul.f32 %v12258_v61, %v7766_v2  ;;  %v8686_v47 = vadd.f32 %v996_v11, %v8266_v16  ;;  %v2289_v61 = vadd.f32 1.0, %v5388_v54  ;;  %v2515_v16 = vmul.f32 %v8292_v35, %v11402_v18 }
 0x3e5   : > { %s8671_s11 = sld [smem:[#allocation11 + $0x70f]]  ;;  %v8691_v59 = vadd.f32 %v1002_v5, %v8283_v41  ;;  %v2519_v11 = vmul.f32 %v8298_v60, %v11400_v23 }
 0x3e6   : > { %12251 = sst [smem:[#allocation95_spill]] %s8636_s28  ;;  %v8694_v37 = vadd.f32 %v1008_v63, %v8286_v28  ;;  %v11408_v28 = vstv %s8636_s28 }
 0x3e7   : > { %12253 = sst [smem:[#allocation96_spill]] %s8643_s0 }
 0x3e8   : > { %12256 = sst [smem:[#allocation97_spill]] %s8652_s19 }
 0x3e9   : > { %s12261_s12 = sld [smem:[#allocation99_spill]]  ;;  %v12269_v25 = vstv %s12259_s1 }
 0x3ea   : > { %s12262_s10 = sld [smem:[#allocation104_spill]]  ;;  %v1014_v58 = vmul.f32 %v12269_v25, %v7766_v2 }
 0x3eb   : > { %12260 = sst [smem:[#allocation98_spill]] %s8671_s11 }
 0x3ec   : > { %s8680_s17 = sld [smem:[#allocation9 + $0xf]] }
 0x3ed   : > { %s12264_s18 = sld [smem:[#allocation105_spill]] }
 0x3ee   : > { %s12265_s16 = sld [smem:[#allocation106_spill]] }
 0x3ef   : > { %s8688_s21 = sld [smem:[#allocation11 + $0x780]]  ;;  %v12272_v41 = vstv %s12261_s12 }
 0x3f0   : > { %s12267_s27 = sld [smem:[#allocation107_spill]]  ;;  %v1020_v5 = vmul.f32 %v12272_v41, %v7766_v2  ;;  %v12275_v25 = vstv %s12262_s10 }
 0x3f1   : > { %s12268_s8 = sld [smem:[#allocation108_spill]]  ;;  %v1054_v63 = vmul.f32 %v12275_v25, %v7779_v6 }
 0x3f2   : > { %12263 = sst [smem:[#allocation99_spill]] %s8680_s17 }
 0x3f3   : > { %s12270_s29 = sld [smem:[#allocation109_spill]]  ;;  %v12276_v54 = vstv %s12264_s18 }
 0x3f4   : > { %s8706_s6 = sld [smem:[#allocation11 + $0x781]]  ;;  %v1060_v56 = vmul.f32 %v12276_v54, %v7779_v6  ;;  %v12277_v35 = vstv %s12265_s16  ;;  %v2291_v54 = vmul.f32 %v2289_v61, %v8500_v51  ;;  %v8751_v51 = vadd.f32 %v1020_v5, %v8316_v62 }
 0x3f5   : > { %12266 = sst [smem:[#allocation104_spill]] %s8688_s21  ;;  %v1066_v60 = vmul.f32 %v12277_v35, %v7779_v6  ;;  %v8740_v35 = vadd.f32 %v1014_v58, %v8313_v8  ;;  %v11435_v62 = vstv %s8680_s17 }
 0x3f6   : > { %s12273_s3 = sld [smem:[#allocation110_spill]]  ;;  %v12280_v2 = vstv %s12267_s27  ;;  %v8763_v58 = vadd.f32 %v1060_v56, %v8328_v4  ;;  %v12292_v56 = vstv %s8226_s13 }
 0x3f7   : > { %s8712_s30 = sld [smem:[#allocation11 + $0x782]]  ;;  %v1072_v41 = vmul.f32 %v12280_v2, %v7779_v6  ;;  %v12281_v18 = vstv %s12268_s8  ;;  %v2521_v2 = vadd.f32 %v2519_v11, %v2515_v16  ;;  %v2295_v5 = vmul.f32 %v12292_v56, %v2291_v54 }
 0x3f8   : > { %s12278_s1 = sld [smem:[#allocation111_spill]]  ;;  %v1078_v57 = vmul.f32 %v12281_v18, %v7779_v6  ;;  %v2525_v18 = vmul.f32 %v8337_v55, %v11408_v28  ;;  %v8766_v55 = vadd.f32 %v1066_v60, %v8331_v3 }
 0x3f9   : > { %s8724_s26 = sld [smem:[#allocation11 + $0x783]]  ;;  %v12282_v50 = vstv %s12270_s29  ;;  %v8772_v16 = vadd.f32 %v1072_v41, %v8346_v17 }
 0x3fa   : > { %12271 = sst [smem:[#allocation105_spill]] %s8706_s6  ;;  %v1084_v25 = vmul.f32 %v12282_v50, %v7779_v6  ;;  %v8775_v11 = vadd.f32 %v1078_v57, %v8355_v14  ;;  %v2527_v41 = vadd.f32 %v2525_v18, %v2521_v2  ;;  %v5390_v18 = vpop.eup %5389  ;;  %v12308_v14 = vstv %s8304_s25 }
 0x3fb   : > { %s8737_s16 = sld [smem:[#allocation11 + $0x784]]  ;;  %v2331_v60 = vmul.f32 %v12308_v14, %v2291_v54  ;;  %v2361_v14 = vmul.f32 %v12316_v1, %v2291_v54 }
 0x3fc   : > { %v12284_v23 = vstv %s12273_s3  ;;  %s12285_s27 = sld [smem:[#allocation78_spill]]  ;;  %v2531_v9 = vadd.f32 %v11435_v62, %v2527_v41 }
 0x3fd   : > { %12274 = sst [smem:[#allocation106_spill]] %s8712_s30  ;;  %v1090_v27 = vmul.f32 %v12284_v23, %v7779_v6  ;;  %v8760_v23 = vadd.f32 %v1054_v63, %v8325_v7  ;;  %v12290_v7 = vld [vmem:[#allocation256_spill] sm:$0xff]  ;;  %v2333_v41 = vadd.f32 %v2331_v60, %v8590_v19 }
 0x3fe   : > { %s8748_s18 = sld [smem:[#allocation11 + $0x785]]  ;;  %v12287_v50 = vstv %s12278_s1  ;;  %v8778_v4 = vadd.f32 %v1084_v25, %v12290_v7  ;;  %v12299_v7 = vstv %s8247_s23 }
 0x3ff   : > { %12279 = sst [smem:[#allocation107_spill]] %s8724_s26  ;;  %v1096_v61 = vmul.f32 %v12287_v50, %v7779_v6  ;;  %v8787_v17 = vadd.f32 %v1090_v27, %v968_v48  ;;  %v2307_v56 = vmul.f32 %v12299_v7, %v2291_v54  ;;  %v12307_v7 = vstv %s8280_s15 }
 0x400   : > { %s8757_s29 = sld [smem:[#allocation11 + $0x786]] }
 0x401   : > { %12283 = sst [smem:[#allocation108_spill]] %s8737_s16  ;;  %v8792_v57 = vadd.f32 %v1096_v61, %v974_v39  ;;  %v12305_v61 = vstv %s8263_s22 }
 0x402   : > { %s12288_s3 = sld [smem:[#allocation112_spill]]  ;;  %v12293_v3 = vstv %s12285_s27 }
 0x403   : > { %s8769_s8 = sld [smem:[#allocation11 + $0x787]]  ;;  %v2301_v63 = vmul.f32 %v12293_v3, %v2291_v54  ;;  %v12300_v3 = vstv %s8258_s4 }
 0x404   : > { %12286 = sst [smem:[#allocation109_spill]] %s8748_s18  ;;  %v2313_v28 = vmul.f32 %v12300_v3, %v2291_v54  ;;  %v2325_v3 = vmul.f32 %v12307_v7, %v2291_v54 }
 0x405   : > { %s12289_s12 = sld [smem:[#allocation113_spill]] }
 0x406   : > { %s12291_s10 = sld [smem:[#allocation114_spill]] }
 0x407   : > { %s8785_s1 = sld [smem:[#allocation11 + $0x788]] }
 0x408   : > { %s12294_s28 = sld [smem:[#allocation88_spill]]  ;;  %v12297_v25 = vstv %s12288_s3 }
 0x409   : > { %s8790_s5 = sld [smem:[#allocation11 + $0x789]]  ;;  %v8797_v50 = vmul.f32 %v12297_v25, %v7779_v6  ;;  %v2319_v25 = vmul.f32 %v12305_v61, %v2291_v54 }
 0x40a   : > { %s12296_s11 = sld [smem:[#allocation89_spill]] }
 0x40b   : > { %s12298_s27 = sld [smem:[#allocation90_spill]]  ;;  %v12302_v48 = vstv %s12289_s12  ;;  %v2321_v1 = vadd.f32 %v2319_v25, %v8582_v26 }
 0x40c   : > { %s12301_s13 = sld [smem:[#allocation91_spill]]  ;;  %v8808_v27 = vmul.f32 %v12302_v48, %v7779_v6  ;;  %v12304_v39 = vstv %s12291_s10  ;;  %v12311_v48 = vld [vmem:[#allocation273_spill] sm:$0xff] }
 0x40d   : > { %s8803_s21 = sld [smem:[#allocation11 + $0x78a]]  ;;  %v8813_v2 = vmul.f32 %v12304_v39, %v7779_v6  ;;  %v8826_v33 = vadd.f32 %v2295_v5, %v12311_v48  ;;  %v8829_v39 = vadd.f32 %v2301_v63, %v8565_v30  ;;  %v2379_v30 = vmul.f32 %v11433_v44, %v2291_v54 }
 0x40e   : > { %s12303_s6 = sld [smem:[#allocation260_spill]]  ;;  %v12309_v8 = vstv %s12294_s28  ;;  %v2413_v63 = vadd.f32 1.0, %v5390_v18 }
 0x40f   : > { %12295 = sst [smem:[#allocation110_spill]] %s8790_s5  ;;  %v2337_v10 = vmul.f32 %v12309_v8, %v2291_v54 }
 0x410   : > { %s12306_s3 = sld [smem:[#allocation261_spill]]  ;;  %v12312_v38 = vstv %s12296_s11 }
 0x411   : > { %s8823_s12 = sld [smem:[#allocation11 + $0x78b]]  ;;  %v2343_v34 = vmul.f32 %v12312_v38, %v2291_v54  ;;  %v12313_v24 = vstv %s12298_s27  ;;  %v2385_v38 = vmul.f32 %v11432_v42, %v2291_v54 }
 0x412   : > { %v2349_v61 = vmul.f32 %v12313_v24, %v2291_v54  ;;  %s8835_s10 = sld [smem:[#allocation11 + $0x78c]]  ;;  %v12315_v7 = vstv %s12301_s13  ;;  %v2309_v24 = vadd.f32 %v2307_v56, %v8576_v36  ;;  %v12338_v56 = vstv %s8498_s7 }
 0x413   : > { %v2355_v40 = vmul.f32 %v12315_v7, %v2291_v54  ;;  %s8845_s28 = sld [smem:[#allocation11 + $0x78d]]  ;;  %v2315_v7 = vadd.f32 %v2313_v28, %v8579_v0  ;;  %v2363_v0 = vadd.f32 %v2361_v14, %v8609_v53  ;;  %v11459_v53 = vstv %s8724_s26 }
 0x414   : > { %v12317_v12 = vstv %s12303_s6  ;;  %s8853_s27 = sld [smem:[#allocation11 + $0x78e]]  ;;  %v2351_v18 = vadd.f32 %v2349_v61, %v8603_v21  ;;  %v2415_v21 = vmul.f32 %v2413_v63, %v8632_v15  ;;  %v12336_v28 = vstv %s8486_s24 }
 0x415   : > { %v2367_v8 = vmul.f32 %v12317_v12, %v2291_v54  ;;  %v2327_v12 = vadd.f32 %v2325_v3, %v8585_v13  ;;  %s8859_s6 = sld [smem:[#allocation11 + $0x78f]]  ;;  %v2357_v36 = vadd.f32 %v2355_v40, %v8606_v52  ;;  %v8870_v13 = vmul.f32 0.5, %v2531_v9 }
 0x416   : > { %v12319_v5 = vstv %s12306_s3  ;;  %s8865_s14 = sld [smem:[#allocation12]]  ;;  %v11458_v52 = vstv %s8712_s30  ;;  %v2419_v60 = vmul.f32 %v12336_v28, %v2415_v21  ;;  %v2425_v25 = vmul.f32 %v12338_v56, %v2415_v21 }
 0x417   : > { %12310 = sst [smem:[#allocation111_spill]] %s8823_s12  ;;  %v2373_v48 = vmul.f32 %v12319_v5, %v2291_v54  ;;  %v2339_v5 = vadd.f32 %v2337_v10, %v8593_v22  ;;  %v2345_v54 = vadd.f32 %v2343_v34, %v8596_v45  ;;  %v2369_v26 = vadd.f32 %v2367_v8, %v8612_v31 }
 0x418   : > { %12314 = sst [smem:[#allocation112_spill]] %s8835_s10  ;;  %v2381_v22 = vadd.f32 %v2379_v30, %v8620_v49  ;;  %v2387_v45 = vadd.f32 %v2385_v38, %v8623_v46  ;;  %5391 = vtanh.f32 %v8870_v13 }
 0x419   : > { %12318 = sst [smem:[#allocation113_spill]] %s8845_s28  ;;  %v2375_v19 = vadd.f32 %v2373_v48, %v8617_v29  ;;  %v12355_v29 = vstv %s8652_s19 }
 0x41a   : > { %12320 = sst [smem:[#allocation114_spill]] %s8853_s27 }
 0x41b   : > { %12321 = sst [smem:[#allocation279_spill]] %s8859_s6 }
 0x41c   : > { %s8872_s2 = sld [smem:[#allocation14]] }
 0x41d   : > { %s8878_s3 = sld [smem:[#allocation12 + $0x1]] }
 0x41e   : > { %s12324_s9 = sld [smem:[#allocation267_spill]] }
 0x41f   : > { %s8884_s13 = sld [smem:[#allocation14 + $0x80]] }
 0x420   : > { %s12326_s11 = sld [smem:[#allocation268_spill]] }
 0x421   : > { %s12327_s25 = sld [smem:[#allocation269_spill]] }
 0x422   : > { %12322 = sst [smem:[#allocation280_spill]] %s8872_s2 }
 0x423   : > { %12323 = sst [smem:[#allocation281_spill]] %s8878_s3 }
 0x424   : > { %s12328_s15 = sld [smem:[#allocation270_spill]]  ;;  %v12339_v3 = vstv %s12324_s9 }
 0x425   : > { %12325 = sst [smem:[#allocation282_spill]] %s8884_s13  ;;  %v2431_v61 = vmul.f32 %v12339_v3, %v2415_v21 }
 0x426   : > { %s12329_s22 = sld [smem:[#allocation271_spill]]  ;;  %v12341_v8 = vstv %s12326_s11 }
 0x427   : > { %s8890_s4 = sld [smem:[#allocation12 + $0x2]]  ;;  %v2437_v48 = vmul.f32 %v12341_v8, %v2415_v21  ;;  %v12342_v30 = vstv %s12327_s25 }
 0x428   : > { %s12331_s23 = sld [smem:[#allocation272_spill]]  ;;  %v2443_v38 = vmul.f32 %v12342_v30, %v2415_v21  ;;  %v12353_v30 = vstv %s8630_s20 }
 0x429   : > { %s12332_s17 = sld [smem:[#allocation274_spill]]  ;;  %v2491_v46 = vmul.f32 %v12353_v30, %v2415_v21 }
 0x42a   : > { %s12333_s30 = sld [smem:[#allocation275_spill]]  ;;  %v12343_v63 = vstv %s12328_s15  ;;  %v8951_v30 = vadd.f32 %v2443_v38, %v2321_v1 }
 0x42b   : > { %s12334_s26 = sld [smem:[#allocation276_spill]]  ;;  %v2449_v42 = vmul.f32 %v12343_v63, %v2415_v21  ;;  %v12354_v63 = vstv %s8643_s0 }
 0x42c   : > { %s8896_s16 = sld [smem:[#allocation14 + $0x100]]  ;;  %v12344_v44 = vstv %s12329_s22  ;;  %v2497_v49 = vmul.f32 %v12354_v63, %v2415_v21 }
 0x42d   : > { %12330 = sst [smem:[#allocation283_spill]] %s8890_s4  ;;  %v2455_v62 = vmul.f32 %v12344_v44, %v2415_v21  ;;  %v2503_v44 = vmul.f32 %v12355_v29, %v2415_v21  ;;  %v8953_v29 = vadd.f32 %v2449_v42, %v2327_v12 }
 0x42e   : > { %s12337_s18 = sld [smem:[#allocation93_spill]]  ;;  %v12347_v28 = vstv %s12331_s23  ;;  %v8973_v1 = vadd.f32 %v2497_v49, %v2375_v19 }
 0x42f   : > { %s8905_s5 = sld [smem:[#allocation12 + $0x3]]  ;;  %v2461_v56 = vmul.f32 %v12347_v28, %v2415_v21  ;;  %v12348_v10 = vstv %s12332_s17  ;;  %v8938_v28 = vadd.f32 %v2419_v60, %v8826_v33  ;;  %v8955_v33 = vadd.f32 %v2455_v62, %v2333_v41 }
 0x430   : > { %s12345_s24 = sld [smem:[#allocation98_spill]]  ;;  %v2467_v34 = vmul.f32 %v12348_v10, %v2415_v21  ;;  %v12349_v3 = vstv %s12333_s30  ;;  %v8941_v10 = vadd.f32 %v2425_v25, %v8829_v39  ;;  %v8971_v62 = vadd.f32 %v2491_v46, %v2369_v26  ;;  %v5392_v26 = vpop.eup %5391 }
 0x431   : > { %s8915_s10 = sld [smem:[#allocation14 + $0x180]]  ;;  %v2473_v40 = vmul.f32 %v12349_v3, %v2415_v21  ;;  %v12350_v14 = vstv %s12334_s26  ;;  %v8943_v3 = vadd.f32 %v2431_v61, %v2309_v24  ;;  %v8959_v39 = vadd.f32 %v2461_v56, %v2339_v5 }
 0x432   : > { %12335 = sst [smem:[#allocation284_spill]] %s8896_s16  ;;  %v2479_v15 = vmul.f32 %v12350_v14, %v2415_v21  ;;  %v8961_v24 = vadd.f32 %v2467_v34, %v2345_v54  ;;  %v8975_v12 = vadd.f32 %v2503_v44, %v2381_v22  ;;  %v2537_v49 = vadd.f32 1.0, %v5392_v26 }
 0x433   : > { %s8925_s9 = sld [smem:[#allocation12 + $0x4]]  ;;  %v8999_v34 = vadd.f32 %v8808_v27, %v8676_v20  ;;  %v9006_v25 = vadd.f32 %v8813_v2, %v8683_v43 }
 0x434   : > { %v12352_v8 = vstv %s12337_s18  ;;  %s8935_s22 = sld [smem:[#allocation14 + $0x200]]  ;;  %v9015_v20 = vmul.f32 %v2537_v49, %v8870_v13 }
 0x435   : > { %12340 = sst [smem:[#allocation285_spill]] %s8905_s5  ;;  %v2485_v9 = vmul.f32 %v12352_v8, %v2415_v21  ;;  %v8949_v8 = vadd.f32 %v2437_v48, %v2315_v7  ;;  %v8963_v7 = vadd.f32 %v2473_v40, %v2351_v18  ;;  %v11478_v18 = vstv %s8865_s14 }
 0x436   : > { %v12357_v14 = vstv %s12345_s24  ;;  %s8947_s18 = sld [smem:[#allocation12 + $0x5]]  ;;  %v11473_v22 = vstv %s8905_s5  ;;  %v8995_v40 = vadd.f32 %v8797_v50, %v8668_v32 }
 0x437   : > { %12346 = sst [smem:[#allocation286_spill]] %s8915_s10  ;;  %v2509_v31 = vmul.f32 %v12357_v14, %v2415_v21  ;;  %v8965_v21 = vadd.f32 %v2479_v15, %v2357_v36  ;;  %v8969_v42 = vadd.f32 %v2485_v9, %v2363_v0  ;;  %v11477_v15 = vstv %s8878_s3 }
 0x438   : > { %s8957_s19 = sld [smem:[#allocation14 + $0x280]]  ;;  %v11475_v9 = vstv %s8890_s4 }
 0x439   : > { %12351 = sst [smem:[#allocation287_spill]] %s8925_s9  ;;  %v8977_v41 = vadd.f32 %v2509_v31, %v2387_v45  ;;  %v11472_v31 = vstv %s8925_s9 }
 0x43a   : > { %12356 = sst [smem:[#allocation288_spill]] %s8935_s22 }
 0x43b   : > { %s8967_s24 = sld [smem:[#allocation12 + $0x6]] }
 0x43c   : > { %12358 = sst [smem:[#allocation289_spill]] %s8947_s18 }
 0x43d   : > { %s12361_s0 = sld [smem:[#allocation115_spill]] }
 0x43e   : > { %12359 = sst [smem:[#allocation290_spill]] %s8957_s19 }
 0x43f   : > { %s12362_s20 = sld [smem:[#allocation116_spill]] }
 0x440   : > { %s8986_s26 = sld [smem:[#allocation14 + $0x300]] }
 0x441   : > { %12360 = sst [smem:[#allocation291_spill]] %s8967_s24 }
 0x442   : > { %s12364_s30 = sld [smem:[#allocation117_spill]] }
 0x443   : > { %s12365_s17 = sld [smem:[#allocation118_spill]]  ;;  %v12372_v61 = vstv %s12361_s0 }
 0x444   : > { %s12366_s23 = sld [smem:[#allocation121_spill]]  ;;  %v1120_v32 = vmul.f32 %v12372_v61, %v7779_v6 }
 0x445   : > { %s12367_s15 = sld [smem:[#allocation68_spill]]  ;;  %v12374_v50 = vstv %s12362_s20 }
 0x446   : > { %12363 = sst [smem:[#allocation115_spill]] %s8986_s26  ;;  %v1126_v48 = vmul.f32 %v12374_v50, %v7779_v6 }
 0x447   : > { %s12368_s25 = sld [smem:[#allocation137_spill]] }
 0x448   : > { %s12369_s11 = sld [smem:[#allocation138_spill]]  ;;  %v12380_v43 = vstv %s12364_s30 }
 0x449   : > { %s9002_s7 = sld [smem:[#allocation12 + $0x7]]  ;;  %v1132_v2 = vmul.f32 %v12380_v43, %v7779_v6  ;;  %v12382_v38 = vstv %s12365_s17 }
 0x44a   : > { %s12371_s10 = sld [smem:[#allocation104_spill]]  ;;  %v1138_v56 = vmul.f32 %v12382_v38, %v7779_v6  ;;  %v12385_v13 = vstv %s12366_s23 }
 0x44b   : > { %s12373_s22 = sld [smem:[#allocation105_spill]]  ;;  %v1144_v44 = vmul.f32 %v12385_v13, %v7779_v6  ;;  %v9033_v14 = vld [vmem:[%s12367_s15] sm:$0xff]  ;;  %v9039_v61 = vld [vmem:[%s12367_s15 + $0x10] sm:$0xff]  ;;  %v2555_v6 = vmul.f32 %v11458_v52, %v9015_v20  ;;  %v2561_v13 = vmul.f32 %v11459_v53, %v9015_v20  ;;  %v9073_v52 = vadd.f32 %v1126_v48, %v8691_v59 }
 0x44c   : > { %s12375_s16 = sld [smem:[#allocation106_spill]]  ;;  %v12396_v53 = vld [vmem:[#allocation241_spill] sm:$0xff] }
 0x44d   : > { %s12376_s13 = sld [smem:[#allocation107_spill]]  ;;  %v12386_v26 = vstv %s12368_s25  ;;  %5393 = vtanh.f32 %v12396_v53  ;;  %v2557_v48 = vadd.f32 %v2555_v6, %v8943_v3  ;;  %v9102_v3 = vadd.f32 %v1138_v56, %v8740_v35 }
 0x44e   : > { %s12377_s2 = sld [smem:[#allocation108_spill]]  ;;  %v1274_v49 = vmul.f32 %v9033_v14, %v12386_v26  ;;  %v12387_v50 = vstv %s12369_s11 }
 0x44f   : > { %12370 = sst [smem:[#allocation116_spill]] %s9002_s7  ;;  %v1278_v43 = vmul.f32 %v9039_v61, %v12387_v50  ;;  %v2703_v6 = vadd.f32 %v11475_v9, %v2557_v48 }
 0x450   : > { %s12378_s6 = sld [smem:[#allocation109_spill]]  ;;  %v12388_v38 = vstv %s12371_s10 }
 0x451   : > { %s9018_s27 = sld [smem:[#allocation14 + $0x380]]  ;;  %v2543_v27 = vmul.f32 %v12388_v38, %v9015_v20  ;;  %v12389_v46 = vstv %s12373_s22  ;;  %v1280_v60 = vadd.f32 %v1278_v43, %v1274_v49 }
 0x452   : > { %s12381_s28 = sld [smem:[#allocation151_spill]]  ;;  %v2549_v45 = vmul.f32 %v12389_v46, %v9015_v20  ;;  %v9070_v46 = vadd.f32 %v1120_v32, %v8686_v47 }
 0x453   : > { %s12383_s0 = sld [smem:[#allocation152_spill]]  ;;  %v2545_v59 = vadd.f32 %v2543_v27, %v8938_v28 }
 0x454   : > { %s9027_s20 = sld [smem:[#allocation12 + $0x8]]  ;;  %v12391_v26 = vstv %s12377_s2  ;;  %v2551_v32 = vadd.f32 %v2549_v45, %v8941_v10  ;;  %v11463_v10 = vstv %s9002_s7 }
 0x455   : > { %s12390_s30 = sld [smem:[#allocation142_spill]]  ;;  %v2567_v19 = vmul.f32 %v12391_v26, %v9015_v20  ;;  %v12397_v26 = vstv %s8757_s29 }
 0x456   : > { %v12392_v0 = vstv %s12378_s6  ;;  %s12395_s23 = sld [smem:[#allocation156_spill]]  ;;  %v2667_v43 = vadd.f32 %v11477_v15, %v2551_v32 }
 0x457   : > { %12379 = sst [smem:[#allocation117_spill]] %s9018_s27  ;;  %v2573_v50 = vmul.f32 %v12392_v0, %v9015_v20  ;;  %v2579_v0 = vmul.f32 %v12397_v26, %v9015_v20  ;;  %v2563_v26 = vadd.f32 %v2561_v13, %v8949_v8  ;;  %v9105_v8 = vadd.f32 %v1144_v44, %v8751_v51 }
 0x458   : > { %v12393_v36 = vstv %s12381_s28  ;;  %s9092_s28 = sld [smem:[#allocation14 + $0x400]] }
 0x459   : > { %v1398_v54 = vmul.f32 %v9033_v14, %v12393_v36  ;;  %v12394_v38 = vstv %s12383_s0  ;;  %v9080_v36 = vadd.f32 %v1132_v2, %v8694_v37  ;;  %v2569_v37 = vadd.f32 %v2567_v19, %v8951_v30  ;;  %s12403_s25 = sld [smem:[#allocation178_spill]] }
 0x45a   : > { %12384 = sst [smem:[#allocation118_spill]] %s9027_s20  ;;  %v1402_v5 = vmul.f32 %v9039_v61, %v12394_v38  ;;  %v9083_v38 = vld [vmem:[%s12367_s15 + $0x20] sm:$0xff]  ;;  %v2575_v2 = vadd.f32 %v2573_v50, %v8953_v29  ;;  %v2581_v27 = vadd.f32 %v2579_v0, %v8955_v33  ;;  %v12402_v30 = vstv %s8769_s8 }
 0x45b   : > { %v12398_v63 = vstv %s12390_s30  ;;  %s12401_s15 = sld [smem:[#allocation177_spill]]  ;;  %v2585_v29 = vmul.f32 %v12402_v30, %v9015_v20  ;;  %v11470_v19 = vstv %s9027_s20  ;;  %v2739_v35 = vadd.f32 %v11473_v22, %v2563_v26 }
 0x45c   : > { %v1284_v47 = vmul.f32 %v9083_v38, %v12398_v63  ;;  %v1404_v63 = vadd.f32 %v1402_v5, %v1398_v54  ;;  %v12400_v49 = vstv %s12395_s23  ;;  %v2639_v54 = vadd.f32 %v11478_v18, %v2545_v59  ;;  %s9120_s11 = sld [smem:[#allocation12 + $0x9]] }
 0x45d   : > { %v1408_v28 = vmul.f32 %v9083_v38, %v12400_v49  ;;  %v2775_v51 = vadd.f32 %v11472_v31, %v2569_v37  ;;  %v12405_v33 = vstv %s8947_s18  ;;  %s12406_s17 = sld [smem:[#allocation143_spill]]  ;;  %v9133_v0 = vmul.f32 0.5, %v2667_v43 }
 0x45e   : > { %12399 = sst [smem:[#allocation121_spill]] %s9092_s28  ;;  %v1286_v5 = vadd.f32 %v1284_v47, %v1280_v60  ;;  %v2811_v56 = vadd.f32 %v12405_v33, %v2575_v2  ;;  %v9131_v50 = vmul.f32 0.5, %v2639_v54  ;;  %v9135_v47 = vmul.f32 0.5, %v2703_v6 }
 0x45f   : > { %s9126_s0 = sld [smem:[#allocation14 + $0x480]]  ;;  %v1410_v60 = vadd.f32 %v1408_v28, %v1404_v63  ;;  %v12411_v59 = vstv %s12403_s25  ;;  %v2587_v48 = vadd.f32 %v2585_v29, %v8959_v39  ;;  %v12413_v26 = vstv %s8785_s1 }
 0x460   : > { %s12408_s30 = sld [smem:[#allocation110_spill]]  ;;  %v1526_v32 = vmul.f32 %v9039_v61, %v12411_v59  ;;  %v2591_v37 = vmul.f32 %v12413_v26, %v9015_v20  ;;  %v9146_v2 = vmul.f32 0.5, %v2739_v35  ;;  %v12415_v63 = vstv %s8967_s24 }
 0x461   : > { %v12409_v44 = vstv %s12401_s15  ;;  %s12410_s23 = sld [smem:[#allocation163_spill]]  ;;  %v2847_v49 = vadd.f32 %v12415_v63, %v2581_v27  ;;  %5395 = vtanh.f32 %v9131_v50  ;;  %v9151_v28 = vmul.f32 0.5, %v2775_v51  ;;  %v9176_v63 = vpop.eup %5393 }
 0x462   : > { %12404 = sst [smem:[#allocation68_spill]] %s9120_s11  ;;  %v1522_v13 = vmul.f32 %v9033_v14, %v12409_v44  ;;  %5397 = vtanh.f32 %v9133_v0  ;;  %v9160_v29 = vmul.f32 0.5, %v2811_v56  ;;  %v12420_v33 = vstv %s8803_s21 }
 0x463   : > { %s9137_s9 = sld [smem:[#allocation12 + $0xa]]  ;;  %v12416_v54 = vstv %s12406_s17  ;;  %v2603_v51 = vmul.f32 %v12420_v33, %v9015_v20  ;;  %5399 = vtanh.f32 %v9135_v47  ;;  %v2593_v56 = vadd.f32 %v2591_v37, %v8961_v24 }
 0x464   : > { %s12412_s18 = sld [smem:[#allocation182_spill]]  ;;  %v1290_v43 = vadd.f32 %v12416_v54, %v1286_v5  ;;  %5401 = vtanh.f32 %v9146_v2  ;;  %v2883_v54 = vadd.f32 %v11463_v10, %v2587_v48  ;;  %v1528_v37 = vadd.f32 %v1526_v32, %v1522_v13 }
 0x465   : > { %12407 = sst [smem:[#allocation137_spill]] %s9126_s0  ;;  %5403 = vtanh.f32 %v9151_v28 }
 0x466   : > { %s12414_s15 = sld [smem:[#allocation193_spill]]  ;;  %v12417_v6 = vstv %s12408_s30  ;;  %v9192_v24 = vmul.f32 0.5, %v1290_v43  ;;  %5405 = vtanh.f32 %v9160_v29  ;;  %v9209_v32 = vmul.f32 0.5, %v2883_v54 }
 0x467   : > { %v2597_v39 = vmul.f32 %v12417_v6, %v9015_v20  ;;  %s9162_s25 = sld [smem:[#allocation12 + $0xb]]  ;;  %v12419_v35 = vstv %s12410_s23  ;;  %v12426_v6 = vstv %s8823_s12 }
 0x468   : > { %v1414_v27 = vadd.f32 %v12419_v35, %v1410_v60  ;;  %s12423_s17 = sld [smem:[#allocation194_spill]]  ;;  %v9180_v60 = vmul.f32 0.5, %v2847_v49  ;;  %v2609_v35 = vmul.f32 %v12426_v6, %v9015_v20  ;;  %v11471_v6 = vstv %s9120_s11 }
 0x469   : > { %s12424_s23 = sld [smem:[#allocation112_spill]]  ;;  %v2599_v33 = vadd.f32 %v2597_v39, %v8963_v7  ;;  %v11476_v43 = vstv %s9137_s9  ;;  %v2919_v39 = vadd.f32 %v11470_v19, %v2593_v56 }
 0x46a   : > { %v12421_v44 = vstv %s12412_s18  ;;  %s9184_s18 = sld [smem:[#allocation14 + $0x500]]  ;;  %v9196_v48 = vmul.f32 0.5, %v1414_v27  ;;  %5407 = vtanh.f32 %v9180_v60  ;;  %v2611_v27 = vadd.f32 %v2609_v35, %v8969_v42 }
 0x46b   : > { %v1532_v5 = vmul.f32 %v9083_v38, %v12421_v44  ;;  %s12428_s24 = sld [smem:[#allocation197_spill]]  ;;  %5409 = vtanh.f32 %v9192_v24 }
 0x46c   : > { %v12422_v59 = vstv %s12414_s15  ;;  %s9190_s15 = sld [smem:[#allocation12 + $0xc]]  ;;  %5411 = vtanh.f32 %v9196_v48 }
 0x46d   : > { %12418 = sst [smem:[#allocation138_spill]] %s9162_s25  ;;  %v1646_v26 = vmul.f32 %v9033_v14, %v12422_v59  ;;  %v2605_v59 = vadd.f32 %v2603_v51, %v8965_v21  ;;  %v1534_v21 = vadd.f32 %v1532_v5, %v1528_v37  ;;  %v11479_v54 = vstv %s9162_s25 }
 0x46e   : > { %v12429_v49 = vstv %s12423_s17  ;;  %s12430_s7 = sld [smem:[#allocation113_spill]]  ;;  %5413 = vtanh.f32 %v9209_v32 }
 0x46f   : > { %v1650_v44 = vmul.f32 %v9039_v61, %v12429_v49  ;;  %v12431_v13 = vstv %s12424_s23  ;;  %s12432_s12 = sld [smem:[#allocation114_spill]] }
 0x470   : > { %12425 = sst [smem:[#allocation104_spill]] %s9184_s18  ;;  %v2615_v7 = vmul.f32 %v12431_v13, %v9015_v20  ;;  %v2955_v13 = vadd.f32 %v11471_v6, %v2599_v33 }
 0x471   : > { %s12433_s5 = sld [smem:[#allocation82_spill]]  ;;  %v12436_v51 = vstv %s12428_s24  ;;  %v1652_v42 = vadd.f32 %v1650_v44, %v1646_v26  ;;  %v9242_v26 = vmul.f32 0.5, %v2919_v39 }
 0x472   : > { %12427 = sst [smem:[#allocation105_spill]] %s9190_s15  ;;  %v1656_v49 = vmul.f32 %v9083_v38, %v12436_v51  ;;  %v2991_v51 = vadd.f32 %v11476_v43, %v2605_v59  ;;  %v2617_v6 = vadd.f32 %v2615_v7, %v8971_v62  ;;  %v9253_v43 = vmul.f32 0.5, %v2955_v13 }
 0x473   : > { %s12434_s17 = sld [smem:[#allocation279_spill]]  ;;  %5415 = vtanh.f32 %v9242_v26 }
 0x474   : > { %s9214_s4 = sld [smem:[#allocation12 + $0xd]]  ;;  %v12439_v56 = vstv %s12430_s7  ;;  %v9262_v44 = vmul.f32 0.5, %v2991_v51  ;;  %5417 = vtanh.f32 %v9253_v43 }
 0x475   : > { %s12437_s23 = sld [smem:[#allocation102_spill]]  ;;  %v2621_v35 = vmul.f32 %v12439_v56, %v9015_v20  ;;  %v12441_v5 = vstv %s12432_s12  ;;  %v3027_v56 = vadd.f32 %v11479_v54, %v2611_v27 }
 0x476   : > { %s9223_s20 = sld [smem:[#allocation12 + $0xe]]  ;;  %v2627_v37 = vmul.f32 %v12441_v5, %v9015_v20  ;;  %v11482_v5 = vstv %s9190_s15  ;;  %5419 = vtanh.f32 %v9262_v44 }
 0x477   : > { %s12440_s3 = sld [smem:[#allocation183_spill]]  ;;  %v12443_v19 = vstv %s12433_s5  ;;  %v2623_v18 = vadd.f32 %v2621_v35, %v8973_v1  ;;  %v3063_v13 = vadd.f32 %v11482_v5, %v2617_v6  ;;  %v9273_v35 = vmul.f32 0.5, %v3027_v56 }
 0x478   : > { %s12442_s24 = sld [smem:[#allocation120_spill]]  ;;  %v1770_v33 = vmul.f32 %v9033_v14, %v12443_v19  ;;  %v5396_v19 = vpop.eup %5395  ;;  %v2629_v27 = vadd.f32 %v2627_v37, %v8975_v12 }
 0x479   : > { %v12444_v31 = vstv %s12434_s17  ;;  %s9244_s11 = sld [smem:[#allocation12 + $0xf]]  ;;  %v5398_v15 = vpop.eup %5397  ;;  %v2645_v54 = vadd.f32 1.0, %v5396_v19  ;;  %5421 = vtanh.f32 %v9273_v35 }
 0x47a   : > { %12435 = sst [smem:[#allocation106_spill]] %s9214_s4  ;;  %v2633_v22 = vmul.f32 %v12444_v31, %v9015_v20  ;;  %v1658_v31 = vadd.f32 %v1656_v49, %v1652_v42  ;;  %v2673_v49 = vadd.f32 1.0, %v5398_v15  ;;  %v11491_v37 = vstv %s9214_s4 }
 0x47b   : > { %v12446_v9 = vstv %s12437_s23  ;;  %s9264_s5 = sld [smem:[#allocation14 + $0x580]]  ;;  %v9271_v1 = vmul.f32 %v2645_v54, %v9131_v50 }
 0x47c   : > { %12438 = sst [smem:[#allocation107_spill]] %s9223_s20  ;;  %v1774_v59 = vmul.f32 %v9039_v61, %v12446_v9  ;;  %v5400_v9 = vpop.eup %5399  ;;  %v9277_v19 = vmul.f32 %v2673_v49, %v9133_v0  ;;  %v11490_v15 = vstv %s9223_s20 }
 0x47d   : > { %v12447_v62 = vstv %s12440_s3  ;;  %s12450_s3 = sld [smem:[#allocation280_spill]]  ;;  %v5402_v42 = vpop.eup %5401  ;;  %12452 = vst [vmem:[#allocation256_spill] sm:$0xff] %v9271_v1  ;;  %v2709_v12 = vadd.f32 1.0, %v5400_v9 }
 0x47e   : > { %v1538_v7 = vadd.f32 %v12447_v62, %v1534_v21  ;;  %v12448_v20 = vstv %s12442_s24  ;;  %v2635_v21 = vadd.f32 %v2633_v22, %v8977_v41  ;;  %s12451_s23 = sld [smem:[#allocation282_spill]]  ;;  %v5404_v51 = vpop.eup %5403  ;;  %12454 = vst [vmem:[#allocation273_spill] sm:$0xff] %v9277_v19  ;;  %v2745_v41 = vadd.f32 1.0, %v5402_v42 }
 0x47f   : > { %12445 = sst [smem:[#allocation108_spill]] %s9244_s11  ;;  %v1780_v39 = vmul.f32 %v9083_v38, %v12448_v20  ;;  %v5406_v22 = vpop.eup %5405  ;;  %v9285_v50 = vmul.f32 %v2709_v12, %v9135_v47  ;;  %v2781_v54 = vadd.f32 1.0, %v5404_v51  ;;  %v11489_v49 = vstv %s9244_s11 }
 0x480   : > { %s12453_s24 = sld [smem:[#allocation284_spill]]  ;;  %v9294_v20 = vmul.f32 %v2745_v41, %v9146_v2  ;;  %v2817_v9 = vadd.f32 1.0, %v5406_v22  ;;  %v5408_v42 = vpop.eup %5407  ;;  %v1776_v5 = vadd.f32 %v1774_v59, %v1770_v33  ;;  %v9308_v22 = vmul.f32 0.5, %v3063_v13 }
 0x481   : > { %12449 = sst [smem:[#allocation109_spill]] %s9264_s5  ;;  %12457 = vst [vmem:[#allocation241_spill] sm:$0xff] %v9285_v50  ;;  %v9301_v51 = vmul.f32 %v2781_v54, %v9151_v28  ;;  %v3135_v28 = vadd.f32 %v11490_v15, %v2629_v27 }
 0x482   : > { %s12456_s15 = sld [smem:[#allocation286_spill]]  ;;  %12460 = vst [vmem:[#allocation292_spill] sm:$0xff] %v9294_v20  ;;  %12465 = vst [vmem:[#allocation293_spill] sm:$0xff] %v9308_v22  ;;  %v9321_v54 = vmul.f32 %v2817_v9, %v9160_v29  ;;  %5423 = vtanh.f32 %v9308_v22  ;;  %v1782_v29 = vadd.f32 %v1780_v39, %v1776_v5 }
 0x483   : > { %v12455_v6 = vstv %s12450_s3  ;;  %s9288_s25 = sld [smem:[#allocation14 + $0x600]] }
 0x484   : > { %v2651_v62 = vmul.f32 %v12455_v6, %v9271_v1  ;;  %v12459_v0 = vstv %s12451_s23  ;;  %s12462_s3 = sld [smem:[#allocation288_spill]]  ;;  %v1172_v6 = vadd.f32 1.0, %v9176_v63  ;;  %v3171_v63 = vadd.f32 %v11489_v49, %v2635_v21 }
 0x485   : > { %v2679_v56 = vmul.f32 %v12459_v0, %v9277_v19  ;;  %v5410_v0 = vpop.eup %5409  ;;  %s12464_s23 = sld [smem:[#allocation203_spill]] }
 0x486   : > { %v12461_v47 = vstv %s12453_s24  ;;  %v5412_v30 = vpop.eup %5411  ;;  %v1296_v45 = vadd.f32 1.0, %v5410_v0  ;;  %s12469_s24 = sld [smem:[#allocation125_spill]] }
 0x487   : > { %v2715_v12 = vmul.f32 %v12461_v47, %v9285_v50  ;;  %v2681_v10 = vadd.f32 %v2679_v56, %v2651_v62  ;;  %v3099_v47 = vadd.f32 %v11491_v37, %v2623_v18  ;;  %v2853_v56 = vadd.f32 1.0, %v5408_v42  ;;  %v5414_v13 = vpop.eup %5413  ;;  %s12471_s11 = sld [smem:[#allocation42_spill]] }
 0x488   : > { %v12463_v2 = vstv %s12456_s15  ;;  %s12467_s15 = sld [smem:[#allocation124_spill]]  ;;  %v9326_v18 = vmul.f32 0.5, %v1538_v7  ;;  %v2889_v5 = vadd.f32 1.0, %v5414_v13  ;;  %v5416_v39 = vpop.eup %5415 }
 0x489   : > { %12458 = sst [smem:[#allocation151_spill]] %s9288_s25  ;;  %v2751_v41 = vmul.f32 %v12463_v2, %v9294_v20  ;;  %v2717_v33 = vadd.f32 %v2715_v12, %v2681_v10  ;;  %v9324_v2 = vmul.f32 %v1172_v6, %v12396_v53  ;;  %v1420_v12 = vadd.f32 1.0, %v5412_v30 }
 0x48a   : > { %v12466_v59 = vstv %s12462_s3  ;;  %s12470_s3 = sld [smem:[#allocation126_spill]]  ;;  %v9332_v42 = vmul.f32 0.5, %v3099_v47  ;;  %v9334_v53 = vmul.f32 0.5, %v3135_v28  ;;  %v9336_v6 = vmul.f32 0.5, %v3171_v63 }
 0x48b   : > { %v2787_v62 = vmul.f32 %v12466_v59, %v9301_v51  ;;  %v12468_v27 = vstv %s12464_s23  ;;  %v2753_v10 = vadd.f32 %v2751_v41, %v2717_v33  ;;  %s12472_s20 = sld [smem:[#allocation215_spill]]  ;;  %v9342_v30 = vmul.f32 %v2853_v56, %v9180_v60 }
 0x48c   : > { %v1662_v21 = vadd.f32 %v12468_v27, %v1658_v31  ;;  %12473 = vst [vmem:[#allocation294_spill] sm:$0xff] %v9332_v42  ;;  %12474 = vst [vmem:[#allocation295_spill] sm:$0xff] %v9334_v53  ;;  %s12475_s5 = sld [smem:[#allocation127_spill]]  ;;  %v12478_v31 = vstv %s8957_s19  ;;  %v12482_v28 = vstv %s12469_s24  ;;  %v9351_v33 = vmul.f32 %v1296_v45, %v9192_v24 }
 0x48d   : > { %12476 = vst [vmem:[#allocation296_spill] sm:$0xff] %v9336_v6  ;;  %s12477_s4 = sld [smem:[#allocation128_spill]]  ;;  %v2789_v7 = vadd.f32 %v2787_v62, %v2753_v10  ;;  %v2823_v0 = vmul.f32 %v12478_v31, %v9321_v54  ;;  %v1184_v63 = vmul.f32 %v12482_v28, %v9324_v2  ;;  %v9359_v60 = vmul.f32 %v1420_v12, %v9196_v48 }
 0x48e   : > { %s12479_s23 = sld [smem:[#allocation129_spill]]  ;;  %v12481_v41 = vstv %s12467_s15  ;;  %v9353_v59 = vmul.f32 0.5, %v1662_v21  ;;  %v12484_v56 = vstv %s12471_s11  ;;  %v9388_v15 = vmul.f32 %v2889_v5, %v9209_v32 }
 0x48f   : > { %s12480_s17 = sld [smem:[#allocation216_spill]]  ;;  %v1178_v47 = vmul.f32 %v12481_v41, %v9324_v2  ;;  %v9363_v13 = vadd.f32 %v12484_v56, %v1782_v29  ;;  %v5418_v41 = vpop.eup %5417  ;;  %v2825_v9 = vadd.f32 %v2823_v0, %v2789_v7  ;;  %5425 = vtanh.f32 %v9332_v42 }
 0x490   : > { %v12483_v62 = vstv %s12470_s3  ;;  %s12485_s19 = sld [smem:[#allocation130_spill]]  ;;  %v5420_v56 = vpop.eup %5419  ;;  %12494 = vst [vmem:[#allocation297_spill] sm:$0xff] %v9388_v15  ;;  %v2961_v22 = vadd.f32 1.0, %v5418_v41  ;;  %5427 = vtanh.f32 %v9334_v53 }
 0x491   : > { %v1190_v27 = vmul.f32 %v12483_v62, %v9324_v2  ;;  %v12486_v10 = vstv %s12472_s20  ;;  %s12488_s15 = sld [smem:[#allocation131_spill]]  ;;  %v2997_v42 = vadd.f32 1.0, %v5420_v56  ;;  %5429 = vtanh.f32 %v9336_v6 }
 0x492   : > { %v9368_v31 = vmul.f32 %v9033_v14, %v12486_v10  ;;  %v12487_v45 = vstv %s12475_s5  ;;  %s12490_s3 = sld [smem:[#allocation132_spill]]  ;;  %v12493_v10 = vstv %s8986_s26  ;;  %5431 = vtanh.f32 %v9326_v18 }
 0x493   : > { %v1196_v24 = vmul.f32 %v12487_v45, %v9324_v2  ;;  %v12489_v21 = vstv %s12477_s4  ;;  %v2859_v49 = vmul.f32 %v12493_v10, %v9342_v30  ;;  %v2925_v45 = vadd.f32 1.0, %v5416_v39  ;;  %s12496_s4 = sld [smem:[#allocation133_spill]]  ;;  %v5422_v10 = vpop.eup %5421 }
 0x494   : > { %v1202_v28 = vmul.f32 %v12489_v21, %v9324_v2  ;;  %v12491_v48 = vstv %s12479_s23  ;;  %v1180_v21 = vadd.f32 %v1178_v47, %v8760_v23  ;;  %s12497_s20 = sld [smem:[#allocation134_spill]]  ;;  %v1192_v7 = vadd.f32 %v1190_v27, %v8766_v55 }
 0x495   : > { %v1208_v12 = vmul.f32 %v12491_v48, %v9324_v2  ;;  %v12492_v62 = vstv %s12480_s17  ;;  %v1186_v48 = vadd.f32 %v1184_v63, %v8763_v58  ;;  %v1198_v23 = vadd.f32 %v1196_v24, %v8772_v16  ;;  %s12501_s11 = sld [smem:[#allocation136_spill]] }
 0x496   : > { %v9382_v29 = vmul.f32 %v9039_v61, %v12492_v62  ;;  %v12495_v37 = vstv %s12485_s19  ;;  %s12500_s19 = sld [smem:[#allocation135_spill]]  ;;  %v1204_v58 = vadd.f32 %v1202_v28, %v8775_v11  ;;  %v12502_v47 = vstv %s9018_s27 }
 0x497   : > { %v1214_v62 = vmul.f32 %v12495_v37, %v9324_v2  ;;  %v12498_v0 = vstv %s12488_s15  ;;  %v2861_v37 = vadd.f32 %v2859_v49, %v2825_v9  ;;  %s12503_s17 = sld [smem:[#allocation139_spill]]  ;;  %v2895_v55 = vmul.f32 %v12502_v47, %v9388_v15 }
 0x498   : > { %v1220_v32 = vmul.f32 %v12498_v0, %v9324_v2  ;;  %v12499_v5 = vstv %s12490_s3  ;;  %v9410_v63 = vmul.f32 %v2925_v45, %v9242_v26  ;;  %s12505_s5 = sld [smem:[#allocation140_spill]]  ;;  %v1210_v27 = vadd.f32 %v1208_v12, %v8778_v4  ;;  %v5424_v12 = vpop.eup %5423 }
 0x499   : > { %v1226_v39 = vmul.f32 %v12499_v5, %v9324_v2  ;;  %s12506_s24 = sld [smem:[#allocation141_spill]]  ;;  %v1216_v16 = vadd.f32 %v1214_v62, %v8787_v17  ;;  %v12507_v11 = vstv %s12496_s4  ;;  %v9422_v24 = vmul.f32 %v2961_v22, %v9253_v43 }
 0x49a   : > { %12504 = vst [vmem:[#allocation298_spill] sm:$0xff] %v9410_v63  ;;  %v1232_v41 = vmul.f32 %v12507_v11, %v9324_v2  ;;  %v12508_v49 = vstv %s12497_s20  ;;  %s12509_s23 = sld [smem:[#allocation144_spill]]  ;;  %v3033_v26 = vadd.f32 1.0, %v5422_v10  ;;  %v1222_v28 = vadd.f32 %v1220_v32, %v8792_v57 }
 0x49b   : > { %v1238_v9 = vmul.f32 %v12508_v49, %v9324_v2  ;;  %12510 = vst [vmem:[#allocation299_spill] sm:$0xff] %v9422_v24  ;;  %s12511_s15 = sld [smem:[#allocation145_spill]]  ;;  %v1228_v4 = vadd.f32 %v1226_v39, %v8995_v40  ;;  %v9427_v17 = vmul.f32 %v2997_v42, %v9262_v44  ;;  %v12515_v62 = vstv %s12501_s11 }
 0x49c   : > { %s12512_s3 = sld [smem:[#allocation146_spill]]  ;;  %v12514_v56 = vstv %s12500_s19  ;;  %v1250_v43 = vmul.f32 %v12515_v62, %v9324_v2  ;;  %v2897_v5 = vadd.f32 %v2895_v55, %v2861_v37  ;;  %v12517_v57 = vstv %s9092_s28 }
 0x49d   : > { %12513 = vst [vmem:[#allocation300_spill] sm:$0xff] %v9427_v17  ;;  %v1244_v45 = vmul.f32 %v12514_v56, %v9324_v2  ;;  %v12516_v22 = vstv %s12503_s17  ;;  %v2931_v32 = vmul.f32 %v12517_v57, %v9410_v63  ;;  %s12520_s4 = sld [smem:[#allocation147_spill]]  ;;  %v1234_v10 = vadd.f32 %v1232_v41, %v8999_v34 }
 0x49e   : > { %v1256_v0 = vmul.f32 %v12516_v22, %v9324_v2  ;;  %v12518_v40 = vstv %s12505_s5  ;;  %v1240_v47 = vadd.f32 %v1238_v9, %v9006_v25  ;;  %s12523_s20 = sld [smem:[#allocation148_spill]]  ;;  %v12524_v55 = vstv %s9126_s0 }
 0x49f   : > { %v1262_v39 = vmul.f32 %v12518_v40, %v9324_v2  ;;  %v12519_v44 = vstv %s12506_s24  ;;  %s12525_s19 = sld [smem:[#allocation149_spill]]  ;;  %v2967_v62 = vmul.f32 %v12524_v55, %v9422_v24  ;;  %v9459_v22 = vmul.f32 %v3033_v26, %v9273_v35 }
 0x4a0   : > { %v1268_v42 = vmul.f32 %v12519_v44, %v9324_v2  ;;  %v12521_v11 = vstv %s12509_s23  ;;  %v9461_v2 = vadd.f32 1.0, %v5424_v12  ;;  %s12528_s11 = sld [smem:[#allocation150_spill]]  ;;  %v12529_v41 = vstv %s9184_s18 }
 0x4a1   : > { %v1302_v49 = vmul.f32 %v12521_v11, %v9351_v33  ;;  %v12522_v56 = vstv %s12511_s15  ;;  %12526 = vst [vmem:[#allocation301_spill] sm:$0xff] %v9459_v22  ;;  %s12530_s17 = sld [smem:[#allocation153_spill]]  ;;  %v9469_v9 = vmul.f32 %v12529_v41, %v9427_v17  ;;  %v1246_v57 = vadd.f32 %v1244_v45, %v9070_v46 }
 0x4a2   : > { %v1308_v37 = vmul.f32 %v12522_v56, %v9351_v33  ;;  %v12527_v34 = vstv %s12512_s3  ;;  %s12532_s5 = sld [smem:[#allocation154_spill]]  ;;  %v1252_v40 = vadd.f32 %v1250_v43, %v9073_v52  ;;  %v1258_v35 = vadd.f32 %v1256_v0, %v9080_v36  ;;  %v9485_v43 = vpop.eup %5425 }
 0x4a3   : > { %v1314_v25 = vmul.f32 %v12527_v34, %v9351_v33  ;;  %12531 = vst [vmem:[#allocation302_spill] sm:$0xff] %v9469_v9  ;;  %s12533_s24 = sld [smem:[#allocation155_spill]]  ;;  %v2933_v26 = vadd.f32 %v2931_v32, %v2897_v5  ;;  %v1264_v12 = vadd.f32 %v1262_v39, %v9102_v3  ;;  %v1270_v44 = vadd.f32 %v1268_v42, %v9105_v8 }
 0x4a4   : > { %s12534_s23 = sld [smem:[#allocation157_spill]]  ;;  %v12537_v11 = vstv %s12520_s4  ;;  %v1304_v55 = vadd.f32 %v1302_v49, %v1180_v21  ;;  %v1310_v34 = vadd.f32 %v1308_v37, %v1186_v48  ;;  %v12539_v46 = vstv %s12523_s20 }
 0x4a5   : > { %s12535_s15 = sld [smem:[#allocation158_spill]]  ;;  %v1320_v56 = vmul.f32 %v12537_v11, %v9351_v33  ;;  %v1326_v52 = vmul.f32 %v12539_v46, %v9351_v33  ;;  %v12541_v45 = vstv %s12525_s19  ;;  %v9487_v0 = vadd.f32 %v1314_v25, %v1192_v7  ;;  %v9510_v46 = vpop.eup %5427 }
 0x4a6   : > { %s12536_s3 = sld [smem:[#allocation159_spill]]  ;;  %v1332_v36 = vmul.f32 %v12541_v45, %v9351_v33  ;;  %v12542_v3 = vstv %s12528_s11  ;;  %12552 = vst [vmem:[#allocation303_spill] sm:$0xff] %v9510_v46  ;;  %v9512_v45 = vadd.f32 %v2967_v62, %v2933_v26  ;;  %v9520_v6 = vpop.eup %5429  ;;  %5433 = vtanh.f32 %v9353_v59 }
 0x4a7   : > { %s12538_s18 = sld [smem:[#allocation160_spill]]  ;;  %v1338_v8 = vmul.f32 %v12542_v3, %v9351_v33  ;;  %v12544_v5 = vstv %s12530_s17  ;;  %v1322_v3 = vadd.f32 %v1320_v56, %v1198_v23  ;;  %12555 = vst [vmem:[#allocation304_spill] sm:$0xff] %v9520_v6 }
 0x4a8   : > { %s12540_s0 = sld [smem:[#allocation161_spill]]  ;;  %v1344_v21 = vmul.f32 %v12544_v5, %v9351_v33  ;;  %v12546_v48 = vstv %s12532_s5  ;;  %v1334_v53 = vadd.f32 %v1332_v36, %v1210_v27 }
 0x4a9   : > { %s12543_s28 = sld [smem:[#allocation162_spill]]  ;;  %v1350_v32 = vmul.f32 %v12546_v48, %v9351_v33  ;;  %v12547_v39 = vstv %s12533_s24  ;;  %v1340_v62 = vadd.f32 %v1338_v8, %v1216_v16 }
 0x4aa   : > { %s12545_s4 = sld [smem:[#allocation164_spill]]  ;;  %v1356_v42 = vmul.f32 %v12547_v39, %v9351_v33  ;;  %v12548_v49 = vstv %s12534_s23  ;;  %v9528_v23 = vadd.f32 %v1344_v21, %v1222_v28 }
 0x4ab   : > { %v1362_v37 = vmul.f32 %v12548_v49, %v9351_v33  ;;  %v12549_v7 = vstv %s12535_s15  ;;  %s12550_s20 = sld [smem:[#allocation165_spill]]  ;;  %v1328_v49 = vadd.f32 %v1326_v52, %v1204_v58  ;;  %v9530_v26 = vadd.f32 %v1350_v32, %v1228_v4 }
 0x4ac   : > { %v1368_v25 = vmul.f32 %v12549_v7, %v9351_v33  ;;  %v12551_v41 = vstv %s12536_s3  ;;  %s12558_s19 = sld [smem:[#allocation166_spill]]  ;;  %v9549_v4 = vmul.f32 0.5, %v9363_v13 }
 0x4ad   : > { %v1374_v11 = vmul.f32 %v12551_v41, %v9351_v33  ;;  %v12553_v5 = vstv %s12538_s18  ;;  %s12559_s11 = sld [smem:[#allocation167_spill]]  ;;  %v9537_v58 = vadd.f32 %v1362_v37, %v1240_v47 }
 0x4ae   : > { %v1380_v48 = vmul.f32 %v12553_v5, %v9351_v33  ;;  %v12554_v39 = vstv %s12540_s0  ;;  %s12560_s18 = sld [smem:[#allocation168_spill]]  ;;  %5435 = vtanh.f32 %v9549_v4 }
 0x4af   : > { %v1386_v17 = vmul.f32 %v12554_v39, %v9351_v33  ;;  %v12556_v7 = vstv %s12543_s28  ;;  %v9535_v39 = vadd.f32 %v1356_v42, %v1234_v10  ;;  %s12562_s0 = sld [smem:[#allocation217_spill]]  ;;  %v9541_v27 = vadd.f32 %v1374_v11, %v1252_v40 }
 0x4b0   : > { %v1392_v24 = vmul.f32 %v12556_v7, %v9351_v33  ;;  %v12557_v41 = vstv %s12545_s4  ;;  %s12563_s28 = sld [smem:[#allocation237_spill]]  ;;  %v9539_v33 = vadd.f32 %v1368_v25, %v1246_v57  ;;  %v9543_v16 = vadd.f32 %v1380_v48, %v1258_v35 }
 0x4b1   : > { %v1426_v63 = vmul.f32 %v12557_v41, %v9359_v60  ;;  %v12561_v56 = vstv %s12550_s20  ;;  %s12564_s17 = sld [smem:[#allocation238_spill]]  ;;  %v9545_v28 = vadd.f32 %v1386_v17, %v1264_v12 }
 0x4b2   : > { %v1432_v5 = vmul.f32 %v12561_v56, %v9359_v60  ;;  %s12565_s5 = sld [smem:[#allocation54_spill]]  ;;  %v9551_v10 = vadd.f32 %v1392_v24, %v1270_v44  ;;  %v12569_v57 = vstv %s12558_s19 }
 0x4b3   : > { %s12566_s24 = sld [smem:[#allocation169_spill]]  ;;  %v9553_v47 = vadd.f32 %v1426_v63, %v1304_v55  ;;  %v1438_v40 = vmul.f32 %v12569_v57, %v9359_v60  ;;  %v12570_v35 = vstv %s12559_s11  ;;  %v1900_v63 = vadd.f32 %v9382_v29, %v9368_v31 }
 0x4b4   : > { %s12567_s23 = sld [smem:[#allocation44_spill]]  ;;  %v1444_v52 = vmul.f32 %v12570_v35, %v9359_v60  ;;  %v9561_v17 = vadd.f32 %v1432_v5, %v1310_v34  ;;  %v12573_v12 = vstv %s12560_s18 }
 0x4b5   : > { %s12568_s15 = sld [smem:[#allocation55_spill]]  ;;  %v1450_v13 = vmul.f32 %v12573_v12, %v9359_v60  ;;  %v12575_v24 = vstv %s12562_s0 }
 0x4b6   : > { %s12571_s3 = sld [smem:[#allocation66_spill]]  ;;  %v1904_v44 = vmul.f32 %v9083_v38, %v12575_v24  ;;  %v12577_v55 = vstv %s12563_s28 }
 0x4b7   : > { %s12572_s4 = sld [smem:[#allocation72_spill]]  ;;  %v2018_v36 = vmul.f32 %v9033_v14, %v12577_v55  ;;  %v12579_v8 = vstv %s12564_s17 }
 0x4b8   : > { %s12574_s20 = sld [smem:[#allocation73_spill]]  ;;  %v2022_v34 = vmul.f32 %v9039_v61, %v12579_v8  ;;  %v12581_v21 = vstv %s12565_s5 }
 0x4b9   : > { %s12576_s19 = sld [smem:[#allocation75_spill]]  ;;  %v2142_v32 = vmul.f32 %v9033_v14, %v12581_v21  ;;  %v12582_v42 = vstv %s12566_s24 }
 0x4ba   : > { %s12578_s11 = sld [smem:[#allocation92_spill]]  ;;  %v1456_v37 = vmul.f32 %v12582_v42, %v9359_v60  ;;  %v12584_v31 = vstv %s12567_s23  ;;  %v2024_v48 = vadd.f32 %v2022_v34, %v2018_v36  ;;  %v1906_v42 = vadd.f32 %v1904_v44, %v1900_v63 }
 0x4bb   : > { %s12580_s27 = sld [smem:[#allocation257_spill]]  ;;  %v2028_v29 = vmul.f32 %v9083_v38, %v12584_v31  ;;  %v12586_v25 = vstv %s12568_s15  ;;  %v9626_v63 = vadd.f32 %v1438_v40, %v9487_v0  ;;  %v9628_v44 = vadd.f32 %v1444_v52, %v1322_v3 }
 0x4bc   : > { %s12583_s18 = sld [smem:[#allocation258_spill]]  ;;  %v2146_v11 = vmul.f32 %v9039_v61, %v12586_v25  ;;  %v12589_v7 = vstv %s12571_s3 }
 0x4bd   : > { %s12585_s0 = sld [smem:[#allocation277_spill]]  ;;  %v2152_v41 = vmul.f32 %v9083_v38, %v12589_v7  ;;  %v12591_v56 = vstv %s12572_s4 }
 0x4be   : > { %s12587_s28 = sld [smem:[#allocation170_spill]]  ;;  %v2266_v5 = vmul.f32 %v9033_v14, %v12591_v56  ;;  %v12592_v57 = vstv %s12574_s20  ;;  %v2148_v12 = vadd.f32 %v2146_v11, %v2142_v32 }
 0x4bf   : > { %s9591_s17 = sld [smem:[#allocation14 + $0x1]]  ;;  %v2270_v35 = vmul.f32 %v9039_v61, %v12592_v57  ;;  %v12595_v24 = vstv %s12576_s19 }
 0x4c0   : > { %s12590_s5 = sld [smem:[#allocation278_spill]]  ;;  %v2276_v55 = vmul.f32 %v9083_v38, %v12595_v24  ;;  %v12596_v8 = vstv %s12578_s11  ;;  %v2030_v24 = vadd.f32 %v2028_v29, %v2024_v48  ;;  %v9635_v29 = vadd.f32 %v1450_v13, %v1328_v49 }
 0x4c1   : > { %s12593_s24 = sld [smem:[#allocation171_spill]]  ;;  %v2390_v36 = vmul.f32 %v9033_v14, %v12596_v8  ;;  %v12597_v34 = vstv %s12580_s27  ;;  %v2272_v31 = vadd.f32 %v2270_v35, %v2266_v5 }
 0x4c2   : > { %s9602_s23 = sld [smem:[#allocation14 + $0x81]]  ;;  %v2394_v21 = vmul.f32 %v9039_v61, %v12597_v34  ;;  %v12600_v25 = vstv %s12583_s18 }
 0x4c3   : > { %s12598_s15 = sld [smem:[#allocation172_spill]]  ;;  %v2400_v7 = vmul.f32 %v9083_v38, %v12600_v25  ;;  %v12602_v56 = vstv %s12585_s0  ;;  %v2278_v40 = vadd.f32 %v2276_v55, %v2272_v31  ;;  %v5432_v55 = vpop.eup %5431 }
 0x4c4   : > { %s12599_s3 = sld [smem:[#allocation173_spill]]  ;;  %v2514_v32 = vmul.f32 %v9033_v14, %v12602_v56  ;;  %v12603_v11 = vstv %s12587_s28  ;;  %v2396_v8 = vadd.f32 %v2394_v21, %v2390_v36  ;;  %v2154_v14 = vadd.f32 %v2152_v41, %v2148_v12 }
 0x4c5   : > { %12588 = sst [smem:[#allocation152_spill]] %s9591_s17  ;;  %v1462_v57 = vmul.f32 %v12603_v11, %v9359_v60  ;;  %v9648_v21 = vadd.f32 %v1456_v37, %v1334_v53 }
 0x4c6   : > { %s12601_s4 = sld [smem:[#allocation223_spill]]  ;;  %v12605_v6 = vstv %s12590_s5  ;;  %v2402_v36 = vadd.f32 %v2400_v7, %v2396_v8  ;;  %v11515_v7 = vstv %s9591_s17 }
 0x4c7   : > { %s12604_s20 = sld [smem:[#allocation95_spill]]  ;;  %v2518_v46 = vmul.f32 %v9039_v61, %v12605_v6  ;;  %v12608_v5 = vstv %s12593_s24  ;;  %v9650_v49 = vadd.f32 %v1462_v57, %v1340_v62 }
 0x4c8   : > { %12594 = sst [smem:[#allocation142_spill]] %s9602_s23  ;;  %v1468_v35 = vmul.f32 %v12608_v5, %v9359_v60 }
 0x4c9   : > { %s12606_s27 = sld [smem:[#allocation174_spill]]  ;;  %v12611_v48 = vstv %s12598_s15  ;;  %v2520_v41 = vadd.f32 %v2518_v46, %v2514_v32  ;;  %v1544_v32 = vadd.f32 1.0, %v5432_v55 }
 0x4ca   : > { %s12607_s19 = sld [smem:[#allocation45_spill]]  ;;  %v1474_v61 = vmul.f32 %v12611_v48, %v9359_v60  ;;  %v12612_v6 = vstv %s12599_s3  ;;  %v9658_v31 = vadd.f32 %v1468_v35, %v9528_v23 }
 0x4cb   : > { %s12609_s11 = sld [smem:[#allocation242_spill]]  ;;  %v1480_v0 = vmul.f32 %v12612_v6, %v9359_v60  ;;  %v2655_v6 = vmul.f32 %v11515_v7, %v9271_v1 }
 0x4cc   : > { %s9633_s18 = sld [smem:[#allocation14 + $0x101]]  ;;  %v12613_v3 = vstv %s12601_s4  ;;  %v9667_v53 = vadd.f32 %v1474_v61, %v9530_v26 }
 0x4cd   : > { %s12614_s0 = sld [smem:[#allocation175_spill]]  ;;  %v1910_v52 = vadd.f32 %v12613_v3, %v1906_v42  ;;  %v12616_v12 = vstv %s12604_s20  ;;  %v9675_v8 = vadd.f32 %v1480_v0, %v9535_v39 }
 0x4ce   : > { %s12615_s28 = sld [smem:[#allocation76_spill]]  ;;  %v2524_v34 = vmul.f32 %v9083_v38, %v12616_v12  ;;  %v11514_v38 = vstv %s9602_s23 }
 0x4cf   : > { %v12617_v13 = vstv %s12606_s27  ;;  %s12618_s5 = sld [smem:[#allocation264_spill]]  ;;  %v9677_v5 = vmul.f32 0.5, %v1910_v52 }
 0x4d0   : > { %v1486_v25 = vmul.f32 %v12617_v13, %v9359_v60  ;;  %v12619_v56 = vstv %s12607_s19  ;;  %s12621_s24 = sld [smem:[#allocation176_spill]]  ;;  %v2526_v48 = vadd.f32 %v2524_v34, %v2520_v41 }
 0x4d1   : > { %v2034_v11 = vadd.f32 %v12619_v56, %v2030_v24  ;;  %v12620_v42 = vstv %s12609_s11  ;;  %s9664_s15 = sld [smem:[#allocation14 + $0x181]]  ;;  %v5434_v24 = vpop.eup %5433  ;;  %v1546_v56 = vmul.f32 %v1544_v32, %v9326_v18  ;;  %5437 = vtanh.f32 %v9677_v5 }
 0x4d2   : > { %12610 = sst [smem:[#allocation156_spill]] %s9633_s18  ;;  %v2158_v46 = vadd.f32 %v12620_v42, %v2154_v14  ;;  %v9682_v26 = vadd.f32 %v1486_v25, %v9537_v58  ;;  %v5436_v3 = vpop.eup %5435  ;;  %v11513_v58 = vstv %s9633_s18  ;;  %v1668_v55 = vadd.f32 1.0, %v5434_v24 }
 0x4d3   : > { %s12623_s3 = sld [smem:[#allocation179_spill]]  ;;  %v12624_v62 = vstv %s12614_s0  ;;  %v9684_v61 = vmul.f32 0.5, %v2034_v11  ;;  %v2721_v18 = vmul.f32 %v11513_v58, %v9285_v50 }
 0x4d4   : > { %v1492_v37 = vmul.f32 %v12624_v62, %v9359_v60  ;;  %v12625_v23 = vstv %s12615_s28  ;;  %s12626_s4 = sld [smem:[#allocation180_spill]]  ;;  %v9698_v41 = vmul.f32 0.5, %v2158_v46 }
 0x4d5   : > { %v2282_v57 = vadd.f32 %v12625_v23, %v2278_v40  ;;  %s12627_s20 = sld [smem:[#allocation181_spill]]  ;;  %v12628_v35 = vstv %s12618_s5  ;;  %v2685_v40 = vmul.f32 %v11514_v38, %v9277_v19  ;;  %5439 = vtanh.f32 %v9684_v61 }
 0x4d6   : > { %v2406_v14 = vadd.f32 %v12628_v35, %v2402_v36  ;;  %s12629_s27 = sld [smem:[#allocation99_spill]]  ;;  %v12630_v39 = vstv %s12621_s24  ;;  %v1494_v23 = vadd.f32 %v1492_v37, %v9539_v33  ;;  %5441 = vtanh.f32 %v9698_v41 }
 0x4d7   : > { %12622 = sst [smem:[#allocation177_spill]] %s9664_s15  ;;  %v1498_v0 = vmul.f32 %v12630_v39, %v9359_v60  ;;  %v9710_v11 = vmul.f32 0.5, %v2282_v57  ;;  %v2687_v35 = vadd.f32 %v2685_v40, %v2655_v6  ;;  %v11512_v57 = vstv %s9664_s15 }
 0x4d8   : > { %s9701_s19 = sld [smem:[#allocation14 + $0x201]]  ;;  %v9713_v42 = vmul.f32 0.5, %v2406_v14 }
 0x4d9   : > { %v12631_v52 = vstv %s12623_s3  ;;  %s12634_s11 = sld [smem:[#allocation184_spill]]  ;;  %5443 = vtanh.f32 %v9710_v11  ;;  %v9741_v39 = vadd.f32 %v2721_v18, %v2687_v35 }
 0x4da   : > { %v1504_v36 = vmul.f32 %v12631_v52, %v9359_v60  ;;  %v12632_v12 = vstv %s12626_s4  ;;  %s12636_s0 = sld [smem:[#allocation185_spill]]  ;;  %5445 = vtanh.f32 %v9713_v42 }
 0x4db   : > { %v1510_v34 = vmul.f32 %v12632_v12, %v9359_v60  ;;  %v12633_v13 = vstv %s12627_s20  ;;  %s12637_s28 = sld [smem:[#allocation186_spill]] }
 0x4dc   : > { %v1516_v25 = vmul.f32 %v12633_v13, %v9359_v60  ;;  %v12635_v46 = vstv %s12629_s27  ;;  %v1500_v60 = vadd.f32 %v1498_v0, %v9541_v27  ;;  %s12638_s5 = sld [smem:[#allocation187_spill]]  ;;  %v1506_v32 = vadd.f32 %v1504_v36, %v9543_v16 }
 0x4dd   : > { %v2530_v62 = vadd.f32 %v12635_v46, %v2526_v48  ;;  %s12639_s24 = sld [smem:[#allocation188_spill]]  ;;  %v1512_v33 = vadd.f32 %v1510_v34, %v9545_v28  ;;  %v9732_v27 = vmul.f32 %v1668_v55, %v9353_v59  ;;  %v1792_v16 = vadd.f32 1.0, %v5436_v3 }
 0x4de   : > { %s12640_s3 = sld [smem:[#allocation189_spill]]  ;;  %v1518_v37 = vadd.f32 %v1516_v25, %v9551_v10  ;;  %v9746_v59 = vmul.f32 %v11512_v57, %v9294_v20 }
 0x4df   : > { %v12641_v24 = vstv %s12634_s11  ;;  %s12642_s4 = sld [smem:[#allocation190_spill]]  ;;  %v9735_v48 = vmul.f32 0.5, %v2530_v62 }
 0x4e0   : > { %v1550_v14 = vmul.f32 %v12641_v24, %v1546_v56  ;;  %s12643_s20 = sld [smem:[#allocation191_spill]]  ;;  %v12648_v28 = vstv %s12636_s0 }
 0x4e1   : > { %s12644_s27 = sld [smem:[#allocation192_spill]]  ;;  %v1556_v10 = vmul.f32 %v12648_v28, %v1546_v56  ;;  %v12650_v6 = vstv %s12637_s28  ;;  %5447 = vtanh.f32 %v9735_v48 }
 0x4e2   : > { %s12645_s18 = sld [smem:[#allocation195_spill]]  ;;  %v1562_v40 = vmul.f32 %v12650_v6, %v1546_v56  ;;  %v12652_v0 = vstv %s12638_s5  ;;  %v1552_v25 = vadd.f32 %v1550_v14, %v9553_v47 }
 0x4e3   : > { %s12646_s23 = sld [smem:[#allocation196_spill]]  ;;  %v1568_v3 = vmul.f32 %v12652_v0, %v1546_v56  ;;  %v12654_v52 = vstv %s12639_s24 }
 0x4e4   : > { %s12647_s17 = sld [smem:[#allocation198_spill]]  ;;  %v1574_v36 = vmul.f32 %v12654_v52, %v1546_v56  ;;  %v12655_v12 = vstv %s12640_s3  ;;  %v1564_v13 = vadd.f32 %v1562_v40, %v9626_v63 }
 0x4e5   : > { %s12649_s26 = sld [smem:[#allocation199_spill]]  ;;  %v1580_v34 = vmul.f32 %v12655_v12, %v1546_v56  ;;  %v12657_v55 = vstv %s12642_s4  ;;  %v1558_v12 = vadd.f32 %v1556_v10, %v9561_v17 }
 0x4e6   : > { %s12651_s11 = sld [smem:[#allocation200_spill]]  ;;  %v1586_v46 = vmul.f32 %v12657_v55, %v1546_v56  ;;  %v12658_v62 = vstv %s12643_s20 }
 0x4e7   : > { %s12653_s25 = sld [smem:[#allocation201_spill]]  ;;  %v1592_v35 = vmul.f32 %v12658_v62, %v1546_v56  ;;  %v12659_v18 = vstv %s12644_s27  ;;  %v1570_v62 = vadd.f32 %v1568_v3, %v9628_v44  ;;  %v5438_v3 = vpop.eup %5437 }
 0x4e8   : > { %s12656_s0 = sld [smem:[#allocation202_spill]]  ;;  %v1598_v24 = vmul.f32 %v12659_v18, %v1546_v56  ;;  %v12660_v28 = vstv %s12645_s18  ;;  %v1576_v18 = vadd.f32 %v1574_v36, %v9635_v29 }
 0x4e9   : > { %s12661_s28 = sld [smem:[#allocation204_spill]]  ;;  %v1604_v6 = vmul.f32 %v12660_v28, %v1546_v56  ;;  %v12662_v57 = vstv %s12646_s23  ;;  %v1594_v17 = vadd.f32 %v1592_v35, %v9658_v31 }
 0x4ea   : > { %v1610_v58 = vmul.f32 %v12662_v57, %v1546_v56  ;;  %v12663_v0 = vstv %s12647_s17  ;;  %s12667_s5 = sld [smem:[#allocation205_spill]]  ;;  %v1582_v57 = vadd.f32 %v1580_v34, %v9648_v21  ;;  %v1600_v63 = vadd.f32 %v1598_v24, %v9667_v53 }
 0x4eb   : > { %v1616_v38 = vmul.f32 %v12663_v0, %v1546_v56  ;;  %v12664_v52 = vstv %s12649_s26  ;;  %s12668_s18 = sld [smem:[#allocation206_spill]]  ;;  %v1606_v44 = vadd.f32 %v1604_v6, %v9675_v8  ;;  %v5440_v8 = vpop.eup %5439 }
 0x4ec   : > { %v1622_v7 = vmul.f32 %v12664_v52, %v1546_v56  ;;  %v12665_v47 = vstv %s12651_s11  ;;  %s12670_s26 = sld [smem:[#allocation207_spill]]  ;;  %v1588_v52 = vadd.f32 %v1586_v46, %v9650_v49  ;;  %v1612_v29 = vadd.f32 %v1610_v58, %v9682_v26 }
 0x4ed   : > { %v1628_v14 = vmul.f32 %v12665_v47, %v1546_v56  ;;  %v12666_v55 = vstv %s12653_s25  ;;  %s12671_s17 = sld [smem:[#allocation39_spill]]  ;;  %v1618_v21 = vadd.f32 %v1616_v38, %v1494_v23 }
 0x4ee   : > { %v1634_v20 = vmul.f32 %v12666_v55, %v1546_v56  ;;  %v12669_v28 = vstv %s12656_s0  ;;  %s12672_s23 = sld [smem:[#allocation40_spill]] }
 0x4ef   : > { %v1640_v0 = vmul.f32 %v12669_v28, %v1546_v56  ;;  %v12673_v10 = vstv %s12661_s28  ;;  %s12674_s25 = sld [smem:[#allocation59_spill]]  ;;  %v1624_v56 = vadd.f32 %v1622_v7, %v1500_v60  ;;  %v1630_v49 = vadd.f32 %v1628_v14, %v1506_v32  ;;  %v5442_v60 = vpop.eup %5441 }
 0x4f0   : > { %v1674_v40 = vmul.f32 %v12673_v10, %v9732_v27  ;;  %s12675_s24 = sld [smem:[#allocation60_spill]]  ;;  %v1636_v31 = vadd.f32 %v1634_v20, %v1512_v33  ;;  %v12679_v36 = vstv %s12667_s5  ;;  %v5444_v55 = vpop.eup %5443 }
 0x4f1   : > { %s12676_s3 = sld [smem:[#allocation80_spill]]  ;;  %v1680_v53 = vmul.f32 %v12679_v36, %v9732_v27  ;;  %v12681_v34 = vstv %s12668_s18  ;;  %v1642_v35 = vadd.f32 %v1640_v0, %v1518_v37 }
 0x4f2   : > { %s12677_s4 = sld [smem:[#allocation81_spill]]  ;;  %v1686_v46 = vmul.f32 %v12681_v34, %v9732_v27  ;;  %v12682_v26 = vstv %s12670_s26  ;;  %v1676_v32 = vadd.f32 %v1674_v40, %v1552_v25  ;;  %v1794_v40 = vmul.f32 %v1792_v16, %v9549_v4 }
 0x4f3   : > { %s12678_s20 = sld [smem:[#allocation41_spill]]  ;;  %v1692_v38 = vmul.f32 %v12682_v26, %v9732_v27  ;;  %v12684_v7 = vstv %s12671_s17  ;;  %v5446_v26 = vpop.eup %5445 }
 0x4f4   : > { %s12680_s27 = sld [smem:[#allocation100_spill]]  ;;  %v1698_v58 = vmul.f32 %v12684_v7, %v9732_v27  ;;  %v12686_v23 = vstv %s12672_s23  ;;  %v1682_v7 = vadd.f32 %v1680_v53, %v1558_v12  ;;  %v1688_v19 = vadd.f32 %v1686_v46, %v1564_v13 }
 0x4f5   : > { %s12683_s11 = sld [smem:[#allocation101_spill]]  ;;  %v1704_v20 = vmul.f32 %v12686_v23, %v9732_v27  ;;  %v12688_v33 = vstv %s12674_s25  ;;  %v1694_v1 = vadd.f32 %v1692_v38, %v1570_v62 }
 0x4f6   : > { %s12685_s0 = sld [smem:[#allocation61_spill]]  ;;  %v1710_v24 = vmul.f32 %v12688_v33, %v9732_v27  ;;  %v12689_v6 = vstv %s12675_s24 }
 0x4f7   : > { %s12687_s28 = sld [smem:[#allocation208_spill]]  ;;  %v1716_v37 = vmul.f32 %v12689_v6, %v9732_v27  ;;  %v12690_v47 = vstv %s12676_s3  ;;  %v1706_v15 = vadd.f32 %v1704_v20, %v1582_v57  ;;  %v1916_v57 = vadd.f32 1.0, %v5438_v3 }
 0x4f8   : > { %v1722_v14 = vmul.f32 %v12690_v47, %v9732_v27  ;;  %v12691_v28 = vstv %s12677_s4  ;;  %s12693_s5 = sld [smem:[#allocation119_spill]]  ;;  %v1712_v22 = vadd.f32 %v1710_v24, %v1588_v52  ;;  %v2040_v52 = vadd.f32 1.0, %v5440_v8 }
 0x4f9   : > { %v1728_v0 = vmul.f32 %v12691_v28, %v9732_v27  ;;  %v12692_v10 = vstv %s12678_s20  ;;  %s12695_s18 = sld [smem:[#allocation62_spill]] }
 0x4fa   : > { %v1734_v36 = vmul.f32 %v12692_v10, %v9732_v27  ;;  %v12694_v34 = vstv %s12680_s27  ;;  %v1700_v10 = vadd.f32 %v1698_v58, %v1576_v18  ;;  %s12699_s26 = sld [smem:[#allocation83_spill]]  ;;  %v1724_v4 = vadd.f32 %v1722_v14, %v1600_v63 }
 0x4fb   : > { %v1740_v25 = vmul.f32 %v12694_v34, %v9732_v27  ;;  %v12696_v23 = vstv %s12683_s11  ;;  %v1718_v34 = vadd.f32 %v1716_v37, %v1594_v17  ;;  %s12701_s17 = sld [smem:[#allocation122_spill]]  ;;  %v1730_v53 = vadd.f32 %v1728_v0, %v1606_v44 }
 0x4fc   : > { %v1746_v33 = vmul.f32 %v12696_v23, %v9732_v27  ;;  %v12697_v6 = vstv %s12685_s0  ;;  %s12702_s23 = sld [smem:[#allocation103_spill]]  ;;  %v1736_v23 = vadd.f32 %v1734_v36, %v1612_v29  ;;  %v2288_v17 = vadd.f32 1.0, %v5444_v55 }
 0x4fd   : > { %v1752_v47 = vmul.f32 %v12697_v6, %v9732_v27  ;;  %v12698_v28 = vstv %s12687_s28  ;;  %s12703_s25 = sld [smem:[#allocation209_spill]]  ;;  %v1742_v6 = vadd.f32 %v1740_v25, %v1618_v21  ;;  %v2412_v63 = vadd.f32 1.0, %v5446_v26 }
 0x4fe   : > { %v1758_v50 = vmul.f32 %v12698_v28, %v9732_v27  ;;  %v12700_v16 = vstv %s12693_s5  ;;  %s12705_s24 = sld [smem:[#allocation210_spill]]  ;;  %v1748_v13 = vadd.f32 %v1746_v33, %v1624_v56 }
 0x4ff   : > { %v1764_v12 = vmul.f32 %v12700_v16, %v9732_v27  ;;  %v12704_v9 = vstv %s12695_s18  ;;  %s12706_s3 = sld [smem:[#allocation211_spill]]  ;;  %v1754_v62 = vadd.f32 %v1752_v47, %v1630_v49  ;;  %v2164_v27 = vadd.f32 1.0, %v5442_v60 }
 0x500   : > { %v1798_v28 = vmul.f32 %v12704_v9, %v1794_v40  ;;  %s12707_s4 = sld [smem:[#allocation212_spill]]  ;;  %v1760_v18 = vadd.f32 %v1758_v50, %v1636_v31  ;;  %v12714_v29 = vstv %s12699_s26 }
 0x501   : > { %s12708_s20 = sld [smem:[#allocation213_spill]]  ;;  %v1766_v44 = vadd.f32 %v1764_v12, %v1642_v35  ;;  %v1804_v21 = vmul.f32 %v12714_v29, %v1794_v40  ;;  %v12715_v9 = vstv %s12701_s17  ;;  %v1918_v12 = vmul.f32 %v1916_v57, %v9677_v5 }
 0x502   : > { %s12709_s27 = sld [smem:[#allocation123_spill]]  ;;  %v1810_v46 = vmul.f32 %v12715_v9, %v1794_v40  ;;  %v12716_v56 = vstv %s12702_s23  ;;  %v1800_v49 = vadd.f32 %v1798_v28, %v1676_v32 }
 0x503   : > { %s12710_s11 = sld [smem:[#allocation214_spill]]  ;;  %v1816_v38 = vmul.f32 %v12716_v56, %v1794_v40  ;;  %v12718_v50 = vstv %s12703_s25  ;;  %v1806_v28 = vadd.f32 %v1804_v21, %v1682_v7 }
 0x504   : > { %s12711_s0 = sld [smem:[#allocation218_spill]]  ;;  %v1822_v31 = vmul.f32 %v12718_v50, %v1794_v40  ;;  %v12719_v3 = vstv %s12705_s24  ;;  %v1812_v29 = vadd.f32 %v1810_v46, %v1688_v19 }
 0x505   : > { %s12712_s28 = sld [smem:[#allocation219_spill]]  ;;  %v1828_v58 = vmul.f32 %v12719_v3, %v1794_v40  ;;  %v12720_v8 = vstv %s12706_s3  ;;  %v1818_v9 = vadd.f32 %v1816_v38, %v1694_v1 }
 0x506   : > { %s12713_s5 = sld [smem:[#allocation220_spill]]  ;;  %v1834_v20 = vmul.f32 %v12720_v8, %v1794_v40  ;;  %v12721_v60 = vstv %s12707_s4  ;;  %v1824_v3 = vadd.f32 %v1822_v31, %v1700_v10 }
 0x507   : > { %s12717_s18 = sld [smem:[#allocation221_spill]]  ;;  %v1840_v24 = vmul.f32 %v12721_v60, %v1794_v40  ;;  %v12723_v37 = vstv %s12708_s20  ;;  %v1830_v8 = vadd.f32 %v1828_v58, %v1706_v15 }
 0x508   : > { %s12722_s15 = sld [smem:[#allocation222_spill]]  ;;  %v1846_v14 = vmul.f32 %v12723_v37, %v1794_v40  ;;  %v12724_v35 = vstv %s12709_s27  ;;  %v1836_v60 = vadd.f32 %v1834_v20, %v1712_v22 }
 0x509   : > { %v1852_v55 = vmul.f32 %v12724_v35, %v1794_v40  ;;  %v12725_v0 = vstv %s12710_s11  ;;  %s12729_s26 = sld [smem:[#allocation224_spill]] }
 0x50a   : > { %v1858_v36 = vmul.f32 %v12725_v0, %v1794_v40  ;;  %v12726_v25 = vstv %s12711_s0  ;;  %s12730_s17 = sld [smem:[#allocation225_spill]]  ;;  %v1842_v0 = vadd.f32 %v1840_v24, %v1718_v34 }
 0x50b   : > { %v1864_v26 = vmul.f32 %v12726_v25, %v1794_v40  ;;  %v12727_v33 = vstv %s12712_s28  ;;  %s12732_s23 = sld [smem:[#allocation226_spill]]  ;;  %v1848_v25 = vadd.f32 %v1846_v14, %v1724_v4  ;;  %v1854_v5 = vadd.f32 %v1852_v55, %v1730_v53 }
 0x50c   : > { %v1870_v47 = vmul.f32 %v12727_v33, %v1794_v40  ;;  %v12728_v32 = vstv %s12713_s5  ;;  %s12733_s25 = sld [smem:[#allocation227_spill]]  ;;  %v1860_v57 = vadd.f32 %v1858_v36, %v1736_v23 }
 0x50d   : > { %v1876_v16 = vmul.f32 %v12728_v32, %v1794_v40  ;;  %v12731_v56 = vstv %s12717_s18  ;;  %s12734_s24 = sld [smem:[#allocation228_spill]]  ;;  %v1866_v7 = vadd.f32 %v1864_v26, %v1742_v6 }
 0x50e   : > { %v1882_v50 = vmul.f32 %v12731_v56, %v1794_v40  ;;  %v12735_v37 = vstv %s12722_s15  ;;  %s12736_s3 = sld [smem:[#allocation229_spill]]  ;;  %v1872_v19 = vadd.f32 %v1870_v47, %v1748_v13  ;;  %v2042_v13 = vmul.f32 %v2040_v52, %v9684_v61 }
 0x50f   : > { %v1888_v35 = vmul.f32 %v12735_v37, %v1794_v40  ;;  %s12737_s4 = sld [smem:[#allocation230_spill]]  ;;  %v1878_v1 = vadd.f32 %v1876_v16, %v1754_v62  ;;  %v12739_v21 = vstv %s12729_s26  ;;  %v9884_v62 = vmul.f32 %v2164_v27, %v9698_v41 }
 0x510   : > { %s12738_s20 = sld [smem:[#allocation231_spill]]  ;;  %v1922_v46 = vmul.f32 %v12739_v21, %v1918_v12  ;;  %v1884_v38 = vadd.f32 %v1882_v50, %v1760_v18  ;;  %v12740_v33 = vstv %s12730_s17  ;;  %v9887_v18 = vmul.f32 %v2288_v17, %v9710_v11 }
 0x511   : > { %v1928_v10 = vmul.f32 %v12740_v33, %v1918_v12  ;;  %v12741_v15 = vstv %s12732_s23  ;;  %s12743_s15 = sld [smem:[#allocation232_spill]]  ;;  %v1890_v40 = vadd.f32 %v1888_v35, %v1766_v44  ;;  %v9890_v44 = vmul.f32 %v2412_v63, %v9713_v42 }
 0x512   : > { %v1934_v31 = vmul.f32 %v12741_v15, %v1918_v12  ;;  %v12742_v22 = vstv %s12733_s25  ;;  %s12747_s27 = sld [smem:[#allocation233_spill]]  ;;  %v1924_v24 = vadd.f32 %v1922_v46, %v1800_v49  ;;  %v9897_v61 = vadd.f32 %v9746_v59, %v9741_v39 }
 0x513   : > { %v1940_v58 = vmul.f32 %v12742_v22, %v1918_v12  ;;  %v12744_v20 = vstv %s12734_s24  ;;  %s12748_s11 = sld [smem:[#allocation234_spill]]  ;;  %v1930_v41 = vadd.f32 %v1928_v10, %v1806_v28 }
 0x514   : > { %v1946_v34 = vmul.f32 %v12744_v20, %v1918_v12  ;;  %v12745_v4 = vstv %s12736_s3  ;;  %s12749_s0 = sld [smem:[#allocation235_spill]]  ;;  %v1936_v11 = vadd.f32 %v1934_v31, %v1812_v29 }
 0x515   : > { %v1952_v53 = vmul.f32 %v12745_v4, %v1918_v12  ;;  %v12746_v23 = vstv %s12737_s4  ;;  %s12750_s28 = sld [smem:[#allocation236_spill]]  ;;  %v1942_v52 = vadd.f32 %v1940_v58, %v1818_v9 }
 0x516   : > { %v1958_v6 = vmul.f32 %v12746_v23, %v1918_v12  ;;  %s12751_s5 = sld [smem:[#allocation239_spill]]  ;;  %v12752_v14 = vstv %s12738_s20  ;;  %v1948_v17 = vadd.f32 %v1946_v34, %v1824_v3 }
 0x517   : > { %v1964_v55 = vmul.f32 %v12752_v14, %v1918_v12  ;;  %s12753_s18 = sld [smem:[#allocation240_spill]]  ;;  %v12757_v27 = vstv %s12743_s15  ;;  %v1954_v63 = vadd.f32 %v1952_v53, %v1830_v8 }
 0x518   : > { %s12754_s26 = sld [smem:[#allocation43_spill]]  ;;  %v1970_v42 = vmul.f32 %v12757_v27, %v1918_v12  ;;  %v1960_v49 = vadd.f32 %v1958_v6, %v1836_v60  ;;  %v12761_v36 = vstv %s12747_s27 }
 0x519   : > { %s12755_s17 = sld [smem:[#allocation46_spill]]  ;;  %v1976_v26 = vmul.f32 %v12761_v36, %v1918_v12  ;;  %v12763_v47 = vstv %s12748_s11  ;;  %v1966_v56 = vadd.f32 %v1964_v55, %v1842_v0 }
 0x51a   : > { %s12756_s23 = sld [smem:[#allocation47_spill]]  ;;  %v1982_v39 = vmul.f32 %v12763_v47, %v1918_v12  ;;  %v12765_v59 = vstv %s12749_s0  ;;  %v1972_v60 = vadd.f32 %v1970_v42, %v1848_v25 }
 0x51b   : > { %s12758_s25 = sld [smem:[#allocation48_spill]]  ;;  %v1988_v32 = vmul.f32 %v12765_v59, %v1918_v12  ;;  %v12766_v16 = vstv %s12750_s28  ;;  %v1978_v58 = vadd.f32 %v1976_v26, %v1854_v5 }
 0x51c   : > { %s12759_s24 = sld [smem:[#allocation49_spill]]  ;;  %v1994_v28 = vmul.f32 %v12766_v16, %v1918_v12  ;;  %v12767_v29 = vstv %s12751_s5 }
 0x51d   : > { %s12760_s3 = sld [smem:[#allocation50_spill]]  ;;  %v2000_v9 = vmul.f32 %v12767_v29, %v1918_v12  ;;  %v12768_v50 = vstv %s12753_s18  ;;  %v1990_v6 = vadd.f32 %v1988_v32, %v1866_v7 }
 0x51e   : > { %s12762_s4 = sld [smem:[#allocation51_spill]]  ;;  %v2006_v37 = vmul.f32 %v12768_v50, %v1918_v12  ;;  %v12769_v35 = vstv %s12754_s26  ;;  %v1996_v25 = vadd.f32 %v1994_v28, %v1872_v19 }
 0x51f   : > { %s12764_s20 = sld [smem:[#allocation63_spill]]  ;;  %v2012_v3 = vmul.f32 %v12769_v35, %v1918_v12  ;;  %v12770_v8 = vstv %s12755_s17  ;;  %v1984_v12 = vadd.f32 %v1982_v39, %v1860_v57  ;;  %v2002_v14 = vadd.f32 %v2000_v9, %v1878_v1 }
 0x520   : > { %v2046_v21 = vmul.f32 %v12770_v8, %v2042_v13  ;;  %s12771_s15 = sld [smem:[#allocation64_spill]]  ;;  %v12772_v46 = vstv %s12756_s23  ;;  %v2008_v55 = vadd.f32 %v2006_v37, %v1884_v38 }
 0x521   : > { %v2052_v33 = vmul.f32 %v12772_v46, %v2042_v13  ;;  %v12773_v10 = vstv %s12758_s25  ;;  %s12775_s27 = sld [smem:[#allocation52_spill]]  ;;  %v2014_v27 = vadd.f32 %v2012_v3, %v1890_v40  ;;  %v9950_v3 = vpop.eup %5447 }
 0x522   : > { %v2058_v15 = vmul.f32 %v12773_v10, %v2042_v13  ;;  %v12774_v31 = vstv %s12759_s24  ;;  %s12779_s11 = sld [smem:[#allocation53_spill]]  ;;  %v2048_v42 = vadd.f32 %v2046_v21, %v1924_v24 }
 0x523   : > { %v2064_v22 = vmul.f32 %v12774_v31, %v2042_v13  ;;  %v12776_v20 = vstv %s12760_s3  ;;  %s12780_s0 = sld [smem:[#allocation65_spill]]  ;;  %v2054_v26 = vadd.f32 %v2052_v33, %v1930_v41 }
 0x524   : > { %v2070_v34 = vmul.f32 %v12776_v20, %v2042_v13  ;;  %v12777_v4 = vstv %s12762_s4  ;;  %s12781_s28 = sld [smem:[#allocation56_spill]]  ;;  %v2060_v47 = vadd.f32 %v2058_v15, %v1936_v11 }
 0x525   : > { %v2076_v0 = vmul.f32 %v12777_v4, %v2042_v13  ;;  %v12778_v53 = vstv %s12764_s20  ;;  %s12782_s5 = sld [smem:[#allocation67_spill]]  ;;  %v2066_v59 = vadd.f32 %v2064_v22, %v1942_v52 }
 0x526   : > { %v2082_v23 = vmul.f32 %v12778_v53, %v2042_v13  ;;  %s12783_s18 = sld [smem:[#allocation57_spill]]  ;;  %v12785_v5 = vstv %s12771_s15  ;;  %v2072_v7 = vadd.f32 %v2070_v34, %v1948_v17 }
 0x527   : > { %s12784_s26 = sld [smem:[#allocation58_spill]]  ;;  %v2088_v36 = vmul.f32 %v12785_v5, %v2042_v13  ;;  %v12788_v16 = vstv %s12775_s27  ;;  %v2078_v19 = vadd.f32 %v2076_v0, %v1954_v63 }
 0x528   : > { %s12786_s17 = sld [smem:[#allocation69_spill]]  ;;  %v2094_v57 = vmul.f32 %v12788_v16, %v2042_v13  ;;  %v2084_v1 = vadd.f32 %v2082_v23, %v1960_v49  ;;  %v12792_v39 = vstv %s12779_s11 }
 0x529   : > { %s12787_s23 = sld [smem:[#allocation243_spill]]  ;;  %v2100_v38 = vmul.f32 %v12792_v39, %v2042_v13  ;;  %v12794_v40 = vstv %s12780_s0  ;;  %v2090_v9 = vadd.f32 %v2088_v36, %v1966_v56 }
 0x52a   : > { %s12789_s25 = sld [smem:[#allocation244_spill]]  ;;  %v2106_v24 = vmul.f32 %v12794_v40, %v2042_v13  ;;  %v12796_v32 = vstv %s12781_s28  ;;  %v2096_v8 = vadd.f32 %v2094_v57, %v1972_v60 }
 0x52b   : > { %s12790_s24 = sld [smem:[#allocation245_spill]]  ;;  %v2112_v28 = vmul.f32 %v12796_v32, %v2042_v13  ;;  %v12798_v41 = vstv %s12782_s5  ;;  %v2102_v31 = vadd.f32 %v2100_v38, %v1978_v58 }
 0x52c   : > { %s12791_s3 = sld [smem:[#allocation246_spill]]  ;;  %v2118_v11 = vmul.f32 %v12798_v41, %v2042_v13  ;;  %v12799_v52 = vstv %s12783_s18  ;;  %v2108_v0 = vadd.f32 %v2106_v24, %v1984_v12 }
 0x52d   : > { %s12793_s4 = sld [smem:[#allocation247_spill]]  ;;  %v2124_v29 = vmul.f32 %v12799_v52, %v2042_v13  ;;  %v12800_v50 = vstv %s12784_s26  ;;  %v2114_v53 = vadd.f32 %v2112_v28, %v1990_v6 }
 0x52e   : > { %s12795_s20 = sld [smem:[#allocation248_spill]]  ;;  %v2130_v37 = vmul.f32 %v12800_v50, %v2042_v13  ;;  %v12801_v17 = vstv %s12786_s17  ;;  %v2120_v23 = vadd.f32 %v2118_v11, %v1996_v25 }
 0x52f   : > { %s12797_s15 = sld [smem:[#allocation249_spill]]  ;;  %v2136_v35 = vmul.f32 %v12801_v17, %v2042_v13  ;;  %v12802_v63 = vstv %s12787_s23  ;;  %v2126_v5 = vadd.f32 %v2124_v29, %v2002_v14 }
 0x530   : > { %v2170_v49 = vmul.f32 %v12802_v63, %v9884_v62  ;;  %s12803_s27 = sld [smem:[#allocation250_spill]]  ;;  %v12804_v21 = vstv %s12789_s25  ;;  %v2132_v36 = vadd.f32 %v2130_v37, %v2008_v55 }
 0x531   : > { %v2176_v46 = vmul.f32 %v12804_v21, %v9884_v62  ;;  %v12805_v33 = vstv %s12790_s24  ;;  %s12807_s11 = sld [smem:[#allocation251_spill]]  ;;  %v2138_v58 = vadd.f32 %v2136_v35, %v2014_v27 }
 0x532   : > { %v2182_v10 = vmul.f32 %v12805_v33, %v9884_v62  ;;  %v12806_v15 = vstv %s12791_s3  ;;  %s12811_s0 = sld [smem:[#allocation252_spill]]  ;;  %v2172_v16 = vadd.f32 %v2170_v49, %v2048_v42 }
 0x533   : > { %v2188_v56 = vmul.f32 %v12806_v15, %v9884_v62  ;;  %v12808_v13 = vstv %s12793_s4  ;;  %s12812_s28 = sld [smem:[#allocation253_spill]]  ;;  %v2178_v38 = vadd.f32 %v2176_v46, %v2054_v26 }
 0x534   : > { %v2194_v22 = vmul.f32 %v12808_v13, %v9884_v62  ;;  %v12809_v20 = vstv %s12795_s20  ;;  %s12813_s5 = sld [smem:[#allocation254_spill]]  ;;  %v2184_v40 = vadd.f32 %v2182_v10, %v2060_v47 }
 0x535   : > { %v2200_v34 = vmul.f32 %v12809_v20, %v9884_v62  ;;  %v12810_v4 = vstv %s12797_s15  ;;  %s12814_s18 = sld [smem:[#allocation70_spill]]  ;;  %v2190_v12 = vadd.f32 %v2188_v56, %v2066_v59 }
 0x536   : > { %v2206_v60 = vmul.f32 %v12810_v4, %v9884_v62  ;;  %s12815_s26 = sld [smem:[#allocation71_spill]]  ;;  %v12817_v57 = vstv %s12803_s27  ;;  %v2196_v14 = vadd.f32 %v2194_v22, %v2072_v7 }
 0x537   : > { %s12816_s17 = sld [smem:[#allocation74_spill]]  ;;  %v2212_v39 = vmul.f32 %v12817_v57, %v9884_v62  ;;  %v12821_v6 = vstv %s12807_s11  ;;  %v2202_v24 = vadd.f32 %v2200_v34, %v2078_v19 }
 0x538   : > { %s12818_s23 = sld [smem:[#allocation255_spill]]  ;;  %v2218_v25 = vmul.f32 %v12821_v6, %v9884_v62  ;;  %v2208_v55 = vadd.f32 %v2206_v60, %v2084_v1  ;;  %v12825_v27 = vstv %s12811_s0 }
 0x539   : > { %s12819_s25 = sld [smem:[#allocation77_spill]]  ;;  %v2224_v42 = vmul.f32 %v12825_v27, %v9884_v62  ;;  %v12827_v32 = vstv %s12812_s28  ;;  %v2214_v19 = vadd.f32 %v2212_v39, %v2090_v9 }
 0x53a   : > { %s12820_s24 = sld [smem:[#allocation78_spill]]  ;;  %v2230_v26 = vmul.f32 %v12827_v32, %v9884_v62  ;;  %v12829_v47 = vstv %s12813_s5  ;;  %v2220_v35 = vadd.f32 %v2218_v25, %v2096_v8 }
 0x53b   : > { %s12822_s3 = sld [smem:[#allocation79_spill]]  ;;  %v2236_v59 = vmul.f32 %v12829_v47, %v9884_v62  ;;  %v12830_v28 = vstv %s12814_s18  ;;  %v2226_v10 = vadd.f32 %v2224_v42, %v2102_v31 }
 0x53c   : > { %s12823_s4 = sld [smem:[#allocation84_spill]]  ;;  %v2242_v41 = vmul.f32 %v12830_v28, %v9884_v62  ;;  %v12831_v11 = vstv %s12815_s26  ;;  %v2232_v20 = vadd.f32 %v2230_v26, %v2108_v0 }
 0x53d   : > { %s12824_s20 = sld [smem:[#allocation85_spill]]  ;;  %v2248_v7 = vmul.f32 %v12831_v11, %v9884_v62  ;;  %v12832_v1 = vstv %s12816_s17  ;;  %v2238_v34 = vadd.f32 %v2236_v59, %v2114_v53 }
 0x53e   : > { %s12826_s15 = sld [smem:[#allocation86_spill]]  ;;  %v2254_v52 = vmul.f32 %v12832_v1, %v9884_v62  ;;  %v12833_v29 = vstv %s12818_s23  ;;  %v2244_v4 = vadd.f32 %v2242_v41, %v2120_v23 }
 0x53f   : > { %s12828_s27 = sld [smem:[#allocation87_spill]]  ;;  %v2260_v50 = vmul.f32 %v12833_v29, %v9884_v62  ;;  %v12834_v37 = vstv %s12819_s25  ;;  %v2250_v60 = vadd.f32 %v2248_v7, %v2126_v5 }
 0x540   : > { %v2294_v17 = vmul.f32 %v12834_v37, %v9887_v18  ;;  %s12835_s11 = sld [smem:[#allocation88_spill]]  ;;  %v12836_v63 = vstv %s12820_s24  ;;  %v2256_v57 = vadd.f32 %v2254_v52, %v2132_v36 }
 0x541   : > { %v2300_v49 = vmul.f32 %v12836_v63, %v9887_v18  ;;  %v12837_v21 = vstv %s12822_s3  ;;  %s12839_s0 = sld [smem:[#allocation89_spill]]  ;;  %v2262_v31 = vadd.f32 %v2260_v50, %v2138_v58 }
 0x542   : > { %v2306_v46 = vmul.f32 %v12837_v21, %v9887_v18  ;;  %v12838_v33 = vstv %s12823_s4  ;;  %s12843_s28 = sld [smem:[#allocation90_spill]]  ;;  %v2296_v39 = vadd.f32 %v2294_v17, %v2172_v16 }
 0x543   : > { %v2312_v9 = vmul.f32 %v12838_v33, %v9887_v18  ;;  %v12840_v15 = vstv %s12824_s20  ;;  %s12844_s5 = sld [smem:[#allocation91_spill]]  ;;  %v2302_v27 = vadd.f32 %v2300_v49, %v2178_v38 }
 0x544   : > { %v2318_v56 = vmul.f32 %v12840_v15, %v9887_v18  ;;  %v12841_v62 = vstv %s12826_s15  ;;  %s12845_s18 = sld [smem:[#allocation259_spill]]  ;;  %v2308_v42 = vadd.f32 %v2306_v46, %v2184_v40 }
 0x545   : > { %v2324_v13 = vmul.f32 %v12841_v62, %v9887_v18  ;;  %v12842_v22 = vstv %s12828_s27  ;;  %s12846_s26 = sld [smem:[#allocation260_spill]]  ;;  %v2314_v0 = vadd.f32 %v2312_v9, %v2190_v12 }
 0x546   : > { %v2330_v8 = vmul.f32 %v12842_v22, %v9887_v18  ;;  %s12847_s17 = sld [smem:[#allocation261_spill]]  ;;  %v12849_v6 = vstv %s12835_s11  ;;  %v2320_v5 = vadd.f32 %v2318_v56, %v2196_v14 }
 0x547   : > { %s12848_s23 = sld [smem:[#allocation262_spill]]  ;;  %v2336_v25 = vmul.f32 %v12849_v6, %v9887_v18  ;;  %v12853_v53 = vstv %s12839_s0  ;;  %v2326_v32 = vadd.f32 %v2324_v13, %v2202_v24 }
 0x548   : > { %s12850_s25 = sld [smem:[#allocation263_spill]]  ;;  %v2342_v23 = vmul.f32 %v12853_v53, %v9887_v18  ;;  %v2332_v36 = vadd.f32 %v2330_v8, %v2208_v55  ;;  %v12857_v58 = vstv %s12843_s28 }
 0x549   : > { %s12851_s24 = sld [smem:[#allocation265_spill]]  ;;  %v2348_v16 = vmul.f32 %v12857_v58, %v9887_v18  ;;  %v12859_v26 = vstv %s12844_s5  ;;  %v2338_v24 = vadd.f32 %v2336_v25, %v2214_v19 }
 0x54a   : > { %s12852_s3 = sld [smem:[#allocation266_spill]]  ;;  %v2354_v38 = vmul.f32 %v12859_v26, %v9887_v18  ;;  %v12861_v40 = vstv %s12845_s18  ;;  %v2344_v29 = vadd.f32 %v2342_v23, %v2220_v35 }
 0x54b   : > { %s12854_s4 = sld [smem:[#allocation267_spill]]  ;;  %v2360_v12 = vmul.f32 %v12861_v40, %v9887_v18  ;;  %v12862_v47 = vstv %s12846_s26  ;;  %v2350_v21 = vadd.f32 %v2348_v16, %v2226_v10 }
 0x54c   : > { %s12855_s20 = sld [smem:[#allocation268_spill]]  ;;  %v2366_v59 = vmul.f32 %v12862_v47, %v9887_v18  ;;  %v12863_v28 = vstv %s12847_s17  ;;  %v2356_v35 = vadd.f32 %v2354_v38, %v2232_v20 }
 0x54d   : > { %s12856_s15 = sld [smem:[#allocation269_spill]]  ;;  %v2372_v14 = vmul.f32 %v12863_v28, %v9887_v18  ;;  %v12864_v55 = vstv %s12848_s23  ;;  %v2362_v62 = vadd.f32 %v2360_v12, %v2238_v34  ;;  %v12890_v28 = vstv %s12371_s10 }
 0x54e   : > { %s12858_s27 = sld [smem:[#allocation270_spill]]  ;;  %v2378_v41 = vmul.f32 %v12864_v55, %v9887_v18  ;;  %v12865_v11 = vstv %s12850_s25  ;;  %v2368_v13 = vadd.f32 %v2366_v59, %v2244_v4  ;;  %v2536_v4 = vadd.f32 1.0, %v9950_v3 }
 0x54f   : > { %s12860_s11 = sld [smem:[#allocation271_spill]]  ;;  %v2384_v7 = vmul.f32 %v12865_v11, %v9887_v18  ;;  %v12866_v1 = vstv %s12851_s24  ;;  %v2374_v22 = vadd.f32 %v2372_v14, %v2250_v60  ;;  %v12893_v11 = vstv %s12376_s13 }
 0x550   : > { %v2418_v52 = vmul.f32 %v12866_v1, %v9890_v44  ;;  %s12867_s0 = sld [smem:[#allocation272_spill]]  ;;  %v12868_v50 = vstv %s12852_s3  ;;  %v2380_v8 = vadd.f32 %v2378_v41, %v2256_v57  ;;  %v12892_v41 = vstv %s12375_s16 }
 0x551   : > { %v2424_v37 = vmul.f32 %v12868_v50, %v9890_v44  ;;  %v12869_v17 = vstv %s12854_s4  ;;  %s12874_s28 = sld [smem:[#allocation274_spill]]  ;;  %v10066_v6 = vadd.f32 %v2384_v7, %v2262_v31 }
 0x552   : > { %v2430_v63 = vmul.f32 %v12869_v17, %v9890_v44  ;;  %v12870_v49 = vstv %s12855_s20  ;;  %s12875_s5 = sld [smem:[#allocation275_spill]]  ;;  %v2420_v10 = vadd.f32 %v2418_v52, %v2296_v39 }
 0x553   : > { %v2436_v19 = vmul.f32 %v12870_v49, %v9890_v44  ;;  %v12871_v46 = vstv %s12856_s15  ;;  %s12876_s18 = sld [smem:[#allocation276_spill]]  ;;  %v2426_v23 = vadd.f32 %v2424_v37, %v2302_v27  ;;  %v12895_v37 = vstv %s12377_s2 }
 0x554   : > { %v2442_v33 = vmul.f32 %v12871_v46, %v9890_v44  ;;  %v12872_v18 = vstv %s12858_s27  ;;  %s12877_s26 = sld [smem:[#allocation93_spill]]  ;;  %v2432_v20 = vadd.f32 %v2430_v63, %v2308_v42  ;;  %v12896_v63 = vstv %s12378_s6 }
 0x555   : > { %v2448_v9 = vmul.f32 %v12872_v18, %v9890_v44  ;;  %v12873_v15 = vstv %s12860_s11  ;;  %s12879_s17 = sld [smem:[#allocation94_spill]]  ;;  %v2438_v34 = vadd.f32 %v2436_v19, %v2314_v0  ;;  %v12897_v18 = vstv %s8757_s29 }
 0x556   : > { %v2454_v56 = vmul.f32 %v12873_v15, %v9890_v44  ;;  %v12878_v25 = vstv %s12867_s0  ;;  %s10071_s23 = sld [smem:[#allocation14 + $0x281]]  ;;  %v2444_v60 = vadd.f32 %v2442_v33, %v2320_v5  ;;  %v10087_v5 = vmul.f32 %v2536_v4, %v9735_v48 }
 0x557   : > { %v2460_v53 = vmul.f32 %v12878_v25, %v9890_v44  ;;  %s12880_s25 = sld [smem:[#allocation96_spill]]  ;;  %v2450_v57 = vadd.f32 %v2448_v9, %v2326_v32  ;;  %v12882_v39 = vstv %s12874_s28  ;;  %v12891_v48 = vstv %s12373_s22 }
 0x558   : > { %s12881_s24 = sld [smem:[#allocation97_spill]]  ;;  %v2456_v31 = vadd.f32 %v2454_v56, %v2332_v36  ;;  %v2466_v58 = vmul.f32 %v12882_v39, %v9890_v44  ;;  %v12884_v16 = vstv %s12875_s5  ;;  %v2542_v14 = vmul.f32 %v12890_v28, %v10087_v5 }
 0x559   : > { %s12883_s3 = sld [smem:[#allocation98_spill]]  ;;  %v2472_v27 = vmul.f32 %v12884_v16, %v9890_v44  ;;  %v12885_v42 = vstv %s12876_s18  ;;  %v2462_v32 = vadd.f32 %v2460_v53, %v2338_v24  ;;  %v2548_v55 = vmul.f32 %v12891_v48, %v10087_v5 }
 0x55a   : > { %v2478_v0 = vmul.f32 %v12885_v42, %v9890_v44  ;;  %v12886_v26 = vstv %s12877_s26  ;;  %s10089_s4 = sld [smem:[#allocation14 + $0x301]]  ;;  %v2554_v24 = vmul.f32 %v12892_v41, %v10087_v5  ;;  %v2560_v7 = vmul.f32 %v12893_v11, %v10087_v5 }
 0x55b   : > { %v2484_v3 = vmul.f32 %v12886_v26, %v9890_v44  ;;  %v12887_v36 = vstv %s12879_s17  ;;  %v2468_v1 = vadd.f32 %v2466_v58, %v2344_v29  ;;  %v2566_v17 = vmul.f32 %v12895_v37, %v10087_v5  ;;  %s12899_s2 = sld [smem:[#allocation281_spill]] }
 0x55c   : > { %v2490_v38 = vmul.f32 %v12887_v36, %v9890_v44  ;;  %v2572_v49 = vmul.f32 %v12896_v63, %v10087_v5  ;;  %v2474_v19 = vadd.f32 %v2472_v27, %v2350_v21  ;;  %v2480_v46 = vadd.f32 %v2478_v0, %v2356_v35  ;;  %s12901_s13 = sld [smem:[#allocation283_spill]] }
 0x55d   : > { %v12888_v40 = vstv %s12880_s25  ;;  %v2486_v33 = vadd.f32 %v2484_v3, %v2362_v62  ;;  %v2578_v9 = vmul.f32 %v12897_v18, %v10087_v5  ;;  %v2544_v15 = vadd.f32 %v2542_v14, %v2420_v10  ;;  %s12902_s22 = sld [smem:[#allocation285_spill]] }
 0x55e   : > { %v2496_v12 = vmul.f32 %v12888_v40, %v9890_v44  ;;  %v12889_v47 = vstv %s12881_s24  ;;  %v2492_v29 = vadd.f32 %v2490_v38, %v2368_v13  ;;  %v2827_v25 = vstv %s10071_s23  ;;  %s12903_s6 = sld [smem:[#allocation111_spill]] }
 0x55f   : > { %v2502_v59 = vmul.f32 %v12889_v47, %v9890_v44  ;;  %v12894_v52 = vstv %s12883_s3  ;;  %v2550_v53 = vadd.f32 %v2548_v55, %v2426_v23  ;;  %v2556_v4 = vadd.f32 %v2554_v24, %v2432_v20  ;;  %s12905_s16 = sld [smem:[#allocation287_spill]] }
 0x560   : > { %v10115_v50 = vmul.f32 %v12894_v52, %v9890_v44  ;;  %v12898_v44 = vstv %s8769_s8  ;;  %v2562_v21 = vadd.f32 %v2560_v7, %v2438_v34  ;;  %v12900_v35 = vstv %s8785_s1  ;;  %s12906_s29 = sld [smem:[#allocation289_spill]] }
 0x561   : > { %v2584_v56 = vmul.f32 %v12898_v44, %v10087_v5  ;;  %v2590_v62 = vmul.f32 %v12900_v35, %v10087_v5  ;;  %v2498_v39 = vadd.f32 %v2496_v12, %v2374_v22  ;;  %v2568_v58 = vadd.f32 %v2566_v17, %v2444_v60  ;;  %s12908_s8 = sld [smem:[#allocation291_spill]] }
 0x562   : > { %v2574_v13 = vadd.f32 %v2572_v49, %v2450_v57  ;;  %v12904_v10 = vstv %s12408_s30  ;;  %v2504_v27 = vadd.f32 %v2502_v59, %v2380_v8  ;;  %v2580_v23 = vadd.f32 %v2578_v9, %v2456_v31  ;;  %s12910_s1 = sld [smem:[#allocation112_spill]] }
 0x563   : > { %v2596_v16 = vmul.f32 %v12904_v10, %v10087_v5  ;;  %v12907_v20 = vstv %s9701_s19  ;;  %v2863_v34 = vstv %s10089_s4  ;;  %v2586_v0 = vadd.f32 %v2584_v56, %v2462_v32  ;;  %s12913_s10 = sld [smem:[#allocation116_spill]] }
 0x564   : > { %v2793_v42 = vmul.f32 %v12907_v20, %v9301_v51  ;;  %v2592_v26 = vadd.f32 %v2590_v62, %v2468_v1  ;;  %v12909_v3 = vstv %s8803_s21  ;;  %v2829_v60 = vmul.f32 %v2827_v25, %v9321_v54  ;;  %s12918_s21 = sld [smem:[#allocation118_spill]] }
 0x565   : > { %v2602_v22 = vmul.f32 %v12909_v3, %v10087_v5  ;;  %v12911_v57 = vstv %s8865_s14  ;;  %v12912_v38 = vstv %s12899_s2  ;;  %v12914_v31 = vstv %s12901_s13  ;;  %s12920_s14 = sld [smem:[#allocation68_spill]] }
 0x566   : > { %v2638_v36 = vadd.f32 %v12911_v57, %v2544_v15  ;;  %v2666_v8 = vadd.f32 %v12912_v38, %v2550_v53  ;;  %v2702_v40 = vadd.f32 %v12914_v31, %v2556_v4  ;;  %v12915_v12 = vstv %s12902_s22  ;;  %s10169_s30 = sld [smem:[#allocation14 + $0x381]] }
 0x567   : > { %v2738_v47 = vadd.f32 %v12915_v12, %v2562_v21  ;;  %v2598_v59 = vadd.f32 %v2596_v16, %v2474_v19  ;;  %v12916_v32 = vstv %s12903_s6  ;;  %v12917_v14 = vstv %s12905_s16  ;;  %s10178_s20 = sld [smem:[#allocation14 + $0x680]]  ;;  %v12938_v12 = vld [vmem:[#allocation293_spill] sm:$0xff] }
 0x568   : > { %v2608_v28 = vmul.f32 %v12916_v32, %v10087_v5  ;;  %v2774_v48 = vadd.f32 %v12917_v14, %v2568_v58  ;;  %v12919_v55 = vstv %s12906_s29  ;;  %v10161_v24 = vmul.f32 0.5, %v2638_v36  ;;  %s12926_s15 = sld [smem:[#allocation279_spill]]  ;;  %v12942_v32 = vld [vmem:[#allocation302_spill] sm:$0xff]  ;;  %v12943_v14 = vld [vmem:[#allocation301_spill] sm:$0xff] }
 0x569   : > { %v2810_v41 = vadd.f32 %v12919_v55, %v2574_v13  ;;  %v10163_v11 = vmul.f32 0.5, %v2666_v8  ;;  %v10165_v7 = vmul.f32 0.5, %v2702_v40  ;;  %v12921_v1 = vstv %s12908_s8  ;;  %s10205_s27 = sld [smem:[#allocation14 + $0x401]] }
 0x56a   : > { %v2846_v52 = vadd.f32 %v12921_v1, %v2580_v23  ;;  %v2604_v37 = vadd.f32 %v2602_v22, %v2480_v46  ;;  %v12922_v17 = vstv %s12910_s1  ;;  %v10174_v49 = vmul.f32 0.5, %v2738_v47  ;;  %s12932_s11 = sld [smem:[#allocation105_spill]]  ;;  %v12945_v1 = vld [vmem:[#allocation297_spill] sm:$0xff] }
 0x56b   : > { %v2614_v63 = vmul.f32 %v12922_v17, %v10087_v5  ;;  %v12923_v19 = vstv %s12913_s10  ;;  %v12924_v9 = vstv %s12430_s7  ;;  %5449 = vtanh.f32 %v10161_v24  ;;  %s12929_s7 = sld [smem:[#allocation138_spill]] }
 0x56c   : > { %v2882_v18 = vadd.f32 %v12923_v19, %v2586_v0  ;;  %v2620_v15 = vmul.f32 %v12924_v9, %v10087_v5  ;;  %v10184_v44 = vmul.f32 0.5, %v2774_v48  ;;  %v12925_v56 = vstv %s12918_s21  ;;  %s12935_s0 = sld [smem:[#allocation109_spill]]  ;;  %v12947_v19 = vld [vmem:[#allocation294_spill] sm:$0xff] }
 0x56d   : > { %v2918_v53 = vadd.f32 %v12925_v56, %v2592_v26  ;;  %v2610_v46 = vadd.f32 %v2608_v28, %v2486_v33  ;;  %5451 = vtanh.f32 %v10163_v11  ;;  %v10189_v4 = vmul.f32 0.5, %v2810_v41  ;;  %s10227_s28 = sld [smem:[#allocation14 + $0x481]] }
 0x56e   : > { %v12927_v21 = vstv %s12920_s14  ;;  %v12928_v62 = vstv %s12432_s12  ;;  %5453 = vtanh.f32 %v10165_v7  ;;  %v10197_v13 = vmul.f32 0.5, %v2846_v52  ;;  %s10207_s12 = sld [smem:[#allocation14 + $0x700]] }
 0x56f   : > { %v2954_v35 = vadd.f32 %v12927_v21, %v2598_v59  ;;  %v2626_v58 = vmul.f32 %v12928_v62, %v10087_v5  ;;  %v2795_v10 = vadd.f32 %v2793_v42, %v9897_v61  ;;  %v2616_v16 = vadd.f32 %v2614_v63, %v2492_v29  ;;  %s12937_s5 = sld [smem:[#allocation107_spill]]  ;;  %v12951_v62 = vld [vmem:[#allocation304_spill] sm:$0xff] }
 0x570   : > { %5455 = vtanh.f32 %v10174_v49  ;;  %v10201_v33 = vmul.f32 0.5, %v2882_v18  ;;  %v12930_v23 = vstv %s9137_s9  ;;  %v2510_v0 = vadd.f32 %v10115_v50, %v10066_v6  ;;  %s12934_s9 = sld [smem:[#allocation106_spill]] }
 0x571   : > { %v2990_v20 = vadd.f32 %v12930_v23, %v2604_v37  ;;  %v12931_v26 = vstv %s12926_s15  ;;  %5457 = vtanh.f32 %v10184_v44  ;;  %v10215_v29 = vmul.f32 0.5, %v2918_v53  ;;  %s10237_s18 = sld [smem:[#allocation14 + $0x501]] }
 0x572   : > { %v2632_v61 = vmul.f32 %v12931_v26, %v10087_v5  ;;  %v2622_v42 = vadd.f32 %v2620_v15, %v2498_v39  ;;  %5459 = vtanh.f32 %v10189_v4  ;;  %v10218_v3 = vmul.f32 0.5, %v2954_v35  ;;  %s12939_s26 = sld [smem:[#allocation108_spill]] }
 0x573   : > { %v12933_v22 = vstv %s12929_s7  ;;  %5461 = vtanh.f32 %v10197_v13  ;;  %v2831_v36 = vadd.f32 %v2829_v60, %v2795_v10  ;;  %v2865_v6 = vmul.f32 %v2863_v34, %v9342_v30  ;;  %s12940_s17 = sld [smem:[#allocation151_spill]] }
 0x574   : > { %v3026_v57 = vadd.f32 %v12933_v22, %v2610_v46  ;;  %v2899_v5 = vstv %s10169_s30  ;;  %v2628_v50 = vadd.f32 %v2626_v58, %v2504_v27  ;;  %5463 = vtanh.f32 %v10201_v33  ;;  %s10280_s25 = sld [smem:[#allocation14 + $0x780]] }
 0x575   : > { %v10230_v39 = vmul.f32 0.5, %v2990_v20  ;;  %v12936_v38 = vstv %s12932_s11  ;;  %v3105_v31 = vadd.f32 1.0, %v9485_v43  ;;  %v3109_v60 = vstv %s10178_s20  ;;  %s12953_s24 = sld [smem:[#allocation280_spill]] }
 0x576   : > { %v3062_v8 = vadd.f32 %v12936_v38, %v2616_v16  ;;  %v2634_v40 = vadd.f32 %v2632_v61, %v2510_v0  ;;  %5465 = vtanh.f32 %v10215_v29  ;;  %v10241_v27 = vmul.f32 %v9461_v2, %v12938_v12  ;;  %v12952_v0 = vld [vmem:[#allocation298_spill] sm:$0xff]  ;;  %s12954_s3 = sld [smem:[#allocation282_spill]] }
 0x577   : > { %5467 = vtanh.f32 %v10218_v3  ;;  %v10244_v47 = vmul.f32 0.5, %v3026_v57  ;;  %v12941_v59 = vstv %s12934_s9  ;;  %v3005_v28 = vadd.f32 %v12942_v32, %v9512_v45  ;;  %v12948_v45 = vld [vmem:[#allocation303_spill] sm:$0xff]  ;;  %s10291_s2 = sld [smem:[#allocation14 + $0x581]] }
 0x578   : > { %v3098_v43 = vadd.f32 %v12941_v59, %v2622_v42  ;;  %v12944_v48 = vstv %s12935_s0  ;;  %v2867_v41 = vadd.f32 %v2865_v6, %v2831_v36  ;;  %v2901_v52 = vmul.f32 %v2899_v5, %v12945_v1  ;;  %v5450_v46 = vpop.eup %5449  ;;  %s12955_s13 = sld [smem:[#allocation284_spill]] }
 0x579   : > { %v3039_v55 = vmul.f32 %v12944_v48, %v12943_v14  ;;  %5469 = vtanh.f32 %v10230_v39  ;;  %v10257_v2 = vmul.f32 0.5, %v3062_v8  ;;  %v12946_v37 = vstv %s12937_s5  ;;  %s10300_s22 = sld [smem:[#allocation15]] }
 0x57a   : > { %v3134_v17 = vadd.f32 %v12946_v37, %v2628_v50  ;;  %v2935_v63 = vstv %s10205_s27  ;;  %v10263_v18 = vmul.f32 %v3105_v31, %v12947_v19  ;;  %v3141_v9 = vadd.f32 1.0, %v12948_v45  ;;  %v5452_v16 = vpop.eup %5451  ;;  %s12958_s6 = sld [smem:[#allocation286_spill]] }
 0x57b   : > { %v3145_v15 = vstv %s10207_s12  ;;  %v12949_v56 = vstv %s12939_s26  ;;  %v12950_v21 = vstv %s12940_s17  ;;  %v3177_v58 = vadd.f32 1.0, %v12951_v62  ;;  %v5454_v42 = vpop.eup %5453  ;;  %s10315_s16 = sld [smem:[#allocation14 + $0x601]] }
 0x57c   : > { %v3170_v53 = vadd.f32 %v12949_v56, %v2634_v40  ;;  %v3075_v35 = vmul.f32 %v12950_v21, %v10241_v27  ;;  %5471 = vtanh.f32 %v10244_v47  ;;  %v10274_v10 = vmul.f32 0.5, %v3098_v43  ;;  %v12956_v43 = vld [vmem:[#allocation299_spill] sm:$0xff]  ;;  %s12961_s29 = sld [smem:[#allocation288_spill]] }
 0x57d   : > { %v2644_v23 = vadd.f32 1.0, %v5450_v46  ;;  %v2903_v20 = vadd.f32 %v2901_v52, %v2867_v41  ;;  %v2937_v26 = vmul.f32 %v2935_v63, %v12952_v0  ;;  %v2971_v61 = vstv %s10227_s28  ;;  %v5456_v6 = vpop.eup %5455  ;;  %s12963_s8 = sld [smem:[#allocation290_spill]] }
 0x57e   : > { %v3041_v22 = vadd.f32 %v3039_v55, %v3005_v28  ;;  %v2672_v57 = vadd.f32 1.0, %v5452_v16  ;;  %5473 = vtanh.f32 %v10257_v2  ;;  %v10283_v36 = vmul.f32 0.5, %v3134_v17  ;;  %v5458_v40 = vpop.eup %5457  ;;  %s12967_s1 = sld [smem:[#allocation115_spill]] }
 0x57f   : > { %v10286_v50 = vmul.f32 %v2644_v23, %v10161_v24  ;;  %v2708_v38 = vadd.f32 1.0, %v5454_v42  ;;  %v10288_v8 = vmul.f32 0.5, %v3170_v53  ;;  %v11530_v31 = vstv %s10237_s18  ;;  %v5460_v24 = vpop.eup %5459  ;;  %s10350_s10 = sld [smem:[#allocation14 + $0x681]] }
 0x580   : > { %v10294_v12 = vmul.f32 %v2672_v57, %v10163_v11  ;;  %v2744_v59 = vadd.f32 1.0, %v5456_v6  ;;  %5475 = vtanh.f32 %v10274_v10  ;;  %v2973_v32 = vmul.f32 %v2971_v61, %v12956_v43  ;;  %v5462_v52 = vpop.eup %5461  ;;  %v12964_v6 = vld [vmem:[#allocation295_spill] sm:$0xff]  ;;  %s12970_s21 = sld [smem:[#allocation152_spill]] }
 0x581   : > { %v12957_v28 = vstv %s12953_s24  ;;  %v10306_v55 = vmul.f32 %v2708_v38, %v10165_v7  ;;  %v2780_v41 = vadd.f32 1.0, %v5458_v40  ;;  %v2939_v11 = vadd.f32 %v2937_v26, %v2903_v20  ;;  %v5464_v56 = vpop.eup %5463  ;;  %s12971_s14 = sld [smem:[#allocation117_spill]] }
 0x582   : > { %v2650_v48 = vmul.f32 %v12957_v28, %v10286_v50  ;;  %v12959_v37 = vstv %s12954_s3  ;;  %v10312_v19 = vmul.f32 %v2744_v59, %v10174_v49  ;;  %v2816_v45 = vadd.f32 1.0, %v5460_v24  ;;  %s10365_s15 = sld [smem:[#allocation14 + $0x701]] }
 0x583   : > { %v2678_v17 = vmul.f32 %v12959_v37, %v10294_v12  ;;  %5477 = vtanh.f32 %v10283_v36  ;;  %v12960_v7 = vstv %s12955_s13  ;;  %v10321_v46 = vmul.f32 %v2780_v41, %v10184_v44  ;;  %v5466_v49 = vpop.eup %5465  ;;  %v12968_v37 = vld [vmem:[#allocation300_spill] sm:$0xff]  ;;  %s12972_s7 = sld [smem:[#allocation121_spill]] }
 0x584   : > { %v2714_v53 = vmul.f32 %v12960_v7, %v10306_v55  ;;  %v2852_v21 = vadd.f32 1.0, %v5462_v52  ;;  %5479 = vtanh.f32 %v10288_v8  ;;  %v12962_v16 = vstv %s12958_s6  ;;  %v5468_v42 = vpop.eup %5467  ;;  %v12966_v52 = vld [vmem:[#allocation296_spill] sm:$0xff]  ;;  %s12974_s11 = sld [smem:[#allocation142_spill]] }
 0x585   : > { %v2680_v62 = vadd.f32 %v2678_v17, %v2650_v48  ;;  %v2750_v23 = vmul.f32 %v12962_v16, %v10312_v19  ;;  %v10328_v20 = vmul.f32 %v2816_v45, %v10189_v4  ;;  %v2888_v26 = vadd.f32 1.0, %v5464_v56  ;;  %s12975_s9 = sld [smem:[#allocation156_spill]] }
 0x586   : > { %v3077_v57 = vadd.f32 %v3075_v35, %v3041_v22  ;;  %v3111_v44 = vmul.f32 %v3109_v60, %v10263_v18  ;;  %v10334_v38 = vmul.f32 %v3141_v9, %v12964_v6  ;;  %v2924_v40 = vadd.f32 1.0, %v5466_v49  ;;  %v5470_v41 = vpop.eup %5469  ;;  %s12978_s5 = sld [smem:[#allocation177_spill]] }
 0x587   : > { %v3181_v59 = vstv %s10280_s25  ;;  %v2716_v24 = vadd.f32 %v2714_v53, %v2680_v62  ;;  %v12965_v28 = vstv %s12961_s29  ;;  %v10341_v4 = vmul.f32 %v2852_v21, %v10197_v13  ;;  %s12979_s26 = sld [smem:[#allocation137_spill]] }
 0x588   : > { %v2786_v48 = vmul.f32 %v12965_v28, %v10321_v46  ;;  %v10344_v35 = vmul.f32 %v3177_v58, %v12966_v52  ;;  %v2975_v22 = vadd.f32 %v2973_v32, %v2939_v11  ;;  %v3009_v9 = vmul.f32 %v11530_v31, %v12968_v37  ;;  %s12983_s24 = sld [smem:[#allocation104_spill]] }
 0x589   : > { %v11528_v17 = vstv %s10291_s2  ;;  %v2752_v45 = vadd.f32 %v2750_v23, %v2716_v24  ;;  %v12969_v56 = vstv %s12963_s8  ;;  %v10356_v13 = vmul.f32 %v2888_v26, %v10201_v33  ;;  %v5472_v53 = vpop.eup %5471  ;;  %s10411_s3 = sld [smem:[#allocation14 + $0x781]] }
 0x58a   : > { %v2822_v7 = vmul.f32 %v12969_v56, %v10328_v20  ;;  %v2960_v58 = vadd.f32 1.0, %v5468_v42  ;;  %v3113_v32 = vadd.f32 %v3111_v44, %v3077_v57  ;;  %v3147_v11 = vmul.f32 %v3145_v15, %v10334_v38  ;;  %s12992_s23 = sld [smem:[#allocation37_spill]] }
 0x58b   : > { %v3205_v21 = vstv %s10300_s22  ;;  %v10363_v49 = vmul.f32 %v2924_v40, %v10215_v29  ;;  %v2788_v62 = vadd.f32 %v2786_v48, %v2752_v45  ;;  %v12973_v16 = vstv %s12967_s1  ;;  %v5474_v42 = vpop.eup %5473  ;;  %s12994_s20 = sld [smem:[#allocation309_spill]] }
 0x58c   : > { %v2858_v33 = vmul.f32 %v12973_v16, %v10341_v4  ;;  %v2996_v23 = vadd.f32 1.0, %v5470_v41  ;;  %v11529_v26 = vstv %s10315_s16  ;;  %v3183_v57 = vmul.f32 %v3181_v59, %v10344_v35  ;;  %s12996_s25 = sld [smem:[#allocation36_spill]] }
 0x58d   : > { %v3011_v44 = vadd.f32 %v3009_v9, %v2975_v22  ;;  %v3045_v29 = vmul.f32 %v11528_v17, %v12943_v14  ;;  %v12976_v6 = vstv %s12970_s21  ;;  %v2824_v24 = vadd.f32 %v2822_v7, %v2788_v62  ;;  %v5476_v45 = vpop.eup %5475  ;;  %s4982_s13 = sld [smem:[#allocation14 + $0x2]] }
 0x58e   : > { %v2654_v40 = vmul.f32 %v12976_v6, %v10286_v50  ;;  %v12977_v28 = vstv %s12971_s14  ;;  %v10384_v41 = vmul.f32 %v2960_v58, %v10218_v3  ;;  %v3032_v52 = vadd.f32 1.0, %v5472_v53  ;;  %s4987_s22 = sld [smem:[#allocation14 + $0x82]] }
 0x58f   : > { %v2894_v48 = vmul.f32 %v12977_v28, %v10356_v13  ;;  %v3149_v56 = vadd.f32 %v3147_v11, %v3113_v32  ;;  %v12980_v22 = vstv %s12972_s7  ;;  %v3081_v16 = vmul.f32 %v11529_v26, %v10241_v27  ;;  %s4992_s6 = sld [smem:[#allocation14 + $0x102]] }
 0x590   : > { %v2930_v9 = vmul.f32 %v12980_v22, %v10363_v49  ;;  %v12981_v6 = vstv %s12974_s11  ;;  %v2860_v62 = vadd.f32 %v2858_v33, %v2824_v24  ;;  %v10396_v28 = vmul.f32 %v2996_v23, %v10230_v39  ;;  %v5478_v32 = vpop.eup %5477  ;;  %s5114_s12 = sshll.u32 %s12992_s23, 5  ;;  %s5002_s29 = sld [smem:[#allocation14 + $0x202]] }
 0x591   : > { %v2684_v7 = vmul.f32 %v12981_v6, %v10294_v12  ;;  %v3068_v3 = vadd.f32 1.0, %v5474_v42  ;;  %v12982_v58 = vstv %s12975_s9  ;;  %v3047_v11 = vadd.f32 %v3045_v29, %v3011_v44  ;;  %v5480_v6 = vpop.eup %5479  ;;  %s674_s27 = scalar_lea.vmem %s12994_s20, %s12992_s23  ;;  %s5007_s8 = sld [smem:[#allocation14 + $0x282]] }
 0x592   : > { %v2720_v53 = vmul.f32 %v12982_v58, %v10306_v55  ;;  %v3115_v22 = vstv %s10350_s10  ;;  %v12984_v26 = vstv %s12978_s5  ;;  %v2896_v33 = vadd.f32 %v2894_v48, %v2860_v62  ;;  %s5012_s1 = sld [smem:[#allocation14 + $0x302]] }
 0x593   : > { %v2686_v17 = vadd.f32 %v2684_v7, %v2654_v40  ;;  %v2756_v31 = vmul.f32 %v12984_v26, %v10312_v19  ;;  %v12985_v24 = vstv %s12979_s26  ;;  %v10409_v23 = vmul.f32 %v3032_v52, %v10244_v47  ;;  %s5017_s10 = sld [smem:[#allocation14 + $0x382]] }
 0x594   : > { %v2966_v39 = vmul.f32 %v12985_v24, %v10384_v41  ;;  %v3104_v42 = vadd.f32 1.0, %v5476_v45  ;;  %v3185_v44 = vadd.f32 %v3183_v57, %v3149_v56  ;;  %v3151_v29 = vstv %s10365_s15  ;;  %s5022_s21 = sld [smem:[#allocation14 + $0x402]] }
 0x595   : > { %v2722_v40 = vadd.f32 %v2720_v53, %v2686_v17  ;;  %v12986_v26 = vstv %s9701_s19  ;;  %v2932_v48 = vadd.f32 %v2930_v9, %v2896_v33  ;;  %v12987_v62 = vstv %s12983_s24  ;;  %s10457_s19 = sld [smem:[#allocation15 + $0x1]] }
 0x596   : > { %v2792_v7 = vmul.f32 %v12986_v26, %v10321_v46  ;;  %v3002_v58 = vmul.f32 %v12987_v62, %v10396_v28  ;;  %v10421_v47 = vmul.f32 %v3068_v3, %v10257_v2  ;;  %v3140_v52 = vadd.f32 1.0, %v5478_v32  ;;  %s5027_s14 = sld [smem:[#allocation14 + $0x482]] }
 0x597   : > { %v3083_v45 = vadd.f32 %v3081_v16, %v3047_v11  ;;  %v3117_v57 = vmul.f32 %v3115_v22, %v10263_v18  ;;  %v2758_v56 = vadd.f32 %v2756_v31, %v2722_v40  ;;  %v2828_v17 = vmul.f32 %v2827_v25, %v10328_v20  ;;  %s5032_s15 = sld [smem:[#allocation14 + $0x502]] }
 0x598   : > { %v2968_v53 = vadd.f32 %v2966_v39, %v2932_v48  ;;  %v12988_v9 = vstv %s12935_s0  ;;  %v10433_v24 = vmul.f32 %v3104_v42, %v10274_v10  ;;  %v3176_v2 = vadd.f32 1.0, %v5480_v6  ;;  %s5037_s7 = sld [smem:[#allocation14 + $0x582]] }
 0x599   : > { %v3038_v33 = vmul.f32 %v12988_v9, %v10409_v23  ;;  %v2794_v3 = vadd.f32 %v2792_v7, %v2758_v56  ;;  %v2864_v16 = vmul.f32 %v2863_v34, %v10341_v4  ;;  %v3207_v31 = vadd.f32 %v3205_v21, %v3185_v44  ;;  %s5042_s11 = sld [smem:[#allocation14 + $0x602]] }
 0x59a   : > { %v3004_v32 = vadd.f32 %v3002_v58, %v2968_v53  ;;  %v12989_v25 = vstv %s12940_s17  ;;  %v10444_v39 = vmul.f32 %v3140_v52, %v10283_v36  ;;  %v3119_v40 = vadd.f32 %v3117_v57, %v3083_v45  ;;  %s5047_s9 = sld [smem:[#allocation14 + $0x682]] }
 0x59b   : > { %v3074_v11 = vmul.f32 %v12989_v25, %v10421_v47  ;;  %v3153_v10 = vmul.f32 %v3151_v29, %v10334_v38  ;;  %v2830_v6 = vadd.f32 %v2828_v17, %v2794_v3  ;;  %v2900_v42 = vmul.f32 %v2899_v5, %v10356_v13  ;;  %s5052_s5 = sld [smem:[#allocation14 + $0x702]] }
 0x59c   : > { %v3040_v34 = vadd.f32 %v3038_v33, %v3004_v32  ;;  %v3110_v44 = vmul.f32 %v3109_v60, %v10433_v24  ;;  %v10454_v26 = vmul.f32 %v3176_v2, %v10288_v8  ;;  %v3187_v7 = vstv %s10411_s3  ;;  %s5057_s26 = sld [smem:[#allocation14 + $0x782]] }
 0x59d   : > { %v2866_v36 = vadd.f32 %v2864_v16, %v2830_v6  ;;  %v2936_v48 = vmul.f32 %v2935_v63, %v10363_v49  ;;  %v3146_v5 = vmul.f32 %v3145_v15, %v10444_v39  ;;  %v3155_v58 = vadd.f32 %v3153_v10, %v3119_v40  ;;  %s5060_s24 = sld [smem:[#allocation15 + $0x2]] }
 0x59e   : > { %v3076_v62 = vadd.f32 %v3074_v11, %v3040_v34  ;;  %v3189_v60 = vmul.f32 %v3187_v7, %v10344_v35  ;;  %v2972_v8 = vmul.f32 %v2971_v61, %v10384_v41  ;;  %v3209_v45 = vmul.f32 0.5, %v3207_v31  ;;  %s4983_s3 = sld [smem:[#allocation14 + $0x3]] }
 0x59f   : > { %v2902_v52 = vadd.f32 %v2900_v42, %v2866_v36  ;;  %v3182_v63 = vmul.f32 %v3181_v59, %v10454_v26  ;;  %v12990_v17 = vstv %s10237_s18  ;;  %v12991_v2 = vstv %s10291_s2  ;;  %s12995_s18 = sld [smem:[#allocation308_spill]] }
 0x5a0   : > { %v3112_v57 = vadd.f32 %v3110_v44, %v3076_v62  ;;  %v3008_v15 = vmul.f32 %v12990_v17, %v10396_v28  ;;  %v3191_v9 = vadd.f32 %v3189_v60, %v3155_v58  ;;  %v3044_v3 = vmul.f32 %v12991_v2, %v10409_v23  ;;  %v3252_v58 = vld [vmem:[%s674_s27] sm:$0x1]  ;;  %s12997_s2 = sld [smem:[#allocation38_spill]] }
 0x5a1   : > { %v2938_v56 = vadd.f32 %v2936_v48, %v2902_v52  ;;  %5481 = vtanh.f32 %v3209_v45  ;;  %v3217_v61 = vstv %s10457_s19  ;;  %v12993_v32 = vstv %s10315_s16  ;;  %s4997_s16 = sld [smem:[#allocation14 + $0x182]] }
 0x5a2   : > { %v3148_v53 = vadd.f32 %v3146_v5, %v3112_v57  ;;  %v3080_v25 = vmul.f32 %v12993_v32, %v10421_v47  ;;  %v3219_v11 = vadd.f32 %v3217_v61, %v3191_v9  ;;  %v3116_v10 = vmul.f32 %v3115_v22, %v10433_v24  ;;  %v5156_v57 = vpop.f32.mrf.mxu0  ;;  %s4988_s19 = sld [smem:[#allocation14 + $0x83]] }
 0x5a3   : > { %v2974_v33 = vadd.f32 %v2972_v8, %v2938_v56  ;;  %v3152_v34 = vmul.f32 %v3151_v29, %v10444_v39  ;;  %v3188_v48 = vmul.f32 %v3187_v7, %v10454_v26  ;;  %vm3253_vm2 = vcmp.gt.f32.partialorder %v3252_v58, 0.5  ;;  %s4993_s23 = sld [smem:[#allocation14 + $0x103]] }
 0x5a4   : > { %v3184_v16 = vadd.f32 %v3182_v63, %v3148_v53  ;;  %v3221_v44 = vmul.f32 0.5, %v3219_v11  ;;  %v5796_v56 = vmov 0   ;;  %v3334_v9 = vpop.f32.mrf.mxu0  ;;  %s4998_s4 = sld [smem:[#allocation14 + $0x183]] }
 0x5a5   : > { %v3010_v31 = vadd.f32 %v3008_v15, %v2974_v33  ;;  %v3343_v7 = vsel %vm3253_vm2, 1, %v5796_v56  ;;  %s10516_s17 = scalar_lea.vmem %s12995_s18, %s5114_s12  ;;  %s5003_s30 = sld [smem:[#allocation14 + $0x203]] }
 0x5a6   : > { %v3206_v59 = vadd.f32 %v3205_v21, %v3184_v16  ;;  %v3344_v21 = vlaneseq  ;;  %s5008_s20 = sld [smem:[#allocation14 + $0x283]] }
 0x5a7   : > { %v3046_v40 = vadd.f32 %v3044_v3, %v3010_v31  ;;  %s5013_s27 = sld [smem:[#allocation14 + $0x303]] }
 0x5a8   : > { %v3208_v6 = vmul.f32 0.5, %v3206_v59  ;;  %v3345_v52 = vshrl.u32 %v3344_v21, 7  ;;  %v5166_v59 = vpop.f32.mrf.mxu0  ;;  %s5018_s12 = sld [smem:[#allocation14 + $0x383]] }
 0x5a9   : > { %v3082_v42 = vadd.f32 %v3080_v25, %v3046_v40  ;;  %s5023_s0 = sld [smem:[#allocation14 + $0x403]] }
 0x5aa   : > { %5483 = vtanh.f32 %v3208_v6  ;;  %v3346_v63 = vsub.s32 0, %v3345_v52  ;;  %s5028_s28 = sld [smem:[#allocation14 + $0x483]] }
 0x5ab   : > { %v3118_v36 = vadd.f32 %v3116_v10, %v3082_v42  ;;  %5485 = vtanh.f32 %v3221_v44  ;;  %v3540_v42 = vpop.f32.mrf.mxu0  ;;  %s5033_s18 = sld [smem:[#allocation14 + $0x503]] }
 0x5ac   : > { %v10493_v33 = vrot.slane %v3343_v7, %v3346_v63 }
 0x5ad   : > { %v3154_v62 = vadd.f32 %v3152_v34, %v3118_v36 }
 0x5ae   : > { %v5482_v60 = vpop.eup %5481  ;;  %vm3348_vm3 = vcmp.eq.s32.totalorder %v10493_v33, 1 }
 0x5af   : > { %v3190_v5 = vadd.f32 %v3188_v48, %v3154_v62  ;;  %v3213_v29 = vadd.f32 1.0, %v5482_v60 }
 0x5b1   : > { %v3218_v22 = vadd.f32 %v3217_v61, %v3190_v5  ;;  %v3215_v15 = vmul.f32 %v3213_v29, %v3209_v45 }
 0x5b3   : > { %v3220_v8 = vmul.f32 0.5, %v3218_v22  ;;  %v3340_v16 = vadd.f32 %v5156_v57, %v3215_v15 }
 0x5b5   : > { %5487 = vtanh.f32 %v3220_v8  ;;  %v3350_v45 = vsel %vm3348_vm3, %v3340_v16, -1e+38 }
 0x5b7   : > { %v5484_v17 = vpop.eup %5483 }
 0x5b8   : > { %v3212_v53 = vadd.f32 1.0, %v5484_v17  ;;  %v5486_v3 = vpop.eup %5485 }
 0x5b9   : > { %v3225_v32 = vadd.f32 1.0, %v5486_v3 }
 0x5ba   : > { %v3214_v2 = vmul.f32 %v3212_v53, %v3208_v6  ;;  %v3355_v6 = vsel %vm3351_vm4, %v3350_v45, -inf }
 0x5bb   : > { %v3227_v40 = vmul.f32 %v3225_v32, %v3221_v44 }
 0x5bc   : > { %v3335_v31 = vadd.f32 %v3334_v9, %v3214_v2 }
 0x5bd   : > { %v3546_v36 = vadd.f32 %v5166_v59, %v3227_v40  ;;  %v5074_v59 = vld [vmem:[%s10516_s17 + $0x8] sm:$0xff] }
 0x5be   : > { %v3349_v61 = vsel %vm3348_vm3, %v3335_v31, -1e+38 }
 0x5bf   : > { %v3352_v25 = vsel %vm3351_vm4, %v3349_v61, -inf  ;;  %v3550_v5 = vsel %vm3348_vm3, %v3546_v36, -1e+38 }
 0x5c0   : > { %3353 = vmax.xlane.f32.xlu0 %v3352_v25  ;;  %v3554_v58 = vsel %vm3351_vm4, %v3550_v5, -inf  ;;  %v3374_v25 = vld [vmem:[%s10516_s17] sm:$0xff] }
 0x5c1   : > { %5157 = vmatprep.subr.msk.mxu1 %vm3351_vm4, %v3374_v25 }
 0x5c2   : > { %v5488_v11 = vpop.eup %5487  ;;  %5158 = vmatpush3.xpose.msk.msra.mxu1 %vm3351_vm4, %v3374_v25  ;;  %v2761_v25 = vstv %s4997_s16  ;;  %s5061_s16 = sld [smem:[#allocation15 + $0x3]] }
 0x5c3   : > { %v3224_v10 = vadd.f32 1.0, %v5488_v11  ;;  %5167 = vmatprep.subr.msk.mxu1 %vm3351_vm4, %v5074_v59 }
 0x5c4   : > { %3356 = vmax.xlane.f32.xlu0 %v3355_v6 }
 0x5c5   : > { %v3226_v34 = vmul.f32 %v3224_v10, %v3220_v8 }
 0x5c7   : > { %v3541_v48 = vadd.f32 %v3540_v42, %v3226_v34 }
 0x5c9   : > { %v3549_v62 = vsel %vm3348_vm3, %v3541_v48, -1e+38 }
 0x5ca   : > { %v3551_v21 = vsel %vm3351_vm4, %v3549_v62, -inf }
 0x5cb   : > { %3552 = vmax.xlane.f32.xlu1 %v3551_v21 }
 0x5cf   : > { %3555 = vmax.xlane.f32.xlu1 %v3554_v58  ;;  %v3459_v58 = vld [vmem:[#allocation6] sm:$0xff] }
 0x649   : > { %v3354_v44 = vpop.xlane.xlu0 %3353 }
 0x64a   : > { %v3358_v60 = vsub.f32 %v3349_v61, %v3354_v44  ;;  %v3660_v44 = vld [vmem:[#allocation6 + $0x8] sm:$0xff] }
 0x64b   : > { %5172 = vmatprep.subr.mxu0 %v3660_v44 }
 0x64c   : > { %v3360_v22 = vmul.f32 1.442695, %v3358_v60  ;;  %5173 = vmatpush3.msra.mxu0 %v3660_v44  ;;  %v5084_v60 = vld [vmem:[%s12996_s25 + $0x8] sm:$0xf] }
 0x64d   : > { %v3357_v52 = vpop.xlane.xlu0 %3356  ;;  %5182 = vmatprep.subr.msk.mxu0 %vm3264_vm0, %v5084_v60 }
 0x64e   : > { %5489 = vpow2.f32 %v3360_v22  ;;  %v3359_v8 = vsub.f32 %v3350_v45, %v3357_v52 }
 0x650   : > { %v3362_v29 = vmul.f32 1.442695, %v3359_v8 }
 0x652   : > { %5491 = vpow2.f32 %v3362_v29 }
 0x654   : > { %v3553_v57 = vpop.xlane.xlu1 %3552 }
 0x655   : > { %v3557_v63 = vsub.f32 %v3549_v62, %v3553_v57  ;;  %v5082_v57 = vld [vmem:[%s12997_s2 + $0x20] sm:$0xff] }
 0x657   : > { %v3559_v56 = vmul.f32 1.442695, %v3557_v63  ;;  %v5083_v63 = vld [vmem:[%s12997_s2 + $0x28] sm:$0xff] }
 0x658   : > { %v3556_v7 = vpop.xlane.xlu1 %3555 }
 0x659   : > { %5493 = vpow2.f32 %v3559_v56  ;;  %v3558_v17 = vsub.f32 %v3550_v5, %v3556_v7  ;;  %v2657_v56 = vstv %s4982_s13  ;;  %v2689_v7 = vstv %s4987_s22  ;;  %s5048_s13 = sld [smem:[#allocation14 + $0x683]] }
 0x65a   : > { %s5053_s22 = sld [smem:[#allocation14 + $0x703]] }
 0x65b   : > { %v5490_v15 = vpop.eup %5489  ;;  %v3561_v53 = vmul.f32 1.442695, %v3558_v17  ;;  %v12998_v17 = vld [vmem:[#allocation256_spill] sm:$0xff] }
 0x65c   : > { %v3364_v9 = vsel %vm3351_vm4, %v5490_v15, 0.0 }
 0x65d   : > { %5495 = vpow2.f32 %v3561_v53  ;;  %3365 = vadd.xlane.f32.xlu0 %v3364_v9  ;;  %v12999_v53 = vld [vmem:[#allocation273_spill] sm:$0xff] }
 0x65e   : > { %v2691_v9 = vmul.f32 %v2689_v7, %v12999_v53 }
 0x65f   : > { %v5492_v2 = vpop.eup %5491 }
 0x660   : > { %v3367_v3 = vsel %vm3351_vm4, %v5492_v2, 0.0 }
 0x661   : > { %3368 = vadd.xlane.f32.xlu1 %v3367_v3  ;;  %v2658_v3 = vmul.f32 %v2657_v56, %v10286_v50 }
 0x666   : > { %v5494_v16 = vpop.eup %5493 }
 0x667   : > { %v3563_v31 = vsel %vm3351_vm4, %v5494_v16, 0.0 }
 0x668   : > { %3564 = vadd.xlane.f32.xlu0 %v3563_v31 }
 0x66a   : > { %v5496_v61 = vpop.eup %5495 }
 0x66b   : > { %v3566_v32 = vsel %vm3351_vm4, %v5496_v61, 0.0 }
 0x66c   : > { %3567 = vadd.xlane.f32.xlu1 %v3566_v32 }
 0x6e6   : > { %v3366_v45 = vpop.xlane.xlu0 %3365 }
 0x6e7   : > { %5497 = vrcp.f32 %v3366_v45 }
 0x6ea   : > { %v3369_v11 = vpop.xlane.xlu1 %3368 }
 0x6eb   : > { %5499 = vrcp.f32 %v3369_v11 }
 0x6f1   : > { %v3565_v40 = vpop.xlane.xlu0 %3564 }
 0x6f2   : > { %5501 = vrcp.f32 %v3565_v40  ;;  %v13001_v40 = vld [vmem:[#allocation292_spill] sm:$0xff] }
 0x6f4   : > { %v5498_v10 = vpop.eup %5497 }
 0x6f5   : > { %v3568_v6 = vpop.xlane.xlu1 %3567  ;;  %v3372_v42 = vmul.f32 %v5498_v10, %v5490_v15  ;;  %v2659_v15 = vmul.f32 %v2657_v56, %v12998_v17  ;;  %v2763_v10 = vmul.f32 %v2761_v25, %v13001_v40 }
 0x6f6   : > { %5503 = vrcp.f32 %v3568_v6  ;;  %v2797_v6 = vstv %s5002_s29  ;;  %s13002_s29 = sld [smem:[#allocation35_spill]] }
 0x6f7   : > { %5159 = vmatprep.mubr.msk.f32.mxu1 %vm3351_vm4, %v3372_v42  ;;  %v2693_v31 = vadd.f32 %v2691_v9, %v2659_v15  ;;  %v2941_v9 = vstv %s5022_s21 }
 0x6f8   : > { %v5500_v34 = vpop.eup %5499 }
 0x6f9   : > { %v3373_v36 = vmul.f32 %v5500_v34, %v5492_v2  ;;  %v2725_v2 = vstv %s4992_s6  ;;  %v2762_v34 = vmul.f32 %v2761_v25, %v10312_v19  ;;  %s5058_s6 = sld [smem:[#allocation14 + $0x783]] }
 0x6fa   : > { %v2726_v45 = vmul.f32 %v2725_v2, %v10306_v55 }
 0x6fb   : > { %5160 = vmatmul.mubr.msk.f32.vlgmr.msra.gmra.mxu1 %vm3351_vm4, %v3373_v36 }
 0x6fc   : > { %5168 = vmatpush3.xpose.msk.msra.mxu1 %vm3351_vm4, %v5074_v59  ;;  %s13005_s21 = sshll.u32 %s13002_s29, 4 }
 0x6fd   : > { %5177 = vmatprep.subr.mxu1 %v3459_v58 }
 0x6ff   : > { %v5502_v48 = vpop.eup %5501 }
 0x700   : > { %v3571_v62 = vmul.f32 %v5502_v48, %v5494_v16  ;;  %v2690_v16 = vmul.f32 %v2689_v7, %v10294_v12  ;;  %v2799_v48 = vmul.f32 %v2797_v6, %v9301_v51 }
 0x702   : > { %5169 = vmatprep.mubr.msk.f32.mxu1 %vm3351_vm4, %v3571_v62  ;;  %v2692_v59 = vadd.f32 %v2690_v16, %v2658_v3  ;;  %v2833_v62 = vstv %s5007_s8  ;;  %s13003_s8 = sld [smem:[#allocation28_spill]] }
 0x703   : > { %v5504_v21 = vpop.eup %5503  ;;  %v2835_v44 = vmul.f32 %v2833_v62, %v9321_v54 }
 0x704   : > { %v3572_v5 = vmul.f32 %v5504_v21, %v5496_v61  ;;  %v13000_v61 = vld [vmem:[#allocation241_spill] sm:$0xff]  ;;  %v2728_v42 = vadd.f32 %v2726_v45, %v2692_v59  ;;  %v2942_v59 = vmul.f32 %v2941_v9, %v10363_v49 }
 0x705   : > { %v2727_v32 = vmul.f32 %v2725_v2, %v13000_v61 }
 0x706   : > { %5170 = vmatmul.mubr.msk.f32.vlgmr.msra.gmra.mxu1 %vm3351_vm4, %v3572_v5  ;;  %v2764_v21 = vadd.f32 %v2762_v34, %v2728_v42  ;;  %v2798_v5 = vmul.f32 %v2797_v6, %v10321_v46 }
 0x707   : > { %5178 = vmatpush3.msra.mxu1 %v3459_v58  ;;  %v2729_v11 = vadd.f32 %v2727_v32, %v2693_v31  ;;  %v2943_v31 = vmul.f32 %v2941_v9, %v12952_v0  ;;  %v2977_v32 = vstv %s5027_s14 }
 0x708   : > { %v2978_v42 = vmul.f32 %v2977_v32, %v10384_v41 }
 0x709   : > { %v2765_v36 = vadd.f32 %v2763_v10, %v2729_v11  ;;  %v2979_v11 = vmul.f32 %v2977_v32, %v12956_v43  ;;  %v3013_v10 = vstv %s5032_s15  ;;  %s646_s15 = scalar_lea.vmem [#allocation17], %s13005_s21 }
 0x70b   : > { %v2801_v58 = vadd.f32 %v2799_v48, %v2765_v36  ;;  %v3015_v36 = vmul.f32 %v3013_v10, %v12968_v37  ;;  %v3049_v48 = vstv %s5037_s7  ;;  %s4420_s7 = sshll.u32 %s646_s15, 4  ;;  %s10657_s7 = int_to_ptr.vmem [resolvable:$true] %s4420_s7 }
 0x7bb   : > { %v5161_v22 = vpop.f32.mrf.mxu1 }
 0x7bd   : > { %v3450_v52 = vpop.f32.mrf.mxu1 }
 0x7be   : > { %5179 = vmatprep.mubr.msk.f32.mxu1 %vm3661_vm5, %v3450_v52  ;;  %v2834_v52 = vmul.f32 %v2833_v62, %v10328_v20 }
 0x7bf   : > { %5180 = vmatmul.mubr.msk.f32.vlgmr.msra.gmra.mxu1 %vm3661_vm5, %v5161_v22  ;;  %v2800_v22 = vadd.f32 %v2798_v5, %v2764_v21  ;;  %v3014_v21 = vmul.f32 %v3013_v10, %v10396_v28 }
 0x7c6   : > { %v5171_v8 = vpop.f32.mrf.mxu1 }
 0x7c8   : > { %v3650_v29 = vpop.f32.mrf.mxu1 }
 0x7c9   : > { %5174 = vmatprep.mubr.msk.f32.mxu0 %vm3661_vm5, %v3650_v29 }
 0x7ca   : > { %5175 = vmatmul.mubr.msk.f32.vlgmr.msra.gmra.mxu0 %vm3661_vm5, %v5171_v8  ;;  %v2837_v8 = vadd.f32 %v2835_v44, %v2801_v58  ;;  %v3051_v58 = vmul.f32 %v3049_v48, %v12943_v14  ;;  %v3085_v44 = vstv %s5042_s11  ;;  %s5115_s11 = sshll.u32 %s13003_s8, 8 }
 0x7cb   : > { %5183 = vmatpush3.msk.msra.mxu0 %vm3264_vm0, %v5084_v60  ;;  %5184 = vmatprep.mubr.msk.f32.mxu0 %vm3257_vm1, %v5082_v57  ;;  %v2869_v60 = vstv %s5012_s1  ;;  %v2905_v57 = vstv %s5017_s10  ;;  %s13004_s10 = sld [smem:[#allocation311_spill]] }
 0x7cc   : > { %v2871_v29 = vmul.f32 %v2869_v60, %v9342_v30  ;;  %v2870_v56 = vmul.f32 %v2869_v60, %v10341_v4  ;;  %v2907_v15 = vmul.f32 %v2905_v57, %v12945_v1  ;;  %v2906_v3 = vmul.f32 %v2905_v57, %v10356_v13 }
 0x7ce   : > { %5185 = vmatmul.mubr.msk.f32.vlgmr.msra.gmra.mxu0 %vm3257_vm1, %v5083_v63  ;;  %v2836_v63 = vadd.f32 %v2834_v52, %v2800_v22  ;;  %v2873_v7 = vadd.f32 %v2871_v29, %v2837_v8  ;;  %v3050_v22 = vmul.f32 %v3049_v48, %v10409_v23  ;;  %v3087_v8 = vmul.f32 %v3085_v44, %v10241_v27 }
 0x7cf   : > { %v3121_v29 = vstv %s5047_s9 }
 0x7d0   : > { %v2872_v2 = vadd.f32 %v2870_v56, %v2836_v63  ;;  %v2909_v16 = vadd.f32 %v2907_v15, %v2873_v7  ;;  %v3086_v63 = vmul.f32 %v3085_v44, %v10421_v47  ;;  %v3123_v7 = vmul.f32 %v3121_v29, %v10263_v18 }
 0x7d1   : > { %v3157_v15 = vstv %s5052_s5 }
 0x7d2   : > { %v2908_v25 = vadd.f32 %v2906_v3, %v2872_v2  ;;  %v2945_v45 = vadd.f32 %v2943_v31, %v2909_v16  ;;  %v3122_v2 = vmul.f32 %v3121_v29, %v10433_v24  ;;  %v3159_v16 = vmul.f32 %v3157_v15, %v10334_v38 }
 0x7d3   : > { %v3193_v31 = vstv %s5057_s26  ;;  %s13007_s26 = sld [smem:[#allocation318_spill]] }
 0x7d4   : > { %v2944_v6 = vadd.f32 %v2942_v59, %v2908_v25  ;;  %v2981_v34 = vadd.f32 %v2979_v11, %v2945_v45  ;;  %v3158_v25 = vmul.f32 %v3157_v15, %v10444_v39  ;;  %v3195_v45 = vmul.f32 %v3193_v31, %v10344_v35 }
 0x7d5   : > { %v3194_v10 = vmul.f32 %v3193_v31, %v10454_v26 }
 0x7d6   : > { %v2980_v62 = vadd.f32 %v2978_v42, %v2944_v6  ;;  %v3017_v5 = vadd.f32 %v3015_v36, %v2981_v34  ;;  %v3229_v42 = vstv %s5060_s24 }
 0x7d8   : > { %v3016_v60 = vadd.f32 %v3014_v21, %v2980_v62  ;;  %v3053_v52 = vadd.f32 %v3051_v58, %v3017_v5 }
 0x7d9   : > { %s13008_s24 = smov %s13007_s26 }
 0x7da   : > { %v3052_v57 = vadd.f32 %v3050_v22, %v3016_v60  ;;  %v3089_v56 = vadd.f32 %v3087_v8, %v3053_v52 }
 0x7dc   : > { %v3088_v9 = vadd.f32 %v3086_v63, %v3052_v57  ;;  %v3125_v3 = vadd.f32 %v3123_v7, %v3089_v56 }
 0x7de   : > { %v3124_v32 = vadd.f32 %v3122_v2, %v3088_v9  ;;  %v3161_v59 = vadd.f32 %v3159_v16, %v3125_v3 }
 0x7e0   : > { %v3160_v11 = vadd.f32 %v3158_v25, %v3124_v32  ;;  %v3197_v6 = vadd.f32 %v3195_v45, %v3161_v59 }
 0x7e2   : > { %v3196_v34 = vadd.f32 %v3194_v10, %v3160_v11  ;;  %v3231_v36 = vadd.f32 %v3229_v42, %v3197_v6 }
 0x7e4   : > { %v3230_v48 = vadd.f32 %v3229_v42, %v3196_v34  ;;  %v3233_v62 = vmul.f32 0.5, %v3231_v36 }
 0x7e6   : > { %v3232_v21 = vmul.f32 0.5, %v3230_v48  ;;  %5505 = vtanh.f32 %v3233_v62  ;;  %v5088_v48 = vld [vmem:[%s10516_s17 + $0x10] sm:$0xff] }
 0x7e7   : > { %5187 = vmatprep.subr.msk.mxu1 %vm3351_vm4, %v5088_v48 }
 0x7e8   : > { %5507 = vtanh.f32 %v3232_v21  ;;  %5188 = vmatpush3.xpose.msk.msra.mxu1 %vm3351_vm4, %v5088_v48 }
 0x7f3   : > { %v5506_v5 = vpop.eup %5505 }
 0x7f4   : > { %v3237_v44 = vadd.f32 1.0, %v5506_v5 }
 0x7f5   : > { %v5508_v58 = vpop.eup %5507 }
 0x7f6   : > { %v3236_v60 = vadd.f32 1.0, %v5508_v58  ;;  %v3239_v29 = vmul.f32 %v3237_v44, %v3233_v62  ;;  %v5096_v62 = vld [vmem:[%s12996_s25 + $0xc] sm:$0xf]  ;;  %s5038_s25 = sld [smem:[#allocation14 + $0x583]] }
 0x7f7   : > { %5197 = vmatprep.subr.msk.mxu1 %vm3264_vm0, %v5096_v62 }
 0x7f8   : > { %v3238_v63 = vmul.f32 %v3236_v60, %v3232_v21 }
 0x87f   : > { %v5181_v22 = vpop.f32.mrf.mxu1 }
 0x88a   : > { %v5176_v52 = vpop.f32.mrf.mxu0 }
 0x88b   : > { %v10571_v8 = vadd.f32 %v5181_v22, %v5176_v52  ;;  %v5094_v52 = vld [vmem:[%s12997_s2 + $0x30] sm:$0xff] }
 0x88c   : > { %v10573_v57 = vpop.f32.mrf.mxu0 }
 0x88e   : > { %v5186_v56 = vpop.f32.mrf.mxu0 }
 0x88f   : > { %v3910_v7 = vadd.f32 %v5186_v56, %v3239_v29  ;;  %v5095_v29 = vld [vmem:[%s12997_s2 + $0x38] sm:$0xff]  ;;  %v2661_v56 = vstv %s4983_s3  ;;  %s5043_s2 = sld [smem:[#allocation14 + $0x603]]  ;;  %s10655_s3 = scalar_lea.hbm %s13007_s26, %s5115_s11 }
 0x890   : > { %v3904_v15 = vpop.f32.mrf.mxu0 }
 0x891   : > { %v3905_v9 = vadd.f32 %v3904_v15, %v3238_v63  ;;  %v3914_v2 = vsel %vm3348_vm3, %v3910_v7, -1e+38  ;;  %v4024_v63 = vld [vmem:[#allocation6 + $0x10] sm:$0xff]  ;;  %v2695_v7 = vstv %s4988_s19  ;;  %v2663_v15 = vmul.f32 %v2661_v56, %v12998_v17  ;;  %s4405_s19 = scalar_lea.sflag [#allocation4], %s13002_s29 }
 0x892   : > { %v3918_v3 = vsel %vm3351_vm4, %v3914_v2, -inf  ;;  %5192 = vmatprep.subr.mxu0 %v4024_v63  ;;  %v2803_v17 = vstv %s5003_s30 }
 0x893   : > { %3919 = vmax.xlane.f32.xlu1 %v3918_v3  ;;  %v3913_v16 = vsel %vm3348_vm3, %v3905_v9, -1e+38  ;;  %5193 = vmatpush3.msra.mxu0 %v4024_v63  ;;  %v2697_v9 = vmul.f32 %v2695_v7, %v12999_v53  ;;  %v2662_v3 = vmul.f32 %v2661_v56, %v10286_v50  ;;  %v2805_v50 = vmul.f32 %v2803_v17, %v9301_v51 }
 0x894   : > { %v3915_v31 = vsel %vm3351_vm4, %v3913_v16, -inf }
 0x895   : > { %3916 = vmax.xlane.f32.xlu0 %v3915_v31  ;;  %v2699_v31 = vadd.f32 %v2697_v9, %v2663_v15 }
 0x91c   : > { %v3920_v32 = vpop.xlane.xlu1 %3919 }
 0x91d   : > { %v3922_v25 = vsub.f32 %v3914_v2, %v3920_v32  ;;  %v2731_v2 = vstv %s4993_s23  ;;  %s5682_s23 = scalar_lea.vmem %s10657_s7, 256 }
 0x91e   : > { %v3917_v59 = vpop.xlane.xlu0 %3916  ;;  %v2733_v32 = vmul.f32 %v2731_v2, %v13000_v61  ;;  %v2804_v61 = vmul.f32 %v2803_v17, %v10321_v46  ;;  %v2947_v46 = vstv %s5023_s0  ;;  %p5683_p7 = scmp.ne.s32.totalorder %s10657_s7, %s5682_s23 }
 0x91f   : > { %v3925_v45 = vmul.f32 1.442695, %v3922_v25  ;;  %v3921_v11 = vsub.f32 %v3913_v16, %v3917_v59  ;;  %v2696_v16 = vmul.f32 %v2695_v7, %v10294_v12  ;;  %v2767_v25 = vstv %s4998_s4  ;;  %s5797_s4 = smov [#allocation17]  }
 0x920   : > { %v2839_v12 = vstv %s5008_s20  ;;  %p5684_p8 = pnand %p5683_p7, %p6017_p0  ;;  %s5686_s30 = sshll.u32 %s5797_s4, 4  ;;  %s5687_s30 = int_to_ptr.vmem [resolvable:$false] %s5686_s30 }
 0x921   : > { %5509 = vpow2.f32 %v3925_v45  ;;  %v3923_v10 = vmul.f32 1.442695, %v3921_v11  ;;  %v2698_v59 = vadd.f32 %v2696_v16, %v2662_v3  ;;  %v2732_v45 = vmul.f32 %v2731_v2, %v10306_v55  ;;  %s5688_s20 = scalar_lea.vmem %s5687_s30, 512  ;;  %p5689_p10 = scmp.lt.s32.totalorder %s10657_s7, %s5687_s30 }
 0x922   : > { %v2735_v11 = vadd.f32 %v2733_v32, %v2699_v31  ;;  %v2841_v48 = vmul.f32 %v2839_v12, %v9321_v54  ;;  %v2875_v55 = vstv %s5013_s27  ;;  %p5685_p9 = pneg %p5684_p8  ;;  %p5690_p11 = scmp.lt.s32.totalorder %s5688_s20, %s5682_s23 }
 0x923   : > { %5511 = vpow2.f32 %v3923_v10  ;;  %v2769_v10 = vmul.f32 %v2767_v25, %v13001_v40  ;;  %v2734_v53 = vadd.f32 %v2732_v45, %v2698_v59  ;;  %v2840_v40 = vmul.f32 %v2839_v12, %v10328_v20 }
 0x924   : > { %v2876_v51 = vmul.f32 %v2875_v55, %v10341_v4  ;;  %v2983_v20 = vstv %s5028_s28  ;;  %v3019_v4 = vstv %s5033_s18  ;;  %p5691_p1 = por %p5690_p11, %p5689_p10 }
 0x925   : > { %v2985_v7 = vmul.f32 %v2983_v20, %v12956_v43  ;;  %v3021_v2 = vmul.f32 %v3019_v4, %v12968_v37 }
 0x926   : > { %p5692_p3 = pnand %p5691_p1, %p5685_p9 }
 0x92e   : > { %v5510_v6 = vpop.eup %5509 }
 0x92f   : > { %v3930_v42 = vsel %vm3351_vm4, %v5510_v6, 0.0 }
 0x930   : > { %v5512_v34 = vpop.eup %5511  ;;  %3931 = vadd.xlane.f32.xlu1 %v3930_v42  ;;  %v2771_v42 = vadd.f32 %v2769_v10, %v2735_v11 }
 0x931   : > { %v3927_v36 = vsel %vm3351_vm4, %v5512_v34, 0.0 }
 0x932   : > { %3928 = vadd.xlane.f32.xlu0 %v3927_v36  ;;  %v2807_v36 = vadd.f32 %v2805_v50, %v2771_v42  ;;  %v3199_v42 = vstv %s5058_s6 }
 0x933   : > { %v3201_v12 = vmul.f32 %v3199_v42, %v10344_v35 }
 0x9b9   : > { %v3932_v21 = vpop.xlane.xlu1 %3931 }
 0x9ba   : > { %5513 = vrcp.f32 %v3932_v21  ;;  %v2843_v21 = vadd.f32 %v2841_v48, %v2807_v36 }
 0x9bb   : > { %v3929_v5 = vpop.xlane.xlu0 %3928 }
 0x9bc   : > { %5515 = vrcp.f32 %v3929_v5  ;;  %v2877_v5 = vmul.f32 %v2875_v55, %v9342_v30  ;;  %v2948_v30 = vmul.f32 %v2947_v46, %v10363_v49  ;;  %v3091_v49 = vstv %s5043_s2 }
 0x9bd   : > { %v3093_v59 = vmul.f32 %v3091_v49, %v10241_v27  ;;  %v3092_v37 = vmul.f32 %v3091_v49, %v10421_v47  ;;  %v3200_v47 = vmul.f32 %v3199_v42, %v10454_v26 }
 0x9c7   : > { %v5514_v58 = vpop.eup %5513 }
 0x9c8   : > { %v3936_v22 = vmul.f32 %v5514_v58, %v5510_v6  ;;  %v2768_v6 = vmul.f32 %v2767_v25, %v10312_v19  ;;  %v2911_v19 = vstv %s5018_s12 }
 0x9c9   : > { %v5516_v44 = vpop.eup %5515  ;;  %v2912_v54 = vmul.f32 %v2911_v19, %v10356_v13  ;;  %v3055_v13 = vstv %s5038_s25 }
 0x9ca   : > { %v3935_v60 = vmul.f32 %v5516_v44, %v5512_v34  ;;  %v2770_v34 = vadd.f32 %v2768_v6, %v2734_v53  ;;  %v2879_v44 = vadd.f32 %v2877_v5, %v2843_v21  ;;  %v3057_v31 = vmul.f32 %v3055_v13, %v12943_v14  ;;  %v3815_v5 = vpop.f32.mrf.mxu1 }
 0x9cb   : > { %v3056_v43 = vmul.f32 %v3055_v13, %v10409_v23  ;;  %v4308_v13 = vld [vmem:[#allocation6 + $0x18] sm:$0xff] }
 0x9cc   : > { %5189 = vmatprep.mubr.msk.f32.mxu1 %vm3351_vm4, %v3935_v60  ;;  %v2913_v60 = vmul.f32 %v2911_v19, %v12945_v1  ;;  %v2984_v1 = vmul.f32 %v2983_v20, %v10384_v41  ;;  %v3127_v41 = vstv %s5048_s13 }
 0x9cd   : > { %5190 = vmatmul.mubr.msk.f32.vlgmr.msra.gmra.mxu1 %vm3351_vm4, %v3936_v22  ;;  %v3129_v10 = vmul.f32 %v3127_v41, %v10263_v18  ;;  %v3128_v14 = vmul.f32 %v3127_v41, %v10433_v24  ;;  %v3241_v18 = vstv %s5061_s16 }
 0x9ce   : > { %5198 = vmatpush3.msk.msra.mxu1 %vm3264_vm0, %v5096_v62  ;;  %5199 = vmatprep.mubr.msk.f32.mxu1 %vm3257_vm1, %v5094_v52  ;;  %v2806_v62 = vadd.f32 %v2804_v61, %v2770_v34  ;;  %v2915_v52 = vadd.f32 %v2913_v60, %v2879_v44 }
 0x9cf   : > { %5207 = vmatprep.subr.mxu1 %v4308_v13 }
 0x9d0   : > { %v2842_v58 = vadd.f32 %v2840_v40, %v2806_v62 }
 0x9d1   : > { %5200 = vmatmul.mubr.msk.f32.vlgmr.msra.gmra.mxu1 %vm3257_vm1, %v5095_v29  ;;  %v2949_v29 = vmul.f32 %v2947_v46, %v12952_v0  ;;  %v3020_v0 = vmul.f32 %v3019_v4, %v10396_v28  ;;  %v3163_v28 = vstv %s5053_s22 }
 0x9d2   : > { %v2878_v22 = vadd.f32 %v2876_v51, %v2842_v58  ;;  %v3165_v6 = vmul.f32 %v3163_v28, %v10334_v38  ;;  %v3164_v27 = vmul.f32 %v3163_v28, %v10444_v39  ;;  %5208 = vmatpush3.msra.mxu1 %v4308_v13 }
 0x9d3   : > { %v2951_v56 = vadd.f32 %v2949_v29, %v2915_v52 }
 0x9d4   : > { %v2914_v63 = vadd.f32 %v2912_v54, %v2878_v22 }
 0x9d5   : > { %v2987_v9 = vadd.f32 %v2985_v7, %v2951_v56 }
 0x9d6   : > { %v2950_v15 = vadd.f32 %v2948_v30, %v2914_v63 }
 0x9d7   : > { %v3023_v16 = vadd.f32 %v3021_v2, %v2987_v9  ;;  %v5100_v2 = vld [vmem:[%s10516_s17 + $0x18] sm:$0xff] }
 0x9d8   : > { %v2986_v3 = vadd.f32 %v2984_v1, %v2950_v15  ;;  %5202 = vmatprep.subr.msk.mxu0 %vm3351_vm4, %v5100_v2 }
 0x9d9   : > { %v3059_v25 = vadd.f32 %v3057_v31, %v3023_v16 }
 0x9da   : > { %v3022_v32 = vadd.f32 %v3020_v0, %v2986_v3 }
 0x9db   : > { %v3095_v11 = vadd.f32 %v3093_v59, %v3059_v25 }
 0x9dc   : > { %v3058_v45 = vadd.f32 %v3056_v43, %v3022_v32 }
 0x9dd   : > { %v3131_v53 = vadd.f32 %v3129_v10, %v3095_v11  ;;  %v5106_v11 = vld [vmem:[%s13004_s10] ss:$0 sm:$0xff] }
 0x9de   : > { %v3094_v17 = vadd.f32 %v3092_v37, %v3058_v45 }
 0x9df   : > { %v3167_v50 = vadd.f32 %v3165_v6, %v3131_v53 }
 0x9e0   : > { %v3130_v23 = vadd.f32 %v3128_v14, %v3094_v17 }
 0x9e1   : > { %v3203_v61 = vadd.f32 %v3201_v12, %v3167_v50 }
 0x9e2   : > { %v3166_v34 = vadd.f32 %v3164_v27, %v3130_v23 }
 0x9e3   : > { %v3243_v48 = vadd.f32 %v3241_v18, %v3203_v61 }
 0x9e4   : > { %v3202_v36 = vadd.f32 %v3200_v47, %v3166_v34 }
 0x9e5   : > { %v3245_v24 = vmul.f32 0.5, %v3243_v48 }
 0x9e6   : > { %v3242_v55 = vadd.f32 %v3241_v18, %v3202_v36 }
 0x9e7   : > { %5517 = vtanh.f32 %v3245_v24 }
 0x9e8   : > { %v3244_v62 = vmul.f32 0.5, %v3242_v55 }
 0x9ea   : > { %5519 = vtanh.f32 %v3244_v62 }
 0x9f4   : > { %v5518_v38 = vpop.eup %5517 }
 0x9f5   : > { %v3249_v21 = vadd.f32 1.0, %v5518_v38 }
 0x9f7   : > { %v5520_v40 = vpop.eup %5519  ;;  %v3251_v58 = vmul.f32 %v3249_v21, %v3245_v24 }
 0x9f8   : > { %v3248_v39 = vadd.f32 1.0, %v5520_v40 }
 0x9fa   : > { %v3250_v26 = vmul.f32 %v3248_v39, %v3244_v62 }
 0xa8d   : > { %v5191_v19 = vpop.f32.mrf.mxu1 }
 0xa8f   : > { %v4014_v35 = vpop.f32.mrf.mxu1 }
 0xa90   : > { %5194 = vmatprep.mubr.msk.f32.mxu0 %vm3661_vm5, %v4014_v35 }
 0xa91   : > { %5195 = vmatmul.mubr.msk.f32.vlgmr.msra.gmra.mxu0 %vm3661_vm5, %v5191_v19  ;;  %v5201_v51 = vpop.f32.mrf.mxu1 }
 0xa92   : > { %v4194_v44 = vadd.f32 %v5201_v51, %v3251_v58  ;;  %5203 = vmatpush3.xpose.msk.msra.mxu0 %vm3351_vm4, %v5100_v2 }
 0xa93   : > { %v4188_v60 = vpop.f32.mrf.mxu1 }
 0xa94   : > { %v4189_v46 = vadd.f32 %v4188_v60, %v3250_v26  ;;  %v4198_v22 = vsel %vm3348_vm3, %v4194_v44, -1e+38 }
 0xa95   : > { %v4202_v54 = vsel %vm3351_vm4, %v4198_v22, -inf }
 0xa96   : > { %4203 = vmax.xlane.f32.xlu1 %v4202_v54  ;;  %v4197_v52 = vsel %vm3348_vm3, %v4189_v46, -1e+38 }
 0xa97   : > { %v4199_v29 = vsel %vm3351_vm4, %v4197_v52, -inf }
 0xa98   : > { %4200 = vmax.xlane.f32.xlu0 %v4199_v29 }
 0xb1f   : > { %v4204_v20 = vpop.xlane.xlu1 %4203 }
 0xb20   : > { %v4206_v63 = vsub.f32 %v4198_v22, %v4204_v20 }
 0xb21   : > { %v4201_v30 = vpop.xlane.xlu0 %4200 }
 0xb22   : > { %v4209_v56 = vmul.f32 1.442695, %v4206_v63  ;;  %v4205_v7 = vsub.f32 %v4197_v52, %v4201_v30 }
 0xb24   : > { %5521 = vpow2.f32 %v4209_v56  ;;  %v4207_v4 = vmul.f32 1.442695, %v4205_v7 }
 0xb26   : > { %5523 = vpow2.f32 %v4207_v4 }
 0xb31   : > { %v5522_v15 = vpop.eup %5521 }
 0xb32   : > { %v4214_v1 = vsel %vm3351_vm4, %v5522_v15, 0.0 }
 0xb33   : > { %v5524_v9 = vpop.eup %5523  ;;  %4215 = vadd.xlane.f32.xlu1 %v4214_v1 }
 0xb34   : > { %v4211_v33 = vsel %vm3351_vm4, %v5524_v9, 0.0 }
 0xb35   : > { %4212 = vadd.xlane.f32.xlu0 %v4211_v33 }
 0xb51   : > { %v5196_v3 = vpop.f32.mrf.mxu0 }
 0xb52   : > { %v4107_v0 = vadd.f32 %v5196_v3, %v10571_v8  ;;  %v3816_v8 = vadd.f32 %v3815_v5, %v10573_v57 }
 0xb53   : > { %v4097_v59 = vpop.f32.mrf.mxu0 }
 0xb54   : > { %v4106_v10 = vadd.f32 %v4097_v59, %v3816_v8 }
 0xbbc   : > { %v4216_v16 = vpop.xlane.xlu1 %4215 }
 0xbbd   : > { %5525 = vrcp.f32 %v4216_v16 }
 0xbbe   : > { %v4213_v31 = vpop.xlane.xlu0 %4212 }
 0xbbf   : > { %5527 = vrcp.f32 %v4213_v31 }
 0xbca   : > { %v5526_v49 = vpop.eup %5525 }
 0xbcb   : > { %v4220_v25 = vmul.f32 %v5526_v49, %v5522_v15 }
 0xbcc   : > { %v5528_v32 = vpop.eup %5527 }
 0xbcd   : > { %v4219_v43 = vmul.f32 %v5528_v32, %v5524_v9 }
 0xbcf   : > { %5204 = vmatprep.mubr.msk.f32.mxu0 %vm3351_vm4, %v4219_v43 }
 0xbd0   : > { %5205 = vmatmul.mubr.msk.f32.vlgmr.msra.gmra.mxu0 %vm3351_vm4, %v4220_v25 }
 0xc90   : > { %v5206_v41 = vpop.f32.mrf.mxu0 }
 0xc92   : > { %v4298_v45 = vpop.f32.mrf.mxu0 }
 0xc93   : > { %5209 = vmatprep.mubr.msk.f32.mxu1 %vm3661_vm5, %v4298_v45 }
 0xc94   : > { %5210 = vmatmul.mubr.msk.f32.vlgmr.msra.gmra.mxu1 %vm3661_vm5, %v5206_v41 }
 0xd54   : > { %v5211_v37 = vpop.f32.mrf.mxu1 }
 0xd55   : > { %v4391_v28 = vadd.f32 %v5211_v37, %v4107_v0 }
 0xd56   : > { %v4381_v17 = vpop.f32.mrf.mxu1 }
 0xd57   : > { %v4400_v14 = vadd.f32 %v5106_v11, %v4391_v28  ;;  %v4390_v53 = vadd.f32 %v4381_v17, %v4106_v10 }
 0xd59   : > { %4403 = vst.msk [vmem:[%s646_s15 + $0x8] sm:$0xff] %vm4401_vm6, %v4400_v14  ;;  %v4399_v57 = vadd.f32 %v5106_v11, %v4390_v53 }
 0xd5b   : > { %4402 = vst.msk [vmem:[%s646_s15] sm:$0xff] %vm4401_vm6, %v4399_v57 }
 0xd5c   : > { %5695 = shalt.err (!%p5692_p3)
}
 0xd5d   : > { %s5696_s27 = scalar_lea.hbm %s10655_s3, 256  ;;  %s5700_s28 = scalar_lea.hbm %s13008_s24, 512 }
 0xd5e   : > { %p5697_p4 = scmp.ne.s32.totalorder %s10655_s3, %s5696_s27  ;;  %p5701_p2 = scmp.lt.s32.totalorder %s10655_s3, %s13008_s24 }
 0xd5f   : > { %p5702_p6 = scmp.lt.s32.totalorder %s5700_s28, %s5696_s27 }
 0xd60   : > { %p5698_p13 = pnand %p5697_p4, %p6017_p0 }
 0xd61   : > { %p5703_p7 = por %p5702_p6, %p5701_p2 }
 0xd62   : > { %p5699_p12 = pneg %p5698_p13 }
 0xd64   : > { %p5704_p8 = pnand %p5703_p7, %p5699_p12 }
 0xd66   : > { %5707 = shalt.err (!%p5704_p8)
}
 0xd67   : > { %s5798_s2 = smov 128   ;;  %s5799_s13 = smov 8  }
 0xd68   : > { %5243 = dma.vmem_to_hbm [thread:$0]  (%p6017_p0), %s10657_s7, 256, %s10655_s3, %s4405_s19, %s5798_s2, %s5798_s2, %s5799_s13  }
 0xd69 PF: > { %s13009_s22 = sld [smem:[#allocation25_spill]] }
 0xd6a   : > { %s13011_s16 = sld [smem:[#allocation30_spill]] }
 0xd6f   : > { %s4435_s8 = sand.u32 1, %s13009_s22  }
 0xd70   : > { %p13012_p9 = scmp.ge.s32.totalorder %s13011_s16, 2  ;;  %s4436_s17 = scalar_lea.sflag [#allocation4], %s4435_s8 }
 0xd72   : > { %p5272_p10 = pnand %p13012_p9, %p6025_p5 }
 0xd74   : > { %p5273_p11 = pneg %p5272_p10 }
 0xd76   : > { %5757 = dma.done.wait (%p5273_p11), %s4436_s17, 256  }
 0xd77   : > { %5759 = vsyncadd (%p5273_p11), %s4436_s17, 4294967040  ;;  %s34_s30 = sadd.s32 1, %s13011_s16   ;;  %s13013_s25 = sld [smem:[#allocation26_spill]] }
 0xd78   : > { %p31_p1 = scmp.ge.s32.totalorder %s34_s30, 4   ;;  %s13014_s26 = sld [smem:[#allocation27_spill]] }
 0xd79   : > { %s13015_s27 = sld [smem:[#allocation33_spill]] }
 0xd7a   : > { %s13016_s28 = sld [smem:[#allocation29_spill]]  ;;  %33 = sbr.rel (!%p31_p1) target bundleno = 26 (0x1a), region = 172 }
 0xd7b   : > { %s13017_s29 = sld [smem:[#allocation31_spill]] }
 0xd7f   :  { %4441 = vsyncpa [#allocation3], 1 }
 0xd80   :  { %4443 = vsyncpa [#allocation3 + $0x1], 1 }
 0xd81   :  { %4444 = vsyncpa [#allocation7], 1 }
 0xd82   :  { %4445 = vsyncpa [#allocation4], 1 }
 0xd83   :  { %4447 = vsyncpa [#allocation4 + $0x1], 1 }
 0xd84   :  { %4448 = vsyncpa [#allocation5], 1 }
 0xd85   :  { %4450 = vsyncpa [#allocation5 + $0x1], 1 }
 0xd86   :  { %4451 = vsyncpa [#allocation10], 1 }
 0xd87   :  { %4452 = vsyncpa [#allocation13], 1 }
 0xd88   :  { %4453 = vsyncpa [#allocation16], 1 }

</bundles_post_ra>
